<compile_context>
chip_gen: v7x
topology: tpu7x:2x2x1
jax: 0.10.0
libtpu: 0.0.40
codegen_flags: <defaults>
</compile_context>

<pallas_src>
import functools

import numpy as np

import jax
import jax.numpy as jnp
from jax import lax
from jax.experimental import pallas as pl
from jax.experimental.pallas import tpu as pltpu

EPS = 1e-5


def _round_up(x, m):
    return ((x + m - 1) // m) * m


# ----------------------------------------------------------------------------------
# Host-precomputed constants (built at trace time, resident in VMEM via constant
# index_maps).
# ----------------------------------------------------------------------------------

def _im2col3x3(x_nhwc):
    """(N, H, W, C) -> (N*H*W, 9*C) im2col with zero 'same' padding (tap-major order)."""
    N, H, W, C = x_nhwc.shape
    xp = jnp.pad(x_nhwc, ((0, 0), (1, 1), (1, 1), (0, 0)))
    taps = [xp[:, ky:ky + H, kx:kx + W, :] for ky in range(3) for kx in range(3)]
    return jnp.stack(taps, axis=3).reshape(N * H * W, 9 * C)


def _pool_sel_compact(H, W):
    """One-hot (R_out, H*W): picks the 2x2 window-top (2y,2x) of a compact (H*W) slab
    and places it at the zero-padded pitched position of the half-resolution image."""
    Ho, Wo = H // 2, W // 2
    pitch = Wo + 2
    R = _round_up((Ho + 2) * pitch, 8)
    S = np.zeros((R, H * W), np.float32)
    for yo in range(Ho):
        for xo in range(Wo):
            S[(yo + 1) * pitch + (xo + 1), (2 * yo) * W + 2 * xo] = 1.0
    return S


def _pool_sel_pitched(Hi, Wi):
    """Same as above but the input slab is itself in pitched (Wi+2) layout."""
    pi = Wi + 2
    Ri = _round_up((Hi + 2) * pi, 8)
    Ho, Wo = Hi // 2, Wi // 2
    po = Wo + 2
    Ro = _round_up((Ho + 2) * po, 8)
    S = np.zeros((Ro, Ri), np.float32)
    for yo in range(Ho):
        for xo in range(Wo):
            S[(yo + 1) * po + (xo + 1), (2 * yo + 1) * pi + (2 * xo + 1)] = 1.0
    return S


def _gap_matrix(H3, W3, B):
    """(Bp, B*R3) masked global-average-pool weights: row b averages the H3*W3 valid
    positions of image b's pitched conv3-output slab; padded rows (b >= B) are zero."""
    p3 = W3 + 2
    R3 = _round_up((H3 + 2) * p3, 8)
    Bp = _round_up(B, 8)
    G = np.zeros((Bp, B * R3), np.float32)
    w = 1.0 / (H3 * W3)
    for b in range(B):
        for y in range(H3):
            for x in range(W3):
                G[b, b * R3 + (y + 1) * p3 + (x + 1)] = w
    return G


# ----------------------------------------------------------------------------------
# Fused kernel: conv1(im2col) -> pool1 -> conv2 -> pool2 -> conv3 -> GAP -> FC1 -> FC2
# for one block of B images.  All activations stay in VMEM scratch / values.
# ----------------------------------------------------------------------------------

def _fused_cnn_kernel(x1_ref, w1_ref, s1_ref, t1_ref,
                      w2_ref, s2_ref, t2_ref,
                      w3_ref, s3_ref, t3_ref,
                      sel1_ref, sel2_ref, gsel_ref,
                      wf1_ref, bf1_ref, wf2_ref, bf2_ref,
                      out_ref,
                      y1_ref, a1_ref, y2_ref, a2_ref,
                      *, B, H, W):
    H2, W2 = H // 2, W // 2
    H3, W3 = H2 // 2, W2 // 2
    P1 = H * W
    p2, p3 = W2 + 2, W3 + 2
    R2 = _round_up((H2 + 2) * p2, 8)
    R3 = _round_up((H3 + 2) * p3, 8)
    M2, M3 = B * R2, B * R3
    GY1 = y1_ref.shape[0] - B * P1
    G2 = (a1_ref.shape[0] - M2) // 2
    GY2 = y2_ref.shape[0] - M2
    G3 = (a2_ref.shape[0] - M3) // 2
    C1 = w1_ref.shape[1]
    C2 = w2_ref.shape[2]
    C3 = w3_ref.shape[2]

    # ---- zero only the tiny guard bands (~15 KB); interiors are overwritten below.
    # (done every step so it is safe under megacore "parallel" grid splitting)
    y1_ref[pl.ds(B * P1, GY1), :] = jnp.zeros((GY1, C1), y1_ref.dtype)
    a1_ref[pl.ds(0, G2), :] = jnp.zeros((G2, C1), a1_ref.dtype)
    a1_ref[pl.ds(G2 + M2, G2), :] = jnp.zeros((G2, C1), a1_ref.dtype)
    y2_ref[pl.ds(M2, GY2), :] = jnp.zeros((GY2, C2), y2_ref.dtype)
    a2_ref[pl.ds(0, G3), :] = jnp.zeros((G3, C2), a2_ref.dtype)
    a2_ref[pl.ds(G3 + M3, G3), :] = jnp.zeros((G3, C2), a2_ref.dtype)

    # ---- stage 1: conv(3->32) as ONE K=27 matmul (host im2col) + folded BN + ReLU ----
    y1 = jnp.dot(x1_ref[...], w1_ref[...], preferred_element_type=jnp.float32)
    y1 = jnp.maximum(y1 * s1_ref[...] + t1_ref[...], 0.0)            # (B*P1, 32) f32
    y1_ref[pl.ds(0, B * P1), :] = y1

    # ---- pool1: 2x2 window max via shifted views, then a one-hot selection matmul
    #      writes the stride-2 result straight into conv2's zero-padded pitched slab ----
    v1 = jnp.maximum(jnp.maximum(y1, y1_ref[pl.ds(1, B * P1), :]),
                     jnp.maximum(y1_ref[pl.ds(W, B * P1), :],
                                 y1_ref[pl.ds(W + 1, B * P1), :]))
    v1 = v1.astype(jnp.bfloat16)
    sel1 = sel1_ref[...]
    for b in range(B):
        a1b = jnp.dot(sel1, v1[b * P1:(b + 1) * P1, :],
                      preferred_element_type=jnp.float32)             # exact (one-hot)
        a1_ref[pl.ds(G2 + b * R2, R2), :] = a1b

    # ---- stage 2: conv(32->64): 9 tap matmuls over the pitched slab, no masking ----
    acc2 = jnp.zeros((M2, C2), jnp.float32)
    for ky in range(3):
        for kx in range(3):
            off = (ky - 1) * p2 + (kx - 1)
            xs = a1_ref[pl.ds(G2 + off, M2), :].astype(jnp.bfloat16)
            acc2 = acc2 + jnp.dot(xs, w2_ref[3 * ky + kx],
                                  preferred_element_type=jnp.float32)
    y2 = jnp.maximum(acc2 * s2_ref[...] + t2_ref[...], 0.0)           # (B*R2, 64) f32
    y2_ref[pl.ds(0, M2), :] = y2

    # ---- pool2 (same scheme) ----
    v2 = jnp.maximum(jnp.maximum(y2, y2_ref[pl.ds(1, M2), :]),
                     jnp.maximum(y2_ref[pl.ds(p2, M2), :],
                                 y2_ref[pl.ds(p2 + 1, M2), :]))
    v2 = v2.astype(jnp.bfloat16)
    sel2 = sel2_ref[...]
    for b in range(B):
        a2b = jnp.dot(sel2, v2[b * R2:(b + 1) * R2, :],
                      preferred_element_type=jnp.float32)
        a2_ref[pl.ds(G3 + b * R3, R3), :] = a2b

    # ---- stage 3: conv(64->128): 9 tap matmuls + BN + ReLU ----
    acc3 = jnp.zeros((M3, C3), jnp.float32)
    for ky in range(3):
        for kx in range(3):
            off = (ky - 1) * p3 + (kx - 1)
            xs = a2_ref[pl.ds(G3 + off, M3), :].astype(jnp.bfloat16)
            acc3 = acc3 + jnp.dot(xs, w3_ref[3 * ky + kx],
                                  preferred_element_type=jnp.float32)
    y3 = jnp.maximum(acc3 * s3_ref[...] + t3_ref[...], 0.0)           # (B*R3, 128) f32

    # ---- head: masked GAP (one matmul for the whole block) + FC1 + ReLU + FC2 ----
    feat = jnp.dot(gsel_ref[...], y3, preferred_element_type=jnp.float32)   # (Bp, 128)
    h = jnp.dot(feat.astype(jnp.bfloat16), wf1_ref[...],
                preferred_element_type=jnp.float32) + bf1_ref[...]
    h = jnp.maximum(h, 0.0)
    # TODO(synk): Dropout(0.3) is inference-mode identity here; training-time stochastic
    # dropout (and BatchNorm batch statistics) are not implemented.
    logits = jnp.dot(h.astype(jnp.bfloat16), wf2_ref[...],
                     preferred_element_type=jnp.float32) + bf2_ref[...]     # (Bp, 128)
    out_ref[0] = logits                                               # lane-dense store


# ----------------------------------------------------------------------------------
# Host-side wrappers
# ----------------------------------------------------------------------------------

def fused_forward(kp, x_nchw, *, block_b=None):
    """kp: kernel-ready params (prepare_params); x_nchw: (N, 3, H, W) like PyTorch."""
    N, C, H, W = x_nchw.shape
    assert H % 4 == 0 and W % 4 == 0, "two 2x2 max-pools require H, W divisible by 4"
    if block_b is None:
        block_b = next(b for b in (8, 4, 2, 1) if N % b == 0)
    B = block_b
    assert N % B == 0, "batch must be divisible by the per-step image block"
    NB = N // B
    Bp = _round_up(B, 8)

    H2, W2 = H // 2, W // 2
    H3, W3 = H2 // 2, W2 // 2
    P1 = H * W
    p2, p3 = W2 + 2, W3 + 2
    R2 = _round_up((H2 + 2) * p2, 8)
    R3 = _round_up((H3 + 2) * p3, 8)
    GY1 = _round_up(W + 2, 8)
    G2 = _round_up(p2 + 2, 8)
    GY2 = _round_up(p2 + 2, 8)
    G3 = _round_up(p3 + 2, 8)

    C1 = kp["w1"].shape[1]
    C2 = kp["w2"].shape[2]
    FOUT = kp["wf2"].shape[1]

    # Host preprocessing: NCHW -> NHWC, 3x3 im2col of the raw input (zero 'same' pad).
    x_nhwc = jnp.transpose(x_nchw, (0, 2, 3, 1)).astype(jnp.float32)
    x1 = _im2col3x3(x_nhwc).astype(jnp.bfloat16)                      # (N*P1, 9*C)

    # Resident constants (stride-2 pool selection, masked GAP weights).
    sel1 = jnp.asarray(_pool_sel_compact(H, W), jnp.bfloat16)         # (R2, P1)
    sel2 = jnp.asarray(_pool_sel_pitched(H2, W2), jnp.bfloat16)       # (R3, R2)
    gsel = jnp.asarray(_gap_matrix(H3, W3, B), jnp.float32)           # (Bp, B*R3)

    def full(arr):
        return pl.BlockSpec(arr.shape, lambda i, _nd=arr.ndim: (0,) * _nd)

    out = pl.pallas_call(
        functools.partial(_fused_cnn_kernel, B=B, H=H, W=W),
        grid=(NB,),
        in_specs=[
            pl.BlockSpec((B * P1, 9 * C), lambda i: (i, 0)),          # B images per step
            full(kp["w1"]), full(kp["s1"]), full(kp["t1"]),
            full(kp["w2"]), full(kp["s2"]), full(kp["t2"]),
            full(kp["w3"]), full(kp["s3"]), full(kp["t3"]),
            full(sel1), full(sel2), full(gsel),
            full(kp["wf1"]), full(kp["bf1"]), full(kp["wf2"]), full(kp["bf2"]),
        ],
        out_specs=pl.BlockSpec((1, Bp, FOUT), lambda i: (i, 0, 0)),
        out_shape=jax.ShapeDtypeStruct((NB, Bp, FOUT), jnp.float32),
        scratch_shapes=[
            pltpu.VMEM((B * P1 + GY1, C1), jnp.float32),              # conv1 out (pool1 views)
            pltpu.VMEM((G2 + B * R2 + G2, C1), jnp.float32),          # conv2 in, pitched+padded
            pltpu.VMEM((B * R2 + GY2, C2), jnp.float32),              # conv2 out (pool2 views)
            pltpu.VMEM((G3 + B * R3 + G3, C2), jnp.float32),          # conv3 in, pitched+padded
        ],
        compiler_params=pltpu.CompilerParams(
            dimension_semantics=("parallel",),        # v7x: blocks split across 2 TCs
            vmem_limit_bytes=32 * 1024 * 1024,        # explicit budget, fits v7x's 64 MiB
        ),
    )(x1, kp["w1"], kp["s1"], kp["t1"], kp["w2"], kp["s2"], kp["t2"],
      kp["w3"], kp["s3"], kp["t3"], sel1, sel2, gsel,
      kp["wf1"], kp["bf1"], kp["wf2"], kp["bf2"])

    return out[:, :B, :2].reshape(N, 2)                               # (N, 2) logits


def init_params(key):
    """Raw parameters mirroring the PyTorch module (eval mode: BN uses running stats)."""
    ks = jax.random.split(key, 5)

    def conv_block(k, cin, cout):
        kw, kb, kg, kbe, km, kv = jax.random.split(k, 6)
        return dict(
            w=jax.random.normal(kw, (3, 3, cin, cout), jnp.float32) / jnp.sqrt(9.0 * cin),
            b=0.05 * jax.random.normal(kb, (cout,), jnp.float32),
            gamma=1.0 + 0.1 * jax.random.normal(kg, (cout,), jnp.float32),
            beta=0.1 * jax.random.normal(kbe, (cout,), jnp.float32),
            mean=0.1 * jax.random.normal(km, (cout,), jnp.float32),
            var=0.5 + jax.random.uniform(kv, (cout,), jnp.float32),
        )

    def linear(k, fin, fout):
        kw, kb = jax.random.split(k)
        return dict(
            w=jax.random.normal(kw, (fin, fout), jnp.float32) / jnp.sqrt(float(fin)),
            b=0.05 * jax.random.normal(kb, (fout,), jnp.float32),
        )

    return dict(conv1=conv_block(ks[0], 3, 32),
                conv2=conv_block(ks[1], 32, 64),
                conv3=conv_block(ks[2], 64, 128),
                fc1=linear(ks[3], 128, 64),
                fc2=linear(ks[4], 64, 2))


def prepare_params(params, lane_pad=128):
    """Fold eval-mode BN into per-channel f32 scale/shift, reshape conv1 weights into a
    merged (27, 32) im2col matrix, conv2/conv3 into (9, Cin, Cout) taps (bf16 operands,
    f32 accumulation in-kernel), and zero-pad fc2 from 2 -> 128 output lanes so the
    kernel's only HBM store is lane-dense."""
    def bn_fold(p):
        scale = p["gamma"] / jnp.sqrt(p["var"] + EPS)
        shift = p["beta"] + scale * (p["b"] - p["mean"])
        return scale[None, :].astype(jnp.float32), shift[None, :].astype(jnp.float32)

    s1, t1 = bn_fold(params["conv1"])
    s2, t2 = bn_fold(params["conv2"])
    s3, t3 = bn_fold(params["conv3"])

    c1_in = params["conv1"]["w"].shape[2]
    w1 = params["conv1"]["w"].reshape(9 * c1_in, -1).astype(jnp.bfloat16)     # (27, 32)
    w2 = params["conv2"]["w"].reshape(9, params["conv2"]["w"].shape[2], -1
                                      ).astype(jnp.bfloat16)                  # (9, 32, 64)
    w3 = params["conv3"]["w"].reshape(9, params["conv3"]["w"].shape[2], -1
                                      ).astype(jnp.bfloat16)                  # (9, 64, 128)

    wf1 = params["fc1"]["w"].astype(jnp.bfloat16)
    bf1 = params["fc1"]["b"][None, :].astype(jnp.float32)

    f_in, f_out = params["fc2"]["w"].shape
    wf2 = jnp.zeros((f_in, lane_pad), jnp.float32).at[:, :f_out].set(params["fc2"]["w"])
    bf2 = jnp.zeros((1, lane_pad), jnp.float32).at[0, :f_out].set(params["fc2"]["b"])

    return dict(w1=w1, s1=s1, t1=t1, w2=w2, s2=s2, t2=t2, w3=w3, s3=s3, t3=t3,
                wf1=wf1, bf1=bf1, wf2=wf2.astype(jnp.bfloat16), bf2=bf2)


def reference_forward(params, x_nchw):
    """Pure-JAX f32 (HIGHEST precision) forward mirroring the PyTorch module in eval mode.
    Used only to validate the Pallas kernel."""
    x = jnp.transpose(x_nchw, (0, 2, 3, 1)).astype(jnp.float32)

    def conv_bn_relu(x, p):
        y = lax.conv_general_dilated(
            x, p["w"], window_strides=(1, 1), padding="SAME",
            dimension_numbers=("NHWC", "HWIO", "NHWC"),
            precision=lax.Precision.HIGHEST) + p["b"]
        y = (y - p["mean"]) / jnp.sqrt(p["var"] + EPS) * p["gamma"] + p["beta"]
        return jnp.maximum(y, 0.0)

    def maxpool2(x):
        return lax.reduce_window(x, -jnp.inf, lax.max,
                                 (1, 2, 2, 1), (1, 2, 2, 1), "VALID")

    x = maxpool2(conv_bn_relu(x, params["conv1"]))
    x = maxpool2(conv_bn_relu(x, params["conv2"]))
    x = conv_bn_relu(x, params["conv3"])
    feat = jnp.mean(x, axis=(1, 2))
    h = jnp.maximum(feat @ params["fc1"]["w"] + params["fc1"]["b"], 0.0)
    return h @ params["fc2"]["w"] + params["fc2"]["b"]


if __name__ == "__main__":
    key = jax.random.PRNGKey(0)
    pkey, xkey = jax.random.split(key)
    params = init_params(pkey)
    x = jax.random.normal(xkey, (8, 3, 16, 16), dtype=jnp.float32)    # NCHW like PyTorch

    kparams = prepare_params(params)
    fwd = jax.jit(functools.partial(fused_forward, block_b=4))        # grid=(2,): 2 blocks
    logits = fwd(kparams, x)
    jax.block_until_ready(logits)

    assert logits.shape == (8, 2) and logits.dtype == jnp.float32
    ref = reference_forward(params, x)
    max_err = float(jnp.max(jnp.abs(logits - ref)))
    assert max_err < 5e-2, f"kernel/reference mismatch: {max_err}"
    print("KERNEL_OK")
</pallas_src>

<mosaic_0001>
module attributes {stable_mosaic.version = 11 : i64} {
  func.func @_fused_cnn_kernel(%arg0: i32, %arg1: memref<1024x27xbf16, #tpu.memory_space<vmem>>, %arg2: memref<27x32xbf16, #tpu.memory_space<vmem>>, %arg3: memref<1x32xf32, #tpu.memory_space<vmem>>, %arg4: memref<1x32xf32, #tpu.memory_space<vmem>>, %arg5: memref<9x32x64xbf16, #tpu.memory_space<vmem>>, %arg6: memref<1x64xf32, #tpu.memory_space<vmem>>, %arg7: memref<1x64xf32, #tpu.memory_space<vmem>>, %arg8: memref<9x64x128xbf16, #tpu.memory_space<vmem>>, %arg9: memref<1x128xf32, #tpu.memory_space<vmem>>, %arg10: memref<1x128xf32, #tpu.memory_space<vmem>>, %arg11: memref<104x256xbf16, #tpu.memory_space<vmem>>, %arg12: memref<40x104xbf16, #tpu.memory_space<vmem>>, %arg13: memref<8x160xf32, #tpu.memory_space<vmem>>, %arg14: memref<128x64xbf16, #tpu.memory_space<vmem>>, %arg15: memref<1x64xf32, #tpu.memory_space<vmem>>, %arg16: memref<64x128xbf16, #tpu.memory_space<vmem>>, %arg17: memref<1x128xf32, #tpu.memory_space<vmem>>, %arg18: memref<1x8x128xf32, #tpu.memory_space<vmem>>, %arg19: memref<1048x32xf32, #tpu.memory_space<vmem>>, %arg20: memref<448x32xf32, #tpu.memory_space<vmem>>, %arg21: memref<432x64xf32, #tpu.memory_space<vmem>>, %arg22: memref<176x64xf32, #tpu.memory_space<vmem>>) attributes {dimension_semantics = [#tpu.dimension_semantics<parallel>], iteration_bounds = array<i64: 2>, scalar_prefetch = 0 : i64, scratch_operands = 4 : i64, tpu.core_type = #tpu.core_type<tc>, window_params = [{transform_indices = @transform_0, window_bounds = array<i64: 1024, 27>}, {pipeline_mode = #tpu.pipeline_mode<synchronous>, transform_indices = @transform_1, window_bounds = array<i64: 27, 32>}, {pipeline_mode = #tpu.pipeline_mode<synchronous>, transform_indices = @transform_2, window_bounds = array<i64: 1, 32>}, {pipeline_mode = #tpu.pipeline_mode<synchronous>, transform_indices = @transform_3, window_bounds = array<i64: 1, 32>}, {pipeline_mode = #tpu.pipeline_mode<synchronous>, transform_indices = @transform_4, window_bounds = array<i64: 9, 32, 64>}, {pipeline_mode = #tpu.pipeline_mode<synchronous>, transform_indices = @transform_5, window_bounds = array<i64: 1, 64>}, {pipeline_mode = #tpu.pipeline_mode<synchronous>, transform_indices = @transform_6, window_bounds = array<i64: 1, 64>}, {pipeline_mode = #tpu.pipeline_mode<synchronous>, transform_indices = @transform_7, window_bounds = array<i64: 9, 64, 128>}, {pipeline_mode = #tpu.pipeline_mode<synchronous>, transform_indices = @transform_8, window_bounds = array<i64: 1, 128>}, {pipeline_mode = #tpu.pipeline_mode<synchronous>, transform_indices = @transform_9, window_bounds = array<i64: 1, 128>}, {pipeline_mode = #tpu.pipeline_mode<synchronous>, transform_indices = @transform_10, window_bounds = array<i64: 104, 256>}, {pipeline_mode = #tpu.pipeline_mode<synchronous>, transform_indices = @transform_11, window_bounds = array<i64: 40, 104>}, {pipeline_mode = #tpu.pipeline_mode<synchronous>, transform_indices = @transform_12, window_bounds = array<i64: 8, 160>}, {pipeline_mode = #tpu.pipeline_mode<synchronous>, transform_indices = @transform_13, window_bounds = array<i64: 128, 64>}, {pipeline_mode = #tpu.pipeline_mode<synchronous>, transform_indices = @transform_14, window_bounds = array<i64: 1, 64>}, {pipeline_mode = #tpu.pipeline_mode<synchronous>, transform_indices = @transform_15, window_bounds = array<i64: 64, 128>}, {pipeline_mode = #tpu.pipeline_mode<synchronous>, transform_indices = @transform_16, window_bounds = array<i64: 1, 128>}, {transform_indices = @transform_17, window_bounds = array<i64: 1, 8, 128>}]} {
    %cst = arith.constant 0.000000e+00 : f32
    %0 = vector.broadcast %cst : f32 to vector<24x32xf32>
    %c1024 = arith.constant 1024 : index
    %c0 = arith.constant 0 : index
    %1 = vector.load %arg19[%c1024, %c0] : memref<1048x32xf32, #tpu.memory_space<vmem>>, vector<24x32xf32>
    tpu.vector_store %arg19[%c1024, %c0], %0 {strides = array<i32>} : memref<1048x32xf32, #tpu.memory_space<vmem>>, vector<24x32xf32>,
    %cst_0 = arith.constant 0.000000e+00 : f32
    %2 = vector.broadcast %cst_0 : f32 to vector<16x32xf32>
    %c0_1 = arith.constant 0 : index
    %c0_2 = arith.constant 0 : index
    %3 = vector.load %arg20[%c0_1, %c0_2] : memref<448x32xf32, #tpu.memory_space<vmem>>, vector<16x32xf32>
    tpu.vector_store %arg20[%c0_1, %c0_2], %2 {strides = array<i32>} : memref<448x32xf32, #tpu.memory_space<vmem>>, vector<16x32xf32>,
    %cst_3 = arith.constant 0.000000e+00 : f32
    %4 = vector.broadcast %cst_3 : f32 to vector<16x32xf32>
    %c432 = arith.constant 432 : index
    %c0_4 = arith.constant 0 : index
    %5 = vector.load %arg20[%c432, %c0_4] : memref<448x32xf32, #tpu.memory_space<vmem>>, vector<16x32xf32>
    tpu.vector_store %arg20[%c432, %c0_4], %4 {strides = array<i32>} : memref<448x32xf32, #tpu.memory_space<vmem>>, vector<16x32xf32>,
    %cst_5 = arith.constant 0.000000e+00 : f32
    %6 = vector.broadcast %cst_5 : f32 to vector<16x64xf32>
    %c416 = arith.constant 416 : index
    %c0_6 = arith.constant 0 : index
    %7 = vector.load %arg21[%c416, %c0_6] : memref<432x64xf32, #tpu.memory_space<vmem>>, vector<16x64xf32>
    tpu.vector_store %arg21[%c416, %c0_6], %6 {strides = array<i32>} : memref<432x64xf32, #tpu.memory_space<vmem>>, vector<16x64xf32>,
    %cst_7 = arith.constant 0.000000e+00 : f32
    %8 = vector.broadcast %cst_7 : f32 to vector<8x64xf32>
    %c0_8 = arith.constant 0 : index
    %c0_9 = arith.constant 0 : index
    %9 = vector.load %arg22[%c0_8, %c0_9] : memref<176x64xf32, #tpu.memory_space<vmem>>, vector<8x64xf32>
    tpu.vector_store %arg22[%c0_8, %c0_9], %8 {strides = array<i32>} : memref<176x64xf32, #tpu.memory_space<vmem>>, vector<8x64xf32>,
    %cst_10 = arith.constant 0.000000e+00 : f32
    %10 = vector.broadcast %cst_10 : f32 to vector<8x64xf32>
    %c168 = arith.constant 168 : index
    %c0_11 = arith.constant 0 : index
    %11 = vector.load %arg22[%c168, %c0_11] : memref<176x64xf32, #tpu.memory_space<vmem>>, vector<8x64xf32>
    tpu.vector_store %arg22[%c168, %c0_11], %10 {strides = array<i32>} : memref<176x64xf32, #tpu.memory_space<vmem>>, vector<8x64xf32>,
    %c0_12 = arith.constant 0 : index
    %c0_13 = arith.constant 0 : index
    %12 = vector.load %arg1[%c0_12, %c0_13] : memref<1024x27xbf16, #tpu.memory_space<vmem>>, vector<1024x27xbf16>
    %c0_14 = arith.constant 0 : index
    %c0_15 = arith.constant 0 : index
    %13 = vector.load %arg2[%c0_14, %c0_15] : memref<27x32xbf16, #tpu.memory_space<vmem>>, vector<27x32xbf16>
    %cst_16 = arith.constant dense<0.000000e+00> : vector<1024x32xf32>
    %14 = tpu.matmul %12, %13, %cst_16 {dimension_numbers = #tpu.dot_dimension_numbers<[1], [0], [0], [1], [0, 0, 1, 1], [], []>} : vector<1024x27xbf16>, vector<27x32xbf16>, vector<1024x32xf32> -> vector<1024x32xf32>
    %c0_17 = arith.constant 0 : index
    %c0_18 = arith.constant 0 : index
    %15 = vector.load %arg3[%c0_17, %c0_18] : memref<1x32xf32, #tpu.memory_space<vmem>>, vector<1x32xf32>
    %16 = vector.broadcast %15 : vector<1x32xf32> to vector<1024x32xf32>
    %17 = arith.mulf %14, %16 : vector<1024x32xf32>
    %c0_19 = arith.constant 0 : index
    %c0_20 = arith.constant 0 : index
    %18 = vector.load %arg4[%c0_19, %c0_20] : memref<1x32xf32, #tpu.memory_space<vmem>>, vector<1x32xf32>
    %19 = vector.broadcast %18 : vector<1x32xf32> to vector<1024x32xf32>
    %20 = arith.addf %17, %19 : vector<1024x32xf32>
    %cst_21 = arith.constant 0.000000e+00 : f32
    %21 = vector.broadcast %cst_21 : f32 to vector<1024x32xf32>
    %22 = arith.maximumf %20, %21 : vector<1024x32xf32>
    %c0_22 = arith.constant 0 : index
    %c0_23 = arith.constant 0 : index
    %23 = vector.load %arg19[%c0_22, %c0_23] : memref<1048x32xf32, #tpu.memory_space<vmem>>, vector<1024x32xf32>
    tpu.vector_store %arg19[%c0_22, %c0_23], %22 {strides = array<i32>} : memref<1048x32xf32, #tpu.memory_space<vmem>>, vector<1024x32xf32>,
    %c1 = arith.constant 1 : index
    %c0_24 = arith.constant 0 : index
    %24 = vector.load %arg19[%c1, %c0_24] : memref<1048x32xf32, #tpu.memory_space<vmem>>, vector<1024x32xf32>
    %25 = arith.maximumf %22, %24 : vector<1024x32xf32>
    %c16 = arith.constant 16 : index
    %c0_25 = arith.constant 0 : index
    %26 = vector.load %arg19[%c16, %c0_25] : memref<1048x32xf32, #tpu.memory_space<vmem>>, vector<1024x32xf32>
    %c17 = arith.constant 17 : index
    %c0_26 = arith.constant 0 : index
    %27 = vector.load %arg19[%c17, %c0_26] : memref<1048x32xf32, #tpu.memory_space<vmem>>, vector<1024x32xf32>
    %28 = arith.maximumf %26, %27 : vector<1024x32xf32>
    %29 = arith.maximumf %25, %28 : vector<1024x32xf32>
    %30 = arith.truncf %29 : vector<1024x32xf32> to vector<1024x32xbf16>
    %c0_27 = arith.constant 0 : index
    %c0_28 = arith.constant 0 : index
    %31 = vector.load %arg11[%c0_27, %c0_28] : memref<104x256xbf16, #tpu.memory_space<vmem>>, vector<104x256xbf16>
    %32 = vector.extract_strided_slice %30 {offsets = [0, 0], sizes = [256, 32], strides = [1, 1]} : vector<1024x32xbf16> to vector<256x32xbf16>
    %cst_29 = arith.constant dense<0.000000e+00> : vector<104x32xf32>
    %33 = tpu.matmul %31, %32, %cst_29 {dimension_numbers = #tpu.dot_dimension_numbers<[1], [0], [0], [1], [0, 0, 1, 1], [], []>} : vector<104x256xbf16>, vector<256x32xbf16>, vector<104x32xf32> -> vector<104x32xf32>
    %c16_30 = arith.constant 16 : index
    %c0_31 = arith.constant 0 : index
    %34 = vector.load %arg20[%c16_30, %c0_31] : memref<448x32xf32, #tpu.memory_space<vmem>>, vector<104x32xf32>
    tpu.vector_store %arg20[%c16_30, %c0_31], %33 {strides = array<i32>} : memref<448x32xf32, #tpu.memory_space<vmem>>, vector<104x32xf32>,
    %35 = vector.extract_strided_slice %30 {offsets = [256, 0], sizes = [256, 32], strides = [1, 1]} : vector<1024x32xbf16> to vector<256x32xbf16>
    %cst_32 = arith.constant dense<0.000000e+00> : vector<104x32xf32>
    %36 = tpu.matmul %31, %35, %cst_32 {dimension_numbers = #tpu.dot_dimension_numbers<[1], [0], [0], [1], [0, 0, 1, 1], [], []>} : vector<104x256xbf16>, vector<256x32xbf16>, vector<104x32xf32> -> vector<104x32xf32>
    %c120 = arith.constant 120 : index
    %c0_33 = arith.constant 0 : index
    %37 = vector.load %arg20[%c120, %c0_33] : memref<448x32xf32, #tpu.memory_space<vmem>>, vector<104x32xf32>
    tpu.vector_store %arg20[%c120, %c0_33], %36 {strides = array<i32>} : memref<448x32xf32, #tpu.memory_space<vmem>>, vector<104x32xf32>,
    %38 = vector.extract_strided_slice %30 {offsets = [512, 0], sizes = [256, 32], strides = [1, 1]} : vector<1024x32xbf16> to vector<256x32xbf16>
    %cst_34 = arith.constant dense<0.000000e+00> : vector<104x32xf32>
    %39 = tpu.matmul %31, %38, %cst_34 {dimension_numbers = #tpu.dot_dimension_numbers<[1], [0], [0], [1], [0, 0, 1, 1], [], []>} : vector<104x256xbf16>, vector<256x32xbf16>, vector<104x32xf32> -> vector<104x32xf32>
    %c224 = arith.constant 224 : index
    %c0_35 = arith.constant 0 : index
    %40 = vector.load %arg20[%c224, %c0_35] : memref<448x32xf32, #tpu.memory_space<vmem>>, vector<104x32xf32>
    tpu.vector_store %arg20[%c224, %c0_35], %39 {strides = array<i32>} : memref<448x32xf32, #tpu.memory_space<vmem>>, vector<104x32xf32>,
    %41 = vector.extract_strided_slice %30 {offsets = [768, 0], sizes = [256, 32], strides = [1, 1]} : vector<1024x32xbf16> to vector<256x32xbf16>
    %cst_36 = arith.constant dense<0.000000e+00> : vector<104x32xf32>
    %42 = tpu.matmul %31, %41, %cst_36 {dimension_numbers = #tpu.dot_dimension_numbers<[1], [0], [0], [1], [0, 0, 1, 1], [], []>} : vector<104x256xbf16>, vector<256x32xbf16>, vector<104x32xf32> -> vector<104x32xf32>
    %c328 = arith.constant 328 : index
    %c0_37 = arith.constant 0 : index
    %43 = vector.load %arg20[%c328, %c0_37] : memref<448x32xf32, #tpu.memory_space<vmem>>, vector<104x32xf32>
    tpu.vector_store %arg20[%c328, %c0_37], %42 {strides = array<i32>} : memref<448x32xf32, #tpu.memory_space<vmem>>, vector<104x32xf32>,
    %cst_38 = arith.constant 0.000000e+00 : f32
    %44 = vector.broadcast %cst_38 : f32 to vector<416x64xf32>
    %c5 = arith.constant 5 : index
    %c0_39 = arith.constant 0 : index
    %45 = vector.load %arg20[%c5, %c0_39] : memref<448x32xf32, #tpu.memory_space<vmem>>, vector<416x32xf32>
    %46 = arith.truncf %45 : vector<416x32xf32> to vector<416x32xbf16>
    %c0_40 = arith.constant 0 : index
    %c0_41 = arith.constant 0 : index
    %c0_42 = arith.constant 0 : index
    %47 = vector.load %arg5[%c0_40, %c0_41, %c0_42] : memref<9x32x64xbf16, #tpu.memory_space<vmem>>, vector<1x32x64xbf16>
    %48 = vector.shape_cast %47 : vector<1x32x64xbf16> to vector<32x64xbf16>
    %cst_43 = arith.constant dense<0.000000e+00> : vector<416x64xf32>
    %49 = tpu.matmul %46, %48, %cst_43 {dimension_numbers = #tpu.dot_dimension_numbers<[1], [0], [0], [1], [0, 0, 1, 1], [], []>} : vector<416x32xbf16>, vector<32x64xbf16>, vector<416x64xf32> -> vector<416x64xf32>
    %50 = arith.addf %44, %49 : vector<416x64xf32>
    %c6 = arith.constant 6 : index
    %c0_44 = arith.constant 0 : index
    %51 = vector.load %arg20[%c6, %c0_44] : memref<448x32xf32, #tpu.memory_space<vmem>>, vector<416x32xf32>
    %52 = arith.truncf %51 : vector<416x32xf32> to vector<416x32xbf16>
    %c1_45 = arith.constant 1 : index
    %c0_46 = arith.constant 0 : index
    %c0_47 = arith.constant 0 : index
    %53 = vector.load %arg5[%c1_45, %c0_46, %c0_47] : memref<9x32x64xbf16, #tpu.memory_space<vmem>>, vector<1x32x64xbf16>
    %54 = vector.shape_cast %53 : vector<1x32x64xbf16> to vector<32x64xbf16>
    %cst_48 = arith.constant dense<0.000000e+00> : vector<416x64xf32>
    %55 = tpu.matmul %52, %54, %cst_48 {dimension_numbers = #tpu.dot_dimension_numbers<[1], [0], [0], [1], [0, 0, 1, 1], [], []>} : vector<416x32xbf16>, vector<32x64xbf16>, vector<416x64xf32> -> vector<416x64xf32>
    %56 = arith.addf %50, %55 : vector<416x64xf32>
    %c7 = arith.constant 7 : index
    %c0_49 = arith.constant 0 : index
    %57 = vector.load %arg20[%c7, %c0_49] : memref<448x32xf32, #tpu.memory_space<vmem>>, vector<416x32xf32>
    %58 = arith.truncf %57 : vector<416x32xf32> to vector<416x32xbf16>
    %c2 = arith.constant 2 : index
    %c0_50 = arith.constant 0 : index
    %c0_51 = arith.constant 0 : index
    %59 = vector.load %arg5[%c2, %c0_50, %c0_51] : memref<9x32x64xbf16, #tpu.memory_space<vmem>>, vector<1x32x64xbf16>
    %60 = vector.shape_cast %59 : vector<1x32x64xbf16> to vector<32x64xbf16>
    %cst_52 = arith.constant dense<0.000000e+00> : vector<416x64xf32>
    %61 = tpu.matmul %58, %60, %cst_52 {dimension_numbers = #tpu.dot_dimension_numbers<[1], [0], [0], [1], [0, 0, 1, 1], [], []>} : vector<416x32xbf16>, vector<32x64xbf16>, vector<416x64xf32> -> vector<416x64xf32>
    %62 = arith.addf %56, %61 : vector<416x64xf32>
    %c15 = arith.constant 15 : index
    %c0_53 = arith.constant 0 : index
    %63 = vector.load %arg20[%c15, %c0_53] : memref<448x32xf32, #tpu.memory_space<vmem>>, vector<416x32xf32>
    %64 = arith.truncf %63 : vector<416x32xf32> to vector<416x32xbf16>
    %c3 = arith.constant 3 : index
    %c0_54 = arith.constant 0 : index
    %c0_55 = arith.constant 0 : index
    %65 = vector.load %arg5[%c3, %c0_54, %c0_55] : memref<9x32x64xbf16, #tpu.memory_space<vmem>>, vector<1x32x64xbf16>
    %66 = vector.shape_cast %65 : vector<1x32x64xbf16> to vector<32x64xbf16>
    %cst_56 = arith.constant dense<0.000000e+00> : vector<416x64xf32>
    %67 = tpu.matmul %64, %66, %cst_56 {dimension_numbers = #tpu.dot_dimension_numbers<[1], [0], [0], [1], [0, 0, 1, 1], [], []>} : vector<416x32xbf16>, vector<32x64xbf16>, vector<416x64xf32> -> vector<416x64xf32>
    %68 = arith.addf %62, %67 : vector<416x64xf32>
    %c16_57 = arith.constant 16 : index
    %c0_58 = arith.constant 0 : index
    %69 = vector.load %arg20[%c16_57, %c0_58] : memref<448x32xf32, #tpu.memory_space<vmem>>, vector<416x32xf32>
    %70 = arith.truncf %69 : vector<416x32xf32> to vector<416x32xbf16>
    %c4 = arith.constant 4 : index
    %c0_59 = arith.constant 0 : index
    %c0_60 = arith.constant 0 : index
    %71 = vector.load %arg5[%c4, %c0_59, %c0_60] : memref<9x32x64xbf16, #tpu.memory_space<vmem>>, vector<1x32x64xbf16>
    %72 = vector.shape_cast %71 : vector<1x32x64xbf16> to vector<32x64xbf16>
    %cst_61 = arith.constant dense<0.000000e+00> : vector<416x64xf32>
    %73 = tpu.matmul %70, %72, %cst_61 {dimension_numbers = #tpu.dot_dimension_numbers<[1], [0], [0], [1], [0, 0, 1, 1], [], []>} : vector<416x32xbf16>, vector<32x64xbf16>, vector<416x64xf32> -> vector<416x64xf32>
    %74 = arith.addf %68, %73 : vector<416x64xf32>
    %c17_62 = arith.constant 17 : index
    %c0_63 = arith.constant 0 : index
    %75 = vector.load %arg20[%c17_62, %c0_63] : memref<448x32xf32, #tpu.memory_space<vmem>>, vector<416x32xf32>
    %76 = arith.truncf %75 : vector<416x32xf32> to vector<416x32xbf16>
    %c5_64 = arith.constant 5 : index
    %c0_65 = arith.constant 0 : index
    %c0_66 = arith.constant 0 : index
    %77 = vector.load %arg5[%c5_64, %c0_65, %c0_66] : memref<9x32x64xbf16, #tpu.memory_space<vmem>>, vector<1x32x64xbf16>
    %78 = vector.shape_cast %77 : vector<1x32x64xbf16> to vector<32x64xbf16>
    %cst_67 = arith.constant dense<0.000000e+00> : vector<416x64xf32>
    %79 = tpu.matmul %76, %78, %cst_67 {dimension_numbers = #tpu.dot_dimension_numbers<[1], [0], [0], [1], [0, 0, 1, 1], [], []>} : vector<416x32xbf16>, vector<32x64xbf16>, vector<416x64xf32> -> vector<416x64xf32>
    %80 = arith.addf %74, %79 : vector<416x64xf32>
    %c25 = arith.constant 25 : index
    %c0_68 = arith.constant 0 : index
    %81 = vector.load %arg20[%c25, %c0_68] : memref<448x32xf32, #tpu.memory_space<vmem>>, vector<416x32xf32>
    %82 = arith.truncf %81 : vector<416x32xf32> to vector<416x32xbf16>
    %c6_69 = arith.constant 6 : index
    %c0_70 = arith.constant 0 : index
    %c0_71 = arith.constant 0 : index
    %83 = vector.load %arg5[%c6_69, %c0_70, %c0_71] : memref<9x32x64xbf16, #tpu.memory_space<vmem>>, vector<1x32x64xbf16>
    %84 = vector.shape_cast %83 : vector<1x32x64xbf16> to vector<32x64xbf16>
    %cst_72 = arith.constant dense<0.000000e+00> : vector<416x64xf32>
    %85 = tpu.matmul %82, %84, %cst_72 {dimension_numbers = #tpu.dot_dimension_numbers<[1], [0], [0], [1], [0, 0, 1, 1], [], []>} : vector<416x32xbf16>, vector<32x64xbf16>, vector<416x64xf32> -> vector<416x64xf32>
    %86 = arith.addf %80, %85 : vector<416x64xf32>
    %c26 = arith.constant 26 : index
    %c0_73 = arith.constant 0 : index
    %87 = vector.load %arg20[%c26, %c0_73] : memref<448x32xf32, #tpu.memory_space<vmem>>, vector<416x32xf32>
    %88 = arith.truncf %87 : vector<416x32xf32> to vector<416x32xbf16>
    %c7_74 = arith.constant 7 : index
    %c0_75 = arith.constant 0 : index
    %c0_76 = arith.constant 0 : index
    %89 = vector.load %arg5[%c7_74, %c0_75, %c0_76] : memref<9x32x64xbf16, #tpu.memory_space<vmem>>, vector<1x32x64xbf16>
    %90 = vector.shape_cast %89 : vector<1x32x64xbf16> to vector<32x64xbf16>
    %cst_77 = arith.constant dense<0.000000e+00> : vector<416x64xf32>
    %91 = tpu.matmul %88, %90, %cst_77 {dimension_numbers = #tpu.dot_dimension_numbers<[1], [0], [0], [1], [0, 0, 1, 1], [], []>} : vector<416x32xbf16>, vector<32x64xbf16>, vector<416x64xf32> -> vector<416x64xf32>
    %92 = arith.addf %86, %91 : vector<416x64xf32>
    %c27 = arith.constant 27 : index
    %c0_78 = arith.constant 0 : index
    %93 = vector.load %arg20[%c27, %c0_78] : memref<448x32xf32, #tpu.memory_space<vmem>>, vector<416x32xf32>
    %94 = arith.truncf %93 : vector<416x32xf32> to vector<416x32xbf16>
    %c8 = arith.constant 8 : index
    %c0_79 = arith.constant 0 : index
    %c0_80 = arith.constant 0 : index
    %95 = vector.load %arg5[%c8, %c0_79, %c0_80] : memref<9x32x64xbf16, #tpu.memory_space<vmem>>, vector<1x32x64xbf16>
    %96 = vector.shape_cast %95 : vector<1x32x64xbf16> to vector<32x64xbf16>
    %cst_81 = arith.constant dense<0.000000e+00> : vector<416x64xf32>
    %97 = tpu.matmul %94, %96, %cst_81 {dimension_numbers = #tpu.dot_dimension_numbers<[1], [0], [0], [1], [0, 0, 1, 1], [], []>} : vector<416x32xbf16>, vector<32x64xbf16>, vector<416x64xf32> -> vector<416x64xf32>
    %98 = arith.addf %92, %97 : vector<416x64xf32>
    %c0_82 = arith.constant 0 : index
    %c0_83 = arith.constant 0 : index
    %99 = vector.load %arg6[%c0_82, %c0_83] : memref<1x64xf32, #tpu.memory_space<vmem>>, vector<1x64xf32>
    %100 = vector.broadcast %99 : vector<1x64xf32> to vector<416x64xf32>
    %101 = arith.mulf %98, %100 : vector<416x64xf32>
    %c0_84 = arith.constant 0 : index
    %c0_85 = arith.constant 0 : index
    %102 = vector.load %arg7[%c0_84, %c0_85] : memref<1x64xf32, #tpu.memory_space<vmem>>, vector<1x64xf32>
    %103 = vector.broadcast %102 : vector<1x64xf32> to vector<416x64xf32>
    %104 = arith.addf %101, %103 : vector<416x64xf32>
    %cst_86 = arith.constant 0.000000e+00 : f32
    %105 = vector.broadcast %cst_86 : f32 to vector<416x64xf32>
    %106 = arith.maximumf %104, %105 : vector<416x64xf32>
    %c0_87 = arith.constant 0 : index
    %c0_88 = arith.constant 0 : index
    %107 = vector.load %arg21[%c0_87, %c0_88] : memref<432x64xf32, #tpu.memory_space<vmem>>, vector<416x64xf32>
    tpu.vector_store %arg21[%c0_87, %c0_88], %106 {strides = array<i32>} : memref<432x64xf32, #tpu.memory_space<vmem>>, vector<416x64xf32>,
    %c1_89 = arith.constant 1 : index
    %c0_90 = arith.constant 0 : index
    %108 = vector.load %arg21[%c1_89, %c0_90] : memref<432x64xf32, #tpu.memory_space<vmem>>, vector<416x64xf32>
    %109 = arith.maximumf %106, %108 : vector<416x64xf32>
    %c10 = arith.constant 10 : index
    %c0_91 = arith.constant 0 : index
    %110 = vector.load %arg21[%c10, %c0_91] : memref<432x64xf32, #tpu.memory_space<vmem>>, vector<416x64xf32>
    %c11 = arith.constant 11 : index
    %c0_92 = arith.constant 0 : index
    %111 = vector.load %arg21[%c11, %c0_92] : memref<432x64xf32, #tpu.memory_space<vmem>>, vector<416x64xf32>
    %112 = arith.maximumf %110, %111 : vector<416x64xf32>
    %113 = arith.maximumf %109, %112 : vector<416x64xf32>
    %114 = arith.truncf %113 : vector<416x64xf32> to vector<416x64xbf16>
    %c0_93 = arith.constant 0 : index
    %c0_94 = arith.constant 0 : index
    %115 = vector.load %arg12[%c0_93, %c0_94] : memref<40x104xbf16, #tpu.memory_space<vmem>>, vector<40x104xbf16>
    %116 = vector.extract_strided_slice %114 {offsets = [0, 0], sizes = [104, 64], strides = [1, 1]} : vector<416x64xbf16> to vector<104x64xbf16>
    %cst_95 = arith.constant dense<0.000000e+00> : vector<40x64xf32>
    %117 = tpu.matmul %115, %116, %cst_95 {dimension_numbers = #tpu.dot_dimension_numbers<[1], [0], [0], [1], [0, 0, 1, 1], [], []>} : vector<40x104xbf16>, vector<104x64xbf16>, vector<40x64xf32> -> vector<40x64xf32>
    %c8_96 = arith.constant 8 : index
    %c0_97 = arith.constant 0 : index
    %118 = vector.load %arg22[%c8_96, %c0_97] : memref<176x64xf32, #tpu.memory_space<vmem>>, vector<40x64xf32>
    tpu.vector_store %arg22[%c8_96, %c0_97], %117 {strides = array<i32>} : memref<176x64xf32, #tpu.memory_space<vmem>>, vector<40x64xf32>,
    %119 = vector.extract_strided_slice %114 {offsets = [104, 0], sizes = [104, 64], strides = [1, 1]} : vector<416x64xbf16> to vector<104x64xbf16>
    %cst_98 = arith.constant dense<0.000000e+00> : vector<40x64xf32>
    %120 = tpu.matmul %115, %119, %cst_98 {dimension_numbers = #tpu.dot_dimension_numbers<[1], [0], [0], [1], [0, 0, 1, 1], [], []>} : vector<40x104xbf16>, vector<104x64xbf16>, vector<40x64xf32> -> vector<40x64xf32>
    %c48 = arith.constant 48 : index
    %c0_99 = arith.constant 0 : index
    %121 = vector.load %arg22[%c48, %c0_99] : memref<176x64xf32, #tpu.memory_space<vmem>>, vector<40x64xf32>
    tpu.vector_store %arg22[%c48, %c0_99], %120 {strides = array<i32>} : memref<176x64xf32, #tpu.memory_space<vmem>>, vector<40x64xf32>,
    %122 = vector.extract_strided_slice %114 {offsets = [208, 0], sizes = [104, 64], strides = [1, 1]} : vector<416x64xbf16> to vector<104x64xbf16>
    %cst_100 = arith.constant dense<0.000000e+00> : vector<40x64xf32>
    %123 = tpu.matmul %115, %122, %cst_100 {dimension_numbers = #tpu.dot_dimension_numbers<[1], [0], [0], [1], [0, 0, 1, 1], [], []>} : vector<40x104xbf16>, vector<104x64xbf16>, vector<40x64xf32> -> vector<40x64xf32>
    %c88 = arith.constant 88 : index
    %c0_101 = arith.constant 0 : index
    %124 = vector.load %arg22[%c88, %c0_101] : memref<176x64xf32, #tpu.memory_space<vmem>>, vector<40x64xf32>
    tpu.vector_store %arg22[%c88, %c0_101], %123 {strides = array<i32>} : memref<176x64xf32, #tpu.memory_space<vmem>>, vector<40x64xf32>,
    %125 = vector.extract_strided_slice %114 {offsets = [312, 0], sizes = [104, 64], strides = [1, 1]} : vector<416x64xbf16> to vector<104x64xbf16>
    %cst_102 = arith.constant dense<0.000000e+00> : vector<40x64xf32>
    %126 = tpu.matmul %115, %125, %cst_102 {dimension_numbers = #tpu.dot_dimension_numbers<[1], [0], [0], [1], [0, 0, 1, 1], [], []>} : vector<40x104xbf16>, vector<104x64xbf16>, vector<40x64xf32> -> vector<40x64xf32>
    %c128 = arith.constant 128 : index
    %c0_103 = arith.constant 0 : index
    %127 = vector.load %arg22[%c128, %c0_103] : memref<176x64xf32, #tpu.memory_space<vmem>>, vector<40x64xf32>
    tpu.vector_store %arg22[%c128, %c0_103], %126 {strides = array<i32>} : memref<176x64xf32, #tpu.memory_space<vmem>>, vector<40x64xf32>,
    %cst_104 = arith.constant 0.000000e+00 : f32
    %128 = vector.broadcast %cst_104 : f32 to vector<160x128xf32>
    %c1_105 = arith.constant 1 : index
    %c0_106 = arith.constant 0 : index
    %129 = vector.load %arg22[%c1_105, %c0_106] : memref<176x64xf32, #tpu.memory_space<vmem>>, vector<160x64xf32>
    %130 = arith.truncf %129 : vector<160x64xf32> to vector<160x64xbf16>
    %c0_107 = arith.constant 0 : index
    %c0_108 = arith.constant 0 : index
    %c0_109 = arith.constant 0 : index
    %131 = vector.load %arg8[%c0_107, %c0_108, %c0_109] : memref<9x64x128xbf16, #tpu.memory_space<vmem>>, vector<1x64x128xbf16>
    %132 = vector.shape_cast %131 : vector<1x64x128xbf16> to vector<64x128xbf16>
    %cst_110 = arith.constant dense<0.000000e+00> : vector<160x128xf32>
    %133 = tpu.matmul %130, %132, %cst_110 {dimension_numbers = #tpu.dot_dimension_numbers<[1], [0], [0], [1], [0, 0, 1, 1], [], []>} : vector<160x64xbf16>, vector<64x128xbf16>, vector<160x128xf32> -> vector<160x128xf32>
    %134 = arith.addf %128, %133 : vector<160x128xf32>
    %c2_111 = arith.constant 2 : index
    %c0_112 = arith.constant 0 : index
    %135 = vector.load %arg22[%c2_111, %c0_112] : memref<176x64xf32, #tpu.memory_space<vmem>>, vector<160x64xf32>
    %136 = arith.truncf %135 : vector<160x64xf32> to vector<160x64xbf16>
    %c1_113 = arith.constant 1 : index
    %c0_114 = arith.constant 0 : index
    %c0_115 = arith.constant 0 : index
    %137 = vector.load %arg8[%c1_113, %c0_114, %c0_115] : memref<9x64x128xbf16, #tpu.memory_space<vmem>>, vector<1x64x128xbf16>
    %138 = vector.shape_cast %137 : vector<1x64x128xbf16> to vector<64x128xbf16>
    %cst_116 = arith.constant dense<0.000000e+00> : vector<160x128xf32>
    %139 = tpu.matmul %136, %138, %cst_116 {dimension_numbers = #tpu.dot_dimension_numbers<[1], [0], [0], [1], [0, 0, 1, 1], [], []>} : vector<160x64xbf16>, vector<64x128xbf16>, vector<160x128xf32> -> vector<160x128xf32>
    %140 = arith.addf %134, %139 : vector<160x128xf32>
    %c3_117 = arith.constant 3 : index
    %c0_118 = arith.constant 0 : index
    %141 = vector.load %arg22[%c3_117, %c0_118] : memref<176x64xf32, #tpu.memory_space<vmem>>, vector<160x64xf32>
    %142 = arith.truncf %141 : vector<160x64xf32> to vector<160x64xbf16>
    %c2_119 = arith.constant 2 : index
    %c0_120 = arith.constant 0 : index
    %c0_121 = arith.constant 0 : index
    %143 = vector.load %arg8[%c2_119, %c0_120, %c0_121] : memref<9x64x128xbf16, #tpu.memory_space<vmem>>, vector<1x64x128xbf16>
    %144 = vector.shape_cast %143 : vector<1x64x128xbf16> to vector<64x128xbf16>
    %cst_122 = arith.constant dense<0.000000e+00> : vector<160x128xf32>
    %145 = tpu.matmul %142, %144, %cst_122 {dimension_numbers = #tpu.dot_dimension_numbers<[1], [0], [0], [1], [0, 0, 1, 1], [], []>} : vector<160x64xbf16>, vector<64x128xbf16>, vector<160x128xf32> -> vector<160x128xf32>
    %146 = arith.addf %140, %145 : vector<160x128xf32>
    %c7_123 = arith.constant 7 : index
    %c0_124 = arith.constant 0 : index
    %147 = vector.load %arg22[%c7_123, %c0_124] : memref<176x64xf32, #tpu.memory_space<vmem>>, vector<160x64xf32>
    %148 = arith.truncf %147 : vector<160x64xf32> to vector<160x64xbf16>
    %c3_125 = arith.constant 3 : index
    %c0_126 = arith.constant 0 : index
    %c0_127 = arith.constant 0 : index
    %149 = vector.load %arg8[%c3_125, %c0_126, %c0_127] : memref<9x64x128xbf16, #tpu.memory_space<vmem>>, vector<1x64x128xbf16>
    %150 = vector.shape_cast %149 : vector<1x64x128xbf16> to vector<64x128xbf16>
    %cst_128 = arith.constant dense<0.000000e+00> : vector<160x128xf32>
    %151 = tpu.matmul %148, %150, %cst_128 {dimension_numbers = #tpu.dot_dimension_numbers<[1], [0], [0], [1], [0, 0, 1, 1], [], []>} : vector<160x64xbf16>, vector<64x128xbf16>, vector<160x128xf32> -> vector<160x128xf32>
    %152 = arith.addf %146, %151 : vector<160x128xf32>
    %c8_129 = arith.constant 8 : index
    %c0_130 = arith.constant 0 : index
    %153 = vector.load %arg22[%c8_129, %c0_130] : memref<176x64xf32, #tpu.memory_space<vmem>>, vector<160x64xf32>
    %154 = arith.truncf %153 : vector<160x64xf32> to vector<160x64xbf16>
    %c4_131 = arith.constant 4 : index
    %c0_132 = arith.constant 0 : index
    %c0_133 = arith.constant 0 : index
    %155 = vector.load %arg8[%c4_131, %c0_132, %c0_133] : memref<9x64x128xbf16, #tpu.memory_space<vmem>>, vector<1x64x128xbf16>
    %156 = vector.shape_cast %155 : vector<1x64x128xbf16> to vector<64x128xbf16>
    %cst_134 = arith.constant dense<0.000000e+00> : vector<160x128xf32>
    %157 = tpu.matmul %154, %156, %cst_134 {dimension_numbers = #tpu.dot_dimension_numbers<[1], [0], [0], [1], [0, 0, 1, 1], [], []>} : vector<160x64xbf16>, vector<64x128xbf16>, vector<160x128xf32> -> vector<160x128xf32>
    %158 = arith.addf %152, %157 : vector<160x128xf32>
    %c9 = arith.constant 9 : index
    %c0_135 = arith.constant 0 : index
    %159 = vector.load %arg22[%c9, %c0_135] : memref<176x64xf32, #tpu.memory_space<vmem>>, vector<160x64xf32>
    %160 = arith.truncf %159 : vector<160x64xf32> to vector<160x64xbf16>
    %c5_136 = arith.constant 5 : index
    %c0_137 = arith.constant 0 : index
    %c0_138 = arith.constant 0 : index
    %161 = vector.load %arg8[%c5_136, %c0_137, %c0_138] : memref<9x64x128xbf16, #tpu.memory_space<vmem>>, vector<1x64x128xbf16>
    %162 = vector.shape_cast %161 : vector<1x64x128xbf16> to vector<64x128xbf16>
    %cst_139 = arith.constant dense<0.000000e+00> : vector<160x128xf32>
    %163 = tpu.matmul %160, %162, %cst_139 {dimension_numbers = #tpu.dot_dimension_numbers<[1], [0], [0], [1], [0, 0, 1, 1], [], []>} : vector<160x64xbf16>, vector<64x128xbf16>, vector<160x128xf32> -> vector<160x128xf32>
    %164 = arith.addf %158, %163 : vector<160x128xf32>
    %c13 = arith.constant 13 : index
    %c0_140 = arith.constant 0 : index
    %165 = vector.load %arg22[%c13, %c0_140] : memref<176x64xf32, #tpu.memory_space<vmem>>, vector<160x64xf32>
    %166 = arith.truncf %165 : vector<160x64xf32> to vector<160x64xbf16>
    %c6_141 = arith.constant 6 : index
    %c0_142 = arith.constant 0 : index
    %c0_143 = arith.constant 0 : index
    %167 = vector.load %arg8[%c6_141, %c0_142, %c0_143] : memref<9x64x128xbf16, #tpu.memory_space<vmem>>, vector<1x64x128xbf16>
    %168 = vector.shape_cast %167 : vector<1x64x128xbf16> to vector<64x128xbf16>
    %cst_144 = arith.constant dense<0.000000e+00> : vector<160x128xf32>
    %169 = tpu.matmul %166, %168, %cst_144 {dimension_numbers = #tpu.dot_dimension_numbers<[1], [0], [0], [1], [0, 0, 1, 1], [], []>} : vector<160x64xbf16>, vector<64x128xbf16>, vector<160x128xf32> -> vector<160x128xf32>
    %170 = arith.addf %164, %169 : vector<160x128xf32>
    %c14 = arith.constant 14 : index
    %c0_145 = arith.constant 0 : index
    %171 = vector.load %arg22[%c14, %c0_145] : memref<176x64xf32, #tpu.memory_space<vmem>>, vector<160x64xf32>
    %172 = arith.truncf %171 : vector<160x64xf32> to vector<160x64xbf16>
    %c7_146 = arith.constant 7 : index
    %c0_147 = arith.constant 0 : index
    %c0_148 = arith.constant 0 : index
    %173 = vector.load %arg8[%c7_146, %c0_147, %c0_148] : memref<9x64x128xbf16, #tpu.memory_space<vmem>>, vector<1x64x128xbf16>
    %174 = vector.shape_cast %173 : vector<1x64x128xbf16> to vector<64x128xbf16>
    %cst_149 = arith.constant dense<0.000000e+00> : vector<160x128xf32>
    %175 = tpu.matmul %172, %174, %cst_149 {dimension_numbers = #tpu.dot_dimension_numbers<[1], [0], [0], [1], [0, 0, 1, 1], [], []>} : vector<160x64xbf16>, vector<64x128xbf16>, vector<160x128xf32> -> vector<160x128xf32>
    %176 = arith.addf %170, %175 : vector<160x128xf32>
    %c15_150 = arith.constant 15 : index
    %c0_151 = arith.constant 0 : index
    %177 = vector.load %arg22[%c15_150, %c0_151] : memref<176x64xf32, #tpu.memory_space<vmem>>, vector<160x64xf32>
    %178 = arith.truncf %177 : vector<160x64xf32> to vector<160x64xbf16>
    %c8_152 = arith.constant 8 : index
    %c0_153 = arith.constant 0 : index
    %c0_154 = arith.constant 0 : index
    %179 = vector.load %arg8[%c8_152, %c0_153, %c0_154] : memref<9x64x128xbf16, #tpu.memory_space<vmem>>, vector<1x64x128xbf16>
    %180 = vector.shape_cast %179 : vector<1x64x128xbf16> to vector<64x128xbf16>
    %cst_155 = arith.constant dense<0.000000e+00> : vector<160x128xf32>
    %181 = tpu.matmul %178, %180, %cst_155 {dimension_numbers = #tpu.dot_dimension_numbers<[1], [0], [0], [1], [0, 0, 1, 1], [], []>} : vector<160x64xbf16>, vector<64x128xbf16>, vector<160x128xf32> -> vector<160x128xf32>
    %182 = arith.addf %176, %181 : vector<160x128xf32>
    %c0_156 = arith.constant 0 : index
    %c0_157 = arith.constant 0 : index
    %183 = vector.load %arg9[%c0_156, %c0_157] : memref<1x128xf32, #tpu.memory_space<vmem>>, vector<1x128xf32>
    %184 = vector.broadcast %183 : vector<1x128xf32> to vector<160x128xf32>
    %185 = arith.mulf %182, %184 : vector<160x128xf32>
    %c0_158 = arith.constant 0 : index
    %c0_159 = arith.constant 0 : index
    %186 = vector.load %arg10[%c0_158, %c0_159] : memref<1x128xf32, #tpu.memory_space<vmem>>, vector<1x128xf32>
    %187 = vector.broadcast %186 : vector<1x128xf32> to vector<160x128xf32>
    %188 = arith.addf %185, %187 : vector<160x128xf32>
    %cst_160 = arith.constant 0.000000e+00 : f32
    %189 = vector.broadcast %cst_160 : f32 to vector<160x128xf32>
    %190 = arith.maximumf %188, %189 : vector<160x128xf32>
    %c0_161 = arith.constant 0 : index
    %c0_162 = arith.constant 0 : index
    %191 = vector.load %arg13[%c0_161, %c0_162] : memref<8x160xf32, #tpu.memory_space<vmem>>, vector<8x160xf32>
    %cst_163 = arith.constant dense<0.000000e+00> : vector<8x128xf32>
    %192 = tpu.matmul %191, %190, %cst_163 {dimension_numbers = #tpu.dot_dimension_numbers<[1], [0], [0], [1], [0, 0, 1, 1], [], []>} : vector<8x160xf32>, vector<160x128xf32>, vector<8x128xf32> -> vector<8x128xf32>
    %193 = arith.truncf %192 : vector<8x128xf32> to vector<8x128xbf16>
    %c0_164 = arith.constant 0 : index
    %c0_165 = arith.constant 0 : index
    %194 = vector.load %arg14[%c0_164, %c0_165] : memref<128x64xbf16, #tpu.memory_space<vmem>>, vector<128x64xbf16>
    %cst_166 = arith.constant dense<0.000000e+00> : vector<8x64xf32>
    %195 = tpu.matmul %193, %194, %cst_166 {dimension_numbers = #tpu.dot_dimension_numbers<[1], [0], [0], [1], [0, 0, 1, 1], [], []>} : vector<8x128xbf16>, vector<128x64xbf16>, vector<8x64xf32> -> vector<8x64xf32>
    %c0_167 = arith.constant 0 : index
    %c0_168 = arith.constant 0 : index
    %196 = vector.load %arg15[%c0_167, %c0_168] : memref<1x64xf32, #tpu.memory_space<vmem>>, vector<1x64xf32>
    %197 = vector.broadcast %196 : vector<1x64xf32> to vector<8x64xf32>
    %198 = arith.addf %195, %197 : vector<8x64xf32>
    %cst_169 = arith.constant 0.000000e+00 : f32
    %199 = vector.broadcast %cst_169 : f32 to vector<8x64xf32>
    %200 = arith.maximumf %198, %199 : vector<8x64xf32>
    %201 = arith.truncf %200 : vector<8x64xf32> to vector<8x64xbf16>
    %c0_170 = arith.constant 0 : index
    %c0_171 = arith.constant 0 : index
    %202 = vector.load %arg16[%c0_170, %c0_171] : memref<64x128xbf16, #tpu.memory_space<vmem>>, vector<64x128xbf16>
    %cst_172 = arith.constant dense<0.000000e+00> : vector<8x128xf32>
    %203 = tpu.matmul %201, %202, %cst_172 {dimension_numbers = #tpu.dot_dimension_numbers<[1], [0], [0], [1], [0, 0, 1, 1], [], []>} : vector<8x64xbf16>, vector<64x128xbf16>, vector<8x128xf32> -> vector<8x128xf32>
    %c0_173 = arith.constant 0 : index
    %c0_174 = arith.constant 0 : index
    %204 = vector.load %arg17[%c0_173, %c0_174] : memref<1x128xf32, #tpu.memory_space<vmem>>, vector<1x128xf32>
    %205 = vector.broadcast %204 : vector<1x128xf32> to vector<8x128xf32>
    %206 = arith.addf %203, %205 : vector<8x128xf32>
    %c0_175 = arith.constant 0 : index
    %c0_176 = arith.constant 0 : index
    %c0_177 = arith.constant 0 : index
    %207 = vector.load %arg18[%c0_175, %c0_176, %c0_177] : memref<1x8x128xf32, #tpu.memory_space<vmem>>, vector<1x8x128xf32>
    %208 = vector.shape_cast %207 : vector<1x8x128xf32> to vector<8x128xf32>
    %209 = vector.shape_cast %206 : vector<8x128xf32> to vector<1x8x128xf32>
    tpu.vector_store %arg18[%c0_175, %c0_176, %c0_177], %209 {strides = array<i32>} : memref<1x8x128xf32, #tpu.memory_space<vmem>>, vector<1x8x128xf32>,
    return
  }
  func.func @transform_0(%arg0: i32) -> (i32, i32) {
    %c0_i32 = arith.constant 0 : i32
    %c0_i32_0 = arith.constant 0 : i32
    return %arg0, %c0_i32 : i32, i32
  }
  func.func @transform_1(%arg0: i32) -> (i32, i32) {
    %c0_i32 = arith.constant 0 : i32
    %c0_i32_0 = arith.constant 0 : i32
    %c0_i32_1 = arith.constant 0 : i32
    return %c0_i32, %c0_i32_0 : i32, i32
  }
  func.func @transform_2(%arg0: i32) -> (i32, i32) {
    %c0_i32 = arith.constant 0 : i32
    %c0_i32_0 = arith.constant 0 : i32
    %c0_i32_1 = arith.constant 0 : i32
    return %c0_i32, %c0_i32_0 : i32, i32
  }
  func.func @transform_3(%arg0: i32) -> (i32, i32) {
    %c0_i32 = arith.constant 0 : i32
    %c0_i32_0 = arith.constant 0 : i32
    %c0_i32_1 = arith.constant 0 : i32
    return %c0_i32, %c0_i32_0 : i32, i32
  }
  func.func @transform_4(%arg0: i32) -> (i32, i32, i32) {
    %c0_i32 = arith.constant 0 : i32
    %c0_i32_0 = arith.constant 0 : i32
    %c0_i32_1 = arith.constant 0 : i32
    %c0_i32_2 = arith.constant 0 : i32
    return %c0_i32, %c0_i32_0, %c0_i32_1 : i32, i32, i32
  }
  func.func @transform_5(%arg0: i32) -> (i32, i32) {
    %c0_i32 = arith.constant 0 : i32
    %c0_i32_0 = arith.constant 0 : i32
    %c0_i32_1 = arith.constant 0 : i32
    return %c0_i32, %c0_i32_0 : i32, i32
  }
  func.func @transform_6(%arg0: i32) -> (i32, i32) {
    %c0_i32 = arith.constant 0 : i32
    %c0_i32_0 = arith.constant 0 : i32
    %c0_i32_1 = arith.constant 0 : i32
    return %c0_i32, %c0_i32_0 : i32, i32
  }
  func.func @transform_7(%arg0: i32) -> (i32, i32, i32) {
    %c0_i32 = arith.constant 0 : i32
    %c0_i32_0 = arith.constant 0 : i32
    %c0_i32_1 = arith.constant 0 : i32
    %c0_i32_2 = arith.constant 0 : i32
    return %c0_i32, %c0_i32_0, %c0_i32_1 : i32, i32, i32
  }
  func.func @transform_8(%arg0: i32) -> (i32, i32) {
    %c0_i32 = arith.constant 0 : i32
    %c0_i32_0 = arith.constant 0 : i32
    %c0_i32_1 = arith.constant 0 : i32
    return %c0_i32, %c0_i32_0 : i32, i32
  }
  func.func @transform_9(%arg0: i32) -> (i32, i32) {
    %c0_i32 = arith.constant 0 : i32
    %c0_i32_0 = arith.constant 0 : i32
    %c0_i32_1 = arith.constant 0 : i32
    return %c0_i32, %c0_i32_0 : i32, i32
  }
  func.func @transform_10(%arg0: i32) -> (i32, i32) {
    %c0_i32 = arith.constant 0 : i32
    %c0_i32_0 = arith.constant 0 : i32
    %c0_i32_1 = arith.constant 0 : i32
    return %c0_i32, %c0_i32_0 : i32, i32
  }
  func.func @transform_11(%arg0: i32) -> (i32, i32) {
    %c0_i32 = arith.constant 0 : i32
    %c0_i32_0 = arith.constant 0 : i32
    %c0_i32_1 = arith.constant 0 : i32
    return %c0_i32, %c0_i32_0 : i32, i32
  }
  func.func @transform_12(%arg0: i32) -> (i32, i32) {
    %c0_i32 = arith.constant 0 : i32
    %c0_i32_0 = arith.constant 0 : i32
    %c0_i32_1 = arith.constant 0 : i32
    return %c0_i32, %c0_i32_0 : i32, i32
  }
  func.func @transform_13(%arg0: i32) -> (i32, i32) {
    %c0_i32 = arith.constant 0 : i32
    %c0_i32_0 = arith.constant 0 : i32
    %c0_i32_1 = arith.constant 0 : i32
    return %c0_i32, %c0_i32_0 : i32, i32
  }
  func.func @transform_14(%arg0: i32) -> (i32, i32) {
    %c0_i32 = arith.constant 0 : i32
    %c0_i32_0 = arith.constant 0 : i32
    %c0_i32_1 = arith.constant 0 : i32
    return %c0_i32, %c0_i32_0 : i32, i32
  }
  func.func @transform_15(%arg0: i32) -> (i32, i32) {
    %c0_i32 = arith.constant 0 : i32
    %c0_i32_0 = arith.constant 0 : i32
    %c0_i32_1 = arith.constant 0 : i32
    return %c0_i32, %c0_i32_0 : i32, i32
  }
  func.func @transform_16(%arg0: i32) -> (i32, i32) {
    %c0_i32 = arith.constant 0 : i32
    %c0_i32_0 = arith.constant 0 : i32
    %c0_i32_1 = arith.constant 0 : i32
    return %c0_i32, %c0_i32_0 : i32, i32
  }
  func.func @transform_17(%arg0: i32) -> (i32, i32, i32) {
    %c0_i32 = arith.constant 0 : i32
    %c0_i32_0 = arith.constant 0 : i32
    %c0_i32_1 = arith.constant 0 : i32
    return %arg0, %c0_i32, %c0_i32_0 : i32, i32, i32
  }
}

</mosaic_0001>

<bundles_post_ra>
// kernel: fused_forward.1
= control target key start
LH: loop header
LB: loop body
LE: loop exit
PB: predicated region body
PF: predicated region fallthrough
CT: control target
= control target key end

     0   :  { %s14219_s24 = smov 0   ;;  %s18413_s0 = inlined_call_operand.vmem [shape: bf16[2048,27], index: 0, kind: input, shape index: {}]   ;;  %s18414_s1 = inlined_call_operand.vmem [shape: bf16[27,32], index: 1, kind: input, shape index: {}]   ;;  %s18415_s2 = inlined_call_operand.vmem [shape: f32[1,32], index: 2, kind: input, shape index: {}]   ;;  %s18416_s3 = inlined_call_operand.vmem [shape: f32[1,32], index: 3, kind: input, shape index: {}]   ;;  %s18417_s4 = inlined_call_operand.vmem [shape: bf16[9,32,64], index: 4, kind: input, shape index: {}]   ;;  %s18418_s5 = inlined_call_operand.vmem [shape: f32[1,64], index: 5, kind: input, shape index: {}]   ;;  %s18419_s6 = inlined_call_operand.vmem [shape: f32[1,64], index: 6, kind: input, shape index: {}]   ;;  %s18420_s7 = inlined_call_operand.vmem [shape: bf16[9,64,128], index: 7, kind: input, shape index: {}]   ;;  %s18421_s8 = inlined_call_operand.vmem [shape: f32[1,128], index: 8, kind: input, shape index: {}]   ;;  %s18422_s9 = inlined_call_operand.vmem [shape: f32[1,128], index: 9, kind: input, shape index: {}]   ;;  %s18423_s10 = inlined_call_operand.vmem [shape: bf16[104,256], index: 10, kind: input, shape index: {}]   ;;  %s18424_s11 = inlined_call_operand.vmem [shape: bf16[40,104], index: 11, kind: input, shape index: {}]   ;;  %s18425_s12 = inlined_call_operand.vmem [shape: f32[8,160], index: 12, kind: input, shape index: {}]   ;;  %s18426_s13 = inlined_call_operand.vmem [shape: bf16[128,64], index: 13, kind: input, shape index: {}]   ;;  %s18427_s14 = inlined_call_operand.vmem [shape: f32[1,64], index: 14, kind: input, shape index: {}]   ;;  %s18428_s15 = inlined_call_operand.vmem [shape: bf16[64,128], index: 15, kind: input, shape index: {}]   ;;  %s18429_s16 = inlined_call_operand.vmem [shape: f32[1,128], index: 16, kind: input, shape index: {}]   ;;  %s18430_s17 = inlined_call_operand.vmem [shape: f32[2,8,128], index: 17, kind: output, shape index: {}]  }
   0x1   :  { %18516 = sst [smem:[#allocation71_spill]] %s18413_s0 }
   0x2   :  { %18517 = sst [smem:[#allocation72_spill]] %s18414_s1 }
   0x3 LB: > { %s14225_s25 = sadd.s32 4294967295, %s14123_s24   ;;  %p10870_p0 = scmp.ge.s32.totalorder %s14123_s24, 1  ;;  %s14123_s24 = sphi %s14219_s24, %s27_s24  }
   0x4   : > { %p488_p1 = scmp.lt.s32.totalorder %s14123_s24, 3 }
   0x6   : > { %p489_p2 = pnand %p10870_p0, %p488_p1 }
   0x8   : > { %492 = sbr.rel (%p489_p2) target bundleno = 3224 (0xc98), region = 88 }
   0xf   : > { %s18518_s28 = sld [smem:[#allocation72_spill]]  ;;  %vm1219_vm0 = vcmask 1044480   ;;  %vm1220_vm1 = vcmask 1045504   ;;  %s10871_s30 = sshll.u32 %s14225_s25, 7  ;;  %v14125_v2 = vmov 65535   ;;  %vm1026_vm2 = vcmask 220160  }
  0x10   : > { %v1221_v3 = vsel %vm1219_vm0, 4294967295, %v14125_v2  ;;  %p540_p3 = scmp.lt.s32.totalorder %s10871_s30, 255  ;;  %s18519_s20 = sld [smem:[#allocation71_spill]]  ;;  %v13973_v55 = vld [vmem:[%s18423_s10 + $0x4] ss:$8 sps:$4 sm:$0xff]   ;;  %vm550_vm3 = vcmask 261120  }
  0x11   : > { %v1222_v4 = vsel %vm1220_vm1, %v1221_v3, 0  ;;  %3115 = vmatprep.mubr.bf16.mxu1 %v13973_v55  ;;  %v14356_v62 = vld [vmem:[%s18415_s2] ss:$0 sm:$0xff]  ;;  %vm558_vm4 = vcmask 523264   ;;  %vm14127_vm5 = vmmov 0   ;;  %vm8164_vm6 = vcmask 1043456  }
  0x12   : > { %s18762_s30 = smov (!%p540_p3, %s10871_s30), 255  ;;  %vm8154_vm7 = vcmask 850944   ;;  %p545_p4 = scmp.lt.s32.totalorder %s14225_s25, 1 }
  0x13   : > { %s10872_s18 = sshll.u32 %s18762_s30, 2 }
  0x14   : > { %s18764_s25 = smov (!%p545_p4, %s14225_s25), 1 }
  0x15   : > { %v13907_v0 = vld [vmem:[%s18518_s28] sm:$0xff]   ;;  %v13908_v1 = vld [vmem:[%s18518_s28 + $0x8] sm:$0x3f]   ;;  %s10873_s29 = sshll.u32 %s18764_s25, 3 }
  0x16   : > { %12261 = vmatprep.subr.bf16.mxu0 %v13907_v0  ;;  %v1224_v5 = vand.u32 %v13908_v1, %v1222_v4  ;;  %s14239_s21 = scalar_lea.vmem %s18519_s20, %s10872_s18  ;;  %s548_s1 = scalar_lea.vmem %s18430_s17, %s10873_s29 }
  0x17   : > { %12262 = vmatpush3.bf16.msra.mxu0 %v13907_v0  ;;  %v13909_v6 = vld [vmem:[%s14239_s21] sm:$0xff]   ;;  %v13910_v7 = vld [vmem:[%s14239_s21 + $0x8] sm:$0xff]   ;;  %v13911_v8 = vld [vmem:[%s14239_s21 + $0x10] sm:$0xff]  }
  0x18   : > { %12263 = vmatprep.subr.bf16.mxu0 %v1224_v5  ;;  %12265 = vmatprep.mubr.msk.bf16.mxu0 %vm1026_vm2, %v13909_v6  ;;  %v13912_v9 = vld [vmem:[%s14239_s21 + $0x18] sm:$0xff]   ;;  %v13913_v10 = vld [vmem:[%s14239_s21 + $0x20] sm:$0xff]   ;;  %v13914_v11 = vld [vmem:[%s14239_s21 + $0x28] sm:$0xff]  }
  0x19   : > { %v13915_v12 = vld [vmem:[%s14239_s21 + $0x30] sm:$0xff]   ;;  %v13916_v13 = vld [vmem:[%s14239_s21 + $0x38] sm:$0xff]   ;;  %v13917_v14 = vld [vmem:[%s14239_s21 + $0x40] sm:$0xff]  }
  0x1a   : > { %v13918_v15 = vld [vmem:[%s14239_s21 + $0x48] sm:$0xff]   ;;  %v13919_v16 = vld [vmem:[%s14239_s21 + $0x50] sm:$0xff]   ;;  %v13920_v17 = vld [vmem:[%s14239_s21 + $0x58] sm:$0xff]  }
  0x1b   : > { %12264 = vmatpush3.bf16.msra.mxu0 %v1224_v5  ;;  %v13921_v18 = vld [vmem:[%s14239_s21 + $0x60] sm:$0xff]   ;;  %v13922_v19 = vld [vmem:[%s14239_s21 + $0x68] sm:$0xff]   ;;  %v13923_v20 = vld [vmem:[%s14239_s21 + $0x70] sm:$0xff]  }
  0x1c   : > { %v13924_v21 = vld [vmem:[%s14239_s21 + $0x78] sm:$0xff]   ;;  %v13925_v22 = vld [vmem:[%s14239_s21 + $0x80] sm:$0xff]   ;;  %v13926_v23 = vld [vmem:[%s14239_s21 + $0x88] sm:$0xff]  }
  0x1d   : > { %v13927_v24 = vld [vmem:[%s14239_s21 + $0x90] sm:$0xff]   ;;  %v13928_v25 = vld [vmem:[%s14239_s21 + $0x98] sm:$0xff]   ;;  %v13929_v26 = vld [vmem:[%s14239_s21 + $0xa0] sm:$0xff]  }
  0x1e   : > { %12266 = vmatmul.mubr.msk.bf16.vlgmr.msra.gmra.mrb[0].mxu0 %vm1026_vm2, %v13910_v7  ;;  %v13930_v27 = vld [vmem:[%s14239_s21 + $0xa8] sm:$0xff]   ;;  %v13931_v28 = vld [vmem:[%s14239_s21 + $0xb0] sm:$0xff]   ;;  %v13932_v29 = vld [vmem:[%s14239_s21 + $0xb8] sm:$0xff]  }
  0x1f   : > { %12269 = vmatprep.mubr.msk.bf16.mxu0 %vm1026_vm2, %v13911_v8  ;;  %v13933_v30 = vld [vmem:[%s14239_s21 + $0xc0] sm:$0xff]   ;;  %v13934_v31 = vld [vmem:[%s14239_s21 + $0xc8] sm:$0xff]   ;;  %v13935_v32 = vld [vmem:[%s14239_s21 + $0xd0] sm:$0xff]  }
  0x20   : > { %v13936_v33 = vld [vmem:[%s14239_s21 + $0xd8] sm:$0xff]   ;;  %v13937_v34 = vld [vmem:[%s14239_s21 + $0xe0] sm:$0xff]   ;;  %v13938_v35 = vld [vmem:[%s14239_s21 + $0xe8] sm:$0xff]  }
  0x21   : > { %v13939_v36 = vld [vmem:[%s14239_s21 + $0xf0] sm:$0xff]   ;;  %v13940_v37 = vld [vmem:[%s14239_s21 + $0xf8] sm:$0xff]   ;;  %v13941_v38 = vld [vmem:[%s14239_s21 + $0x100] sm:$0xff]  }
  0x22   : > { %v13942_v39 = vld [vmem:[%s14239_s21 + $0x108] sm:$0xff]   ;;  %v13943_v40 = vld [vmem:[%s14239_s21 + $0x110] sm:$0xff]   ;;  %v13944_v41 = vld [vmem:[%s14239_s21 + $0x118] sm:$0xff]  }
  0x23   : > { %v13945_v42 = vld [vmem:[%s14239_s21 + $0x120] sm:$0xff]   ;;  %v13946_v43 = vld [vmem:[%s14239_s21 + $0x128] sm:$0xff]   ;;  %v13947_v44 = vld [vmem:[%s14239_s21 + $0x130] sm:$0xff]  }
  0x24   : > { %v13948_v45 = vld [vmem:[%s14239_s21 + $0x138] sm:$0xff]   ;;  %v13949_v46 = vld [vmem:[%s14239_s21 + $0x140] sm:$0xff]   ;;  %v13950_v47 = vld [vmem:[%s14239_s21 + $0x148] sm:$0xff]  }
  0x25   : > { %v13951_v48 = vld [vmem:[%s14239_s21 + $0x150] sm:$0xff]   ;;  %v13952_v49 = vld [vmem:[%s14239_s21 + $0x158] sm:$0xff]   ;;  %v13953_v50 = vld [vmem:[%s14239_s21 + $0x160] sm:$0xff]  }
  0x26   : > { %12270 = vmatmul.mubr.msk.bf16.gmra.mrb[4].mxu0 %vm1026_vm2, %v13912_v9  ;;  %v13954_v51 = vld [vmem:[%s14239_s21 + $0x168] sm:$0xff]   ;;  %v13955_v52 = vld [vmem:[%s14239_s21 + $0x170] sm:$0xff]   ;;  %v13956_v53 = vld [vmem:[%s14239_s21 + $0x178] sm:$0xff]  }
  0x27   : > { %12273 = vmatprep.mubr.msk.bf16.mxu0 %vm1026_vm2, %v13913_v10  ;;  %v13957_v54 = vld [vmem:[%s14239_s21 + $0x180] sm:$0xff]   ;;  %v13958_v56 = vld [vmem:[%s14239_s21 + $0x188] sm:$0xff]   ;;  %v13959_v57 = vld [vmem:[%s14239_s21 + $0x190] sm:$0xff]  }
  0x28   : > { %v13960_v58 = vld [vmem:[%s14239_s21 + $0x198] sm:$0xff]   ;;  %v13961_v59 = vld [vmem:[%s14239_s21 + $0x1a0] sm:$0xff]   ;;  %v13962_v60 = vld [vmem:[%s14239_s21 + $0x1a8] sm:$0xff]  }
  0x29   : > { %v13963_v61 = vld [vmem:[%s14239_s21 + $0x1b0] sm:$0xff]   ;;  %v14362_v0 = vld [vmem:[%s18416_s3] ss:$0 sm:$0xff]  ;;  %v13964_v3 = vld [vmem:[%s14239_s21 + $0x1b8] sm:$0xff]  }
  0x2a   : > { %v13965_v6 = vld [vmem:[%s14239_s21 + $0x1c0] sm:$0xff]  }
  0x2e   : > { %12274 = vmatmul.mubr.msk.bf16.gmra.mrb[8].mxu0 %vm1026_vm2, %v13914_v11 }
  0x2f   : > { %12277 = vmatprep.mubr.msk.bf16.mxu0 %vm1026_vm2, %v13915_v12 }
  0x36   : > { %12278 = vmatmul.mubr.msk.bf16.gmra.mrb[12].mxu0 %vm1026_vm2, %v13916_v13 }
  0x37   : > { %12281 = vmatprep.mubr.msk.bf16.mxu0 %vm1026_vm2, %v13917_v14 }
  0x3e   : > { %12282 = vmatmul.mubr.msk.bf16.gmra.mrb[16].mxu0 %vm1026_vm2, %v13918_v15 }
  0x3f   : > { %12285 = vmatprep.mubr.msk.bf16.mxu0 %vm1026_vm2, %v13919_v16 }
  0x46   : > { %12286 = vmatmul.mubr.msk.bf16.gmra.mrb[20].mxu0 %vm1026_vm2, %v13920_v17 }
  0x47   : > { %12289 = vmatprep.mubr.msk.bf16.mxu0 %vm1026_vm2, %v13921_v18 }
  0x4e   : > { %12290 = vmatmul.mubr.msk.bf16.gmra.mrb[24].mxu0 %vm1026_vm2, %v13922_v19 }
  0x4f   : > { %12293 = vmatprep.mubr.msk.bf16.mxu0 %vm1026_vm2, %v13923_v20 }
  0x56   : > { %12294 = vmatmul.mubr.msk.bf16.gmra.mrb[28].mxu0 %vm1026_vm2, %v13924_v21  ;;  %v13966_v21 = vld [vmem:[%s14239_s21 + $0x1c8] sm:$0xff]  }
  0x57   : > { %12297 = vmatprep.mubr.msk.bf16.mxu0 %vm1026_vm2, %v13925_v22 }
  0x5e   : > { %12298 = vmatmul.mubr.msk.bf16.gmra.mrb[32].mxu0 %vm1026_vm2, %v13926_v23 }
  0x5f   : > { %12301 = vmatprep.mubr.msk.bf16.mxu0 %vm1026_vm2, %v13927_v24  ;;  %v13967_v24 = vld [vmem:[%s14239_s21 + $0x1d0] sm:$0xff]  }
  0x66   : > { %12302 = vmatmul.mubr.msk.bf16.gmra.mrb[36].mxu0 %vm1026_vm2, %v13928_v25 }
  0x67   : > { %12305 = vmatprep.mubr.msk.bf16.mxu0 %vm1026_vm2, %v13929_v26 }
  0x6e   : > { %12306 = vmatmul.mubr.msk.bf16.gmra.mrb[40].mxu0 %vm1026_vm2, %v13930_v27 }
  0x6f   : > { %12309 = vmatprep.mubr.msk.bf16.mxu0 %vm1026_vm2, %v13931_v28 }
  0x76   : > { %12310 = vmatmul.mubr.msk.bf16.gmra.mrb[44].mxu0 %vm1026_vm2, %v13932_v29 }
  0x77   : > { %12313 = vmatprep.mubr.msk.bf16.mxu0 %vm1026_vm2, %v13933_v30 }
  0x7e   : > { %12314 = vmatmul.mubr.msk.bf16.gmra.mrb[48].mxu0 %vm1026_vm2, %v13934_v31 }
  0x7f   : > { %12317 = vmatprep.mubr.msk.bf16.mxu0 %vm1026_vm2, %v13935_v32 }
  0x86   : > { %12318 = vmatmul.mubr.msk.bf16.gmra.mrb[52].mxu0 %vm1026_vm2, %v13936_v33 }
  0x87   : > { %12321 = vmatprep.mubr.msk.bf16.mxu0 %vm1026_vm2, %v13937_v34 }
  0x8e   : > { %12322 = vmatmul.mubr.msk.bf16.gmra.mrb[56].mxu0 %vm1026_vm2, %v13938_v35 }
  0x8f   : > { %12325 = vmatprep.mubr.msk.bf16.mxu0 %vm1026_vm2, %v13939_v36 }
  0x96   : > { %12326 = vmatmul.mubr.msk.bf16.gmra.mrb[60].mxu0 %vm1026_vm2, %v13940_v37 }
  0x97   : > { %12329 = vmatprep.mubr.msk.bf16.mxu0 %vm1026_vm2, %v13941_v38 }
  0x9e   : > { %12330 = vmatmul.mubr.msk.bf16.gmra.mrb[64].mxu0 %vm1026_vm2, %v13942_v39  ;;  %v13968_v39 = vld [vmem:[%s14239_s21 + $0x1d8] sm:$0xff]  }
  0x9f   : > { %12333 = vmatprep.mubr.msk.bf16.mxu0 %vm1026_vm2, %v13943_v40 }
  0xa6   : > { %12334 = vmatmul.mubr.msk.bf16.gmra.mrb[68].mxu0 %vm1026_vm2, %v13944_v41 }
  0xa7   : > { %12337 = vmatprep.mubr.msk.bf16.mxu0 %vm1026_vm2, %v13945_v42  ;;  %v13969_v42 = vld [vmem:[%s14239_s21 + $0x1e0] sm:$0xff]  }
  0xae   : > { %12338 = vmatmul.mubr.msk.bf16.gmra.mrb[72].mxu0 %vm1026_vm2, %v13946_v43 }
  0xaf   : > { %12341 = vmatprep.mubr.msk.bf16.mxu0 %vm1026_vm2, %v13947_v44 }
  0xb6   : > { %12342 = vmatmul.mubr.msk.bf16.gmra.mrb[76].mxu0 %vm1026_vm2, %v13948_v45 }
  0xb7   : > { %12345 = vmatprep.mubr.msk.bf16.mxu0 %vm1026_vm2, %v13949_v46 }
  0xbe   : > { %12346 = vmatmul.mubr.msk.bf16.gmra.mrb[80].mxu0 %vm1026_vm2, %v13950_v47 }
  0xbf   : > { %12349 = vmatprep.mubr.msk.bf16.mxu0 %vm1026_vm2, %v13951_v48 }
  0xc6   : > { %12350 = vmatmul.mubr.msk.bf16.gmra.mrb[84].mxu0 %vm1026_vm2, %v13952_v49 }
  0xc7   : > { %12353 = vmatprep.mubr.msk.bf16.mxu0 %vm1026_vm2, %v13953_v50 }
  0xce   : > { %12354 = vmatmul.mubr.msk.bf16.gmra.mrb[88].mxu0 %vm1026_vm2, %v13954_v51 }
  0xcf   : > { %12357 = vmatprep.mubr.msk.bf16.mxu0 %vm1026_vm2, %v13955_v52 }
  0xd6   : > { %12358 = vmatmul.mubr.msk.bf16.gmra.mrb[92].mxu0 %vm1026_vm2, %v13956_v53 }
  0xd7   : > { %12361 = vmatprep.mubr.msk.bf16.mxu0 %vm1026_vm2, %v13957_v54 }
  0xde   : > { %12362 = vmatmul.mubr.msk.bf16.gmra.mrb[96].mxu0 %vm1026_vm2, %v13958_v56 }
  0xdf   : > { %12365 = vmatprep.mubr.msk.bf16.mxu0 %vm1026_vm2, %v13959_v57 }
  0xe6   : > { %12366 = vmatmul.mubr.msk.bf16.gmra.mrb[100].mxu0 %vm1026_vm2, %v13960_v58 }
  0xe7   : > { %12369 = vmatprep.mubr.msk.bf16.mxu0 %vm1026_vm2, %v13961_v59 }
  0xee   : > { %12370 = vmatmul.mubr.msk.bf16.gmra.mrb[104].mxu0 %vm1026_vm2, %v13962_v60 }
  0xef   : > { %12373 = vmatprep.mubr.msk.bf16.mxu0 %vm1026_vm2, %v13963_v61 }
  0xf1   : > { %v12267_v63 = vpop.f32.mrb[0].mxu0 }
  0xf2   : > { %v1780_v1 = vmul.f32 %v12267_v63, %v14356_v62  ;;  %v1260_v2 = vpop.f32.mrb[1].mxu0 }
  0xf3   : > { %v1778_v4 = vmul.f32 %v14356_v62, %v1260_v2  ;;  %v12268_v5 = vpop.f32.mrb[2].mxu0 }
  0xf4   : > { %v14369_v7 = vadd.f32 %v14362_v0, %v1780_v1  ;;  %v1781_v8 = vmul.f32 %v12268_v5, %v14356_v62  ;;  %v1263_v9 = vpop.f32.mrb[3].mxu0  ;;  %v13970_v1 = vld [vmem:[%s14239_s21 + $0x1e8] sm:$0xff]  }
  0xf5   : > { %v1913_v10 = vadd.f32 %v14362_v0, %v1778_v4  ;;  %v1779_v11 = vmul.f32 %v14356_v62, %v1263_v9 }
  0xf6   : > { %v2043_v12 = vmax.f32 %v14369_v7, 0.0  ;;  %v14376_v13 = vadd.f32 %v14362_v0, %v1781_v8  ;;  %12374 = vmatmul.mubr.msk.bf16.gmra.mrb[108].mxu0 %vm1026_vm2, %v13964_v3 }
  0xf7   : > { %v2041_v14 = vmax.f32 %v1913_v10, 0.0  ;;  %v14380_v15 = vadd.f32 %v14362_v0, %v1779_v11  ;;  %12377 = vmatprep.mubr.msk.bf16.mxu0 %vm1026_vm2, %v13965_v6 }
  0xf8   : > { %2171 = vst.msk [vmem:[#allocation2 + $0x10] sm:$0xff] %vm550_vm3, %v2043_v12  ;;  %v2044_v16 = vmax.f32 %v14376_v13, 0.0 }
  0xf9   : > { %2169 = vst.msk [vmem:[#allocation2] sm:$0xff] %vm550_vm3, %v2041_v14  ;;  %v2042_v17 = vmax.f32 %v14380_v15, 0.0  ;;  %v12271_v18 = vpop.f32.mrb[4].mxu0 }
  0xfa   : > { %2172 = vst.msk [vmem:[#allocation2 + $0x18] sm:$0xff] %vm550_vm3, %v2044_v16  ;;  %v1784_v19 = vmul.f32 %v12271_v18, %v14356_v62  ;;  %v1276_v20 = vpop.f32.mrb[5].mxu0 }
  0xfb   : > { %2170 = vst.msk [vmem:[#allocation2 + $0x8] sm:$0xff] %vm550_vm3, %v2042_v17  ;;  %v1782_v22 = vmul.f32 %v14356_v62, %v1276_v20  ;;  %v12272_v23 = vpop.f32.mrb[6].mxu0 }
  0xfc   : > { %v14398_v25 = vadd.f32 %v14362_v0, %v1784_v19  ;;  %v1785_v26 = vmul.f32 %v12272_v23, %v14356_v62  ;;  %v1279_v27 = vpop.f32.mrb[7].mxu0  ;;  %v13971_v19 = vld [vmem:[%s14239_s21 + $0x1f0] sm:$0xff]  }
  0xfd   : > { %v14402_v28 = vadd.f32 %v14362_v0, %v1782_v22  ;;  %v1783_v29 = vmul.f32 %v14356_v62, %v1279_v27 }
  0xfe   : > { %v2047_v30 = vmax.f32 %v14398_v25, 0.0  ;;  %v14407_v31 = vadd.f32 %v14362_v0, %v1785_v26  ;;  %12378 = vmatmul.mubr.msk.bf16.gmra.mrb[112].mxu0 %vm1026_vm2, %v13966_v21 }
  0xff   : > { %v2045_v32 = vmax.f32 %v14402_v28, 0.0  ;;  %v14412_v33 = vadd.f32 %v14362_v0, %v1783_v29  ;;  %12381 = vmatprep.mubr.msk.bf16.mxu0 %vm1026_vm2, %v13967_v24  ;;  %v2553_v50 = vld [vmem:[#allocation2 + $0x10] sm:$0xff] }
 0x100   : > { %2175 = vst.msk [vmem:[#allocation2 + $0x30] sm:$0xff] %vm550_vm3, %v2047_v30  ;;  %v2048_v34 = vmax.f32 %v14407_v31, 0.0 }
 0x101   : > { %2173 = vst.msk [vmem:[#allocation2 + $0x20] sm:$0xff] %vm550_vm3, %v2045_v32  ;;  %v2046_v35 = vmax.f32 %v14412_v33, 0.0  ;;  %v12275_v36 = vpop.f32.mrb[8].mxu0  ;;  %v2299_v44 = vld [vmem:[#allocation2 + $0x11] sm:$0xff] }
 0x102   : > { %2176 = vst.msk [vmem:[#allocation2 + $0x38] sm:$0xff] %vm550_vm3, %v2048_v34  ;;  %v1788_v37 = vmul.f32 %v12275_v36, %v14356_v62  ;;  %v1292_v38 = vpop.f32.mrb[9].mxu0  ;;  %v2297_v43 = vld [vmem:[#allocation2 + $0x1] sm:$0xff]  ;;  %v2298_v53 = vld [vmem:[#allocation2 + $0x9] sm:$0xff]  ;;  %v2683_v55 = vmax.f32 %v2553_v50, %v2299_v44  ;;  %v2554_v60 = vld [vmem:[#allocation2 + $0x18] sm:$0xff]  ;;  %v2427_v10 = vmax.f32 %v2043_v12, %v2299_v44 }
 0x103   : > { %2174 = vst.msk [vmem:[#allocation2 + $0x28] sm:$0xff] %vm550_vm3, %v2046_v35  ;;  %v1786_v40 = vmul.f32 %v14356_v62, %v1292_v38  ;;  %v12276_v41 = vpop.f32.mrb[10].mxu0  ;;  %v2425_v54 = vmax.f32 %v2041_v14, %v2297_v43  ;;  %v2426_v2 = vmax.f32 %v2042_v17, %v2298_v53  ;;  %v13972_v50 = vld [vmem:[%s14239_s21 + $0x1f8] sm:$0xff]  }
 0x104   : > { %v14434_v45 = vadd.f32 %v14362_v0, %v1788_v37  ;;  %v1789_v46 = vmul.f32 %v12276_v41, %v14356_v62  ;;  %v1295_v47 = vpop.f32.mrb[11].mxu0 }
 0x105   : > { %v14438_v48 = vadd.f32 %v14362_v0, %v1786_v40  ;;  %v1787_v49 = vmul.f32 %v14356_v62, %v1295_v47  ;;  %v14466_v11 = vmax.f32 %v2425_v54, %v2683_v55 }
 0x106   : > { %v2051_v51 = vmax.f32 %v14434_v45, 0.0  ;;  %v14443_v52 = vadd.f32 %v14362_v0, %v1789_v46  ;;  %12382 = vmatmul.mubr.msk.bf16.gmra.mrb[116].mxu0 %vm1026_vm2, %v13968_v39 }
 0x107   : > { %v2049_v56 = vmax.f32 %v14438_v48, 0.0  ;;  %v14448_v57 = vadd.f32 %v14362_v0, %v1787_v49  ;;  %12385 = vmatprep.mubr.msk.bf16.mxu0 %vm1026_vm2, %v13969_v42  ;;  %v2557_v7 = vld [vmem:[#allocation2 + $0x30] sm:$0xff] }
 0x108   : > { %2179 = vst.msk [vmem:[#allocation2 + $0x50] sm:$0xff] %vm550_vm3, %v2051_v51  ;;  %v2052_v58 = vmax.f32 %v14443_v52, 0.0  ;;  %v2300_v59 = vld [vmem:[#allocation2 + $0x19] sm:$0xff] }
 0x109   : > { %2177 = vst.msk [vmem:[#allocation2 + $0x40] sm:$0xff] %vm550_vm3, %v2049_v56  ;;  %v2050_v61 = vmax.f32 %v14448_v57, 0.0  ;;  %v12279_v63 = vpop.f32.mrb[12].mxu0  ;;  %v2684_v3 = vmax.f32 %v2554_v60, %v2300_v59  ;;  %v2303_v4 = vld [vmem:[#allocation2 + $0x31] sm:$0xff]  ;;  %v2428_v20 = vmax.f32 %v2044_v16, %v2300_v59  ;;  %v2555_v22 = vld [vmem:[#allocation2 + $0x20] sm:$0xff] }
 0x10a   : > { %v2302_v5 = vld [vmem:[#allocation2 + $0x29] sm:$0xff]  ;;  %2180 = vst.msk [vmem:[#allocation2 + $0x58] sm:$0xff] %vm550_vm3, %v2052_v58  ;;  %v1792_v8 = vmul.f32 %v12279_v63, %v14356_v62  ;;  %v1308_v9 = vpop.f32.mrb[13].mxu0  ;;  %v2301_v14 = vld [vmem:[#allocation2 + $0x21] sm:$0xff]  ;;  %v2687_v27 = vmax.f32 %v2557_v7, %v2303_v4  ;;  %v2558_v47 = vld [vmem:[#allocation2 + $0x38] sm:$0xff] }
 0x10b   : > { %v2556_v6 = vld [vmem:[#allocation2 + $0x28] sm:$0xff]  ;;  %2178 = vst.msk [vmem:[#allocation2 + $0x48] sm:$0xff] %vm550_vm3, %v2050_v61  ;;  %v1790_v17 = vmul.f32 %v14356_v62, %v1308_v9  ;;  %v12280_v18 = vpop.f32.mrb[14].mxu0  ;;  %v14475_v21 = vmax.f32 %v2426_v2, %v2684_v3  ;;  %v2685_v26 = vmax.f32 %v2555_v22, %v2301_v14  ;;  %v2429_v40 = vmax.f32 %v2045_v32, %v2301_v14 }
 0x10c   : > { %v2686_v15 = vmax.f32 %v2556_v6, %v2302_v5  ;;  %v14478_v12 = vadd.f32 %v14362_v0, %v1792_v8  ;;  %v1793_v23 = vmul.f32 %v12280_v18, %v14356_v62  ;;  %v1311_v24 = vpop.f32.mrb[15].mxu0  ;;  %v2430_v28 = vmax.f32 %v2046_v35, %v2302_v5 }
 0x10d   : > { %v14482_v29 = vadd.f32 %v14362_v0, %v1790_v17  ;;  %v1791_v36 = vmul.f32 %v14356_v62, %v1311_v24  ;;  %v2939_v13 = vpack.c.bf16 %v14475_v21, %v14466_v11  ;;  %v14494_v39 = vmax.f32 %v2427_v10, %v2685_v26 }
 0x10e   : > { %v14487_v16 = vmax.f32 %v2428_v20, %v2686_v15  ;;  %v2055_v37 = vmax.f32 %v14478_v12, 0.0  ;;  %v14491_v38 = vadd.f32 %v14362_v0, %v1793_v23  ;;  %12386 = vmatmul.mubr.msk.bf16.gmra.mrb[120].mxu0 %vm1026_vm2, %v13970_v1  ;;  %v14520_v35 = vmax.f32 %v2429_v40, %v2687_v27 }
 0x10f   : > { %v2053_v41 = vmax.f32 %v14482_v29, 0.0  ;;  %v14500_v42 = vadd.f32 %v14362_v0, %v1791_v36  ;;  %12389 = vmatprep.mubr.msk.bf16.mxu0 %vm1026_vm2, %v13971_v19  ;;  %v2431_v1 = vmax.f32 %v2047_v30, %v2303_v4  ;;  %v2561_v10 = vld [vmem:[#allocation2 + $0x50] sm:$0xff] }
 0x110   : > { %2183 = vst.msk [vmem:[#allocation2 + $0x70] sm:$0xff] %vm550_vm3, %v2055_v37  ;;  %v2056_v43 = vmax.f32 %v14491_v38, 0.0  ;;  %v2940_v44 = vpack.c.bf16 %v14487_v16, %v14494_v39  ;;  %v2304_v46 = vld [vmem:[#allocation2 + $0x39] sm:$0xff] }
 0x111   : > { %2181 = vst.msk [vmem:[#allocation2 + $0x60] sm:$0xff] %vm550_vm3, %v2053_v41  ;;  %v2054_v32 = vmax.f32 %v14500_v42, 0.0  ;;  %v12283_v49 = vpop.f32.mrb[16].mxu0  ;;  %v2688_v53 = vmax.f32 %v2558_v47, %v2304_v46  ;;  %v2307_v54 = vld [vmem:[#allocation2 + $0x51] sm:$0xff]  ;;  %v2432_v8 = vmax.f32 %v2048_v34, %v2304_v46  ;;  %v2559_v9 = vld [vmem:[#allocation2 + $0x40] sm:$0xff] }
 0x112   : > { %v2306_v55 = vld [vmem:[#allocation2 + $0x49] sm:$0xff]  ;;  %2184 = vst.msk [vmem:[#allocation2 + $0x78] sm:$0xff] %vm550_vm3, %v2056_v43  ;;  %v1796_v60 = vmul.f32 %v12283_v49, %v14356_v62  ;;  %v1324_v33 = vpop.f32.mrb[17].mxu0  ;;  %v2305_v63 = vld [vmem:[#allocation2 + $0x41] sm:$0xff]  ;;  %v2691_v15 = vmax.f32 %v2561_v10, %v2307_v54  ;;  %v2562_v40 = vld [vmem:[#allocation2 + $0x58] sm:$0xff] }
 0x113   : > { %v2560_v59 = vld [vmem:[#allocation2 + $0x48] sm:$0xff]  ;;  %2182 = vst.msk [vmem:[#allocation2 + $0x68] sm:$0xff] %vm550_vm3, %v2054_v32  ;;  %v1794_v3 = vmul.f32 %v14356_v62, %v1324_v33  ;;  %v12284_v5 = vpop.f32.mrb[18].mxu0  ;;  %v14528_v6 = vmax.f32 %v2430_v28, %v2688_v53  ;;  %v2689_v4 = vmax.f32 %v2559_v9, %v2305_v63  ;;  %v2433_v7 = vmax.f32 %v2049_v56, %v2305_v63 }
 0x114   : > { %v2690_v2 = vmax.f32 %v2560_v59, %v2306_v55  ;;  %v14533_v14 = vadd.f32 %v14362_v0, %v1796_v60  ;;  %v1797_v25 = vmul.f32 %v12284_v5, %v14356_v62  ;;  %v1327_v30 = vpop.f32.mrb[19].mxu0  ;;  %v2434_v48 = vmax.f32 %v2050_v61, %v2306_v55 }
 0x115   : > { %v14537_v17 = vadd.f32 %v14362_v0, %v1794_v3  ;;  %v1795_v18 = vmul.f32 %v14356_v62, %v1327_v30  ;;  %v2941_v19 = vpack.c.bf16 %v14528_v6, %v14520_v35  ;;  %v14549_v22 = vmax.f32 %v2431_v1, %v2689_v4 }
 0x116   : > { %v14542_v31 = vmax.f32 %v2432_v8, %v2690_v2  ;;  %v2059_v34 = vmax.f32 %v14533_v14, 0.0  ;;  %v14546_v20 = vadd.f32 %v14362_v0, %v1797_v25  ;;  %12390 = vmatmul.mubr.msk.bf16.gmra.mrb[124].mxu0 %vm1026_vm2, %v13972_v50  ;;  %v14573_v57 = vmax.f32 %v2433_v7, %v2691_v15 }
 0x117   : > { %v2057_v23 = vmax.f32 %v14537_v17, 0.0  ;;  %v14555_v24 = vadd.f32 %v14362_v0, %v1795_v18  ;;  %v2435_v55 = vmax.f32 %v2051_v51, %v2307_v54  ;;  %v2565_v5 = vld [vmem:[#allocation2 + $0x70] sm:$0xff] }
 0x118   : > { %2187 = vst.msk [vmem:[#allocation2 + $0x90] sm:$0xff] %vm550_vm3, %v2059_v34  ;;  %v2060_v26 = vmax.f32 %v14546_v20, 0.0  ;;  %v2308_v36 = vld [vmem:[#allocation2 + $0x59] sm:$0xff] }
 0x119   : > { %2185 = vst.msk [vmem:[#allocation2 + $0x80] sm:$0xff] %vm550_vm3, %v2057_v23  ;;  %v2058_v56 = vmax.f32 %v14555_v24, 0.0  ;;  %v12287_v46 = vpop.f32.mrb[20].mxu0  ;;  %v2692_v47 = vmax.f32 %v2562_v40, %v2308_v36  ;;  %v2311_v28 = vld [vmem:[#allocation2 + $0x71] sm:$0xff]  ;;  %v2436_v2 = vmax.f32 %v2052_v58, %v2308_v36  ;;  %v2563_v3 = vld [vmem:[#allocation2 + $0x60] sm:$0xff] }
 0x11a   : > { %v2310_v49 = vld [vmem:[#allocation2 + $0x69] sm:$0xff]  ;;  %2188 = vst.msk [vmem:[#allocation2 + $0x98] sm:$0xff] %vm550_vm3, %v2060_v26  ;;  %v1800_v53 = vmul.f32 %v12287_v46, %v14356_v62  ;;  %v1340_v59 = vpop.f32.mrb[21].mxu0  ;;  %v2309_v61 = vld [vmem:[#allocation2 + $0x61] sm:$0xff]  ;;  %v2695_v9 = vmax.f32 %v2565_v5, %v2311_v28 }
 0x11b   : > { %v2564_v50 = vld [vmem:[#allocation2 + $0x68] sm:$0xff]  ;;  %2186 = vst.msk [vmem:[#allocation2 + $0x88] sm:$0xff] %vm550_vm3, %v2058_v56  ;;  %v1798_v33 = vmul.f32 %v14356_v62, %v1340_v59  ;;  %v12288_v63 = vpop.f32.mrb[22].mxu0  ;;  %v14581_v1 = vmax.f32 %v2434_v48, %v2692_v47  ;;  %v2693_v54 = vmax.f32 %v2563_v3, %v2309_v61  ;;  %v2437_v18 = vmax.f32 %v2053_v41, %v2309_v61  ;;  %v2566_v47 = vld [vmem:[#allocation2 + $0x78] sm:$0xff] }
 0x11c   : > { %v2694_v60 = vmax.f32 %v2564_v50, %v2310_v49  ;;  %v14586_v8 = vadd.f32 %v14362_v0, %v1800_v53  ;;  %v1801_v45 = vmul.f32 %v12288_v63, %v14356_v62  ;;  %v1343_v51 = vpop.f32.mrb[23].mxu0 }
 0x11d   : > { %v14590_v10 = vadd.f32 %v14362_v0, %v1798_v33  ;;  %v1799_v25 = vmul.f32 %v14356_v62, %v1343_v51  ;;  %v14601_v15 = vmax.f32 %v2435_v55, %v2693_v54  ;;  %v2438_v55 = vmax.f32 %v2054_v32, %v2310_v49 }
 0x11e   : > { %v14595_v52 = vmax.f32 %v2436_v2, %v2694_v60  ;;  %v2063_v58 = vmax.f32 %v14586_v8, 0.0  ;;  %v14599_v4 = vadd.f32 %v14362_v0, %v1801_v45  ;;  %v14625_v5 = vmax.f32 %v2437_v18, %v2695_v9 }
 0x11f   : > { %v2061_v7 = vmax.f32 %v14590_v10, 0.0  ;;  %v14607_v36 = vadd.f32 %v14362_v0, %v1799_v25  ;;  %v2569_v59 = vld [vmem:[#allocation2 + $0x90] sm:$0xff]  ;;  %v2439_v45 = vmax.f32 %v2055_v37, %v2311_v28 }
 0x120   : > { %2191 = vst.msk [vmem:[#allocation2 + $0xb0] sm:$0xff] %vm550_vm3, %v2063_v58  ;;  %v2064_v40 = vmax.f32 %v14599_v4, 0.0  ;;  %v2312_v46 = vld [vmem:[#allocation2 + $0x79] sm:$0xff] }
 0x121   : > { %2189 = vst.msk [vmem:[#allocation2 + $0xa0] sm:$0xff] %vm550_vm3, %v2061_v7  ;;  %v2062_v29 = vmax.f32 %v14607_v36, 0.0  ;;  %v12291_v41 = vpop.f32.mrb[24].mxu0  ;;  %v2315_v50 = vld [vmem:[#allocation2 + $0x91] sm:$0xff]  ;;  %v2567_v53 = vld [vmem:[#allocation2 + $0x80] sm:$0xff]  ;;  %v2696_v61 = vmax.f32 %v2566_v47, %v2312_v46  ;;  %v2440_v54 = vmax.f32 %v2056_v43, %v2312_v46 }
 0x122   : > { %2192 = vst.msk [vmem:[#allocation2 + $0xb8] sm:$0xff] %vm550_vm3, %v2064_v40  ;;  %v1804_v60 = vmul.f32 %v12291_v41, %v14356_v62  ;;  %v1356_v33 = vpop.f32.mrb[25].mxu0  ;;  %v2313_v63 = vld [vmem:[#allocation2 + $0x81] sm:$0xff]  ;;  %v2314_v2 = vld [vmem:[#allocation2 + $0x89] sm:$0xff]  ;;  %v2699_v51 = vmax.f32 %v2569_v59, %v2315_v50 }
 0x123   : > { %v2568_v3 = vld [vmem:[#allocation2 + $0x88] sm:$0xff]  ;;  %2190 = vst.msk [vmem:[#allocation2 + $0xa8] sm:$0xff] %vm550_vm3, %v2062_v29  ;;  %v1802_v42 = vmul.f32 %v14356_v62, %v1356_v33  ;;  %v12292_v32 = vpop.f32.mrb[26].mxu0  ;;  %v2697_v49 = vmax.f32 %v2567_v53, %v2313_v63  ;;  %v14639_v37 = vmax.f32 %v2438_v55, %v2696_v61  ;;  %v2441_v41 = vmax.f32 %v2057_v23, %v2313_v63 }
 0x124   : > { %v14636_v25 = vadd.f32 %v14362_v0, %v1804_v60  ;;  %v1805_v9 = vmul.f32 %v12292_v32, %v14356_v62  ;;  %v1359_v18 = vpop.f32.mrb[27].mxu0  ;;  %v2698_v12 = vmax.f32 %v2568_v3, %v2314_v2  ;;  %v2570_v60 = vld [vmem:[#allocation2 + $0x98] sm:$0xff] }
 0x125   : > { %v14642_v28 = vadd.f32 %v14362_v0, %v1802_v42  ;;  %v1803_v47 = vmul.f32 %v14356_v62, %v1359_v18  ;;  %v14647_v53 = vmax.f32 %v2439_v45, %v2697_v49  ;;  %v2442_v45 = vmax.f32 %v2058_v56, %v2314_v2 }
 0x126   : > { %v2067_v38 = vmax.f32 %v14636_v25, 0.0  ;;  %v14651_v43 = vadd.f32 %v14362_v0, %v1805_v9  ;;  %v14655_v59 = vmax.f32 %v2440_v54, %v2698_v12  ;;  %v2443_v12 = vmax.f32 %v2059_v34, %v2315_v50 }
 0x127   : > { %v2065_v61 = vmax.f32 %v14642_v28, 0.0  ;;  %v14659_v55 = vadd.f32 %v14362_v0, %v1803_v47  ;;  %v2827_v47 = vmax.f32 %v2441_v41, %v2699_v51 }
 0x128   : > { %2195 = vst.msk [vmem:[#allocation2 + $0xd0] sm:$0xff] %vm550_vm3, %v2067_v38  ;;  %v2068_v17 = vmax.f32 %v14651_v43, 0.0  ;;  %v2316_v23 = vld [vmem:[#allocation2 + $0x99] sm:$0xff] }
 0x129   : > { %2193 = vst.msk [vmem:[#allocation2 + $0xc0] sm:$0xff] %vm550_vm3, %v2065_v61  ;;  %v2066_v63 = vmax.f32 %v14659_v55, 0.0  ;;  %v12295_v3 = vpop.f32.mrb[28].mxu0  ;;  %v2700_v42 = vmax.f32 %v2570_v60, %v2316_v23  ;;  %v2319_v32 = vld [vmem:[#allocation2 + $0xb1] sm:$0xff]  ;;  %v2444_v2 = vmax.f32 %v2060_v26, %v2316_v23  ;;  %v2571_v48 = vld [vmem:[#allocation2 + $0xa0] sm:$0xff] }
 0x12a   : > { %v2318_v49 = vld [vmem:[#allocation2 + $0xa9] sm:$0xff]  ;;  %2196 = vst.msk [vmem:[#allocation2 + $0xd8] sm:$0xff] %vm550_vm3, %v2068_v17  ;;  %v1808_v9 = vmul.f32 %v12295_v3, %v14356_v62  ;;  %v1372_v18 = vpop.f32.mrb[29].mxu0  ;;  %v2317_v33 = vld [vmem:[#allocation2 + $0xa1] sm:$0xff]  ;;  %v2574_v10 = vld [vmem:[#allocation2 + $0xb8] sm:$0xff]  ;;  %v2447_v36 = vmax.f32 %v2063_v58, %v2319_v32 }
 0x12b   : > { %v2572_v54 = vld [vmem:[#allocation2 + $0xa8] sm:$0xff]  ;;  %2194 = vst.msk [vmem:[#allocation2 + $0xc8] sm:$0xff] %vm550_vm3, %v2066_v63  ;;  %v1806_v24 = vmul.f32 %v14356_v62, %v1372_v18  ;;  %v12296_v56 = vpop.f32.mrb[30].mxu0  ;;  %v2828_v60 = vmax.f32 %v2442_v45, %v2700_v42  ;;  %v2573_v3 = vld [vmem:[#allocation2 + $0xb0] sm:$0xff]  ;;  %v2701_v50 = vmax.f32 %v2571_v48, %v2317_v33  ;;  %v2445_v45 = vmax.f32 %v2061_v7, %v2317_v33 }
 0x12c   : > { %v2702_v46 = vmax.f32 %v2572_v54, %v2318_v49  ;;  %v14686_v30 = vadd.f32 %v14362_v0, %v1808_v9  ;;  %v1809_v14 = vmul.f32 %v12296_v56, %v14356_v62  ;;  %v1375_v34 = vpop.f32.mrb[31].mxu0  ;;  %v2703_v51 = vmax.f32 %v2573_v3, %v2319_v32 }
 0x12d   : > { %v14690_v41 = vadd.f32 %v14362_v0, %v1806_v24  ;;  %v1807_v54 = vmul.f32 %v14356_v62, %v1375_v34  ;;  %v2947_v18 = vpack.c.bf16 %v2828_v60, %v2827_v47  ;;  %v2829_v23 = vmax.f32 %v2443_v12, %v2701_v50 }
 0x12e   : > { %v2830_v27 = vmax.f32 %v2444_v2, %v2702_v46  ;;  %v2071_v20 = vmax.f32 %v14686_v30, 0.0  ;;  %v14695_v26 = vadd.f32 %v14362_v0, %v1809_v14  ;;  %v2446_v7 = vmax.f32 %v2062_v29, %v2318_v49 }
 0x12f   : > { %v2069_v42 = vmax.f32 %v14690_v41, 0.0  ;;  %v14701_v48 = vadd.f32 %v14362_v0, %v1807_v54  ;;  %11597 = vmatprep.subr.bf16.mxu1 %v2947_v18  ;;  %v2577_v54 = vld [vmem:[#allocation2 + $0xd0] sm:$0xff] }
 0x130   : > { %2199 = vst.msk [vmem:[#allocation2 + $0xf0] sm:$0xff] %vm550_vm3, %v2071_v20  ;;  %v2072_v46 = vmax.f32 %v14695_v26, 0.0  ;;  %11598 = vmatpush3.bf16.msra.mxu1 %v2939_v13  ;;  %v2948_v9 = vpack.c.bf16 %v2830_v27, %v2829_v23  ;;  %v2320_v12 = vld [vmem:[#allocation2 + $0xb9] sm:$0xff]  ;;  %v2831_v13 = vmax.f32 %v2445_v45, %v2703_v51 }
 0x131   : > { %2197 = vst.msk [vmem:[#allocation2 + $0xe0] sm:$0xff] %vm550_vm3, %v2069_v42  ;;  %v2070_v33 = vmax.f32 %v14701_v48, 0.0  ;;  %v12299_v47 = vpop.f32.mrb[32].mxu0  ;;  %v2704_v24 = vmax.f32 %v2574_v10, %v2320_v12  ;;  %v2323_v56 = vld [vmem:[#allocation2 + $0xd1] sm:$0xff]  ;;  %v2448_v34 = vmax.f32 %v2064_v40, %v2320_v12  ;;  %v2575_v50 = vld [vmem:[#allocation2 + $0xc0] sm:$0xff] }
 0x132   : > { %v2322_v2 = vld [vmem:[#allocation2 + $0xc9] sm:$0xff]  ;;  %2200 = vst.msk [vmem:[#allocation2 + $0xf8] sm:$0xff] %vm550_vm3, %v2072_v46  ;;  %v1812_v11 = vmul.f32 %v12299_v47, %v14356_v62  ;;  %11599 = vmatprep.subr.bf16.mxu1 %v2948_v9  ;;  %v1388_v21 = vpop.f32.mrb[33].mxu0  ;;  %v2321_v27 = vld [vmem:[#allocation2 + $0xc1] sm:$0xff]  ;;  %v2707_v18 = vmax.f32 %v2577_v54, %v2323_v56  ;;  %v2578_v28 = vld [vmem:[#allocation2 + $0xd8] sm:$0xff] }
 0x133   : > { %v2576_v60 = vld [vmem:[#allocation2 + $0xc8] sm:$0xff]  ;;  %2198 = vst.msk [vmem:[#allocation2 + $0xe8] sm:$0xff] %vm550_vm3, %v2070_v33  ;;  %v1810_v49 = vmul.f32 %v14356_v62, %v1388_v21  ;;  %v12300_v3 = vpop.f32.mrb[34].mxu0  ;;  %v2832_v14 = vmax.f32 %v2446_v7, %v2704_v24  ;;  %v2705_v32 = vmax.f32 %v2575_v50, %v2321_v27  ;;  %v2449_v7 = vmax.f32 %v2065_v61, %v2321_v27 }
 0x134   : > { %v2706_v29 = vmax.f32 %v2576_v60, %v2322_v2  ;;  %v14729_v51 = vadd.f32 %v14362_v0, %v1812_v11  ;;  %v1813_v8 = vmul.f32 %v12300_v3, %v14356_v62  ;;  %v1391_v58 = vpop.f32.mrb[35].mxu0  ;;  %11600 = vmatpush3.bf16.msra.mxu1 %v2940_v44  ;;  %v2450_v61 = vmax.f32 %v2066_v63, %v2322_v2 }
 0x135   : > { %v14736_v23 = vadd.f32 %v14362_v0, %v1810_v49  ;;  %v1811_v4 = vmul.f32 %v14356_v62, %v1391_v58  ;;  %v2949_v40 = vpack.c.bf16 %v2832_v14, %v2831_v13  ;;  %v2833_v10 = vmax.f32 %v2447_v36, %v2705_v32 }
 0x136   : > { %v2834_v45 = vmax.f32 %v2448_v34, %v2706_v29  ;;  %v2075_v9 = vmax.f32 %v14729_v51, 0.0  ;;  %v14741_v12 = vadd.f32 %v14362_v0, %v1813_v8  ;;  %v2451_v63 = vmax.f32 %v2067_v38, %v2323_v56 }
 0x137   : > { %v2073_v16 = vmax.f32 %v14736_v23, 0.0  ;;  %v14747_v39 = vadd.f32 %v14362_v0, %v1811_v4  ;;  %11601 = vmatprep.subr.bf16.mxu1 %v2949_v40  ;;  %v2581_v50 = vld [vmem:[#allocation2 + $0xf0] sm:$0xff]  ;;  %v18520_v56 = vpack.c.bf16 %v14542_v31, %v14549_v22 }
 0x138   : > { %2203 = vst.msk [vmem:[#allocation2 + $0x110] sm:$0xff] %vm550_vm3, %v2075_v9  ;;  %v2076_v44 = vmax.f32 %v14741_v12, 0.0  ;;  %11602 = vmatpush3.bf16.msra.mxu1 %v2941_v19  ;;  %v2950_v47 = vpack.c.bf16 %v2834_v45, %v2833_v10  ;;  %v2324_v24 = vld [vmem:[#allocation2 + $0xd9] sm:$0xff]  ;;  %v2835_v19 = vmax.f32 %v2449_v7, %v2707_v18 }
 0x139   : > { %2201 = vst.msk [vmem:[#allocation2 + $0x100] sm:$0xff] %vm550_vm3, %v2073_v16  ;;  %v2074_v60 = vmax.f32 %v14747_v39, 0.0  ;;  %v12303_v11 = vpop.f32.mrb[36].mxu0  ;;  %v2708_v21 = vmax.f32 %v2578_v28, %v2324_v24  ;;  %v2327_v13 = vld [vmem:[#allocation2 + $0xf1] sm:$0xff]  ;;  %v2452_v14 = vmax.f32 %v2068_v17, %v2324_v24  ;;  %v2579_v34 = vld [vmem:[#allocation2 + $0xe0] sm:$0xff] }
 0x13a   : > { %v2326_v27 = vld [vmem:[#allocation2 + $0xe9] sm:$0xff]  ;;  %2204 = vst.msk [vmem:[#allocation2 + $0x118] sm:$0xff] %vm550_vm3, %v2076_v44  ;;  %v1816_v35 = vmul.f32 %v12303_v11, %v14356_v62  ;;  %11603 = vmatprep.subr.bf16.mxu1 %v2950_v47  ;;  %v1404_v6 = vpop.f32.mrb[37].mxu0  ;;  %v2325_v55 = vld [vmem:[#allocation2 + $0xe1] sm:$0xff]  ;;  %v2711_v58 = vmax.f32 %v2581_v50, %v2327_v13  ;;  %v18521_v47 = vpack.c.bf16 %v14581_v1, %v14573_v57  ;;  %v2582_v41 = vld [vmem:[#allocation2 + $0xf8] sm:$0xff] }
 0x13b   : > { %v2580_v36 = vld [vmem:[#allocation2 + $0xe8] sm:$0xff]  ;;  %2202 = vst.msk [vmem:[#allocation2 + $0x108] sm:$0xff] %vm550_vm3, %v2074_v60  ;;  %v1814_v29 = vmul.f32 %v14356_v62, %v1404_v6  ;;  %v12304_v49 = vpop.f32.mrb[38].mxu0  ;;  %v2836_v3 = vmax.f32 %v2450_v61, %v2708_v21  ;;  %v2709_v8 = vmax.f32 %v2579_v34, %v2325_v55  ;;  %v2453_v10 = vmax.f32 %v2069_v42, %v2325_v55 }
 0x13c   : > { %v2710_v2 = vmax.f32 %v2580_v36, %v2326_v27  ;;  %v14775_v54 = vadd.f32 %v14362_v0, %v1816_v35  ;;  %v1817_v25 = vmul.f32 %v12304_v49, %v14356_v62  ;;  %v1407_v38 = vpop.f32.mrb[39].mxu0  ;;  %11604 = vmatpush3.bf16.msra.mxu1 %v18520_v56  ;;  %v2454_v42 = vmax.f32 %v2070_v33, %v2326_v27 }
 0x13d   : > { %v14782_v32 = vadd.f32 %v14362_v0, %v1814_v29  ;;  %v1815_v43 = vmul.f32 %v14356_v62, %v1407_v38  ;;  %v2951_v17 = vpack.c.bf16 %v2836_v3, %v2835_v19  ;;  %v2837_v45 = vmax.f32 %v2451_v63, %v2709_v8 }
 0x13e   : > { %v2838_v18 = vmax.f32 %v2452_v14, %v2710_v2  ;;  %v2079_v4 = vmax.f32 %v14775_v54, 0.0  ;;  %v14787_v40 = vadd.f32 %v14362_v0, %v1817_v25  ;;  %v2839_v48 = vmax.f32 %v2453_v10, %v2711_v58 }
 0x13f   : > { %v2077_v31 = vmax.f32 %v14782_v32, 0.0  ;;  %v14793_v22 = vadd.f32 %v14362_v0, %v1815_v43  ;;  %11605 = vmatprep.subr.bf16.mxu1 %v2951_v17  ;;  %v2455_v27 = vmax.f32 %v2071_v20, %v2327_v13  ;;  %v2585_v3 = vld [vmem:[#allocation2 + $0x110] sm:$0xff]  ;;  %v18522_v13 = vpack.c.bf16 %v14595_v52, %v14601_v15 }
 0x140   : > { %2207 = vst.msk [vmem:[#allocation2 + $0x130] sm:$0xff] %vm550_vm3, %v2079_v4  ;;  %v2080_v7 = vmax.f32 %v14787_v40, 0.0  ;;  %11606 = vmatpush3.bf16.msra.mxu1 %v18521_v47  ;;  %v2952_v24 = vpack.c.bf16 %v2838_v18, %v2837_v45  ;;  %v2328_v28 = vld [vmem:[#allocation2 + $0xf9] sm:$0xff]  ;;  %v18523_v45 = vpack.c.bf16 %v14639_v37, %v14625_v5 }
 0x141   : > { %2205 = vst.msk [vmem:[#allocation2 + $0x120] sm:$0xff] %vm550_vm3, %v2077_v31  ;;  %v2078_v61 = vmax.f32 %v14793_v22, 0.0  ;;  %v12307_v11 = vpop.f32.mrb[40].mxu0  ;;  %v2712_v21 = vmax.f32 %v2582_v41, %v2328_v28  ;;  %v2331_v36 = vld [vmem:[#allocation2 + $0x111] sm:$0xff]  ;;  %v2456_v29 = vmax.f32 %v2072_v46, %v2328_v28  ;;  %v2583_v49 = vld [vmem:[#allocation2 + $0x100] sm:$0xff] }
 0x142   : > { %v2330_v35 = vld [vmem:[#allocation2 + $0x109] sm:$0xff]  ;;  %2208 = vst.msk [vmem:[#allocation2 + $0x138] sm:$0xff] %vm550_vm3, %v2080_v7  ;;  %v1820_v57 = vmul.f32 %v12307_v11, %v14356_v62  ;;  %11607 = vmatprep.subr.bf16.mxu1 %v2952_v24  ;;  %v1420_v1 = vpop.f32.mrb[41].mxu0  ;;  %v2329_v33 = vld [vmem:[#allocation2 + $0x101] sm:$0xff]  ;;  %v2715_v50 = vmax.f32 %v2585_v3, %v2331_v36 }
 0x143   : > { %v2584_v6 = vld [vmem:[#allocation2 + $0x108] sm:$0xff]  ;;  %2206 = vst.msk [vmem:[#allocation2 + $0x128] sm:$0xff] %vm550_vm3, %v2078_v61  ;;  %v1818_v55 = vmul.f32 %v14356_v62, %v1420_v1  ;;  %v12308_v63 = vpop.f32.mrb[42].mxu0  ;;  %v2840_v2 = vmax.f32 %v2454_v42, %v2712_v21  ;;  %v2713_v34 = vmax.f32 %v2583_v49, %v2329_v33  ;;  %v2457_v58 = vmax.f32 %v2073_v16, %v2329_v33  ;;  %v2586_v16 = vld [vmem:[#allocation2 + $0x118] sm:$0xff] }
 0x144   : > { %v2714_v19 = vmax.f32 %v2584_v6, %v2330_v35  ;;  %v14821_v14 = vadd.f32 %v14362_v0, %v1820_v57  ;;  %v1821_v30 = vmul.f32 %v12308_v63, %v14356_v62  ;;  %v1423_v20 = vpop.f32.mrb[43].mxu0  ;;  %11608 = vmatpush3.bf16.msra.mxu1 %v18522_v13  ;;  %v2458_v10 = vmax.f32 %v2074_v60, %v2330_v35 }
 0x145   : > { %v14828_v25 = vadd.f32 %v14362_v0, %v1818_v55  ;;  %v1819_v26 = vmul.f32 %v14356_v62, %v1423_v20  ;;  %v2953_v46 = vpack.c.bf16 %v2840_v2, %v2839_v48  ;;  %v2841_v43 = vmax.f32 %v2455_v27, %v2713_v34  ;;  %v14871_v48 = vld [vmem:[%s18423_s10] ss:$8 sps:$4 sm:$0xff]  }
 0x146   : > { %v2842_v38 = vmax.f32 %v2456_v29, %v2714_v19  ;;  %v2083_v56 = vmax.f32 %v14821_v14, 0.0  ;;  %v14833_v8 = vadd.f32 %v14362_v0, %v1821_v30  ;;  %v14858_v39 = vmax.f32 %v2457_v58, %v2715_v50  ;;  %v14885_v19 = vld [vmem:[%s18423_s10 + $0x14] ss:$8 sps:$4 sm:$0xff]  }
 0x147   : > { %v2081_v52 = vmax.f32 %v14828_v25, 0.0  ;;  %v14839_v15 = vadd.f32 %v14362_v0, %v1819_v26  ;;  %11609 = vmatprep.subr.bf16.mxu1 %v2953_v46  ;;  %v2459_v21 = vmax.f32 %v2075_v9, %v2331_v36  ;;  %v2589_v9 = vld [vmem:[#allocation2 + $0x130] sm:$0xff]  ;;  %v18524_v27 = vpack.c.bf16 %v14655_v59, %v14647_v53 }
 0x148   : > { %v2332_v17 = vld [vmem:[#allocation2 + $0x119] sm:$0xff]  ;;  %2211 = vst.msk [vmem:[#allocation2 + $0x150] sm:$0xff] %vm550_vm3, %v2083_v56  ;;  %v2084_v18 = vmax.f32 %v14833_v8, 0.0  ;;  %11610 = vmatpush3.bf16.msra.mxu1 %v18523_v45  ;;  %v2954_v23 = vpack.c.bf16 %v2842_v38, %v2841_v43 }
 0x149   : > { %2209 = vst.msk [vmem:[#allocation2 + $0x140] sm:$0xff] %vm550_vm3, %v2081_v52  ;;  %v2082_v47 = vmax.f32 %v14839_v15, 0.0  ;;  %v12311_v24 = vpop.f32.mrb[44].mxu0  ;;  %v2716_v28 = vmax.f32 %v2586_v16, %v2332_v17  ;;  %v2335_v41 = vld [vmem:[#allocation2 + $0x131] sm:$0xff]  ;;  %v2460_v35 = vmax.f32 %v2076_v44, %v2332_v17  ;;  %v2587_v51 = vld [vmem:[#allocation2 + $0x120] sm:$0xff] }
 0x14a   : > { %v2334_v42 = vld [vmem:[#allocation2 + $0x129] sm:$0xff]  ;;  %2212 = vst.msk [vmem:[#allocation2 + $0x158] sm:$0xff] %vm550_vm3, %v2084_v18  ;;  %v1824_v5 = vmul.f32 %v12311_v24, %v14356_v62  ;;  %11611 = vmatprep.subr.bf16.mxu1 %v2954_v23  ;;  %v1436_v37 = vpop.f32.mrb[45].mxu0  ;;  %v2333_v60 = vld [vmem:[#allocation2 + $0x121] sm:$0xff]  ;;  %v2719_v63 = vmax.f32 %v2589_v9, %v2335_v41  ;;  %v2463_v24 = vmax.f32 %v2079_v4, %v2335_v41 }
 0x14b   : > { %v2588_v11 = vld [vmem:[#allocation2 + $0x128] sm:$0xff]  ;;  %2210 = vst.msk [vmem:[#allocation2 + $0x148] sm:$0xff] %vm550_vm3, %v2082_v47  ;;  %v1822_v57 = vmul.f32 %v14356_v62, %v1436_v37  ;;  %v12312_v1 = vpop.f32.mrb[46].mxu0  ;;  %v14873_v33 = vmax.f32 %v2458_v10, %v2716_v28  ;;  %v2717_v55 = vmax.f32 %v2587_v51, %v2333_v60  ;;  %v2461_v20 = vmax.f32 %v2077_v31, %v2333_v60  ;;  %v2590_v31 = vld [vmem:[#allocation2 + $0x138] sm:$0xff]  ;;  %v14959_v51 = vld [vmem:[%s18415_s2] ss:$0 sm:$0xff] }
 0x14c   : > { %v2718_v6 = vmax.f32 %v2588_v11, %v2334_v42  ;;  %v14876_v12 = vadd.f32 %v14362_v0, %v1824_v5  ;;  %v1825_v44 = vmul.f32 %v12312_v1, %v14356_v62  ;;  %v1439_v36 = vpop.f32.mrb[47].mxu0  ;;  %11612 = vmatpush3.bf16.msra.mxu1 %v18524_v27  ;;  %v2462_v46 = vmax.f32 %v2078_v61, %v2334_v42  ;;  %v14938_v37 = vld [vmem:[%s18423_s10 + $0x10] ss:$8 sps:$4 sm:$0xff]  }
 0x14d   : > { %v14890_v29 = vadd.f32 %v14362_v0, %v1822_v57  ;;  %v1823_v49 = vmul.f32 %v14356_v62, %v1439_v36  ;;  %v2955_v3 = vpack.c.bf16 %v14873_v33, %v14858_v39  ;;  %v14899_v30 = vmax.f32 %v2459_v21, %v2717_v55  ;;  %v14949_v21 = vld [vmem:[%s18423_s10 + $0x24] ss:$8 sps:$4 sm:$0xff]   ;;  %v14968_v36 = vld [vmem:[%s18416_s3] ss:$0 sm:$0xff] }
 0x14e   : > { %v14887_v2 = vmax.f32 %v2460_v35, %v2718_v6  ;;  %v2087_v53 = vmax.f32 %v14876_v12, 0.0  ;;  %v14897_v59 = vadd.f32 %v14362_v0, %v1825_v44  ;;  %v14925_v22 = vmax.f32 %v2461_v20, %v2719_v63 }
 0x14f   : > { %v2085_v13 = vmax.f32 %v14890_v29, 0.0  ;;  %v14905_v34 = vadd.f32 %v14362_v0, %v1823_v49  ;;  %3116 = vmatmul.mubr.bf16.vlgmr.msra.gmra.mrb[0].mxu1 %v14871_v48  ;;  %v2593_v4 = vld [vmem:[#allocation2 + $0x150] sm:$0xff] }
 0x150   : > { %v2336_v50 = vld [vmem:[#allocation2 + $0x139] sm:$0xff]  ;;  %2215 = vst.msk [vmem:[#allocation2 + $0x170] sm:$0xff] %vm550_vm3, %v2087_v53  ;;  %v2088_v26 = vmax.f32 %v14897_v59, 0.0  ;;  %3123 = vmatprep.mubr.bf16.mxu1 %v14885_v19 }
 0x151   : > { %2213 = vst.msk [vmem:[#allocation2 + $0x160] sm:$0xff] %vm550_vm3, %v2085_v13  ;;  %v2086_v38 = vmax.f32 %v14905_v34, 0.0  ;;  %v12315_v58 = vpop.f32.mrb[48].mxu0  ;;  %v2720_v43 = vmax.f32 %v2590_v31, %v2336_v50  ;;  %v2339_v17 = vld [vmem:[#allocation2 + $0x151] sm:$0xff]  ;;  %v2464_v28 = vmax.f32 %v2080_v7, %v2336_v50  ;;  %v2591_v54 = vld [vmem:[#allocation2 + $0x140] sm:$0xff] }
 0x152   : > { %v2338_v45 = vld [vmem:[#allocation2 + $0x149] sm:$0xff]  ;;  %2216 = vst.msk [vmem:[#allocation2 + $0x178] sm:$0xff] %vm550_vm3, %v2088_v26  ;;  %v1828_v16 = vmul.f32 %v12315_v58, %v14356_v62  ;;  %v1452_v10 = vpop.f32.mrb[49].mxu0  ;;  %v2337_v61 = vld [vmem:[#allocation2 + $0x141] sm:$0xff]  ;;  %v2723_v6 = vmax.f32 %v2593_v4, %v2339_v17 }
 0x153   : > { %v2592_v23 = vld [vmem:[#allocation2 + $0x148] sm:$0xff]  ;;  %2214 = vst.msk [vmem:[#allocation2 + $0x168] sm:$0xff] %vm550_vm3, %v2086_v38  ;;  %v1826_v11 = vmul.f32 %v14356_v62, %v1452_v10  ;;  %v12316_v5 = vpop.f32.mrb[50].mxu0  ;;  %v14940_v60 = vmax.f32 %v2462_v46, %v2720_v43  ;;  %v2721_v35 = vmax.f32 %v2591_v54, %v2337_v61  ;;  %v2465_v55 = vmax.f32 %v2081_v52, %v2337_v61  ;;  %v2594_v52 = vld [vmem:[#allocation2 + $0x158] sm:$0xff] }
 0x154   : > { %v2722_v42 = vmax.f32 %v2592_v23, %v2338_v45  ;;  %v14943_v40 = vadd.f32 %v14362_v0, %v1828_v16  ;;  %v1829_v7 = vmul.f32 %v12316_v5, %v14356_v62  ;;  %v1455_v41 = vpop.f32.mrb[51].mxu0  ;;  %v2466_v31 = vmax.f32 %v2082_v47, %v2338_v45  ;;  %v15012_v54 = vld [vmem:[%s18423_s10 + $0x20] ss:$8 sps:$4 sm:$0xff]  }
 0x155   : > { %v14954_v1 = vadd.f32 %v14362_v0, %v1826_v11  ;;  %v1827_v62 = vmul.f32 %v14959_v51, %v1455_v41  ;;  %v14973_v27 = vmax.f32 %v2463_v24, %v2721_v35  ;;  %v14999_v15 = vmax.f32 %v2465_v55, %v2723_v6 }
 0x156   : > { %v14951_v57 = vmax.f32 %v2464_v28, %v2722_v42  ;;  %v2091_v44 = vmax.f32 %v14943_v40, 0.0  ;;  %v14971_v0 = vadd.f32 %v14968_v36, %v1829_v7  ;;  %v2467_v45 = vmax.f32 %v2083_v56, %v2339_v17  ;;  %v15023_v7 = vld [vmem:[%s18423_s10 + $0x34] ss:$8 sps:$4 sm:$0xff]  }
 0x157   : > { %v2089_v63 = vmax.f32 %v14954_v1, 0.0  ;;  %v14979_v49 = vadd.f32 %v14968_v36, %v1827_v62  ;;  %3124 = vmatmul.mubr.bf16.gmra.mrb[4].mxu1 %v14938_v37  ;;  %v2597_v56 = vld [vmem:[#allocation2 + $0x170] sm:$0xff] }
 0x158   : > { %v2340_v20 = vld [vmem:[#allocation2 + $0x159] sm:$0xff]  ;;  %2219 = vst.msk [vmem:[#allocation2 + $0x190] sm:$0xff] %vm550_vm3, %v2091_v44  ;;  %v2092_v50 = vmax.f32 %v14971_v0, 0.0  ;;  %3131 = vmatprep.mubr.bf16.mxu1 %v14949_v21 }
 0x159   : > { %2217 = vst.msk [vmem:[#allocation2 + $0x180] sm:$0xff] %vm550_vm3, %v2089_v63  ;;  %v2090_v46 = vmax.f32 %v14979_v49, 0.0  ;;  %v12319_v58 = vpop.f32.mrb[52].mxu0  ;;  %v2724_v43 = vmax.f32 %v2594_v52, %v2340_v20  ;;  %v2343_v23 = vld [vmem:[#allocation2 + $0x171] sm:$0xff]  ;;  %v2468_v28 = vmax.f32 %v2084_v18, %v2340_v20  ;;  %v2595_v14 = vld [vmem:[#allocation2 + $0x160] sm:$0xff] }
 0x15a   : > { %v2342_v16 = vld [vmem:[#allocation2 + $0x169] sm:$0xff]  ;;  %2220 = vst.msk [vmem:[#allocation2 + $0x198] sm:$0xff] %vm550_vm3, %v2092_v50  ;;  %v1832_v61 = vmul.f32 %v14959_v51, %v12319_v58  ;;  %v1468_v24 = vpop.f32.mrb[53].mxu0  ;;  %v2341_v47 = vld [vmem:[#allocation2 + $0x161] sm:$0xff]  ;;  %v2727_v35 = vmax.f32 %v2597_v56, %v2343_v23  ;;  %v2471_v20 = vmax.f32 %v2087_v53, %v2343_v23  ;;  %v15147_v0 = vld [vmem:[%s18423_s10 + $0x54] ss:$8 sps:$4 sm:$0xff]  }
 0x15b   : > { %v2596_v10 = vld [vmem:[#allocation2 + $0x168] sm:$0xff]  ;;  %2218 = vst.msk [vmem:[#allocation2 + $0x188] sm:$0xff] %vm550_vm3, %v2090_v46  ;;  %v1830_v11 = vmul.f32 %v14959_v51, %v1468_v24  ;;  %v12320_v5 = vpop.f32.mrb[54].mxu0  ;;  %v15014_v4 = vmax.f32 %v2466_v31, %v2724_v43  ;;  %v2725_v41 = vmax.f32 %v2595_v14, %v2341_v47  ;;  %v2469_v43 = vmax.f32 %v2085_v13, %v2341_v47  ;;  %v2598_v13 = vld [vmem:[#allocation2 + $0x178] sm:$0xff] }
 0x15c   : > { %v2726_v42 = vmax.f32 %v2596_v10, %v2342_v16  ;;  %v15017_v8 = vadd.f32 %v14968_v36, %v1832_v61  ;;  %v1833_v18 = vmul.f32 %v14959_v51, %v12320_v5  ;;  %v1471_v17 = vpop.f32.mrb[55].mxu0  ;;  %v2470_v14 = vmax.f32 %v2086_v38, %v2342_v16  ;;  %v15085_v23 = vld [vmem:[%s18423_s10 + $0x44] ss:$8 sps:$4 sm:$0xff]  }
 0x15d   : > { %v15028_v62 = vadd.f32 %v14968_v36, %v1830_v11  ;;  %v1831_v55 = vmul.f32 %v14959_v51, %v1471_v17  ;;  %v15037_v58 = vmax.f32 %v2467_v45, %v2725_v41  ;;  %v15063_v29 = vmax.f32 %v2469_v43, %v2727_v35 }
 0x15e   : > { %v15025_v6 = vmax.f32 %v2468_v28, %v2726_v42  ;;  %v2095_v52 = vmax.f32 %v15017_v8, 0.0  ;;  %v15035_v31 = vadd.f32 %v14968_v36, %v1833_v18 }
 0x15f   : > { %v2093_v10 = vmax.f32 %v15028_v62, 0.0  ;;  %v15043_v61 = vadd.f32 %v14968_v36, %v1831_v55  ;;  %3132 = vmatmul.mubr.bf16.gmra.mrb[8].mxu1 %v15012_v54  ;;  %v2601_v11 = vld [vmem:[#allocation2 + $0x190] sm:$0xff] }
 0x160   : > { %v2344_v24 = vld [vmem:[#allocation2 + $0x179] sm:$0xff]  ;;  %2223 = vst.msk [vmem:[#allocation2 + $0x1b0] sm:$0xff] %vm550_vm3, %v2095_v52  ;;  %v18435_v28 = vmax.f32 %v15035_v31, 0.0  ;;  %3139 = vmatprep.mubr.bf16.mxu1 %v15023_v7 }
 0x161   : > { %2221 = vst.msk [vmem:[#allocation2 + $0x1a0] sm:$0xff] %vm550_vm3, %v2093_v10  ;;  %v2094_v47 = vmax.f32 %v15043_v61, 0.0  ;;  %v12323_v45 = vpop.f32.mrb[56].mxu0  ;;  %v2347_v42 = vld [vmem:[#allocation2 + $0x191] sm:$0xff]  ;;  %v2728_v5 = vmax.f32 %v2598_v13, %v2344_v24  ;;  %v2472_v13 = vmax.f32 %v2088_v26, %v2344_v24  ;;  %v2599_v35 = vld [vmem:[#allocation2 + $0x180] sm:$0xff] }
 0x162   : > { %v2346_v56 = vld [vmem:[#allocation2 + $0x189] sm:$0xff]  ;;  %2224 = vst.msk [vmem:[#allocation2 + $0x1b8] sm:$0xff] %vm550_vm3, %v18435_v28  ;;  %v1836_v17 = vmul.f32 %v14959_v51, %v12323_v45  ;;  %v1484_v41 = vpop.f32.mrb[57].mxu0  ;;  %v2345_v55 = vld [vmem:[#allocation2 + $0x181] sm:$0xff]  ;;  %v2731_v43 = vmax.f32 %v2601_v11, %v2347_v42 }
 0x163   : > { %v2600_v18 = vld [vmem:[#allocation2 + $0x188] sm:$0xff]  ;;  %2222 = vst.msk [vmem:[#allocation2 + $0x1a8] sm:$0xff] %vm550_vm3, %v2094_v47  ;;  %v1834_v38 = vmul.f32 %v14959_v51, %v1484_v41  ;;  %v12324_v16 = vpop.f32.mrb[58].mxu0  ;;  %v15076_v45 = vld [vmem:[%s18423_s10 + $0x30] ss:$8 sps:$4 sm:$0xff]   ;;  %v2729_v26 = vmax.f32 %v2599_v35, %v2345_v55  ;;  %v15087_v24 = vmax.f32 %v2470_v14, %v2728_v5 }
 0x164   : > { %v2730_v34 = vmax.f32 %v2600_v18, %v2346_v56  ;;  %v15079_v12 = vadd.f32 %v14968_v36, %v1836_v17  ;;  %v1837_v53 = vmul.f32 %v14959_v51, %v12324_v16  ;;  %v1487_v59 = vpop.f32.mrb[59].mxu0  ;;  %v2473_v17 = vmax.f32 %v2089_v63, %v2345_v55  ;;  %v2602_v55 = vld [vmem:[#allocation2 + $0x198] sm:$0xff] }
 0x165   : > { %v15092_v41 = vadd.f32 %v14968_v36, %v1834_v38  ;;  %v1835_v11 = vmul.f32 %v14959_v51, %v1487_v59  ;;  %v15103_v5 = vmax.f32 %v2471_v20, %v2729_v26 }
 0x166   : > { %v15089_v18 = vmax.f32 %v2472_v13, %v2730_v34  ;;  %v18432_v16 = vmax.f32 %v15079_v12, 0.0  ;;  %v15099_v35 = vadd.f32 %v14968_v36, %v1837_v53  ;;  %v2474_v34 = vmax.f32 %v2090_v46, %v2346_v56 }
 0x167   : > { %v18433_v14 = vmax.f32 %v15092_v41, 0.0  ;;  %v15107_v13 = vadd.f32 %v14968_v36, %v1835_v11  ;;  %3140 = vmatmul.mubr.bf16.gmra.mrb[12].mxu1 %v15076_v45  ;;  %v2859_v49 = vmax.f32 %v2473_v17, %v2731_v43  ;;  %v2475_v56 = vmax.f32 %v2091_v44, %v2347_v42  ;;  %v15138_v43 = vld [vmem:[%s18423_s10 + $0x40] ss:$8 sps:$4 sm:$0xff]   ;;  %v2605_v40 = vld [vmem:[#allocation2 + $0x1b0] sm:$0xff] }
 0x168   : > { %2227 = vst.msk [vmem:[#allocation2 + $0x1d0] sm:$0xff] %vm550_vm3, %v18432_v16  ;;  %v18434_v1 = vmax.f32 %v15099_v35, 0.0  ;;  %v2348_v63 = vld [vmem:[#allocation2 + $0x199] sm:$0xff]  ;;  %3147 = vmatprep.mubr.bf16.mxu1 %v15085_v23 }
 0x169   : > { %2225 = vst.msk [vmem:[#allocation2 + $0x1c0] sm:$0xff] %vm550_vm3, %v18433_v14  ;;  %v2098_v38 = vmax.f32 %v15107_v13, 0.0  ;;  %v12327_v53 = vpop.f32.mrb[60].mxu0  ;;  %v2732_v59 = vmax.f32 %v2602_v55, %v2348_v63  ;;  %v2351_v26 = vld [vmem:[#allocation2 + $0x1b1] sm:$0xff]  ;;  %v2603_v28 = vld [vmem:[#allocation2 + $0x1a0] sm:$0xff] }
 0x16a   : > { %v2350_v11 = vld [vmem:[#allocation2 + $0x1a9] sm:$0xff]  ;;  %2228 = vst.msk [vmem:[#allocation2 + $0x1d8] sm:$0xff] %vm550_vm3, %v18434_v1  ;;  %v1840_v20 = vmul.f32 %v14959_v51, %v12327_v53  ;;  %v1500_v16 = vpop.f32.mrb[61].mxu0  ;;  %v2349_v46 = vld [vmem:[#allocation2 + $0x1a1] sm:$0xff]  ;;  %v2476_v1 = vmax.f32 %v2092_v50, %v2348_v63 }
 0x16b   : > { %v2604_v25 = vld [vmem:[#allocation2 + $0x1a8] sm:$0xff]  ;;  %2226 = vst.msk [vmem:[#allocation2 + $0x1c8] sm:$0xff] %vm550_vm3, %v2098_v38  ;;  %v1838_v55 = vmul.f32 %v14959_v51, %v1500_v16  ;;  %v12328_v14 = vpop.f32.mrb[62].mxu0  ;;  %v2860_v32 = vmax.f32 %v2474_v34, %v2732_v59  ;;  %v2733_v17 = vmax.f32 %v2603_v28, %v2349_v46  ;;  %v2735_v16 = vmax.f32 %v2605_v40, %v2351_v26  ;;  %v15162_v40 = vld [vmem:[%s18423_s10 + $0x60] sm:$0xff] }
 0x16c   : > { %v2734_v9 = vmax.f32 %v2604_v25, %v2350_v11  ;;  %v15141_v44 = vadd.f32 %v14968_v36, %v1840_v20  ;;  %v1841_v25 = vmul.f32 %v14959_v51, %v12328_v14  ;;  %v1503_v42 = vpop.f32.mrb[63].mxu0  ;;  %v2477_v28 = vmax.f32 %v2093_v10, %v2349_v46  ;;  %v2606_v10 = vld [vmem:[#allocation2 + $0x1b8] sm:$0xff] }
 0x16d   : > { %v15150_v50 = vadd.f32 %v14968_v36, %v1838_v55  ;;  %v1839_v63 = vmul.f32 %v14959_v51, %v1503_v42  ;;  %v2963_v34 = vpack.c.bf16 %v2860_v32, %v2859_v49  ;;  %v2861_v14 = vmax.f32 %v2475_v56, %v2733_v17 }
 0x16e   : > { %v2862_v53 = vmax.f32 %v2476_v1, %v2734_v9  ;;  %v18437_v20 = vmax.f32 %v15141_v44, 0.0  ;;  %v15155_v59 = vadd.f32 %v14968_v36, %v1841_v25  ;;  %v2478_v1 = vmax.f32 %v2094_v47, %v2350_v11 }
 0x16f   : > { %v2101_v55 = vmax.f32 %v15150_v50, 0.0  ;;  %v15166_v42 = vadd.f32 %v14968_v36, %v1839_v63  ;;  %11655 = vmatprep.subr.bf16.mxu1 %v2963_v34  ;;  %3148 = vmatmul.mubr.bf16.gmra.mrb[16].mxu1 %v15138_v43  ;;  %v15187_v39 = vcombine.high %v15162_v40, %v15162_v40  ;;  %v2863_v11 = vmax.f32 %v2477_v28, %v2735_v16  ;;  %v15204_v16 = vld [vmem:[%s18423_s10 + $0x50] ss:$8 sps:$4 sm:$0xff]  }
 0x170   : > { %2231 = vst.msk [vmem:[#allocation2 + $0x1f0] sm:$0xff] %vm550_vm3, %v18437_v20  ;;  %v18436_v32 = vmax.f32 %v15155_v59, 0.0  ;;  %11656 = vmatpush3.bf16.msra.mxu1 %v2955_v3  ;;  %v2964_v9 = vpack.c.bf16 %v2862_v53, %v2861_v14  ;;  %v2352_v62 = vld [vmem:[#allocation2 + $0x1b9] sm:$0xff]  ;;  %3155 = vmatprep.mubr.bf16.mxu1 %v15147_v0  ;;  %v2479_v63 = vmax.f32 %v2095_v52, %v2351_v26  ;;  %v2609_v8 = vld [vmem:[#allocation2 + $0x1d0] sm:$0xff]  ;;  %v18438_v52 = vmov 0.0  }
 0x171   : > { %2229 = vst.msk [vmem:[#allocation2 + $0x1e0] sm:$0xff] %vm550_vm3, %v2101_v55  ;;  %v18440_v49 = vmax.f32 %v15166_v42, 0.0  ;;  %v12331_v46 = vpop.f32.mrb[64].mxu0  ;;  %v2736_v56 = vmax.f32 %v2606_v10, %v2352_v62  ;;  %v15183_v25 = vld [vmem:[#allocation2 + $0x1d1] sm:$0xff]  ;;  %551 = vst.msk [vmem:[#allocation2 + $0x400] sm:$0xff] %vm550_vm3, %v18438_v52 }
 0x172   : > { %v2354_v33 = vld [vmem:[#allocation2 + $0x1c9] sm:$0xff]  ;;  %2232 = vst.msk [vmem:[#allocation2 + $0x1f8] sm:$0xff] %vm550_vm3, %v18436_v32  ;;  %v1844_v61 = vmul.f32 %v14959_v51, %v12331_v46  ;;  %11657 = vmatprep.subr.bf16.mxu1 %v2964_v9  ;;  %v1516_v47 = vpop.f32.mrb[65].mxu0  ;;  %v2353_v17 = vld [vmem:[#allocation2 + $0x1c1] sm:$0xff]  ;;  %v18525_v32 = vmax.f32 %v15035_v31, 0.0  ;;  %552 = vst.msk [vmem:[#allocation2 + $0x408] sm:$0xff] %vm550_vm3, %v18438_v52 }
 0x173   : > { %v2608_v3 = vld [vmem:[#allocation2 + $0x1c8] sm:$0xff]  ;;  %2230 = vst.msk [vmem:[#allocation2 + $0x1e8] sm:$0xff] %vm550_vm3, %v18440_v49  ;;  %v1842_v53 = vmul.f32 %v14959_v51, %v1516_v47  ;;  %v12332_v14 = vpop.f32.mrb[66].mxu0  ;;  %v2864_v10 = vmax.f32 %v2478_v1, %v2736_v56  ;;  %v2607_v46 = vld [vmem:[#allocation2 + $0x1c0] sm:$0xff]  ;;  %553 = vst.msk [vmem:[#allocation2 + $0x410] sm:$0xff] %vm550_vm3, %v18438_v52  ;;  %v18527_v49 = vmax.f32 %v15092_v41, 0.0 }
 0x174   : > { %v2738_v34 = vmax.f32 %v2608_v3, %v2354_v33  ;;  %v2480_v20 = vmax.f32 %v18525_v32, %v2352_v62  ;;  %554 = vst.msk [vmem:[#allocation3] sm:$0xff] %vm550_vm3, %v18438_v52  ;;  %555 = vst.msk [vmem:[#allocation3 + $0x8] sm:$0xff] %vm550_vm3, %v18438_v52  ;;  %v15221_v31 = vadd.f32 %v14968_v36, %v1844_v61  ;;  %v1519_v28 = vpop.f32.mrb[67].mxu0 }
 0x175   : > { %556 = vst.msk [vmem:[#allocation3 + $0x1b0] sm:$0xff] %vm550_vm3, %v18438_v52  ;;  %557 = vst.msk [vmem:[#allocation3 + $0x1b8] sm:$0xff] %vm550_vm3, %v18438_v52  ;;  %v1845_v26 = vmul.f32 %v14959_v51, %v12332_v14  ;;  %v18526_v32 = vpack.c.bf16 %v14887_v2, %v14899_v30  ;;  %v2737_v9 = vmax.f32 %v2607_v46, %v2353_v17 }
 0x176   : > { %v2739_v62 = vmax.f32 %v2609_v8, %v15183_v25  ;;  %v15229_v1 = vadd.f32 %v14968_v36, %v1842_v53  ;;  %v1843_v56 = vmul.f32 %v14959_v51, %v1519_v28  ;;  %v2965_v3 = vpack.c.bf16 %v2864_v10, %v2863_v11 }
 0x177   : > { %11658 = vmatpush3.bf16.msra.mxu1 %v18526_v32  ;;  %v2866_v47 = vmax.f32 %v2480_v20, %v2738_v34  ;;  %v2107_v61 = vmax.f32 %v15221_v31, 0.0  ;;  %v15234_v52 = vadd.f32 %v14968_v36, %v1845_v26  ;;  %v2865_v14 = vmax.f32 %v2479_v63, %v2737_v9 }
 0x178   : > { %v2481_v2 = vmax.f32 %v18527_v49, %v2353_v17  ;;  %v2105_v30 = vmax.f32 %v15229_v1, 0.0  ;;  %v15240_v46 = vadd.f32 %v14968_v36, %v1843_v56  ;;  %11659 = vmatprep.subr.bf16.mxu1 %v2965_v3  ;;  %3156 = vmatmul.mubr.bf16.gmra.mrb[20].mxu1 %v15204_v16  ;;  %v18528_v11 = vpack.c.bf16 %v14940_v60, %v14925_v22  ;;  %v2356_v49 = vld [vmem:[#allocation2 + $0x1d9] sm:$0xff] }
 0x179   : > { %2235 = vst.msk [vmem:[#allocation2 + $0x210] sm:$0xff] %vm550_vm3, %v2107_v61  ;;  %v2108_v20 = vmax.f32 %v15234_v52, 0.0  ;;  %v2966_v41 = vpack.c.bf16 %v2866_v47, %v2865_v14  ;;  %v2610_v17 = vld [vmem:[#allocation2 + $0x1d8] sm:$0xff]  ;;  %3163 = vmatprep.mubr.bf16.mxu1 %v15187_v39  ;;  %v2482_v63 = vmax.f32 %v2098_v38, %v2354_v33  ;;  %v12335_v53 = vpop.f32.mrb[68].mxu0  ;;  %v18529_v28 = vmax.f32 %v15079_v12, 0.0 }
 0x17a   : > { %2233 = vst.msk [vmem:[#allocation2 + $0x200] sm:$0xff] %vm550_vm3, %v2105_v30  ;;  %v2106_v34 = vmax.f32 %v15240_v46, 0.0  ;;  %v2740_v10 = vmax.f32 %v2610_v17, %v2356_v49  ;;  %v2359_v8 = vld [vmem:[#allocation2 + $0x1f1] sm:$0xff]  ;;  %v2358_v26 = vld [vmem:[#allocation2 + $0x1e9] sm:$0xff]  ;;  %v1848_v60 = vmul.f32 %v14959_v51, %v12335_v53  ;;  %v1532_v13 = vpop.f32.mrb[69].mxu0  ;;  %v2867_v38 = vmax.f32 %v2481_v2, %v2739_v62  ;;  %v2357_v33 = vld [vmem:[#allocation2 + $0x1e1] sm:$0xff] }
 0x17b   : > { %11660 = vmatpush3.bf16.msra.mxu1 %v18528_v11  ;;  %v2612_v22 = vld [vmem:[#allocation2 + $0x1e8] sm:$0xff]  ;;  %2236 = vst.msk [vmem:[#allocation2 + $0x218] sm:$0xff] %vm550_vm3, %v2108_v20  ;;  %v2483_v32 = vmax.f32 %v18529_v28, %v15183_v25  ;;  %v15266_v9 = vcombine.low %v15162_v40, %v15162_v40  ;;  %v1846_v3 = vmul.f32 %v14959_v51, %v1532_v13  ;;  %v12336_v47 = vpop.f32.mrb[70].mxu0  ;;  %v18530_v62 = vmax.f32 %v15099_v35, 0.0  ;;  %v2611_v11 = vld [vmem:[#allocation2 + $0x1e0] sm:$0xff] }
 0x17c   : > { %11661 = vmatprep.subr.bf16.mxu1 %v2966_v41  ;;  %v2742_v56 = vmax.f32 %v2612_v22, %v2358_v26  ;;  %2234 = vst.msk [vmem:[#allocation2 + $0x208] sm:$0xff] %vm550_vm3, %v2106_v34  ;;  %v2868_v14 = vmax.f32 %v2482_v63, %v2740_v10  ;;  %v2613_v41 = vld [vmem:[#allocation2 + $0x1f0] sm:$0xff]  ;;  %v15275_v12 = vadd.f32 %v14968_v36, %v1848_v60  ;;  %v1535_v25 = vpop.f32.mrb[71].mxu0 }
 0x17d   : > { %v2484_v2 = vmax.f32 %v18530_v62, %v2356_v49  ;;  %v1849_v40 = vmul.f32 %v14959_v51, %v12336_v47  ;;  %v18531_v17 = vpack.c.bf16 %v14951_v57, %v14973_v27  ;;  %v2741_v53 = vmax.f32 %v2611_v11, %v2357_v33 }
 0x17e   : > { %v2743_v22 = vmax.f32 %v2613_v41, %v2359_v8  ;;  %v15282_v13 = vadd.f32 %v14968_v36, %v1846_v3  ;;  %v1847_v35 = vmul.f32 %v14959_v51, %v1535_v25  ;;  %v2967_v49 = vpack.c.bf16 %v2868_v14, %v2867_v38 }
 0x17f   : > { %11662 = vmatpush3.bf16.msra.mxu1 %v18531_v17  ;;  %v2870_v63 = vmax.f32 %v2484_v2, %v2742_v56  ;;  %v2111_v10 = vmax.f32 %v15275_v12, 0.0  ;;  %v15287_v60 = vadd.f32 %v14968_v36, %v1849_v40  ;;  %v2869_v28 = vmax.f32 %v2483_v32, %v2741_v53  ;;  %v15306_v56 = vld [vmem:[%s18423_s10 + $0x4] ss:$8 sps:$4 sm:$0xff]  }
 0x180   : > { %v2485_v47 = vmax.f32 %v2101_v55, %v2357_v33  ;;  %v2109_v57 = vmax.f32 %v15282_v13, 0.0  ;;  %v15293_v27 = vadd.f32 %v14968_v36, %v1847_v35  ;;  %11663 = vmatprep.subr.bf16.mxu1 %v2967_v49  ;;  %3164 = vmatmul.mubr.bf16.gmra.mrb[24].mxu1 %v15266_v9  ;;  %v18532_v32 = vpack.c.bf16 %v15014_v4, %v14999_v15  ;;  %v2614_v33 = vld [vmem:[#allocation2 + $0x1f8] sm:$0xff] }
 0x181   : > { %2239 = vst.msk [vmem:[#allocation2 + $0x230] sm:$0xff] %vm550_vm3, %v2111_v10  ;;  %v2112_v38 = vmax.f32 %v15287_v60, 0.0  ;;  %v2968_v50 = vpack.c.bf16 %v2870_v63, %v2869_v28  ;;  %v2360_v55 = vld [vmem:[#allocation2 + $0x1f9] sm:$0xff]  ;;  %3216 = vmatprep.mubr.bf16.mxu1 %v15306_v56  ;;  %v18533_v3 = vmax.f32 %v15166_v42, 0.0  ;;  %v12339_v4 = vpop.f32.mrb[72].mxu0  ;;  %v18534_v17 = vmax.f32 %v15141_v44, 0.0 }
 0x182   : > { %2237 = vst.msk [vmem:[#allocation2 + $0x220] sm:$0xff] %vm550_vm3, %v2109_v57  ;;  %v2110_v15 = vmax.f32 %v15293_v27, 0.0  ;;  %v2744_v62 = vmax.f32 %v2614_v33, %v2360_v55  ;;  %v2363_v2 = vld [vmem:[#allocation2 + $0x211] sm:$0xff]  ;;  %v1852_v40 = vmul.f32 %v14959_v51, %v12339_v4  ;;  %v1548_v42 = vpop.f32.mrb[73].mxu0  ;;  %v18538_v52 = vpack.c.bf16 %v15089_v18, %v15103_v5 }
 0x183   : > { %11664 = vmatpush3.bf16.msra.mxu1 %v18532_v32  ;;  %v2486_v14 = vmax.f32 %v18533_v3, %v2358_v26  ;;  %v2362_v11 = vld [vmem:[#allocation2 + $0x209] sm:$0xff]  ;;  %2240 = vst.msk [vmem:[#allocation2 + $0x238] sm:$0xff] %vm550_vm3, %v2112_v38  ;;  %v2871_v26 = vmax.f32 %v2485_v47, %v2743_v22  ;;  %v2361_v25 = vld [vmem:[#allocation2 + $0x201] sm:$0xff]  ;;  %v2487_v53 = vmax.f32 %v18534_v17, %v2359_v8  ;;  %v12340_v63 = vpop.f32.mrb[74].mxu0  ;;  %v18535_v32 = vmax.f32 %v15155_v59, 0.0 }
 0x184   : > { %v2616_v41 = vld [vmem:[#allocation2 + $0x208] sm:$0xff]  ;;  %11665 = vmatprep.subr.bf16.mxu1 %v2968_v50  ;;  %2238 = vst.msk [vmem:[#allocation2 + $0x228] sm:$0xff] %vm550_vm3, %v2110_v15  ;;  %v1850_v49 = vmul.f32 %v14959_v51, %v1548_v42  ;;  %v2615_v3 = vld [vmem:[#allocation2 + $0x200] sm:$0xff]  ;;  %v2617_v50 = vld [vmem:[#allocation2 + $0x210] sm:$0xff]  ;;  %v15328_v22 = vadd.f32 %v14968_v36, %v1852_v40  ;;  %v1853_v44 = vmul.f32 %v14959_v51, %v12340_v63  ;;  %v1551_v8 = vpop.f32.mrb[75].mxu0 }
 0x185   : > { %v2746_v35 = vmax.f32 %v2616_v41, %v2362_v11  ;;  %v2872_v28 = vmax.f32 %v2486_v14, %v2744_v62  ;;  %v2488_v33 = vmax.f32 %v18535_v32, %v2360_v55  ;;  %v18536_v47 = vpack.c.bf16 %v15025_v6, %v15037_v58 }
 0x186   : > { %v2745_v4 = vmax.f32 %v2615_v3, %v2361_v25  ;;  %v2747_v41 = vmax.f32 %v2617_v50, %v2363_v2  ;;  %v15335_v42 = vadd.f32 %v14968_v36, %v1850_v49  ;;  %v1851_v59 = vmul.f32 %v14959_v51, %v1551_v8 }
 0x187   : > { %11666 = vmatpush3.bf16.msra.mxu1 %v18536_v47  ;;  %v2969_v55 = vpack.c.bf16 %v2872_v28, %v2871_v26  ;;  %v2874_v14 = vmax.f32 %v2488_v33, %v2746_v35  ;;  %v2115_v62 = vmax.f32 %v15328_v22, 0.0  ;;  %v15340_v40 = vadd.f32 %v14968_v36, %v1853_v44 }
 0x188   : > { %v2489_v17 = vmax.f32 %v2105_v30, %v2361_v25  ;;  %v2873_v63 = vmax.f32 %v2487_v53, %v2745_v4  ;;  %v2113_v6 = vmax.f32 %v15335_v42, 0.0  ;;  %v15346_v58 = vadd.f32 %v14968_v36, %v1851_v59  ;;  %v2618_v30 = vld [vmem:[#allocation2 + $0x218] sm:$0xff] }
 0x189   : > { %11667 = vmatprep.subr.bf16.mxu1 %v2969_v55  ;;  %v2364_v49 = vld [vmem:[#allocation2 + $0x219] sm:$0xff]  ;;  %2243 = vst.msk [vmem:[#allocation2 + $0x250] sm:$0xff] %vm550_vm3, %v2115_v62  ;;  %v2116_v26 = vmax.f32 %v15340_v40, 0.0  ;;  %v18537_v35 = vpack.c.bf16 %v15087_v24, %v15063_v29  ;;  %v2490_v25 = vmax.f32 %v2106_v34, %v2362_v11  ;;  %v12343_v28 = vpop.f32.mrb[76].mxu0  ;;  %v2491_v11 = vmax.f32 %v2107_v61, %v2363_v2 }
 0x18a   : > { %v2970_v1 = vpack.c.bf16 %v2874_v14, %v2873_v63  ;;  %2241 = vst.msk [vmem:[#allocation2 + $0x240] sm:$0xff] %vm550_vm3, %v2113_v6  ;;  %v2114_v53 = vmax.f32 %v15346_v58, 0.0  ;;  %v2748_v32 = vmax.f32 %v2618_v30, %v2364_v49  ;;  %v2367_v33 = vld [vmem:[#allocation2 + $0x231] sm:$0xff]  ;;  %v1856_v29 = vmul.f32 %v14959_v51, %v12343_v28  ;;  %v1564_v24 = vpop.f32.mrb[77].mxu0  ;;  %v2619_v55 = vld [vmem:[#allocation2 + $0x220] sm:$0xff] }
 0x18b   : > { %11668 = vmatpush3.bf16.msra.mxu1 %v18537_v35  ;;  %v2366_v3 = vld [vmem:[#allocation2 + $0x229] sm:$0xff]  ;;  %2244 = vst.msk [vmem:[#allocation2 + $0x258] sm:$0xff] %vm550_vm3, %v2116_v26  ;;  %v15365_v46 = vmax.f32 %v2489_v17, %v2747_v41  ;;  %v2365_v34 = vld [vmem:[#allocation2 + $0x221] sm:$0xff]  ;;  %v2492_v44 = vmax.f32 %v2108_v20, %v2364_v49  ;;  %v1854_v47 = vmul.f32 %v14959_v51, %v1564_v24  ;;  %v12344_v4 = vpop.f32.mrb[78].mxu0 }
 0x18c   : > { %v2620_v50 = vld [vmem:[#allocation2 + $0x228] sm:$0xff]  ;;  %11669 = vmatprep.subr.bf16.mxu1 %v2970_v1  ;;  %2242 = vst.msk [vmem:[#allocation2 + $0x248] sm:$0xff] %vm550_vm3, %v2114_v53  ;;  %v15375_v59 = vmax.f32 %v2490_v25, %v2748_v32  ;;  %v2621_v41 = vld [vmem:[#allocation2 + $0x230] sm:$0xff]  ;;  %v15378_v14 = vadd.f32 %v14968_v36, %v1856_v29  ;;  %v1857_v31 = vmul.f32 %v14959_v51, %v12344_v4  ;;  %v1567_v61 = vpop.f32.mrb[79].mxu0 }
 0x18d   : > { %v2750_v8 = vmax.f32 %v2620_v50, %v2366_v3  ;;  %v2749_v20 = vmax.f32 %v2619_v55, %v2365_v34  ;;  %v2751_v2 = vmax.f32 %v2621_v41, %v2367_v33  ;;  %v15387_v63 = vadd.f32 %v14968_v36, %v1854_v47 }
 0x18e   : > { %v1855_v49 = vmul.f32 %v14959_v51, %v1567_v61  ;;  %v2971_v35 = vpack.c.bf16 %v15375_v59, %v15365_v46  ;;  %v2119_v1 = vmax.f32 %v15378_v14, 0.0  ;;  %v15394_v30 = vadd.f32 %v14968_v36, %v1857_v31 }
 0x18f   : > { %11670 = vmatpush3.bf16.msra.mxu1 %v18538_v52  ;;  %v15384_v17 = vmax.f32 %v2492_v44, %v2750_v8  ;;  %v15396_v25 = vmax.f32 %v2491_v11, %v2749_v20  ;;  %v2493_v18 = vmax.f32 %v2109_v57, %v2365_v34  ;;  %v2117_v5 = vmax.f32 %v15387_v63, 0.0  ;;  %v2622_v57 = vld [vmem:[#allocation2 + $0x238] sm:$0xff] }
 0x190   : > { %v15402_v28 = vadd.f32 %v14968_v36, %v1855_v49  ;;  %2247 = vst.msk [vmem:[#allocation2 + $0x270] sm:$0xff] %vm550_vm3, %v2119_v1  ;;  %v2120_v50 = vmax.f32 %v15394_v30, 0.0  ;;  %v2494_v29 = vmax.f32 %v2110_v15, %v2366_v3  ;;  %v2495_v3 = vmax.f32 %v2111_v10, %v2367_v33  ;;  %v2625_v20 = vld [vmem:[#allocation2 + $0x250] sm:$0xff] }
 0x191   : > { %v2368_v32 = vld [vmem:[#allocation2 + $0x239] sm:$0xff]  ;;  %2245 = vst.msk [vmem:[#allocation2 + $0x260] sm:$0xff] %vm550_vm3, %v2117_v5  ;;  %v12347_v24 = vpop.f32.mrb[80].mxu0  ;;  %v15422_v27 = vmax.f32 %v2493_v18, %v2751_v2 }
 0x192   : > { %3217 = vmatmul.mubr.bf16.vlgmr.msra.gmra.mrb[28].mxu1 %v14871_v48  ;;  %v2118_v48 = vmax.f32 %v15402_v28, 0.0  ;;  %v2752_v34 = vmax.f32 %v2622_v57, %v2368_v32  ;;  %v2371_v11 = vld [vmem:[#allocation2 + $0x251] sm:$0xff]  ;;  %2248 = vst.msk [vmem:[#allocation2 + $0x278] sm:$0xff] %vm550_vm3, %v2120_v50  ;;  %v1580_v47 = vpop.f32.mrb[81].mxu0  ;;  %v2496_v4 = vmax.f32 %v2112_v38, %v2368_v32  ;;  %v2623_v52 = vld [vmem:[#allocation2 + $0x240] sm:$0xff] }
 0x193   : > { %3224 = vmatprep.mubr.bf16.mxu1 %v14885_v19  ;;  %v2370_v44 = vld [vmem:[#allocation2 + $0x249] sm:$0xff]  ;;  %v1860_v19 = vmul.f32 %v14959_v51, %v12347_v24  ;;  %v2369_v15 = vld [vmem:[#allocation2 + $0x241] sm:$0xff]  ;;  %v1858_v41 = vmul.f32 %v14959_v51, %v1580_v47  ;;  %v12348_v31 = vpop.f32.mrb[82].mxu0  ;;  %v2755_v38 = vmax.f32 %v2625_v20, %v2371_v11 }
 0x194   : > { %v2624_v8 = vld [vmem:[#allocation2 + $0x248] sm:$0xff]  ;;  %2246 = vst.msk [vmem:[#allocation2 + $0x268] sm:$0xff] %vm550_vm3, %v2118_v48  ;;  %v15432_v61 = vmax.f32 %v2494_v29, %v2752_v34  ;;  %v1861_v12 = vmul.f32 %v14959_v51, %v12348_v31  ;;  %v1583_v10 = vpop.f32.mrb[83].mxu0  ;;  %v2753_v60 = vmax.f32 %v2623_v52, %v2369_v15  ;;  %v2497_v34 = vmax.f32 %v2113_v6, %v2369_v15  ;;  %v2626_v6 = vld [vmem:[#allocation2 + $0x258] sm:$0xff] }
 0x195   : > { %v2754_v55 = vmax.f32 %v2624_v8, %v2370_v44  ;;  %v15435_v2 = vadd.f32 %v14968_v36, %v1860_v19  ;;  %v15441_v49 = vadd.f32 %v14968_v36, %v1858_v41  ;;  %v1859_v18 = vmul.f32 %v14959_v51, %v1583_v10 }
 0x196   : > { %v15448_v29 = vadd.f32 %v14968_v36, %v1861_v12  ;;  %v15450_v24 = vmax.f32 %v2495_v3, %v2753_v60  ;;  %v2498_v15 = vmax.f32 %v2114_v53, %v2370_v44  ;;  %v15476_v58 = vmax.f32 %v2497_v34, %v2755_v38 }
 0x197   : > { %v15438_v33 = vmax.f32 %v2496_v4, %v2754_v55  ;;  %v2123_v57 = vmax.f32 %v15435_v2, 0.0  ;;  %v2121_v8 = vmax.f32 %v15441_v49, 0.0  ;;  %v15456_v19 = vadd.f32 %v14968_v36, %v1859_v18  ;;  %v2629_v38 = vld [vmem:[#allocation2 + $0x270] sm:$0xff] }
 0x198   : > { %v2372_v47 = vld [vmem:[#allocation2 + $0x259] sm:$0xff]  ;;  %v2124_v4 = vmax.f32 %v15448_v29, 0.0  ;;  %v2499_v44 = vmax.f32 %v2115_v62, %v2371_v11 }
 0x199   : > { %2251 = vst.msk [vmem:[#allocation2 + $0x290] sm:$0xff] %vm550_vm3, %v2123_v57  ;;  %2249 = vst.msk [vmem:[#allocation2 + $0x280] sm:$0xff] %vm550_vm3, %v2121_v8  ;;  %v12351_v3 = vpop.f32.mrb[84].mxu0  ;;  %v2756_v55 = vmax.f32 %v2626_v6, %v2372_v47  ;;  %v2375_v41 = vld [vmem:[#allocation2 + $0x271] sm:$0xff]  ;;  %v2500_v12 = vmax.f32 %v2116_v26, %v2372_v47 }
 0x19a   : > { %3225 = vmatmul.mubr.bf16.gmra.mrb[32].mxu1 %v14938_v37  ;;  %v2122_v37 = vmax.f32 %v15456_v19, 0.0  ;;  %2252 = vst.msk [vmem:[#allocation2 + $0x298] sm:$0xff] %vm550_vm3, %v2124_v4  ;;  %v1596_v20 = vpop.f32.mrb[85].mxu0  ;;  %v2759_v26 = vmax.f32 %v2629_v38, %v2375_v41  ;;  %v2503_v32 = vmax.f32 %v2119_v1, %v2375_v41 }
 0x19b   : > { %3232 = vmatprep.mubr.bf16.mxu1 %v14949_v21  ;;  %v2374_v31 = vld [vmem:[#allocation2 + $0x269] sm:$0xff]  ;;  %v1864_v21 = vmul.f32 %v14959_v51, %v12351_v3  ;;  %v2373_v53 = vld [vmem:[#allocation2 + $0x261] sm:$0xff]  ;;  %v1862_v60 = vmul.f32 %v14959_v51, %v1596_v20  ;;  %v12352_v18 = vpop.f32.mrb[86].mxu0  ;;  %v15486_v6 = vmax.f32 %v2498_v15, %v2756_v55 }
 0x19c   : > { %v2628_v52 = vld [vmem:[#allocation2 + $0x268] sm:$0xff]  ;;  %2250 = vst.msk [vmem:[#allocation2 + $0x288] sm:$0xff] %vm550_vm3, %v2122_v37  ;;  %v2627_v3 = vld [vmem:[#allocation2 + $0x260] sm:$0xff]  ;;  %v1865_v22 = vmul.f32 %v14959_v51, %v12352_v18  ;;  %v1599_v62 = vpop.f32.mrb[87].mxu0  ;;  %v2501_v18 = vmax.f32 %v2117_v5, %v2373_v53  ;;  %v2630_v5 = vld [vmem:[#allocation2 + $0x278] sm:$0xff] }
 0x19d   : > { %v2758_v10 = vmax.f32 %v2628_v52, %v2374_v31  ;;  %v15489_v34 = vadd.f32 %v14968_v36, %v1864_v21  ;;  %v2757_v40 = vmax.f32 %v2627_v3, %v2373_v53  ;;  %v15495_v47 = vadd.f32 %v14968_v36, %v1862_v60 }
 0x19e   : > { %v1863_v52 = vmul.f32 %v14959_v51, %v1599_v62  ;;  %v15502_v21 = vadd.f32 %v14968_v36, %v1865_v22  ;;  %v2502_v62 = vmax.f32 %v2118_v48, %v2374_v31  ;;  %v15530_v42 = vmax.f32 %v2501_v18, %v2759_v26 }
 0x19f   : > { %v15492_v11 = vmax.f32 %v2500_v12, %v2758_v10  ;;  %v2127_v55 = vmax.f32 %v15489_v34, 0.0  ;;  %v15504_v20 = vmax.f32 %v2499_v44, %v2757_v40  ;;  %v2125_v12 = vmax.f32 %v15495_v47, 0.0 }
 0x1a0   : > { %v15510_v10 = vadd.f32 %v14968_v36, %v1863_v52  ;;  %v2376_v60 = vld [vmem:[#allocation2 + $0x279] sm:$0xff]  ;;  %v18441_v3 = vmax.f32 %v15502_v21, 0.0  ;;  %v2633_v38 = vld [vmem:[#allocation2 + $0x290] sm:$0xff] }
 0x1a1   : > { %2255 = vst.msk [vmem:[#allocation2 + $0x2b0] sm:$0xff] %vm550_vm3, %v2127_v55  ;;  %2253 = vst.msk [vmem:[#allocation2 + $0x2a0] sm:$0xff] %vm550_vm3, %v2125_v12  ;;  %v2379_v44 = vld [vmem:[#allocation2 + $0x291] sm:$0xff]  ;;  %v2760_v22 = vmax.f32 %v2630_v5, %v2376_v60  ;;  %v2504_v5 = vmax.f32 %v2120_v50, %v2376_v60  ;;  %v2631_v13 = vld [vmem:[#allocation2 + $0x280] sm:$0xff] }
 0x1a2   : > { %3233 = vmatmul.mubr.bf16.gmra.mrb[36].mxu1 %v15012_v54  ;;  %v2126_v53 = vmax.f32 %v15510_v10, 0.0  ;;  %v12355_v54 = vpop.f32.mrb[88].mxu0  ;;  %2256 = vst.msk [vmem:[#allocation2 + $0x2b8] sm:$0xff] %vm550_vm3, %v18441_v3 }
 0x1a3   : > { %3240 = vmatprep.mubr.bf16.mxu1 %v15023_v7  ;;  %v2378_v40 = vld [vmem:[#allocation2 + $0x289] sm:$0xff]  ;;  %v1868_v7 = vmul.f32 %v14959_v51, %v12355_v54  ;;  %v1612_v63 = vpop.f32.mrb[89].mxu0  ;;  %v2377_v15 = vld [vmem:[#allocation2 + $0x281] sm:$0xff]  ;;  %v2763_v54 = vmax.f32 %v2633_v38, %v2379_v44  ;;  %v15544_v41 = vmax.f32 %v2502_v62, %v2760_v22 }
 0x1a4   : > { %v2632_v52 = vld [vmem:[#allocation2 + $0x288] sm:$0xff]  ;;  %2254 = vst.msk [vmem:[#allocation2 + $0x2a8] sm:$0xff] %vm550_vm3, %v2126_v53  ;;  %v1866_v48 = vmul.f32 %v14959_v51, %v1612_v63  ;;  %v12356_v31 = vpop.f32.mrb[90].mxu0  ;;  %v2761_v1 = vmax.f32 %v2631_v13, %v2377_v15  ;;  %v2505_v60 = vmax.f32 %v2121_v8, %v2377_v15  ;;  %v2634_v15 = vld [vmem:[#allocation2 + $0x298] sm:$0xff] }
 0x1a5   : > { %v2762_v28 = vmax.f32 %v2632_v52, %v2378_v40  ;;  %v15541_v3 = vadd.f32 %v14968_v36, %v1868_v7  ;;  %v1869_v26 = vmul.f32 %v14959_v51, %v12356_v31  ;;  %v1615_v14 = vpop.f32.mrb[91].mxu0  ;;  %v2506_v7 = vmax.f32 %v2122_v37, %v2378_v40 }
 0x1a6   : > { %v15549_v50 = vadd.f32 %v14968_v36, %v1866_v48  ;;  %v1867_v18 = vmul.f32 %v14959_v51, %v1615_v14  ;;  %v15560_v22 = vmax.f32 %v2503_v32, %v2761_v1  ;;  %v2891_v19 = vmax.f32 %v2505_v60, %v2763_v54 }
 0x1a7   : > { %v15546_v30 = vmax.f32 %v2504_v5, %v2762_v28  ;;  %v2131_v63 = vmax.f32 %v15541_v3, 0.0  ;;  %v15556_v38 = vadd.f32 %v14968_v36, %v1869_v26  ;;  %v2507_v40 = vmax.f32 %v2123_v57, %v2379_v44 }
 0x1a8   : > { %v2129_v62 = vmax.f32 %v15549_v50, 0.0  ;;  %v15564_v52 = vadd.f32 %v14968_v36, %v1867_v18  ;;  %v2380_v8 = vld [vmem:[#allocation2 + $0x299] sm:$0xff] }
 0x1a9   : > { %2259 = vst.msk [vmem:[#allocation2 + $0x2d0] sm:$0xff] %vm550_vm3, %v2131_v63  ;;  %v18442_v49 = vmax.f32 %v15556_v38, 0.0  ;;  %v12359_v5 = vpop.f32.mrb[92].mxu0  ;;  %v2764_v28 = vmax.f32 %v2634_v15, %v2380_v8  ;;  %v2383_v48 = vld [vmem:[#allocation2 + $0x2b1] sm:$0xff]  ;;  %v2508_v13 = vmax.f32 %v2124_v4, %v2380_v8 }
 0x1aa   : > { %3241 = vmatmul.mubr.bf16.gmra.mrb[40].mxu1 %v15076_v45  ;;  %2257 = vst.msk [vmem:[#allocation2 + $0x2c0] sm:$0xff] %vm550_vm3, %v2129_v62  ;;  %v2130_v45 = vmax.f32 %v15564_v52, 0.0  ;;  %v1628_v14 = vpop.f32.mrb[93].mxu0 }
 0x1ab   : > { %3248 = vmatprep.mubr.bf16.mxu1 %v15085_v23  ;;  %v2382_v31 = vld [vmem:[#allocation2 + $0x2a9] sm:$0xff]  ;;  %2260 = vst.msk [vmem:[#allocation2 + $0x2d8] sm:$0xff] %vm550_vm3, %v18442_v49  ;;  %v1872_v23 = vmul.f32 %v14959_v51, %v12359_v5  ;;  %v2381_v37 = vld [vmem:[#allocation2 + $0x2a1] sm:$0xff]  ;;  %v1870_v18 = vmul.f32 %v14959_v51, %v1628_v14  ;;  %v12360_v15 = vpop.f32.mrb[94].mxu0  ;;  %v2892_v32 = vmax.f32 %v2506_v7, %v2764_v28  ;;  %v15602_v7 = vld [vmem:[%s18415_s2] ss:$0 sm:$0xff] }
 0x1ac   : > { %v2636_v26 = vld [vmem:[#allocation2 + $0x2a8] sm:$0xff]  ;;  %2258 = vst.msk [vmem:[#allocation2 + $0x2c8] sm:$0xff] %vm550_vm3, %v2130_v45  ;;  %v2635_v49 = vld [vmem:[#allocation2 + $0x2a0] sm:$0xff]  ;;  %v2637_v5 = vld [vmem:[#allocation2 + $0x2b0] sm:$0xff]  ;;  %v1873_v2 = vmul.f32 %v14959_v51, %v12360_v15  ;;  %v1631_v57 = vpop.f32.mrb[95].mxu0 }
 0x1ad   : > { %v2766_v1 = vmax.f32 %v2636_v26, %v2382_v31  ;;  %v15593_v54 = vadd.f32 %v14968_v36, %v1872_v23  ;;  %v2765_v44 = vmax.f32 %v2635_v49, %v2381_v37  ;;  %v2767_v60 = vmax.f32 %v2637_v5, %v2383_v48  ;;  %v15609_v51 = vld [vmem:[%s18416_s3] ss:$0 sm:$0xff] }
 0x1ae   : > { %v15597_v26 = vadd.f32 %v14968_v36, %v1870_v18  ;;  %v1871_v29 = vmul.f32 %v15602_v7, %v1631_v57  ;;  %v2979_v4 = vpack.c.bf16 %v2892_v32, %v2891_v19  ;;  %v15612_v49 = vadd.f32 %v15609_v51, %v1873_v2  ;;  %v2638_v32 = vld [vmem:[#allocation2 + $0x2b8] sm:$0xff] }
 0x1af   : > { %v2894_v8 = vmax.f32 %v2508_v13, %v2766_v1  ;;  %v2135_v28 = vmax.f32 %v15593_v54, 0.0  ;;  %v2893_v36 = vmax.f32 %v2507_v40, %v2765_v44  ;;  %v2509_v23 = vmax.f32 %v2125_v12, %v2381_v37 }
 0x1b0   : > { %v2133_v14 = vmax.f32 %v15597_v26, 0.0  ;;  %v15618_v18 = vadd.f32 %v15609_v51, %v1871_v29  ;;  %11713 = vmatprep.subr.bf16.mxu1 %v2979_v4  ;;  %v2136_v13 = vmax.f32 %v15612_v49, 0.0  ;;  %v2510_v19 = vmax.f32 %v2126_v53, %v2382_v31 }
 0x1b1   : > { %2263 = vst.msk [vmem:[#allocation2 + $0x2f0] sm:$0xff] %vm550_vm3, %v2135_v28  ;;  %11714 = vmatpush3.bf16.msra.mxu1 %v2971_v35  ;;  %v2980_v47 = vpack.c.bf16 %v2894_v8, %v2893_v36  ;;  %v2384_v12 = vld [vmem:[#allocation2 + $0x2b9] sm:$0xff]  ;;  %v12363_v37 = vpop.f32.mrb[96].mxu0  ;;  %v2895_v35 = vmax.f32 %v2509_v23, %v2767_v60  ;;  %v2511_v53 = vmax.f32 %v2127_v55, %v2383_v48  ;;  %v18539_v44 = vmax.f32 %v15502_v21, 0.0  ;;  %v2641_v8 = vld [vmem:[#allocation2 + $0x2d0] sm:$0xff] }
 0x1b2   : > { %3249 = vmatmul.mubr.bf16.gmra.mrb[44].mxu1 %v15138_v43  ;;  %2261 = vst.msk [vmem:[#allocation2 + $0x2e0] sm:$0xff] %vm550_vm3, %v2133_v14  ;;  %v2134_v43 = vmax.f32 %v15618_v18, 0.0  ;;  %v2768_v40 = vmax.f32 %v2638_v32, %v2384_v12  ;;  %v2387_v1 = vld [vmem:[#allocation2 + $0x2d1] sm:$0xff]  ;;  %2264 = vst.msk [vmem:[#allocation2 + $0x2f8] sm:$0xff] %vm550_vm3, %v2136_v13  ;;  %v1644_v59 = vpop.f32.mrb[97].mxu0  ;;  %v2639_v4 = vld [vmem:[#allocation2 + $0x2c0] sm:$0xff]  ;;  %v18540_v48 = vpack.c.bf16 %v15384_v17, %v15396_v25 }
 0x1b3   : > { %3256 = vmatprep.mubr.bf16.mxu1 %v15147_v0  ;;  %v2386_v15 = vld [vmem:[#allocation2 + $0x2c9] sm:$0xff]  ;;  %v1876_v0 = vmul.f32 %v15602_v7, %v12363_v37  ;;  %11715 = vmatprep.subr.bf16.mxu1 %v2980_v47  ;;  %v2385_v10 = vld [vmem:[#allocation2 + $0x2c1] sm:$0xff]  ;;  %v1874_v5 = vmul.f32 %v15602_v7, %v1644_v59  ;;  %v12364_v2 = vpop.f32.mrb[98].mxu0  ;;  %v2512_v29 = vmax.f32 %v18539_v44, %v2384_v12 }
 0x1b4   : > { %v2640_v46 = vld [vmem:[#allocation2 + $0x2c8] sm:$0xff]  ;;  %2262 = vst.msk [vmem:[#allocation2 + $0x2e8] sm:$0xff] %vm550_vm3, %v2134_v43  ;;  %v2896_v57 = vmax.f32 %v2510_v19, %v2768_v40  ;;  %v1877_v34 = vmul.f32 %v15602_v7, %v12364_v2  ;;  %v1647_v55 = vpop.f32.mrb[99].mxu0  ;;  %v2769_v36 = vmax.f32 %v2639_v4, %v2385_v10  ;;  %v2771_v23 = vmax.f32 %v2641_v8, %v2387_v1 }
 0x1b5   : > { %v2770_v31 = vmax.f32 %v2640_v46, %v2386_v15  ;;  %v15648_v60 = vadd.f32 %v15609_v51, %v1876_v0  ;;  %11716 = vmatpush3.bf16.msra.mxu1 %v18540_v48  ;;  %v15655_v47 = vadd.f32 %v15609_v51, %v1874_v5  ;;  %v1875_v21 = vmul.f32 %v15602_v7, %v1647_v55 }
 0x1b6   : > { %v2981_v12 = vpack.c.bf16 %v2896_v57, %v2895_v35  ;;  %v15660_v37 = vadd.f32 %v15609_v51, %v1877_v34  ;;  %v2897_v40 = vmax.f32 %v2511_v53, %v2769_v36  ;;  %v2513_v46 = vmax.f32 %v2129_v62, %v2385_v10  ;;  %v2642_v35 = vld [vmem:[#allocation2 + $0x2d8] sm:$0xff] }
 0x1b7   : > { %v2898_v32 = vmax.f32 %v2512_v29, %v2770_v31  ;;  %v2139_v19 = vmax.f32 %v15648_v60, 0.0  ;;  %v2137_v17 = vmax.f32 %v15655_v47, 0.0  ;;  %v15666_v25 = vadd.f32 %v15609_v51, %v1875_v21 }
 0x1b8   : > { %11717 = vmatprep.subr.bf16.mxu1 %v2981_v12  ;;  %v2140_v0 = vmax.f32 %v15660_v37, 0.0  ;;  %v18541_v59 = vpack.c.bf16 %v15432_v61, %v15422_v27  ;;  %v2514_v10 = vmax.f32 %v2130_v45, %v2386_v15  ;;  %v2899_v45 = vmax.f32 %v2513_v46, %v2771_v23  ;;  %v2645_v36 = vld [vmem:[#allocation2 + $0x2f0] sm:$0xff] }
 0x1b9   : > { %2267 = vst.msk [vmem:[#allocation2 + $0x310] sm:$0xff] %vm550_vm3, %v2139_v19  ;;  %v2982_v50 = vpack.c.bf16 %v2898_v32, %v2897_v40  ;;  %v2388_v62 = vld [vmem:[#allocation2 + $0x2d9] sm:$0xff]  ;;  %2265 = vst.msk [vmem:[#allocation2 + $0x300] sm:$0xff] %vm550_vm3, %v2137_v17  ;;  %v12367_v53 = vpop.f32.mrb[100].mxu0  ;;  %v2391_v5 = vld [vmem:[#allocation2 + $0x2f1] sm:$0xff]  ;;  %v2515_v57 = vmax.f32 %v2131_v63, %v2387_v1  ;;  %v18542_v34 = vmax.f32 %v15556_v38, 0.0  ;;  %v18543_v1 = vpack.c.bf16 %v15438_v33, %v15450_v24 }
 0x1ba   : > { %3257 = vmatmul.mubr.bf16.gmra.mrb[48].mxu1 %v15204_v16  ;;  %v2138_v16 = vmax.f32 %v15666_v25, 0.0  ;;  %v2772_v31 = vmax.f32 %v2642_v35, %v2388_v62  ;;  %2268 = vst.msk [vmem:[#allocation2 + $0x318] sm:$0xff] %vm550_vm3, %v2140_v0  ;;  %v1880_v61 = vmul.f32 %v15602_v7, %v12367_v53  ;;  %v1660_v52 = vpop.f32.mrb[101].mxu0  ;;  %v2643_v48 = vld [vmem:[#allocation2 + $0x2e0] sm:$0xff]  ;;  %v2775_v12 = vmax.f32 %v2645_v36, %v2391_v5  ;;  %v13993_v33 = vld [vmem:[%s18417_s4 + $0x10] sm:$0xff]   ;;  %v13994_v53 = vld [vmem:[%s18417_s4 + $0x18] sm:$0xff]  }
 0x1bb   : > { %11718 = vmatpush3.bf16.msra.mxu1 %v18541_v59  ;;  %3264 = vmatprep.mubr.bf16.mxu1 %v15187_v39  ;;  %v2390_v2 = vld [vmem:[#allocation2 + $0x2e9] sm:$0xff]  ;;  %v2389_v15 = vld [vmem:[#allocation2 + $0x2e1] sm:$0xff]  ;;  %v1878_v29 = vmul.f32 %v15602_v7, %v1660_v52  ;;  %v12368_v4 = vpop.f32.mrb[102].mxu0  ;;  %v2516_v55 = vmax.f32 %v18542_v34, %v2388_v62  ;;  %v18547_v37 = vpack.c.bf16 %v15546_v30, %v15560_v22 }
 0x1bc   : > { %v2644_v27 = vld [vmem:[#allocation2 + $0x2e8] sm:$0xff]  ;;  %11719 = vmatprep.subr.bf16.mxu1 %v2982_v50  ;;  %2266 = vst.msk [vmem:[#allocation2 + $0x308] sm:$0xff] %vm550_vm3, %v2138_v16  ;;  %v2900_v8 = vmax.f32 %v2514_v10, %v2772_v31  ;;  %v15696_v23 = vadd.f32 %v15609_v51, %v1880_v61  ;;  %v1881_v3 = vmul.f32 %v15602_v7, %v12368_v4  ;;  %v1663_v63 = vpop.f32.mrb[103].mxu0  ;;  %v2646_v61 = vld [vmem:[#allocation2 + $0x2f8] sm:$0xff] }
 0x1bd   : > { %v2774_v44 = vmax.f32 %v2644_v27, %v2390_v2  ;;  %v2773_v21 = vmax.f32 %v2643_v48, %v2389_v15  ;;  %v15703_v32 = vadd.f32 %v15609_v51, %v1878_v29  ;;  %v1879_v38 = vmul.f32 %v15602_v7, %v1663_v63  ;;  %12393 = vmatprep.subr.bf16.mxu0 %v13993_v33 }
 0x1be   : > { %v2983_v40 = vpack.c.bf16 %v2900_v8, %v2899_v45  ;;  %v2143_v59 = vmax.f32 %v15696_v23, 0.0  ;;  %v15708_v50 = vadd.f32 %v15609_v51, %v1881_v3  ;;  %v2517_v35 = vmax.f32 %v2133_v14, %v2389_v15  ;;  %12394 = vmatpush3.bf16.msra.mxu0 %v13993_v33 }
 0x1bf   : > { %11720 = vmatpush3.bf16.msra.mxu1 %v18543_v1  ;;  %v2902_v46 = vmax.f32 %v2516_v55, %v2774_v44  ;;  %v2901_v62 = vmax.f32 %v2515_v57, %v2773_v21  ;;  %v2141_v24 = vmax.f32 %v15703_v32, 0.0  ;;  %v15717_v10 = vadd.f32 %v15609_v51, %v1879_v38  ;;  %12395 = vmatprep.subr.bf16.mxu0 %v13994_v53 }
 0x1c0   : > { %11721 = vmatprep.subr.bf16.mxu1 %v2983_v40  ;;  %2271 = vst.msk [vmem:[#allocation2 + $0x330] sm:$0xff] %vm550_vm3, %v2143_v59  ;;  %v2144_v26 = vmax.f32 %v15708_v50, 0.0  ;;  %v18544_v14 = vpack.c.bf16 %v15486_v6, %v15476_v58  ;;  %v2392_v27 = vld [vmem:[#allocation2 + $0x2f9] sm:$0xff]  ;;  %v2518_v52 = vmax.f32 %v2134_v43, %v2390_v2  ;;  %v2903_v43 = vmax.f32 %v2517_v35, %v2775_v12  ;;  %v2649_v3 = vld [vmem:[#allocation2 + $0x310] sm:$0xff] }
 0x1c1   : > { %v2984_v31 = vpack.c.bf16 %v2902_v46, %v2901_v62  ;;  %2269 = vst.msk [vmem:[#allocation2 + $0x320] sm:$0xff] %vm550_vm3, %v2141_v24  ;;  %v2142_v45 = vmax.f32 %v15717_v10, 0.0  ;;  %v12371_v15 = vpop.f32.mrb[104].mxu0  ;;  %v2776_v57 = vmax.f32 %v2646_v61, %v2392_v27  ;;  %v2395_v44 = vld [vmem:[#allocation2 + $0x311] sm:$0xff]  ;;  %v2519_v29 = vmax.f32 %v2135_v28, %v2391_v5  ;;  %v2647_v36 = vld [vmem:[#allocation2 + $0x300] sm:$0xff] }
 0x1c2   : > { %3265 = vmatmul.mubr.bf16.gmra.mrb[52].mxu1 %v15266_v9  ;;  %2272 = vst.msk [vmem:[#allocation2 + $0x338] sm:$0xff] %vm550_vm3, %v2144_v26  ;;  %v1676_v18 = vpop.f32.mrb[105].mxu0  ;;  %v2520_v48 = vmax.f32 %v2136_v13, %v2392_v27  ;;  %v18545_v5 = vpack.c.bf16 %v15492_v11, %v15504_v20  ;;  %v2779_v21 = vmax.f32 %v2649_v3, %v2395_v44 }
 0x1c3   : > { %11722 = vmatpush3.bf16.msra.mxu1 %v18544_v14  ;;  %3317 = vmatprep.mubr.bf16.mxu1 %v15306_v56  ;;  %v2394_v58 = vld [vmem:[#allocation2 + $0x309] sm:$0xff]  ;;  %v1884_v56 = vmul.f32 %v15602_v7, %v12371_v15  ;;  %v2393_v2 = vld [vmem:[#allocation2 + $0x301] sm:$0xff]  ;;  %2270 = vst.msk [vmem:[#allocation2 + $0x328] sm:$0xff] %vm550_vm3, %v2142_v45  ;;  %v1882_v8 = vmul.f32 %v15602_v7, %v1676_v18  ;;  %v12372_v34 = vpop.f32.mrb[106].mxu0 }
 0x1c4   : > { %v2648_v6 = vld [vmem:[#allocation2 + $0x308] sm:$0xff]  ;;  %11723 = vmatprep.subr.bf16.mxu1 %v2984_v31  ;;  %v2904_v55 = vmax.f32 %v2518_v52, %v2776_v57  ;;  %v1885_v54 = vmul.f32 %v15602_v7, %v12372_v34  ;;  %v1679_v28 = vpop.f32.mrb[107].mxu0  ;;  %v2777_v1 = vmax.f32 %v2647_v36, %v2393_v2  ;;  %v2521_v62 = vmax.f32 %v2137_v17, %v2393_v2  ;;  %v2650_v17 = vld [vmem:[#allocation2 + $0x318] sm:$0xff] }
 0x1c5   : > { %v2778_v4 = vmax.f32 %v2648_v6, %v2394_v58  ;;  %v15750_v63 = vadd.f32 %v15609_v51, %v1884_v56  ;;  %v15757_v12 = vadd.f32 %v15609_v51, %v1882_v8  ;;  %v1883_v49 = vmul.f32 %v15602_v7, %v1679_v28  ;;  %12396 = vmatpush3.bf16.msra.mxu0 %v13994_v53 }
 0x1c6   : > { %v2985_v13 = vpack.c.bf16 %v2904_v55, %v2903_v43  ;;  %v15762_v46 = vadd.f32 %v15609_v51, %v1885_v54  ;;  %v2905_v35 = vmax.f32 %v2519_v29, %v2777_v1  ;;  %v18546_v31 = vpack.c.bf16 %v15544_v41, %v15530_v42 }
 0x1c7   : > { %11724 = vmatpush3.bf16.msra.mxu1 %v18545_v5  ;;  %v2906_v38 = vmax.f32 %v2520_v48, %v2778_v4  ;;  %v2147_v40 = vmax.f32 %v15750_v63, 0.0  ;;  %v2145_v11 = vmax.f32 %v15757_v12, 0.0  ;;  %v15768_v20 = vadd.f32 %v15609_v51, %v1883_v49  ;;  %v2653_v8 = vld [vmem:[#allocation2 + $0x330] sm:$0xff] }
 0x1c8   : > { %11725 = vmatprep.subr.bf16.mxu1 %v2985_v13  ;;  %v2396_v33 = vld [vmem:[#allocation2 + $0x319] sm:$0xff]  ;;  %v2148_v14 = vmax.f32 %v15762_v46, 0.0  ;;  %v2522_v53 = vmax.f32 %v2138_v16, %v2394_v58  ;;  %v15787_v25 = vmax.f32 %v2521_v62, %v2779_v21  ;;  %v2523_v58 = vmax.f32 %v2139_v19, %v2395_v44 }
 0x1c9   : > { %2275 = vst.msk [vmem:[#allocation2 + $0x350] sm:$0xff] %vm550_vm3, %v2147_v40  ;;  %v2986_v47 = vpack.c.bf16 %v2906_v38, %v2905_v35  ;;  %2273 = vst.msk [vmem:[#allocation2 + $0x340] sm:$0xff] %vm550_vm3, %v2145_v11  ;;  %v2146_v27 = vmax.f32 %v15768_v20, 0.0  ;;  %v12375_v61 = vpop.f32.mrb[108].mxu0  ;;  %v2780_v52 = vmax.f32 %v2650_v17, %v2396_v33  ;;  %v2399_v15 = vld [vmem:[#allocation2 + $0x331] sm:$0xff]  ;;  %v2524_v56 = vmax.f32 %v2140_v0, %v2396_v33  ;;  %v2651_v4 = vld [vmem:[#allocation2 + $0x320] sm:$0xff] }
 0x1ca   : > { %v2398_v57 = vld [vmem:[#allocation2 + $0x329] sm:$0xff]  ;;  %2276 = vst.msk [vmem:[#allocation2 + $0x358] sm:$0xff] %vm550_vm3, %v2148_v14  ;;  %v1888_v42 = vmul.f32 %v15602_v7, %v12375_v61  ;;  %v1692_v41 = vpop.f32.mrb[109].mxu0  ;;  %v2397_v16 = vld [vmem:[#allocation2 + $0x321] sm:$0xff]  ;;  %v2783_v44 = vmax.f32 %v2653_v8, %v2399_v15  ;;  %v2654_v38 = vld [vmem:[#allocation2 + $0x338] sm:$0xff] }
 0x1cb   : > { %11726 = vmatpush3.bf16.msra.mxu1 %v18546_v31  ;;  %v2652_v6 = vld [vmem:[#allocation2 + $0x328] sm:$0xff]  ;;  %2274 = vst.msk [vmem:[#allocation2 + $0x348] sm:$0xff] %vm550_vm3, %v2146_v27  ;;  %v1886_v43 = vmul.f32 %v15602_v7, %v1692_v41  ;;  %v12376_v2 = vpop.f32.mrb[110].mxu0  ;;  %v15797_v29 = vmax.f32 %v2522_v53, %v2780_v52  ;;  %v2781_v0 = vmax.f32 %v2651_v4, %v2397_v16 }
 0x1cc   : > { %11727 = vmatprep.subr.bf16.mxu1 %v2986_v47  ;;  %v2782_v18 = vmax.f32 %v2652_v6, %v2398_v57  ;;  %v15800_v34 = vadd.f32 %v15609_v51, %v1888_v42  ;;  %v1889_v60 = vmul.f32 %v15602_v7, %v12376_v2  ;;  %v1695_v19 = vpop.f32.mrb[111].mxu0  ;;  %v2525_v30 = vmax.f32 %v2141_v24, %v2397_v16  ;;  %v15829_v21 = vld [vmem:[%s18423_s10] ss:$8 sps:$4 sm:$0xff]   ;;  %v15839_v24 = vld [vmem:[%s18423_s10 + $0x14] ss:$8 sps:$4 sm:$0xff]  }
 0x1cd   : > { %v15809_v48 = vadd.f32 %v15609_v51, %v1886_v43  ;;  %v1887_v36 = vmul.f32 %v15602_v7, %v1695_v19  ;;  %v2987_v3 = vpack.c.bf16 %v15797_v29, %v15787_v25  ;;  %v15818_v5 = vmax.f32 %v2523_v58, %v2781_v0 }
 0x1ce   : > { %v15806_v55 = vmax.f32 %v2524_v56, %v2782_v18  ;;  %v2151_v54 = vmax.f32 %v15800_v34, 0.0  ;;  %v15816_v28 = vadd.f32 %v15609_v51, %v1889_v60  ;;  %v2526_v62 = vmax.f32 %v2142_v45, %v2398_v57 }
 0x1cf   : > { %11728 = vmatpush3.bf16.msra.mxu1 %v18547_v37  ;;  %v2149_v22 = vmax.f32 %v15809_v48, 0.0  ;;  %v15824_v1 = vadd.f32 %v15609_v51, %v1887_v36  ;;  %v15854_v10 = vmax.f32 %v2525_v30, %v2783_v44  ;;  %v2527_v57 = vmax.f32 %v2143_v59, %v2399_v15  ;;  %v15893_v30 = vld [vmem:[%s18423_s10 + $0x10] ss:$8 sps:$4 sm:$0xff]  }
 0x1d0   : > { %v2400_v49 = vld [vmem:[#allocation2 + $0x339] sm:$0xff]  ;;  %2279 = vst.msk [vmem:[#allocation2 + $0x370] sm:$0xff] %vm550_vm3, %v2151_v54  ;;  %v2152_v32 = vmax.f32 %v15816_v28, 0.0  ;;  %v2657_v18 = vld [vmem:[#allocation2 + $0x350] sm:$0xff] }
 0x1d1   : > { %2277 = vst.msk [vmem:[#allocation2 + $0x360] sm:$0xff] %vm550_vm3, %v2149_v22  ;;  %v2150_v35 = vmax.f32 %v15824_v1, 0.0  ;;  %v12379_v33 = vpop.f32.mrb[112].mxu0  ;;  %v2784_v31 = vmax.f32 %v2654_v38, %v2400_v49  ;;  %v2403_v47 = vld [vmem:[#allocation2 + $0x351] sm:$0xff]  ;;  %v2528_v6 = vmax.f32 %v2144_v26, %v2400_v49  ;;  %v2655_v56 = vld [vmem:[#allocation2 + $0x340] sm:$0xff] }
 0x1d2   : > { %3318 = vmatmul.mubr.bf16.vlgmr.msra.gmra.mrb[56].mxu1 %v15829_v21  ;;  %v2402_v17 = vld [vmem:[#allocation2 + $0x349] sm:$0xff]  ;;  %2280 = vst.msk [vmem:[#allocation2 + $0x378] sm:$0xff] %vm550_vm3, %v2152_v32  ;;  %v1892_v61 = vmul.f32 %v15602_v7, %v12379_v33  ;;  %v1708_v52 = vpop.f32.mrb[113].mxu0  ;;  %v2401_v45 = vld [vmem:[#allocation2 + $0x341] sm:$0xff]  ;;  %v2787_v26 = vmax.f32 %v2657_v18, %v2403_v47 }
 0x1d3   : > { %3325 = vmatprep.mubr.bf16.mxu1 %v15839_v24  ;;  %v2656_v53 = vld [vmem:[#allocation2 + $0x348] sm:$0xff]  ;;  %2278 = vst.msk [vmem:[#allocation2 + $0x368] sm:$0xff] %vm550_vm3, %v2150_v35  ;;  %v1890_v41 = vmul.f32 %v15602_v7, %v1708_v52  ;;  %v12380_v16 = vpop.f32.mrb[114].mxu0  ;;  %v15864_v58 = vmax.f32 %v2526_v62, %v2784_v31  ;;  %v2785_v50 = vmax.f32 %v2655_v56, %v2401_v45  ;;  %v2658_v62 = vld [vmem:[#allocation2 + $0x358] sm:$0xff] }
 0x1d4   : > { %v2786_v42 = vmax.f32 %v2656_v53, %v2402_v17  ;;  %v15867_v43 = vadd.f32 %v15609_v51, %v1892_v61  ;;  %v1893_v23 = vmul.f32 %v15602_v7, %v12380_v16  ;;  %v1711_v59 = vpop.f32.mrb[115].mxu0  ;;  %v2529_v0 = vmax.f32 %v2145_v11, %v2401_v45  ;;  %v15903_v11 = vld [vmem:[%s18423_s10 + $0x24] ss:$8 sps:$4 sm:$0xff]  }
 0x1d5   : > { %v15873_v2 = vadd.f32 %v15609_v51, %v1890_v41  ;;  %v1891_v4 = vmul.f32 %v15602_v7, %v1711_v59  ;;  %v15882_v37 = vmax.f32 %v2527_v57, %v2785_v50  ;;  %v2530_v33 = vmax.f32 %v2146_v27, %v2402_v17 }
 0x1d6   : > { %v15870_v15 = vmax.f32 %v2528_v6, %v2786_v42  ;;  %v2155_v60 = vmax.f32 %v15867_v43, 0.0  ;;  %v15880_v19 = vadd.f32 %v15609_v51, %v1893_v23  ;;  %v15918_v20 = vmax.f32 %v2529_v0, %v2787_v26 }
 0x1d7   : > { %v2153_v44 = vmax.f32 %v15873_v2, 0.0  ;;  %v15888_v36 = vadd.f32 %v15609_v51, %v1891_v4  ;;  %v2531_v17 = vmax.f32 %v2147_v40, %v2403_v47  ;;  %v2661_v50 = vld [vmem:[#allocation2 + $0x370] sm:$0xff] }
 0x1d8   : > { %v2404_v49 = vld [vmem:[#allocation2 + $0x359] sm:$0xff]  ;;  %2283 = vst.msk [vmem:[#allocation2 + $0x390] sm:$0xff] %vm550_vm3, %v2155_v60  ;;  %v2156_v12 = vmax.f32 %v15880_v19, 0.0 }
 0x1d9   : > { %2281 = vst.msk [vmem:[#allocation2 + $0x380] sm:$0xff] %vm550_vm3, %v2153_v44  ;;  %v2154_v31 = vmax.f32 %v15888_v36, 0.0  ;;  %v12383_v53 = vpop.f32.mrb[116].mxu0  ;;  %v2788_v61 = vmax.f32 %v2658_v62, %v2404_v49  ;;  %v2407_v52 = vld [vmem:[#allocation2 + $0x371] sm:$0xff]  ;;  %v2532_v41 = vmax.f32 %v2148_v14, %v2404_v49  ;;  %v2659_v59 = vld [vmem:[#allocation2 + $0x360] sm:$0xff] }
 0x1da   : > { %3326 = vmatmul.mubr.bf16.gmra.mrb[60].mxu1 %v15893_v30  ;;  %v2406_v45 = vld [vmem:[#allocation2 + $0x369] sm:$0xff]  ;;  %2284 = vst.msk [vmem:[#allocation2 + $0x398] sm:$0xff] %vm550_vm3, %v2156_v12  ;;  %v1896_v6 = vmul.f32 %v15602_v7, %v12383_v53  ;;  %v1724_v42 = vpop.f32.mrb[117].mxu0  ;;  %v2405_v27 = vld [vmem:[#allocation2 + $0x361] sm:$0xff]  ;;  %v2791_v14 = vmax.f32 %v2661_v50, %v2407_v52  ;;  %v2535_v8 = vmax.f32 %v2151_v54, %v2407_v52 }
 0x1db   : > { %3333 = vmatprep.mubr.bf16.mxu1 %v15903_v11  ;;  %v2660_v57 = vld [vmem:[#allocation2 + $0x368] sm:$0xff]  ;;  %2282 = vst.msk [vmem:[#allocation2 + $0x388] sm:$0xff] %vm550_vm3, %v2154_v31  ;;  %v1894_v56 = vmul.f32 %v15602_v7, %v1724_v42  ;;  %v12384_v18 = vpop.f32.mrb[118].mxu0  ;;  %v15928_v23 = vmax.f32 %v2530_v33, %v2788_v61  ;;  %v2789_v46 = vmax.f32 %v2659_v59, %v2405_v27  ;;  %v16021_v2 = vld [vmem:[%s18423_s10 + $0x30] ss:$8 sps:$4 sm:$0xff]  }
 0x1dc   : > { %v2790_v16 = vmax.f32 %v2660_v57, %v2406_v45  ;;  %v15931_v26 = vadd.f32 %v15609_v51, %v1896_v6  ;;  %v1897_v63 = vmul.f32 %v15602_v7, %v12384_v18  ;;  %v1727_v40 = vpop.f32.mrb[119].mxu0  ;;  %v2533_v61 = vmax.f32 %v2149_v22, %v2405_v27  ;;  %v15957_v42 = vld [vmem:[%s18423_s10 + $0x20] ss:$8 sps:$4 sm:$0xff]   ;;  %v15967_v22 = vld [vmem:[%s18423_s10 + $0x34] ss:$8 sps:$4 sm:$0xff]  }
 0x1dd   : > { %v15937_v4 = vadd.f32 %v15609_v51, %v1894_v56  ;;  %v1895_v0 = vmul.f32 %v15602_v7, %v1727_v40  ;;  %v15946_v53 = vmax.f32 %v2531_v17, %v2789_v46  ;;  %v2662_v17 = vld [vmem:[#allocation2 + $0x378] sm:$0xff] }
 0x1de   : > { %v15934_v47 = vmax.f32 %v2532_v41, %v2790_v16  ;;  %v18446_v62 = vmax.f32 %v15931_v26, 0.0  ;;  %v15944_v33 = vadd.f32 %v15609_v51, %v1897_v63  ;;  %v2534_v63 = vmax.f32 %v2150_v35, %v2406_v45 }
 0x1df   : > { %v2157_v57 = vmax.f32 %v15937_v4, 0.0  ;;  %v15952_v6 = vadd.f32 %v15609_v51, %v1895_v0  ;;  %v2665_v59 = vld [vmem:[#allocation2 + $0x390] sm:$0xff]  ;;  %v15982_v38 = vmax.f32 %v2533_v61, %v2791_v14 }
 0x1e0   : > { %v2408_v41 = vld [vmem:[#allocation2 + $0x379] sm:$0xff]  ;;  %2287 = vst.msk [vmem:[#allocation2 + $0x3b0] sm:$0xff] %vm550_vm3, %v18446_v62  ;;  %v18443_v48 = vmax.f32 %v15944_v33, 0.0 }
 0x1e1   : > { %2285 = vst.msk [vmem:[#allocation2 + $0x3a0] sm:$0xff] %vm550_vm3, %v2157_v57  ;;  %v18448_v16 = vmax.f32 %v15952_v6, 0.0  ;;  %v12387_v56 = vpop.f32.mrb[120].mxu0  ;;  %v2411_v18 = vld [vmem:[#allocation2 + $0x391] sm:$0xff]  ;;  %v2792_v50 = vmax.f32 %v2662_v17, %v2408_v41  ;;  %v2536_v17 = vmax.f32 %v2152_v32, %v2408_v41  ;;  %v2663_v13 = vld [vmem:[#allocation2 + $0x380] sm:$0xff] }
 0x1e2   : > { %3334 = vmatmul.mubr.bf16.gmra.mrb[64].mxu1 %v15957_v42  ;;  %v2410_v40 = vld [vmem:[#allocation2 + $0x389] sm:$0xff]  ;;  %2288 = vst.msk [vmem:[#allocation2 + $0x3b8] sm:$0xff] %vm550_vm3, %v18443_v48  ;;  %v1900_v0 = vmul.f32 %v15602_v7, %v12387_v56  ;;  %v1740_v27 = vpop.f32.mrb[121].mxu0  ;;  %v2409_v49 = vld [vmem:[#allocation2 + $0x381] sm:$0xff]  ;;  %v2795_v56 = vmax.f32 %v2665_v59, %v2411_v18 }
 0x1e3   : > { %3341 = vmatprep.mubr.bf16.mxu1 %v15967_v22  ;;  %v2664_v46 = vld [vmem:[#allocation2 + $0x388] sm:$0xff]  ;;  %2286 = vst.msk [vmem:[#allocation2 + $0x3a8] sm:$0xff] %vm550_vm3, %v18448_v16  ;;  %v1898_v35 = vmul.f32 %v15602_v7, %v1740_v27  ;;  %v12388_v45 = vpop.f32.mrb[122].mxu0  ;;  %v2793_v54 = vmax.f32 %v2663_v13, %v2409_v49  ;;  %v15996_v52 = vmax.f32 %v2534_v63, %v2792_v50 }
 0x1e4   : > { %v2794_v1 = vmax.f32 %v2664_v46, %v2410_v40  ;;  %v15993_v48 = vadd.f32 %v15609_v51, %v1900_v0  ;;  %v1901_v14 = vmul.f32 %v15602_v7, %v12388_v45  ;;  %v1743_v34 = vpop.f32.mrb[123].mxu0  ;;  %v2537_v41 = vmax.f32 %v2153_v44, %v2409_v49  ;;  %v2666_v0 = vld [vmem:[#allocation2 + $0x398] sm:$0xff] }
 0x1e5   : > { %v16001_v32 = vadd.f32 %v15609_v51, %v1898_v35  ;;  %v1899_v61 = vmul.f32 %v15602_v7, %v1743_v34  ;;  %v16012_v50 = vmax.f32 %v2535_v8, %v2793_v54  ;;  %v16031_v8 = vld [vmem:[%s18423_s10 + $0x44] ss:$8 sps:$4 sm:$0xff]  }
 0x1e6   : > { %v15998_v28 = vmax.f32 %v2536_v17, %v2794_v1  ;;  %v18444_v27 = vmax.f32 %v15993_v48, 0.0  ;;  %v16008_v59 = vadd.f32 %v15609_v51, %v1901_v14  ;;  %v2538_v1 = vmax.f32 %v2154_v31, %v2410_v40 }
 0x1e7   : > { %v18445_v63 = vmax.f32 %v16001_v32, 0.0  ;;  %v16016_v46 = vadd.f32 %v15609_v51, %v1899_v61  ;;  %v2923_v36 = vmax.f32 %v2537_v41, %v2795_v56  ;;  %v2539_v40 = vmax.f32 %v2155_v60, %v2411_v18 }
 0x1e8   : > { %2291 = vst.msk [vmem:[#allocation2 + $0x3d0] sm:$0xff] %vm550_vm3, %v18444_v27  ;;  %v18447_v44 = vmax.f32 %v16008_v59, 0.0  ;;  %v2412_v49 = vld [vmem:[#allocation2 + $0x399] sm:$0xff] }
 0x1e9   : > { %2289 = vst.msk [vmem:[#allocation2 + $0x3c0] sm:$0xff] %vm550_vm3, %v18445_v63  ;;  %v18449_v35 = vmax.f32 %v16016_v46, 0.0  ;;  %v12391_v45 = vpop.f32.mrb[124].mxu0  ;;  %v2796_v14 = vmax.f32 %v2666_v0, %v2412_v49  ;;  %v2415_v34 = vld [vmem:[#allocation2 + $0x3b1] sm:$0xff]  ;;  %v2667_v16 = vld [vmem:[#allocation2 + $0x3a0] sm:$0xff] }
 0x1ea   : > { %3342 = vmatmul.mubr.bf16.gmra.mrb[68].mxu1 %v16021_v2  ;;  %v2414_v54 = vld [vmem:[#allocation2 + $0x3a9] sm:$0xff]  ;;  %2292 = vst.msk [vmem:[#allocation2 + $0x3d8] sm:$0xff] %vm550_vm3, %v18447_v44  ;;  %v1904_v17 = vmul.f32 %v15602_v7, %v12391_v45  ;;  %v1756_v13 = vpop.f32.mrb[125].mxu0  ;;  %v2413_v31 = vld [vmem:[#allocation2 + $0x3a1] sm:$0xff]  ;;  %v2540_v44 = vmax.f32 %v2156_v12, %v2412_v49 }
 0x1eb   : > { %3349 = vmatprep.mubr.bf16.mxu1 %v16031_v8  ;;  %v2668_v61 = vld [vmem:[#allocation2 + $0x3a8] sm:$0xff]  ;;  %2290 = vst.msk [vmem:[#allocation2 + $0x3c8] sm:$0xff] %vm550_vm3, %v18449_v35  ;;  %v1902_v0 = vmul.f32 %v15602_v7, %v1756_v13  ;;  %v12392_v63 = vpop.f32.mrb[126].mxu0  ;;  %v2924_v62 = vmax.f32 %v2538_v1, %v2796_v14  ;;  %v2669_v45 = vld [vmem:[#allocation2 + $0x3b0] sm:$0xff]  ;;  %v2797_v18 = vmax.f32 %v2667_v16, %v2413_v31 }
 0x1ec   : > { %v2798_v27 = vmax.f32 %v2668_v61, %v2414_v54  ;;  %v16055_v56 = vadd.f32 %v15609_v51, %v1904_v17  ;;  %v1905_v43 = vmul.f32 %v15602_v7, %v12392_v63  ;;  %v1759_v60 = vpop.f32.mrb[127].mxu0  ;;  %v2799_v41 = vmax.f32 %v2669_v45, %v2415_v34 }
 0x1ed   : > { %v16059_v61 = vadd.f32 %v15609_v51, %v1902_v0  ;;  %v1903_v13 = vmul.f32 %v15602_v7, %v1759_v60  ;;  %v2995_v35 = vpack.c.bf16 %v2924_v62, %v2923_v36  ;;  %v2925_v49 = vmax.f32 %v2539_v40, %v2797_v18  ;;  %v16075_v7 = vld [vmem:[%s18423_s10 + $0x40] ss:$8 sps:$4 sm:$0xff]   ;;  %v16088_v62 = vld [vmem:[%s18423_s10 + $0x54] ss:$8 sps:$4 sm:$0xff]  }
 0x1ee   : > { %v2926_v1 = vmax.f32 %v2540_v44, %v2798_v27  ;;  %v2167_v19 = vmax.f32 %v16055_v56, 0.0  ;;  %v16064_v12 = vadd.f32 %v15609_v51, %v1905_v43  ;;  %v2541_v17 = vmax.f32 %v2157_v57, %v2413_v31  ;;  %v2670_v27 = vld [vmem:[#allocation2 + $0x3b8] sm:$0xff] }
 0x1ef   : > { %v2165_v63 = vmax.f32 %v16059_v61, 0.0  ;;  %v16070_v16 = vadd.f32 %v15609_v51, %v1903_v13  ;;  %11771 = vmatprep.subr.bf16.mxu1 %v2995_v35  ;;  %v18548_v44 = vmax.f32 %v15952_v6, 0.0  ;;  %v18549_v45 = vmax.f32 %v15931_v26, 0.0 }
 0x1f0   : > { %2295 = vst.msk [vmem:[#allocation2 + $0x3f0] sm:$0xff] %vm550_vm3, %v2167_v19  ;;  %v2168_v4 = vmax.f32 %v16064_v12, 0.0  ;;  %11772 = vmatpush3.bf16.msra.mxu1 %v2987_v3  ;;  %v2996_v51 = vpack.c.bf16 %v2926_v1, %v2925_v49  ;;  %v2416_v57 = vld [vmem:[#allocation2 + $0x3b9] sm:$0xff]  ;;  %v2927_v40 = vmax.f32 %v2541_v17, %v2799_v41  ;;  %v18550_v60 = vmax.f32 %v15944_v33, 0.0  ;;  %v2673_v1 = vld [vmem:[#allocation2 + $0x3d0] sm:$0xff] }
 0x1f1   : > { %v2542_v35 = vmax.f32 %v18548_v44, %v2414_v54  ;;  %2293 = vst.msk [vmem:[#allocation2 + $0x3e0] sm:$0xff] %vm550_vm3, %v2165_v63  ;;  %v2166_v25 = vmax.f32 %v16070_v16, 0.0  ;;  %v2800_v29 = vmax.f32 %v2670_v27, %v2416_v57  ;;  %v2671_v3 = vld [vmem:[#allocation2 + $0x3c0] sm:$0xff]  ;;  %v2419_v14 = vld [vmem:[#allocation2 + $0x3d1] sm:$0xff]  ;;  %v2543_v6 = vmax.f32 %v18549_v45, %v2415_v34  ;;  %v2680_v27 = vld [vmem:[#allocation2 + $0x408] sm:$0xff] }
 0x1f2   : > { %3350 = vmatmul.mubr.bf16.gmra.mrb[72].mxu1 %v16075_v7  ;;  %v2418_v36 = vld [vmem:[#allocation2 + $0x3c9] sm:$0xff]  ;;  %2296 = vst.msk [vmem:[#allocation2 + $0x3f8] sm:$0xff] %vm550_vm3, %v2168_v4  ;;  %11773 = vmatprep.subr.bf16.mxu1 %v2996_v51  ;;  %v2417_v0 = vld [vmem:[#allocation2 + $0x3c1] sm:$0xff]  ;;  %v2544_v18 = vmax.f32 %v18550_v60, %v2416_v57  ;;  %v18551_v12 = vpack.c.bf16 %v15806_v55, %v15818_v5  ;;  %v18552_v26 = vmax.f32 %v16001_v32, 0.0  ;;  %v2674_v5 = vld [vmem:[#allocation2 + $0x3d8] sm:$0xff] }
 0x1f3   : > { %3357 = vmatprep.mubr.bf16.mxu1 %v16088_v62  ;;  %v2672_v31 = vld [vmem:[#allocation2 + $0x3c8] sm:$0xff]  ;;  %2294 = vst.msk [vmem:[#allocation2 + $0x3e8] sm:$0xff] %vm550_vm3, %v2166_v25  ;;  %v2928_v43 = vmax.f32 %v2542_v35, %v2800_v29  ;;  %v2801_v13 = vmax.f32 %v2671_v3, %v2417_v0  ;;  %v2803_v49 = vmax.f32 %v2673_v1, %v2419_v14  ;;  %v2679_v16 = vld [vmem:[#allocation2 + $0x400] sm:$0xff]  ;;  %v16111_v33 = vld [vmem:[%s18423_s10 + $0x50] ss:$8 sps:$4 sm:$0xff]   ;;  %v18554_v29 = vmax.f32 %v15993_v48, 0.0 }
 0x1f4   : > { %v2802_v54 = vmax.f32 %v2672_v31, %v2418_v36  ;;  %11774 = vmatpush3.bf16.msra.mxu1 %v18551_v12  ;;  %v2545_v34 = vmax.f32 %v18552_v26, %v2417_v0  ;;  %v2681_v44 = vld [vmem:[#allocation2 + $0x401] sm:$0xff]  ;;  %v2682_v35 = vld [vmem:[#allocation2 + $0x409] sm:$0xff]  ;;  %v18553_v57 = vpack.c.bf16 %v15864_v58, %v15854_v10  ;;  %v18556_v10 = vmax.f32 %v16008_v59, 0.0 }
 0x1f5   : > { %v2997_v41 = vpack.c.bf16 %v2928_v43, %v2927_v40  ;;  %v2929_v17 = vmax.f32 %v2543_v6, %v2801_v13  ;;  %v2547_v3 = vmax.f32 %v18554_v29, %v2419_v14  ;;  %v2809_v0 = vmax.f32 %v2679_v16, %v2681_v44 }
 0x1f6   : > { %v2930_v51 = vmax.f32 %v2544_v18, %v2802_v54  ;;  %v2810_v45 = vmax.f32 %v2680_v27, %v2682_v35  ;;  %v18555_v6 = vmax.f32 %v16016_v46, 0.0  ;;  %v2931_v13 = vmax.f32 %v2545_v34, %v2803_v49 }
 0x1f7   : > { %11775 = vmatprep.subr.bf16.mxu1 %v2997_v41  ;;  %v2677_v40 = vld [vmem:[#allocation2 + $0x3f0] sm:$0xff]  ;;  %v18557_v49 = vpack.c.bf16 %v15870_v15, %v15882_v37  ;;  %v14078_v37 = vld [vmem:[%s18423_s10 + $0x4] ss:$8 sps:$4 sm:$0xff]   ;;  %v18559_v61 = vpack.c.bf16 %v15934_v47, %v15946_v53 }
 0x1f8   : > { %v2998_v55 = vpack.c.bf16 %v2930_v51, %v2929_v17  ;;  %11776 = vmatpush3.bf16.msra.mxu1 %v18553_v57  ;;  %v2420_v32 = vld [vmem:[#allocation2 + $0x3d9] sm:$0xff]  ;;  %v2546_v54 = vmax.f32 %v18555_v6, %v2418_v36 }
 0x1f9   : > { %v2675_v31 = vld [vmem:[#allocation2 + $0x3e0] sm:$0xff]  ;;  %v2678_v60 = vld [vmem:[#allocation2 + $0x3f8] sm:$0xff]  ;;  %v2804_v18 = vmax.f32 %v2674_v5, %v2420_v32  ;;  %v2548_v58 = vmax.f32 %v18556_v10, %v2420_v32 }
 0x1fa   : > { %3358 = vmatmul.mubr.bf16.gmra.mrb[76].mxu1 %v16111_v33  ;;  %v2424_v43 = vld [vmem:[#allocation2 + $0x3f9] sm:$0xff]  ;;  %11777 = vmatprep.subr.bf16.mxu1 %v2998_v55  ;;  %v2423_v1 = vld [vmem:[#allocation2 + $0x3f1] sm:$0xff]  ;;  %v2422_v48 = vld [vmem:[#allocation2 + $0x3e9] sm:$0xff] }
 0x1fb   : > { %3365 = vmatprep.mubr.bf16.mxu1 %v15187_v39  ;;  %v2552_v12 = vmax.f32 %v2168_v4, %v2424_v43  ;;  %v2808_v41 = vmax.f32 %v2678_v60, %v2424_v43  ;;  %v2676_v14 = vld [vmem:[#allocation2 + $0x3e8] sm:$0xff]  ;;  %v2807_v51 = vmax.f32 %v2677_v40, %v2423_v1  ;;  %v2551_v16 = vmax.f32 %v2167_v19, %v2423_v1 }
 0x1fc   : > { %v2421_v17 = vld [vmem:[#allocation2 + $0x3e1] sm:$0xff]  ;;  %v2550_v46 = vmax.f32 %v2166_v25, %v2422_v48  ;;  %v2806_v36 = vmax.f32 %v2676_v14, %v2422_v48  ;;  %v2932_v26 = vmax.f32 %v2546_v54, %v2804_v18  ;;  %11778 = vmatpush3.bf16.msra.mxu1 %v18557_v49  ;;  %v18558_v25 = vpack.c.bf16 %v15928_v23, %v15918_v20 }
 0x1fd   : > { %v2805_v27 = vmax.f32 %v2675_v31, %v2421_v17  ;;  %v2549_v59 = vmax.f32 %v2165_v63, %v2421_v17  ;;  %v2937_v4 = vmax.f32 %v2551_v16, %v2809_v0  ;;  %v2938_v34 = vmax.f32 %v2552_v12, %v2810_v45 }
 0x1fe   : > { %v2999_v44 = vpack.c.bf16 %v2932_v26, %v2931_v13  ;;  %v2934_v55 = vmax.f32 %v2548_v58, %v2806_v36  ;;  %v2936_v5 = vmax.f32 %v2550_v46, %v2808_v41  ;;  %v18560_v63 = vpack.c.bf16 %v15996_v52, %v15982_v38 }
 0x1ff   : > { %v2933_v35 = vmax.f32 %v2547_v3, %v2805_v27  ;;  %v2935_v57 = vmax.f32 %v2549_v59, %v2807_v51  ;;  %v3002_v56 = vpack.c.bf16 %v2938_v34, %v2937_v4  ;;  %v18561_v20 = vpack.c.bf16 %v15998_v28, %v16012_v50 }
 0x200   : > { %11779 = vmatprep.subr.bf16.mxu1 %v2999_v44 }
 0x201   : > { %v3000_v19 = vpack.c.bf16 %v2934_v55, %v2933_v35  ;;  %11780 = vmatpush3.bf16.msra.mxu1 %v18558_v25  ;;  %v3001_v15 = vpack.c.bf16 %v2936_v5, %v2935_v57 }
 0x202   : > { %3366 = vmatmul.mubr.bf16.gmra.mrb[80].mxu1 %v15266_v9 }
 0x203   : > { %3418 = vmatprep.mubr.bf16.mxu1 %v14078_v37  ;;  %11781 = vmatprep.subr.bf16.mxu1 %v3000_v19 }
 0x205   : > { %11782 = vmatpush3.bf16.msra.mxu1 %v18559_v61 }
 0x206   : > { %11783 = vmatprep.subr.bf16.mxu1 %v3001_v15 }
 0x209   : > { %11784 = vmatpush3.bf16.msra.mxu1 %v18560_v63 }
 0x20a   : > { %11785 = vmatprep.subr.bf16.mxu1 %v3002_v56 }
 0x20d   : > { %11786 = vmatpush3.bf16.msra.mxu1 %v18561_v20 }
 0x210   : > { %3419 = vmatmul.mubr.bf16.vlgmr.msra.gmra.mrb[84].mxu1 %v15829_v21 }
 0x211   : > { %3426 = vmatprep.mubr.bf16.mxu1 %v15839_v24 }
 0x218   : > { %3427 = vmatmul.mubr.bf16.gmra.mrb[88].mxu1 %v15893_v30  ;;  %v3569_v30 = vld [vmem:[#allocation3 + $0x6] sm:$0xff] }
 0x219   : > { %3434 = vmatprep.mubr.bf16.mxu1 %v15903_v11 }
 0x220   : > { %3435 = vmatmul.mubr.bf16.gmra.mrb[92].mxu1 %v15957_v42 }
 0x221   : > { %3442 = vmatprep.mubr.bf16.mxu1 %v15967_v22 }
 0x222   : > { %v11613_v23 = vpop.f32.mrb[0].mxu1 }
 0x223   : > { %v11614_v38 = vpop.f32.mrb[1].mxu1 }
 0x224   : > { %v11615_v47 = vadd.f32 %v11614_v38, %v11613_v23  ;;  %v11616_v53 = vpop.f32.mrb[2].mxu1 }
 0x225   : > { %v11617_v52 = vpop.f32.mrb[3].mxu1 }
 0x226   : > { %3171 = vst.msk [vmem:[#allocation3 + $0x10] sm:$0xff] %vm550_vm3, %v11615_v47  ;;  %v11618_v28 = vadd.f32 %v11617_v52, %v11616_v53 }
 0x228   : > { %3443 = vmatmul.mubr.bf16.gmra.mrb[96].mxu1 %v16021_v2  ;;  %3172 = vst.msk [vmem:[#allocation3 + $0x18] sm:$0xff] %vm550_vm3, %v11618_v28 }
 0x229   : > { %3450 = vmatprep.mubr.bf16.mxu1 %v16031_v8 }
 0x22a   : > { %v11619_v21 = vpop.f32.mrb[4].mxu1 }
 0x22b   : > { %v11620_v24 = vpop.f32.mrb[5].mxu1 }
 0x22c   : > { %v11621_v11 = vadd.f32 %v11620_v24, %v11619_v21  ;;  %v11622_v42 = vpop.f32.mrb[6].mxu1 }
 0x22d   : > { %v11623_v22 = vpop.f32.mrb[7].mxu1  ;;  %v3570_v50 = vld [vmem:[#allocation3 + $0xe] sm:$0xff] }
 0x22e   : > { %v16157_v32 = vld [vmem:[#allocation3 + $0xf] sm:$0xff]  ;;  %3173 = vst.msk [vmem:[#allocation3 + $0x20] sm:$0xff] %vm550_vm3, %v11621_v11  ;;  %v11624_v29 = vadd.f32 %v11623_v22, %v11622_v42  ;;  %v3621_v3 = vpack.c.bf16 %v3570_v50, %v3569_v30 }
 0x22f   : > { %v16161_v2 = vld [vmem:[#allocation3 + $0x17] sm:$0xff] }
 0x230   : > { %3451 = vmatmul.mubr.bf16.gmra.mrb[100].mxu1 %v16075_v7  ;;  %3174 = vst.msk [vmem:[#allocation3 + $0x28] sm:$0xff] %vm550_vm3, %v11624_v29  ;;  %12397 = vmatprep.mubr.msk.bf16.mxu0 %vm550_vm3, %v3621_v3  ;;  %v3571_v0 = vld [vmem:[#allocation3 + $0x16] sm:$0xff] }
 0x231   : > { %3458 = vmatprep.mubr.bf16.mxu1 %v16088_v62 }
 0x232   : > { %v11625_v31 = vpop.f32.mrb[8].mxu1 }
 0x233   : > { %v11626_v40 = vpop.f32.mrb[9].mxu1 }
 0x234   : > { %v11627_v45 = vadd.f32 %v11626_v40, %v11625_v31  ;;  %v11628_v6 = vpop.f32.mrb[10].mxu1 }
 0x235   : > { %v11629_v54 = vpop.f32.mrb[11].mxu1  ;;  %v3572_v43 = vld [vmem:[#allocation3 + $0x1e] sm:$0xff] }
 0x236   : > { %v16168_v60 = vld [vmem:[#allocation3 + $0x1f] sm:$0xff]  ;;  %3175 = vst.msk [vmem:[#allocation3 + $0x30] sm:$0xff] %vm550_vm3, %v11627_v45  ;;  %v11630_v7 = vadd.f32 %v11629_v54, %v11628_v6  ;;  %v3622_v62 = vpack.c.bf16 %v3572_v43, %v3571_v0 }
 0x237   : > { %v16171_v18 = vld [vmem:[#allocation3 + $0x19] sm:$0xff]  ;;  %v16174_v13 = vld [vmem:[#allocation3 + $0x27] sm:$0xff] }
 0x238   : > { %18562 = vst [vmem:[#allocation6_spill] sm:$0xff] %v16171_v18  ;;  %3459 = vmatmul.mubr.bf16.gmra.mrb[104].mxu1 %v16111_v33  ;;  %3176 = vst.msk [vmem:[#allocation3 + $0x38] sm:$0xff] %vm550_vm3, %v11630_v7  ;;  %12398 = vmatmul.mubr.msk.bf16.vlgmr.msra.gmra.mrb[128].mxu0 %vm550_vm3, %v3622_v62  ;;  %v16181_v58 = vld [vmem:[#allocation3 + $0x21] sm:$0xff] }
 0x239   : > { %3466 = vmatprep.mubr.bf16.mxu1 %v15187_v39  ;;  %18563 = vst [vmem:[#allocation7_spill] sm:$0xff] %v16181_v58  ;;  %v3573_v48 = vld [vmem:[#allocation3 + $0x26] sm:$0xff] }
 0x23a   : > { %v11631_v12 = vpop.f32.mrb[12].mxu1 }
 0x23b   : > { %v11632_v41 = vpop.f32.mrb[13].mxu1 }
 0x23c   : > { %v11633_v33 = vadd.f32 %v11632_v41, %v11631_v12  ;;  %v11634_v14 = vpop.f32.mrb[14].mxu1 }
 0x23d   : > { %v11635_v17 = vpop.f32.mrb[15].mxu1  ;;  %v3574_v51 = vld [vmem:[#allocation3 + $0x2e] sm:$0xff] }
 0x23e   : > { %v16185_v39 = vld [vmem:[#allocation3 + $0x2f] sm:$0xff]  ;;  %3177 = vst.msk [vmem:[#allocation3 + $0x40] sm:$0xff] %vm550_vm3, %v11633_v33  ;;  %v11636_v16 = vadd.f32 %v11635_v17, %v11634_v14  ;;  %v3623_v46 = vpack.c.bf16 %v3574_v51, %v3573_v48 }
 0x23f   : > { %v16188_v36 = vld [vmem:[#allocation3 + $0x29] sm:$0xff]  ;;  %v16191_v26 = vld [vmem:[#allocation3 + $0x37] sm:$0xff] }
 0x240   : > { %18564 = vst [vmem:[#allocation8_spill] sm:$0xff] %v16188_v36  ;;  %3467 = vmatmul.mubr.bf16.gmra.mrb[108].mxu1 %v15266_v9  ;;  %3178 = vst.msk [vmem:[#allocation3 + $0x48] sm:$0xff] %vm550_vm3, %v11636_v16  ;;  %12401 = vmatprep.mubr.msk.bf16.mxu0 %vm550_vm3, %v3623_v46  ;;  %v16197_v49 = vld [vmem:[#allocation3 + $0x31] sm:$0xff] }
 0x241   : > { %18565 = vst [vmem:[#allocation9_spill] sm:$0xff] %v16197_v49  ;;  %v3575_v44 = vld [vmem:[#allocation3 + $0x36] sm:$0xff] }
 0x242   : > { %v11637_v4 = vpop.f32.mrb[16].mxu1 }
 0x243   : > { %v11638_v34 = vpop.f32.mrb[17].mxu1 }
 0x244   : > { %v11639_v35 = vadd.f32 %v11638_v34, %v11637_v4  ;;  %v11640_v55 = vpop.f32.mrb[18].mxu1 }
 0x245   : > { %v11641_v9 = vpop.f32.mrb[19].mxu1  ;;  %v3576_v5 = vld [vmem:[#allocation3 + $0x3e] sm:$0xff] }
 0x246   : > { %v16201_v57 = vld [vmem:[#allocation3 + $0x3f] sm:$0xff]  ;;  %3179 = vst.msk [vmem:[#allocation3 + $0x50] sm:$0xff] %vm550_vm3, %v11639_v35  ;;  %v11642_v56 = vadd.f32 %v11641_v9, %v11640_v55  ;;  %v3624_v19 = vpack.c.bf16 %v3576_v5, %v3575_v44 }
 0x247   : > { %v16204_v25 = vld [vmem:[#allocation3 + $0x39] sm:$0xff]  ;;  %v16206_v15 = vld [vmem:[#allocation3 + $0x47] sm:$0xff] }
 0x248   : > { %18566 = vst [vmem:[#allocation10_spill] sm:$0xff] %v16204_v25  ;;  %3180 = vst.msk [vmem:[#allocation3 + $0x58] sm:$0xff] %vm550_vm3, %v11642_v56  ;;  %12402 = vmatmul.mubr.msk.bf16.gmra.mrb[132].mxu0 %vm550_vm3, %v3624_v19  ;;  %v16212_v61 = vld [vmem:[#allocation3 + $0x41] sm:$0xff] }
 0x249   : > { %18567 = vst [vmem:[#allocation11_spill] sm:$0xff] %v16212_v61  ;;  %v3577_v38 = vld [vmem:[#allocation3 + $0x46] sm:$0xff] }
 0x24b   : > { %v11643_v20 = vpop.f32.mrb[20].mxu1 }
 0x24c   : > { %v11644_v23 = vpop.f32.mrb[21].mxu1 }
 0x24d   : > { %v11645_v47 = vadd.f32 %v11644_v23, %v11643_v20  ;;  %v11646_v53 = vpop.f32.mrb[22].mxu1  ;;  %v3578_v28 = vld [vmem:[#allocation3 + $0x4e] sm:$0xff] }
 0x24e   : > { %v11647_v52 = vpop.f32.mrb[23].mxu1  ;;  %v16216_v21 = vld [vmem:[#allocation3 + $0x4f] sm:$0xff]  ;;  %v3625_v30 = vpack.c.bf16 %v3578_v28, %v3577_v38 }
 0x24f   : > { %3181 = vst.msk [vmem:[#allocation3 + $0x60] sm:$0xff] %vm550_vm3, %v11645_v47  ;;  %v11648_v24 = vadd.f32 %v11647_v52, %v11646_v53  ;;  %v16219_v11 = vld [vmem:[#allocation3 + $0x49] sm:$0xff]  ;;  %v16221_v42 = vld [vmem:[#allocation3 + $0x57] sm:$0xff] }
 0x250   : > { %18568 = vst [vmem:[#allocation12_spill] sm:$0xff] %v16219_v11  ;;  %12405 = vmatprep.mubr.msk.bf16.mxu0 %vm550_vm3, %v3625_v30  ;;  %v16227_v50 = vld [vmem:[#allocation3 + $0x51] sm:$0xff] }
 0x251   : > { %3182 = vst.msk [vmem:[#allocation3 + $0x68] sm:$0xff] %vm550_vm3, %v11648_v24  ;;  %18569 = vst [vmem:[#allocation13_spill] sm:$0xff] %v16227_v50  ;;  %v3579_v40 = vld [vmem:[#allocation3 + $0x56] sm:$0xff] }
 0x253   : > { %v11649_v3 = vpop.f32.mrb[24].mxu1 }
 0x254   : > { %v11650_v31 = vpop.f32.mrb[25].mxu1 }
 0x255   : > { %v11651_v0 = vadd.f32 %v11650_v31, %v11649_v3  ;;  %v11652_v45 = vpop.f32.mrb[26].mxu1 }
 0x256   : > { %v11653_v6 = vpop.f32.mrb[27].mxu1  ;;  %v3580_v54 = vld [vmem:[#allocation3 + $0x5e] sm:$0xff] }
 0x257   : > { %v16231_v43 = vld [vmem:[#allocation3 + $0x5f] sm:$0xff]  ;;  %3183 = vst.msk [vmem:[#allocation3 + $0x70] sm:$0xff] %vm550_vm3, %v11651_v0  ;;  %v3626_v7 = vpack.c.bf16 %v3580_v54, %v3579_v40 }
 0x258   : > { %v16234_v62 = vld [vmem:[#allocation3 + $0x59] sm:$0xff]  ;;  %v16236_v12 = vld [vmem:[#allocation3 + $0x67] sm:$0xff] }
 0x259   : > { %18570 = vst [vmem:[#allocation14_spill] sm:$0xff] %v16234_v62  ;;  %12406 = vmatmul.mubr.msk.bf16.gmra.mrb[136].mxu0 %vm550_vm3, %v3626_v7  ;;  %v16241_v48 = vld [vmem:[#allocation3 + $0x61] sm:$0xff] }
 0x25a   : > { %18571 = vst [vmem:[#allocation15_spill] sm:$0xff] %v16241_v48  ;;  %v3581_v14 = vld [vmem:[#allocation3 + $0x66] sm:$0xff] }
 0x25e   : > { %v3582_v17 = vld [vmem:[#allocation3 + $0x6e] sm:$0xff] }
 0x25f   : > { %v3627_v51 = vpack.c.bf16 %v3582_v17, %v3581_v14  ;;  %v16248_v5 = vld [vmem:[#allocation3 + $0x6f] sm:$0xff] }
 0x260   : > { %v16250_v20 = vld [vmem:[#allocation3 + $0x69] sm:$0xff] }
 0x261   : > { %12409 = vmatprep.mubr.msk.bf16.mxu0 %vm550_vm3, %v3627_v51  ;;  %18572 = vst [vmem:[#allocation16_spill] sm:$0xff] %v16250_v20 }
 0x265   : > { %v11671_v16 = vpop.f32.mrb[28].mxu1 }
 0x266   : > { %v11672_v46 = vpop.f32.mrb[29].mxu1 }
 0x267   : > { %v11673_v4 = vadd.f32 %v11672_v46, %v11671_v16  ;;  %v11674_v34 = vpop.f32.mrb[30].mxu1 }
 0x268   : > { %v11675_v44 = vpop.f32.mrb[31].mxu1 }
 0x269   : > { %3272 = vst.msk [vmem:[#allocation3 + $0x78] sm:$0xff] %vm550_vm3, %v11673_v4  ;;  %v11676_v35 = vadd.f32 %v11675_v44, %v11674_v34 }
 0x26b   : > { %3273 = vst.msk [vmem:[#allocation3 + $0x80] sm:$0xff] %vm550_vm3, %v11676_v35 }
 0x26d   : > { %v11677_v55 = vpop.f32.mrb[32].mxu1 }
 0x26e   : > { %v11678_v9 = vpop.f32.mrb[33].mxu1 }
 0x26f   : > { %v11679_v56 = vadd.f32 %v11678_v9, %v11677_v55  ;;  %v11680_v19 = vpop.f32.mrb[34].mxu1 }
 0x270   : > { %v11681_v23 = vpop.f32.mrb[35].mxu1  ;;  %v3583_v38 = vld [vmem:[#allocation3 + $0x76] sm:$0xff] }
 0x271   : > { %v16252_v47 = vld [vmem:[#allocation3 + $0x77] sm:$0xff]  ;;  %3274 = vst.msk [vmem:[#allocation3 + $0x88] sm:$0xff] %vm550_vm3, %v11679_v56  ;;  %v11682_v53 = vadd.f32 %v11681_v23, %v11680_v19 }
 0x272   : > { %v16257_v28 = vld [vmem:[#allocation3 + $0x71] sm:$0xff]  ;;  %v3584_v24 = vld [vmem:[#allocation3 + $0x7e] sm:$0xff] }
 0x273   : > { %18573 = vst [vmem:[#allocation17_spill] sm:$0xff] %v16257_v28  ;;  %3275 = vst.msk [vmem:[#allocation3 + $0x90] sm:$0xff] %vm550_vm3, %v11682_v53  ;;  %v3628_v3 = vpack.c.bf16 %v3584_v24, %v3583_v38  ;;  %v16263_v7 = vld [vmem:[#allocation3 + $0x7f] sm:$0xff] }
 0x274   : > { %v16270_v16 = vld [vmem:[#allocation3 + $0x79] sm:$0xff] }
 0x275   : > { %v11683_v31 = vpop.f32.mrb[36].mxu1  ;;  %12410 = vmatmul.mubr.msk.bf16.gmra.mrb[140].mxu0 %vm550_vm3, %v3628_v3  ;;  %18574 = vst [vmem:[#allocation18_spill] sm:$0xff] %v16270_v16 }
 0x276   : > { %v11684_v40 = vpop.f32.mrb[37].mxu1 }
 0x277   : > { %v11685_v0 = vadd.f32 %v11684_v40, %v11683_v31  ;;  %v11686_v45 = vpop.f32.mrb[38].mxu1 }
 0x278   : > { %v11687_v6 = vpop.f32.mrb[39].mxu1  ;;  %v3585_v54 = vld [vmem:[#allocation3 + $0x86] sm:$0xff] }
 0x279   : > { %v16265_v14 = vld [vmem:[#allocation3 + $0x87] sm:$0xff]  ;;  %3276 = vst.msk [vmem:[#allocation3 + $0x98] sm:$0xff] %vm550_vm3, %v11685_v0  ;;  %v11688_v17 = vadd.f32 %v11687_v6, %v11686_v45 }
 0x27a   : > { %v16272_v46 = vld [vmem:[#allocation3 + $0x81] sm:$0xff]  ;;  %v3586_v4 = vld [vmem:[#allocation3 + $0x8e] sm:$0xff] }
 0x27b   : > { %18575 = vst [vmem:[#allocation19_spill] sm:$0xff] %v16272_v46  ;;  %3277 = vst.msk [vmem:[#allocation3 + $0xa0] sm:$0xff] %vm550_vm3, %v11688_v17  ;;  %v3629_v44 = vpack.c.bf16 %v3586_v4, %v3585_v54  ;;  %v16278_v38 = vld [vmem:[#allocation3 + $0x8f] sm:$0xff] }
 0x27c   : > { %v16285_v31 = vld [vmem:[#allocation3 + $0x89] sm:$0xff] }
 0x27d   : > { %v11689_v35 = vpop.f32.mrb[40].mxu1  ;;  %12413 = vmatprep.mubr.msk.bf16.mxu0 %vm550_vm3, %v3629_v44  ;;  %18576 = vst [vmem:[#allocation20_spill] sm:$0xff] %v16285_v31 }
 0x27e   : > { %v11690_v55 = vpop.f32.mrb[41].mxu1 }
 0x27f   : > { %v11691_v9 = vadd.f32 %v11690_v55, %v11689_v35  ;;  %v11692_v56 = vpop.f32.mrb[42].mxu1 }
 0x280   : > { %v11693_v19 = vpop.f32.mrb[43].mxu1  ;;  %v3587_v23 = vld [vmem:[#allocation3 + $0x96] sm:$0xff] }
 0x281   : > { %v16280_v53 = vld [vmem:[#allocation3 + $0x97] sm:$0xff]  ;;  %3278 = vst.msk [vmem:[#allocation3 + $0xa8] sm:$0xff] %vm550_vm3, %v11691_v9  ;;  %v11694_v24 = vadd.f32 %v11693_v19, %v11692_v56 }
 0x282   : > { %v16287_v40 = vld [vmem:[#allocation3 + $0x91] sm:$0xff]  ;;  %v3588_v0 = vld [vmem:[#allocation3 + $0x9e] sm:$0xff] }
 0x283   : > { %18577 = vst [vmem:[#allocation21_spill] sm:$0xff] %v16287_v40  ;;  %3279 = vst.msk [vmem:[#allocation3 + $0xb0] sm:$0xff] %vm550_vm3, %v11694_v24  ;;  %v3630_v6 = vpack.c.bf16 %v3588_v0, %v3587_v23  ;;  %v16293_v9 = vld [vmem:[#allocation3 + $0x9f] sm:$0xff] }
 0x284   : > { %v16300_v24 = vld [vmem:[#allocation3 + $0x99] sm:$0xff] }
 0x285   : > { %v11695_v54 = vpop.f32.mrb[44].mxu1  ;;  %12414 = vmatmul.mubr.msk.bf16.gmra.mrb[144].mxu0 %vm550_vm3, %v3630_v6  ;;  %18578 = vst [vmem:[#allocation22_spill] sm:$0xff] %v16300_v24 }
 0x286   : > { %v11696_v17 = vpop.f32.mrb[45].mxu1 }
 0x287   : > { %v11697_v4 = vadd.f32 %v11696_v17, %v11695_v54  ;;  %v11698_v44 = vpop.f32.mrb[46].mxu1 }
 0x288   : > { %v11699_v35 = vpop.f32.mrb[47].mxu1  ;;  %v3589_v55 = vld [vmem:[#allocation3 + $0xa6] sm:$0xff] }
 0x289   : > { %v16295_v56 = vld [vmem:[#allocation3 + $0xa7] sm:$0xff]  ;;  %3280 = vst.msk [vmem:[#allocation3 + $0xb8] sm:$0xff] %vm550_vm3, %v11697_v4  ;;  %v11700_v19 = vadd.f32 %v11699_v35, %v11698_v44 }
 0x28a   : > { %v16302_v23 = vld [vmem:[#allocation3 + $0xa1] sm:$0xff]  ;;  %v3590_v0 = vld [vmem:[#allocation3 + $0xae] sm:$0xff] }
 0x28b   : > { %18579 = vst [vmem:[#allocation23_spill] sm:$0xff] %v16302_v23  ;;  %3281 = vst.msk [vmem:[#allocation3 + $0xc0] sm:$0xff] %vm550_vm3, %v11700_v19  ;;  %v3631_v54 = vpack.c.bf16 %v3590_v0, %v3589_v55  ;;  %v16308_v33 = vld [vmem:[#allocation3 + $0xaf] sm:$0xff] }
 0x28c   : > { %v16315_v19 = vld [vmem:[#allocation3 + $0xa9] sm:$0xff] }
 0x28d   : > { %v11701_v17 = vpop.f32.mrb[48].mxu1  ;;  %12417 = vmatprep.mubr.msk.bf16.mxu0 %vm550_vm3, %v3631_v54  ;;  %18580 = vst [vmem:[#allocation24_spill] sm:$0xff] %v16315_v19 }
 0x28e   : > { %v11702_v34 = vpop.f32.mrb[49].mxu1 }
 0x28f   : > { %v11703_v4 = vadd.f32 %v11702_v34, %v11701_v17  ;;  %v11704_v44 = vpop.f32.mrb[50].mxu1  ;;  %v13995_v17 = vld [vmem:[%s18417_s4] sm:$0xff]  }
 0x290   : > { %v11705_v35 = vpop.f32.mrb[51].mxu1  ;;  %v3591_v30 = vld [vmem:[#allocation3 + $0xb6] sm:$0xff]  ;;  %13315 = vmatprep.subr.bf16.mxu1 %v13995_v17  ;;  %12449 = vmatprep.subr.bf16.mxu0 %v13995_v17 }
 0x291   : > { %v16310_v29 = vld [vmem:[#allocation3 + $0xb7] sm:$0xff]  ;;  %3282 = vst.msk [vmem:[#allocation3 + $0xc8] sm:$0xff] %vm550_vm3, %v11703_v4  ;;  %v11706_v63 = vadd.f32 %v11705_v35, %v11704_v44  ;;  %13317 = vmatpush3.bf16.msra.mxu1 %v13995_v17  ;;  %12450 = vmatpush3.bf16.msra.mxu0 %v13995_v17 }
 0x292   : > { %v16317_v55 = vld [vmem:[#allocation3 + $0xb1] sm:$0xff]  ;;  %v3592_v0 = vld [vmem:[#allocation3 + $0xbe] sm:$0xff] }
 0x293   : > { %18581 = vst [vmem:[#allocation25_spill] sm:$0xff] %v16317_v55  ;;  %3283 = vst.msk [vmem:[#allocation3 + $0xd0] sm:$0xff] %vm550_vm3, %v11706_v63  ;;  %v3632_v54 = vpack.c.bf16 %v3592_v0, %v3591_v30  ;;  %v13996_v63 = vld [vmem:[%s18417_s4 + $0x8] sm:$0xff]   ;;  %v16329_v30 = vld [vmem:[#allocation3 + $0xbf] sm:$0xff] }
 0x294   : > { %13316 = vmatprep.subr.bf16.mxu1 %v13996_v63  ;;  %12451 = vmatprep.subr.bf16.mxu0 %v13996_v63 }
 0x295   : > { %12418 = vmatmul.mubr.msk.bf16.gmra.mrb[148].mxu0 %vm550_vm3, %v3632_v54  ;;  %v11707_v4 = vpop.f32.mrb[52].mxu1  ;;  %v16334_v54 = vld [vmem:[#allocation3 + $0xb9] sm:$0xff]  ;;  %13318 = vmatpush3.bf16.msra.mxu1 %v13996_v63 }
 0x296   : > { %v11708_v44 = vpop.f32.mrb[53].mxu1  ;;  %18582 = vst [vmem:[#allocation26_spill] sm:$0xff] %v16334_v54  ;;  %12452 = vmatpush3.bf16.msra.mxu0 %v13996_v63 }
 0x297   : > { %v11709_v35 = vadd.f32 %v11708_v44, %v11707_v4  ;;  %v11710_v59 = vpop.f32.mrb[54].mxu1  ;;  %v16345_v44 = vld [vmem:[%s18417_s4 + $0x20] sm:$0xff]  }
 0x298   : > { %v3593_v1 = vld [vmem:[#allocation3 + $0xc6] sm:$0xff]  ;;  %v11711_v6 = vpop.f32.mrb[55].mxu1  ;;  %12505 = vmatprep.subr.bf16.mxu1 %v16345_v44 }
 0x299   : > { %3284 = vst.msk [vmem:[#allocation3 + $0xd8] sm:$0xff] %vm550_vm3, %v11709_v35  ;;  %v16332_v0 = vld [vmem:[#allocation3 + $0xc7] sm:$0xff]  ;;  %v18584_v35 = vmov 0.0  }
 0x29a   : > { %v16336_v34 = vld [vmem:[#allocation3 + $0xc1] sm:$0xff]  ;;  %v3594_v4 = vld [vmem:[#allocation3 + $0xce] sm:$0xff]  ;;  %12897 = vmatprep.subr.bf16.mxu0 %v18584_v35 }
 0x29b   : > { %18583 = vst [vmem:[#allocation27_spill] sm:$0xff] %v16336_v34  ;;  %v3633_v17 = vpack.c.bf16 %v3594_v4, %v3593_v1  ;;  %v16350_v45 = vld [vmem:[#allocation3 + $0xcf] sm:$0xff] }
 0x29c   : > { %v16356_v4 = vld [vmem:[#allocation3 + $0xc9] sm:$0xff] }
 0x29d   : > { %12421 = vmatprep.mubr.msk.bf16.mxu0 %vm550_vm3, %v3633_v17  ;;  %18585 = vst [vmem:[#allocation28_spill] sm:$0xff] %v16356_v4 }
 0x2a0   : > { %v16352_v59 = vld [vmem:[#allocation3 + $0xd7] sm:$0xff] }
 0x2a1   : > { %v16358_v63 = vld [vmem:[#allocation3 + $0xd1] sm:$0xff] }
 0x2a2   : > { %18586 = vst [vmem:[#allocation29_spill] sm:$0xff] %v16358_v63  ;;  %v3595_v35 = vld [vmem:[#allocation3 + $0xd6] sm:$0xff] }
 0x2a5   : > { %v11729_v3 = vpop.f32.mrb[56].mxu1 }
 0x2a6   : > { %v11730_v51 = vpop.f32.mrb[57].mxu1 }
 0x2a7   : > { %v11731_v52 = vadd.f32 %v11730_v51, %v11729_v3  ;;  %v11732_v17 = vpop.f32.mrb[58].mxu1 }
 0x2a8   : > { %v11733_v41 = vpop.f32.mrb[59].mxu1 }
 0x2a9   : > { %3373 = vst.msk [vmem:[#allocation3 + $0xe0] sm:$0xff] %vm550_vm3, %v11731_v52  ;;  %v11734_v22 = vadd.f32 %v11733_v41, %v11732_v17 }
 0x2ab   : > { %3374 = vst.msk [vmem:[#allocation3 + $0xe8] sm:$0xff] %vm550_vm3, %v11734_v22 }
 0x2ad   : > { %v11735_v37 = vpop.f32.mrb[60].mxu1 }
 0x2ae   : > { %v11736_v27 = vpop.f32.mrb[61].mxu1 }
 0x2af   : > { %v11737_v1 = vadd.f32 %v11736_v27, %v11735_v37  ;;  %v11738_v10 = vpop.f32.mrb[62].mxu1 }
 0x2b0   : > { %v11739_v8 = vpop.f32.mrb[63].mxu1  ;;  %v3596_v54 = vld [vmem:[#allocation3 + $0xde] sm:$0xff] }
 0x2b1   : > { %3375 = vst.msk [vmem:[#allocation3 + $0xf0] sm:$0xff] %vm550_vm3, %v11737_v1  ;;  %v11740_v6 = vadd.f32 %v11739_v8, %v11738_v10  ;;  %v3634_v4 = vpack.c.bf16 %v3596_v54, %v3595_v35  ;;  %v16365_v63 = vld [vmem:[#allocation3 + $0xdf] sm:$0xff] }
 0x2b2   : > { %v16367_v51 = vld [vmem:[#allocation3 + $0xe7] sm:$0xff]  ;;  %v16373_v27 = vld [vmem:[#allocation3 + $0xd9] sm:$0xff] }
 0x2b3   : > { %3376 = vst.msk [vmem:[#allocation3 + $0xf8] sm:$0xff] %vm550_vm3, %v11740_v6  ;;  %12422 = vmatmul.mubr.msk.bf16.gmra.mrb[152].mxu0 %vm550_vm3, %v3634_v4  ;;  %18587 = vst [vmem:[#allocation30_spill] sm:$0xff] %v16373_v27  ;;  %v16375_v37 = vld [vmem:[#allocation3 + $0xe1] sm:$0xff] }
 0x2b4   : > { %18588 = vst [vmem:[#allocation31_spill] sm:$0xff] %v16375_v37  ;;  %v3597_v52 = vld [vmem:[#allocation3 + $0xe6] sm:$0xff] }
 0x2b5   : > { %v11741_v8 = vpop.f32.mrb[64].mxu1 }
 0x2b6   : > { %v11742_v10 = vpop.f32.mrb[65].mxu1 }
 0x2b7   : > { %v11743_v3 = vadd.f32 %v11742_v10, %v11741_v8  ;;  %v11744_v54 = vpop.f32.mrb[66].mxu1 }
 0x2b8   : > { %v11745_v35 = vpop.f32.mrb[67].mxu1  ;;  %v3598_v1 = vld [vmem:[#allocation3 + $0xee] sm:$0xff] }
 0x2b9   : > { %3377 = vst.msk [vmem:[#allocation3 + $0x100] sm:$0xff] %vm550_vm3, %v11743_v3  ;;  %v11746_v6 = vadd.f32 %v11745_v35, %v11744_v54  ;;  %v3635_v4 = vpack.c.bf16 %v3598_v1, %v3597_v52  ;;  %v16380_v17 = vld [vmem:[#allocation3 + $0xef] sm:$0xff] }
 0x2ba   : > { %v16382_v22 = vld [vmem:[#allocation3 + $0xf7] sm:$0xff]  ;;  %v16388_v27 = vld [vmem:[#allocation3 + $0xe9] sm:$0xff] }
 0x2bb   : > { %3378 = vst.msk [vmem:[#allocation3 + $0x108] sm:$0xff] %vm550_vm3, %v11746_v6  ;;  %12425 = vmatprep.mubr.msk.bf16.mxu0 %vm550_vm3, %v3635_v4  ;;  %18589 = vst [vmem:[#allocation32_spill] sm:$0xff] %v16388_v27  ;;  %v16390_v8 = vld [vmem:[#allocation3 + $0xf1] sm:$0xff] }
 0x2bc   : > { %18590 = vst [vmem:[#allocation33_spill] sm:$0xff] %v16390_v8  ;;  %v3599_v54 = vld [vmem:[#allocation3 + $0xf6] sm:$0xff] }
 0x2bd   : > { %v11747_v3 = vpop.f32.mrb[68].mxu1 }
 0x2be   : > { %v11748_v52 = vpop.f32.mrb[69].mxu1 }
 0x2bf   : > { %v11749_v35 = vadd.f32 %v11748_v52, %v11747_v3  ;;  %v11750_v1 = vpop.f32.mrb[70].mxu1 }
 0x2c0   : > { %v11751_v37 = vpop.f32.mrb[71].mxu1  ;;  %v3600_v34 = vld [vmem:[#allocation3 + $0xfe] sm:$0xff] }
 0x2c1   : > { %3379 = vst.msk [vmem:[#allocation3 + $0x110] sm:$0xff] %vm550_vm3, %v11749_v35  ;;  %v11752_v6 = vadd.f32 %v11751_v37, %v11750_v1  ;;  %v3636_v4 = vpack.c.bf16 %v3600_v34, %v3599_v54  ;;  %v16395_v19 = vld [vmem:[#allocation3 + $0xff] sm:$0xff] }
 0x2c2   : > { %v16397_v41 = vld [vmem:[#allocation3 + $0x107] sm:$0xff]  ;;  %v16403_v27 = vld [vmem:[#allocation3 + $0xf9] sm:$0xff] }
 0x2c3   : > { %3380 = vst.msk [vmem:[#allocation3 + $0x118] sm:$0xff] %vm550_vm3, %v11752_v6  ;;  %12426 = vmatmul.mubr.msk.bf16.gmra.mrb[156].mxu0 %vm550_vm3, %v3636_v4  ;;  %18591 = vst [vmem:[#allocation34_spill] sm:$0xff] %v16403_v27  ;;  %v16405_v3 = vld [vmem:[#allocation3 + $0x101] sm:$0xff] }
 0x2c4   : > { %18592 = vst [vmem:[#allocation35_spill] sm:$0xff] %v16405_v3  ;;  %v3601_v54 = vld [vmem:[#allocation3 + $0x106] sm:$0xff] }
 0x2c5   : > { %v11753_v37 = vpop.f32.mrb[72].mxu1 }
 0x2c6   : > { %v11754_v34 = vpop.f32.mrb[73].mxu1 }
 0x2c7   : > { %v11755_v35 = vadd.f32 %v11754_v34, %v11753_v37  ;;  %v11756_v1 = vpop.f32.mrb[74].mxu1 }
 0x2c8   : > { %v11757_v8 = vpop.f32.mrb[75].mxu1  ;;  %v3602_v55 = vld [vmem:[#allocation3 + $0x10e] sm:$0xff] }
 0x2c9   : > { %3381 = vst.msk [vmem:[#allocation3 + $0x120] sm:$0xff] %vm550_vm3, %v11755_v35  ;;  %v11758_v6 = vadd.f32 %v11757_v8, %v11756_v1  ;;  %v3637_v4 = vpack.c.bf16 %v3602_v55, %v3601_v54  ;;  %v16410_v24 = vld [vmem:[#allocation3 + $0x10f] sm:$0xff] }
 0x2ca   : > { %v16412_v10 = vld [vmem:[#allocation3 + $0x117] sm:$0xff]  ;;  %v16418_v27 = vld [vmem:[#allocation3 + $0x109] sm:$0xff] }
 0x2cb   : > { %3382 = vst.msk [vmem:[#allocation3 + $0x128] sm:$0xff] %vm550_vm3, %v11758_v6  ;;  %12429 = vmatprep.mubr.msk.bf16.mxu0 %vm550_vm3, %v3637_v4  ;;  %18593 = vst [vmem:[#allocation36_spill] sm:$0xff] %v16418_v27  ;;  %v16420_v37 = vld [vmem:[#allocation3 + $0x111] sm:$0xff] }
 0x2cc   : > { %18594 = vst [vmem:[#allocation37_spill] sm:$0xff] %v16420_v37  ;;  %v3603_v54 = vld [vmem:[#allocation3 + $0x116] sm:$0xff] }
 0x2cd   : > { %v11759_v8 = vpop.f32.mrb[76].mxu1 }
 0x2ce   : > { %v11760_v55 = vpop.f32.mrb[77].mxu1 }
 0x2cf   : > { %v11761_v35 = vadd.f32 %v11760_v55, %v11759_v8  ;;  %v11762_v1 = vpop.f32.mrb[78].mxu1 }
 0x2d0   : > { %v11763_v3 = vpop.f32.mrb[79].mxu1  ;;  %v3604_v23 = vld [vmem:[#allocation3 + $0x11e] sm:$0xff] }
 0x2d1   : > { %3383 = vst.msk [vmem:[#allocation3 + $0x130] sm:$0xff] %vm550_vm3, %v11761_v35  ;;  %v11764_v6 = vadd.f32 %v11763_v3, %v11762_v1  ;;  %v3638_v4 = vpack.c.bf16 %v3604_v23, %v3603_v54  ;;  %v16425_v31 = vld [vmem:[#allocation3 + $0x11f] sm:$0xff] }
 0x2d2   : > { %v16427_v52 = vld [vmem:[#allocation3 + $0x127] sm:$0xff]  ;;  %v16433_v27 = vld [vmem:[#allocation3 + $0x119] sm:$0xff] }
 0x2d3   : > { %3384 = vst.msk [vmem:[#allocation3 + $0x138] sm:$0xff] %vm550_vm3, %v11764_v6  ;;  %12430 = vmatmul.mubr.msk.bf16.gmra.mrb[160].mxu0 %vm550_vm3, %v3638_v4  ;;  %18595 = vst [vmem:[#allocation38_spill] sm:$0xff] %v16433_v27  ;;  %v16435_v8 = vld [vmem:[#allocation3 + $0x121] sm:$0xff] }
 0x2d4   : > { %18596 = vst [vmem:[#allocation39_spill] sm:$0xff] %v16435_v8  ;;  %v3605_v54 = vld [vmem:[#allocation3 + $0x126] sm:$0xff] }
 0x2d5   : > { %v11765_v3 = vpop.f32.mrb[80].mxu1 }
 0x2d6   : > { %v11766_v23 = vpop.f32.mrb[81].mxu1 }
 0x2d7   : > { %v11767_v35 = vadd.f32 %v11766_v23, %v11765_v3  ;;  %v11768_v1 = vpop.f32.mrb[82].mxu1 }
 0x2d8   : > { %v3606_v37 = vld [vmem:[#allocation3 + $0x12e] sm:$0xff]  ;;  %v11769_v40 = vpop.f32.mrb[83].mxu1 }
 0x2d9   : > { %3385 = vst.msk [vmem:[#allocation3 + $0x140] sm:$0xff] %vm550_vm3, %v11767_v35  ;;  %v3639_v6 = vpack.c.bf16 %v3606_v37, %v3605_v54  ;;  %v16440_v4 = vld [vmem:[#allocation3 + $0x12f] sm:$0xff] }
 0x2da   : > { %v16442_v34 = vld [vmem:[#allocation3 + $0x137] sm:$0xff]  ;;  %v16447_v55 = vld [vmem:[#allocation3 + $0x129] sm:$0xff] }
 0x2db   : > { %12433 = vmatprep.mubr.msk.bf16.mxu0 %vm550_vm3, %v3639_v6  ;;  %18597 = vst [vmem:[#allocation40_spill] sm:$0xff] %v16447_v55  ;;  %v16449_v27 = vld [vmem:[#allocation3 + $0x131] sm:$0xff] }
 0x2dc   : > { %18598 = vst [vmem:[#allocation41_spill] sm:$0xff] %v16449_v27  ;;  %v3607_v40 = vld [vmem:[#allocation3 + $0x136] sm:$0xff] }
 0x2e0   : > { %v3608_v23 = vld [vmem:[#allocation3 + $0x13e] sm:$0xff] }
 0x2e1   : > { %v3640_v35 = vpack.c.bf16 %v3608_v23, %v3607_v40  ;;  %v16456_v55 = vld [vmem:[#allocation3 + $0x13f] sm:$0xff] }
 0x2e3   : > { %12434 = vmatmul.mubr.msk.bf16.gmra.mrb[164].mxu0 %vm550_vm3, %v3640_v35  ;;  %v11787_v37 = vpop.f32.mrb[84].mxu1 }
 0x2e4   : > { %v11788_v54 = vpop.f32.mrb[85].mxu1 }
 0x2e5   : > { %v11789_v1 = vadd.f32 %v11788_v54, %v11787_v37  ;;  %v11790_v8 = vpop.f32.mrb[86].mxu1  ;;  %v16463_v37 = vld [vmem:[#allocation3 + $0x139] sm:$0xff] }
 0x2e6   : > { %v11791_v6 = vpop.f32.mrb[87].mxu1  ;;  %18599 = vst [vmem:[#allocation42_spill] sm:$0xff] %v16463_v37 }
 0x2e7   : > { %3474 = vst.msk [vmem:[#allocation3 + $0x148] sm:$0xff] %vm550_vm3, %v11789_v1  ;;  %v11792_v16 = vadd.f32 %v11791_v6, %v11790_v8 }
 0x2e9   : > { %3475 = vst.msk [vmem:[#allocation3 + $0x150] sm:$0xff] %vm550_vm3, %v11792_v16 }
 0x2eb   : > { %v11793_v46 = vpop.f32.mrb[88].mxu1 }
 0x2ec   : > { %v11794_v20 = vpop.f32.mrb[89].mxu1 }
 0x2ed   : > { %v11795_v28 = vadd.f32 %v11794_v20, %v11793_v46  ;;  %v11796_v62 = vpop.f32.mrb[90].mxu1 }
 0x2ee   : > { %v11797_v3 = vpop.f32.mrb[91].mxu1  ;;  %v16458_v40 = vld [vmem:[#allocation3 + $0x147] sm:$0xff] }
 0x2ef   : > { %3476 = vst.msk [vmem:[#allocation3 + $0x158] sm:$0xff] %vm550_vm3, %v11795_v28  ;;  %v11798_v23 = vadd.f32 %v11797_v3, %v11796_v62  ;;  %v16465_v8 = vld [vmem:[#allocation3 + $0x141] sm:$0xff] }
 0x2f0   : > { %18600 = vst [vmem:[#allocation43_spill] sm:$0xff] %v16465_v8  ;;  %v3609_v16 = vld [vmem:[#allocation3 + $0x146] sm:$0xff]  ;;  %v3610_v54 = vld [vmem:[#allocation3 + $0x14e] sm:$0xff] }
 0x2f1   : > { %3477 = vst.msk [vmem:[#allocation3 + $0x160] sm:$0xff] %vm550_vm3, %v11798_v23  ;;  %v3641_v46 = vpack.c.bf16 %v3610_v54, %v3609_v16  ;;  %v16471_v35 = vld [vmem:[#allocation3 + $0x14f] sm:$0xff] }
 0x2f2   : > { %v16478_v11 = vld [vmem:[#allocation3 + $0x149] sm:$0xff] }
 0x2f3   : > { %v11799_v1 = vpop.f32.mrb[92].mxu1  ;;  %12437 = vmatprep.mubr.msk.bf16.mxu0 %vm550_vm3, %v3641_v46  ;;  %18601 = vst [vmem:[#allocation44_spill] sm:$0xff] %v16478_v11 }
 0x2f4   : > { %v11800_v28 = vpop.f32.mrb[93].mxu1 }
 0x2f5   : > { %v11801_v62 = vadd.f32 %v11800_v28, %v11799_v1  ;;  %v11802_v3 = vpop.f32.mrb[94].mxu1 }
 0x2f6   : > { %v11803_v6 = vpop.f32.mrb[95].mxu1  ;;  %v16473_v27 = vld [vmem:[#allocation3 + $0x157] sm:$0xff] }
 0x2f7   : > { %3478 = vst.msk [vmem:[#allocation3 + $0x168] sm:$0xff] %vm550_vm3, %v11801_v62  ;;  %v11804_v48 = vadd.f32 %v11803_v6, %v11802_v3  ;;  %v16480_v23 = vld [vmem:[#allocation3 + $0x151] sm:$0xff] }
 0x2f8   : > { %18602 = vst [vmem:[#allocation45_spill] sm:$0xff] %v16480_v23  ;;  %v3611_v16 = vld [vmem:[#allocation3 + $0x156] sm:$0xff]  ;;  %v3612_v54 = vld [vmem:[#allocation3 + $0x15e] sm:$0xff] }
 0x2f9   : > { %3479 = vst.msk [vmem:[#allocation3 + $0x170] sm:$0xff] %vm550_vm3, %v11804_v48  ;;  %v3642_v1 = vpack.c.bf16 %v3612_v54, %v3611_v16  ;;  %v16486_v20 = vld [vmem:[#allocation3 + $0x15f] sm:$0xff] }
 0x2fa   : > { %v16493_v36 = vld [vmem:[#allocation3 + $0x159] sm:$0xff] }
 0x2fb   : > { %v11805_v28 = vpop.f32.mrb[96].mxu1  ;;  %12438 = vmatmul.mubr.msk.bf16.gmra.mrb[168].mxu0 %vm550_vm3, %v3642_v1  ;;  %18603 = vst [vmem:[#allocation46_spill] sm:$0xff] %v16493_v36 }
 0x2fc   : > { %v11806_v62 = vpop.f32.mrb[97].mxu1 }
 0x2fd   : > { %v11807_v3 = vadd.f32 %v11806_v62, %v11805_v28  ;;  %v11808_v6 = vpop.f32.mrb[98].mxu1 }
 0x2fe   : > { %v11809_v50 = vpop.f32.mrb[99].mxu1  ;;  %v16488_v25 = vld [vmem:[#allocation3 + $0x167] sm:$0xff] }
 0x2ff   : > { %3480 = vst.msk [vmem:[#allocation3 + $0x178] sm:$0xff] %vm550_vm3, %v11807_v3  ;;  %v11810_v61 = vadd.f32 %v11809_v50, %v11808_v6  ;;  %v16495_v48 = vld [vmem:[#allocation3 + $0x161] sm:$0xff] }
 0x300   : > { %18604 = vst [vmem:[#allocation47_spill] sm:$0xff] %v16495_v48  ;;  %v3613_v16 = vld [vmem:[#allocation3 + $0x166] sm:$0xff]  ;;  %v3614_v54 = vld [vmem:[#allocation3 + $0x16e] sm:$0xff] }
 0x301   : > { %3481 = vst.msk [vmem:[#allocation3 + $0x180] sm:$0xff] %vm550_vm3, %v11810_v61  ;;  %v3643_v28 = vpack.c.bf16 %v3614_v54, %v3613_v16  ;;  %v16501_v46 = vld [vmem:[#allocation3 + $0x16f] sm:$0xff] }
 0x302   : > { %18605 = vst [vmem:[#allocation48_spill] sm:$0xff] %v16501_v46  ;;  %v16508_v48 = vld [vmem:[#allocation3 + $0x169] sm:$0xff] }
 0x303   : > { %v11811_v62 = vpop.f32.mrb[100].mxu1  ;;  %12441 = vmatprep.mubr.msk.bf16.mxu0 %vm550_vm3, %v3643_v28  ;;  %18607 = vst [vmem:[#allocation50_spill] sm:$0xff] %v16508_v48  ;;  %v3487_v28 = vld [vmem:[#allocation3 + $0x5] sm:$0xff] }
 0x304   : > { %v11812_v3 = vpop.f32.mrb[101].mxu1 }
 0x305   : > { %v11813_v50 = vadd.f32 %v11812_v3, %v11811_v62  ;;  %v11814_v6 = vpop.f32.mrb[102].mxu1 }
 0x306   : > { %v11815_v49 = vpop.f32.mrb[103].mxu1  ;;  %v16503_v18 = vld [vmem:[#allocation3 + $0x177] sm:$0xff] }
 0x307   : > { %18606 = vst [vmem:[#allocation49_spill] sm:$0xff] %v16503_v18  ;;  %3482 = vst.msk [vmem:[#allocation3 + $0x188] sm:$0xff] %vm550_vm3, %v11813_v50  ;;  %v11816_v58 = vadd.f32 %v11815_v49, %v11814_v6  ;;  %v16510_v61 = vld [vmem:[#allocation3 + $0x171] sm:$0xff] }
 0x308   : > { %18608 = vst [vmem:[#allocation51_spill] sm:$0xff] %v16510_v61  ;;  %v3615_v16 = vld [vmem:[#allocation3 + $0x176] sm:$0xff]  ;;  %v3616_v54 = vld [vmem:[#allocation3 + $0x17e] sm:$0xff] }
 0x309   : > { %3483 = vst.msk [vmem:[#allocation3 + $0x190] sm:$0xff] %vm550_vm3, %v11816_v58  ;;  %v3644_v62 = vpack.c.bf16 %v3616_v54, %v3615_v16  ;;  %v16516_v1 = vld [vmem:[#allocation3 + $0x17f] sm:$0xff] }
 0x30a   : > { %18609 = vst [vmem:[#allocation52_spill] sm:$0xff] %v16516_v1  ;;  %v16523_v58 = vld [vmem:[#allocation3 + $0x179] sm:$0xff]  ;;  %v4314_v1 = vld [vmem:[#allocation3 + $0x7] sm:$0xff] }
 0x30b   : > { %v11817_v3 = vpop.f32.mrb[104].mxu1  ;;  %12442 = vmatmul.mubr.msk.bf16.gmra.mrb[172].mxu0 %vm550_vm3, %v3644_v62 }
 0x30c   : > { %v11818_v50 = vpop.f32.mrb[105].mxu1 }
 0x30d   : > { %v11819_v49 = vadd.f32 %v11818_v50, %v11817_v3  ;;  %v11820_v6 = vpop.f32.mrb[106].mxu1 }
 0x30e   : > { %v11821_v36 = vpop.f32.mrb[107].mxu1  ;;  %v16518_v23 = vld [vmem:[#allocation3 + $0x187] sm:$0xff] }
 0x30f   : > { %18610 = vst [vmem:[#allocation53_spill] sm:$0xff] %v16518_v23  ;;  %3484 = vst.msk [vmem:[#allocation3 + $0x198] sm:$0xff] %vm550_vm3, %v11819_v49  ;;  %v11822_v11 = vadd.f32 %v11821_v36, %v11820_v6  ;;  %v3617_v8 = vld [vmem:[#allocation3 + $0x186] sm:$0xff] }
 0x310   : > { %v16525_v16 = vld [vmem:[#allocation3 + $0x181] sm:$0xff]  ;;  %v3618_v54 = vld [vmem:[#allocation3 + $0x18e] sm:$0xff] }
 0x311   : > { %v3535_v62 = vld [vmem:[#allocation3 + $0x185] sm:$0xff]  ;;  %v3536_v3 = vld [vmem:[#allocation3 + $0x18d] sm:$0xff]  ;;  %3485 = vst.msk [vmem:[#allocation3 + $0x1a0] sm:$0xff] %vm550_vm3, %v11822_v11  ;;  %v3645_v61 = vpack.c.bf16 %v3618_v54, %v3617_v8  ;;  %v4366_v8 = vpack.c.bf16 %v16157_v32, %v4314_v1  ;;  %v4369_v1 = vpack.c.bf16 %v16201_v57, %v16191_v26 }
 0x312   : > { %v3563_v48 = vpack.c.bf16 %v3536_v3, %v3535_v62  ;;  %v3488_v23 = vld [vmem:[#allocation3 + $0xd] sm:$0xff]  ;;  %v14000_v3 = vld [vmem:[%s18417_s4 + $0x38] sm:$0xff]  }
 0x313   : > { %v11823_v49 = vpop.f32.mrb[108].mxu1  ;;  %12445 = vmatprep.mubr.msk.bf16.mxu0 %vm550_vm3, %v3645_v61  ;;  %v16532_v18 = vld [vmem:[#allocation3 + $0x18f] sm:$0xff] }
 0x314   : > { %12501 = vmatprep.mubr.msk.bf16.mxu1 %vm550_vm3, %v3563_v48  ;;  %v11824_v36 = vpop.f32.mrb[109].mxu1  ;;  %v16539_v61 = vld [vmem:[#allocation3 + $0x189] sm:$0xff] }
 0x315   : > { %v11825_v6 = vadd.f32 %v11824_v36, %v11823_v49  ;;  %v11826_v37 = vpop.f32.mrb[110].mxu1 }
 0x316   : > { %v16534_v46 = vld [vmem:[#allocation3 + $0x197] sm:$0xff]  ;;  %v11827_v50 = vpop.f32.mrb[111].mxu1 }
 0x317   : > { %3486 = vst.msk [vmem:[#allocation3 + $0x1a8] sm:$0xff] %vm550_vm3, %v11825_v6  ;;  %v3619_v11 = vld [vmem:[#allocation3 + $0x196] sm:$0xff]  ;;  %v3539_v6 = vpack.c.bf16 %v3488_v23, %v3487_v28 }
 0x318   : > { %v16541_v48 = vld [vmem:[#allocation3 + $0x191] sm:$0xff]  ;;  %v3620_v54 = vld [vmem:[#allocation3 + $0x19e] sm:$0xff] }
 0x319   : > { %18611 = vst [vmem:[#allocation54_spill] sm:$0xff] %v16541_v48  ;;  %v3537_v62 = vld [vmem:[#allocation3 + $0x195] sm:$0xff]  ;;  %v3538_v37 = vld [vmem:[#allocation3 + $0x19d] sm:$0xff]  ;;  %v3646_v49 = vpack.c.bf16 %v3620_v54, %v3619_v11 }
 0x31a   : > { %v3564_v36 = vpack.c.bf16 %v3538_v37, %v3537_v62  ;;  %v13998_v50 = vld [vmem:[%s18417_s4 + $0x28] sm:$0xff]   ;;  %v13999_v54 = vld [vmem:[%s18417_s4 + $0x30] sm:$0xff]   ;;  %v3491_v37 = vld [vmem:[#allocation3 + $0x25] sm:$0xff] }
 0x31b   : > { %12446 = vmatmul.mubr.msk.bf16.gmra.mrb[176].mxu0 %vm550_vm3, %v3646_v49  ;;  %v3489_v11 = vld [vmem:[#allocation3 + $0x15] sm:$0xff]  ;;  %v3490_v62 = vld [vmem:[#allocation3 + $0x1d] sm:$0xff]  ;;  %v3492_v49 = vld [vmem:[#allocation3 + $0x2d] sm:$0xff] }
 0x31c   : > { %12502 = vmatmul.mubr.msk.bf16.vlgmr.msra.gmra.mrb[112].mxu1 %vm550_vm3, %v3564_v36  ;;  %12453 = vmatprep.mubr.msk.bf16.mxu0 %vm550_vm3, %v3539_v6  ;;  %v16557_v23 = vld [vmem:[#allocation3 + $0x199] sm:$0xff]  ;;  %v3541_v36 = vpack.c.bf16 %v3492_v49, %v3491_v37  ;;  %v4368_v6 = vpack.c.bf16 %v16185_v39, %v16174_v13  ;;  %v3496_v37 = vld [vmem:[#allocation3 + $0x4d] sm:$0xff] }
 0x31d   : > { %12506 = vmatpush3.bf16.msra.mxu1 %v16345_v44  ;;  %12509 = vmatprep.mubr.msk.bf16.mxu1 %vm550_vm3, %v4366_v8  ;;  %18612 = vst [vmem:[#allocation55_spill] sm:$0xff] %v16557_v23  ;;  %v3540_v44 = vpack.c.bf16 %v3490_v62, %v3489_v11  ;;  %v4367_v8 = vpack.c.bf16 %v16168_v60, %v16161_v2  ;;  %v3494_v11 = vld [vmem:[#allocation3 + $0x3d] sm:$0xff]  ;;  %v3495_v62 = vld [vmem:[#allocation3 + $0x45] sm:$0xff] }
 0x31e   : > { %12507 = vmatprep.subr.bf16.mxu1 %v13998_v50  ;;  %v16559_v28 = vld [vmem:[#allocation3 + $0x1a1] sm:$0xff]  ;;  %v18617_v48 = vld [vmem:[#allocation53_spill] sm:$0xff] }
 0x31f   : > { %18613 = vst [vmem:[#allocation56_spill] sm:$0xff] %v16559_v28  ;;  %v3543_v28 = vpack.c.bf16 %v3496_v37, %v3495_v62  ;;  %v4372_v62 = vpack.c.bf16 %v16248_v5, %v16236_v12  ;;  %v3503_v37 = vld [vmem:[#allocation3 + $0x85] sm:$0xff] }
 0x321   : > { %12508 = vmatpush3.bf16.msra.mxu1 %v13998_v50  ;;  %v3493_v50 = vld [vmem:[#allocation3 + $0x35] sm:$0xff] }
 0x322   : > { %12561 = vmatprep.subr.bf16.mxu1 %v13999_v54  ;;  %v3542_v49 = vpack.c.bf16 %v3494_v11, %v3493_v50 }
 0x323   : > { %12454 = vmatmul.mubr.msk.bf16.vlgmr.msra.gmra.mrb[128].mxu0 %vm550_vm3, %v3540_v44  ;;  %v4370_v44 = vpack.c.bf16 %v16216_v21, %v16206_v15 }
 0x324   : > { %12510 = vmatmul.mubr.msk.bf16.vlgmr.msra.gmra.mrb[116].mxu1 %vm550_vm3, %v4367_v8  ;;  %12457 = vmatprep.mubr.msk.bf16.mxu0 %vm550_vm3, %v3541_v36  ;;  %v3498_v8 = vld [vmem:[#allocation3 + $0x5d] sm:$0xff]  ;;  %v3499_v36 = vld [vmem:[#allocation3 + $0x65] sm:$0xff] }
 0x325   : > { %12513 = vmatprep.mubr.msk.bf16.mxu1 %vm550_vm3, %v4368_v6  ;;  %12562 = vmatpush3.bf16.msra.mxu1 %v13999_v54  ;;  %v3497_v54 = vld [vmem:[#allocation3 + $0x55] sm:$0xff]  ;;  %v3500_v6 = vld [vmem:[#allocation3 + $0x6d] sm:$0xff] }
 0x326   : > { %12563 = vmatprep.subr.bf16.mxu1 %v14000_v3  ;;  %v3544_v50 = vpack.c.bf16 %v3498_v8, %v3497_v54  ;;  %v3545_v11 = vpack.c.bf16 %v3500_v6, %v3499_v36  ;;  %v4373_v54 = vpack.c.bf16 %v16263_v7, %v16252_v47  ;;  %v4374_v36 = vpack.c.bf16 %v16278_v38, %v16265_v14  ;;  %v3505_v6 = vld [vmem:[#allocation3 + $0x95] sm:$0xff] }
 0x329   : > { %12564 = vmatpush3.bf16.msra.mxu1 %v14000_v3  ;;  %v4371_v3 = vpack.c.bf16 %v16231_v43, %v16221_v42 }
 0x32b   : > { %12458 = vmatmul.mubr.msk.bf16.gmra.mrb[132].mxu0 %vm550_vm3, %v3542_v49  ;;  %v3504_v49 = vld [vmem:[#allocation3 + $0x8d] sm:$0xff] }
 0x32c   : > { %12514 = vmatmul.mubr.msk.bf16.gmra.mrb[120].mxu1 %vm550_vm3, %v4369_v1  ;;  %12461 = vmatprep.mubr.msk.bf16.mxu0 %vm550_vm3, %v3543_v28  ;;  %v3501_v28 = vld [vmem:[#allocation3 + $0x75] sm:$0xff]  ;;  %v3502_v1 = vld [vmem:[#allocation3 + $0x7d] sm:$0xff]  ;;  %v3547_v8 = vpack.c.bf16 %v3504_v49, %v3503_v37  ;;  %v4376_v37 = vpack.c.bf16 %v16308_v33, %v16295_v56  ;;  %v16609_v49 = vld [vmem:[%s18417_s4 + $0x40] sm:$0xff]  }
 0x32d   : > { %12517 = vmatprep.mubr.msk.bf16.mxu1 %vm550_vm3, %v4370_v44  ;;  %v3546_v44 = vpack.c.bf16 %v3502_v1, %v3501_v28  ;;  %v4375_v28 = vpack.c.bf16 %v16293_v9, %v16280_v53  ;;  %12617 = vmatprep.subr.bf16.mxu1 %v16609_v49 }
 0x333   : > { %12462 = vmatmul.mubr.msk.bf16.gmra.mrb[136].mxu0 %vm550_vm3, %v3544_v50  ;;  %v3506_v50 = vld [vmem:[#allocation3 + $0x9d] sm:$0xff] }
 0x334   : > { %12518 = vmatmul.mubr.msk.bf16.gmra.mrb[124].mxu1 %vm550_vm3, %v4371_v3  ;;  %12465 = vmatprep.mubr.msk.bf16.mxu0 %vm550_vm3, %v3545_v11  ;;  %v3507_v3 = vld [vmem:[#allocation3 + $0xa5] sm:$0xff]  ;;  %v3508_v11 = vld [vmem:[#allocation3 + $0xad] sm:$0xff] }
 0x335   : > { %12521 = vmatprep.mubr.msk.bf16.mxu1 %vm550_vm3, %v4372_v62  ;;  %v3548_v62 = vpack.c.bf16 %v3506_v50, %v3505_v6  ;;  %v3549_v1 = vpack.c.bf16 %v3508_v11, %v3507_v3  ;;  %v4377_v50 = vpack.c.bf16 %v16329_v30, %v16310_v29  ;;  %v4378_v11 = vpack.c.bf16 %v16350_v45, %v16332_v0 }
 0x33b   : > { %12466 = vmatmul.mubr.msk.bf16.gmra.mrb[140].mxu0 %vm550_vm3, %v3546_v44  ;;  %v3509_v44 = vld [vmem:[#allocation3 + $0xb5] sm:$0xff] }
 0x33c   : > { %12522 = vmatmul.mubr.msk.bf16.gmra.mrb[128].mxu1 %vm550_vm3, %v4373_v54  ;;  %12469 = vmatprep.mubr.msk.bf16.mxu0 %vm550_vm3, %v3547_v8  ;;  %v3510_v54 = vld [vmem:[#allocation3 + $0xbd] sm:$0xff]  ;;  %v3511_v8 = vld [vmem:[#allocation3 + $0xc5] sm:$0xff] }
 0x33d   : > { %12525 = vmatprep.mubr.msk.bf16.mxu1 %vm550_vm3, %v4374_v36  ;;  %v3512_v36 = vld [vmem:[#allocation3 + $0xcd] sm:$0xff]  ;;  %v3550_v6 = vpack.c.bf16 %v3510_v54, %v3509_v44  ;;  %v4379_v54 = vpack.c.bf16 %v16365_v63, %v16352_v59 }
 0x33e   : > { %v3551_v3 = vpack.c.bf16 %v3512_v36, %v3511_v8  ;;  %v4380_v36 = vpack.c.bf16 %v16380_v17, %v16367_v51 }
 0x343   : > { %12470 = vmatmul.mubr.msk.bf16.gmra.mrb[144].mxu0 %vm550_vm3, %v3548_v62  ;;  %v3514_v62 = vld [vmem:[#allocation3 + $0xdd] sm:$0xff] }
 0x344   : > { %12526 = vmatmul.mubr.msk.bf16.gmra.mrb[132].mxu1 %vm550_vm3, %v4375_v28  ;;  %12473 = vmatprep.mubr.msk.bf16.mxu0 %vm550_vm3, %v3549_v1  ;;  %v3515_v28 = vld [vmem:[#allocation3 + $0xe5] sm:$0xff]  ;;  %v3516_v1 = vld [vmem:[#allocation3 + $0xed] sm:$0xff] }
 0x345   : > { %12529 = vmatprep.mubr.msk.bf16.mxu1 %vm550_vm3, %v4376_v37  ;;  %v3513_v37 = vld [vmem:[#allocation3 + $0xd5] sm:$0xff]  ;;  %v3553_v8 = vpack.c.bf16 %v3516_v1, %v3515_v28  ;;  %v4382_v1 = vpack.c.bf16 %v16410_v24, %v16397_v41 }
 0x346   : > { %v3552_v44 = vpack.c.bf16 %v3514_v62, %v3513_v37  ;;  %v4381_v37 = vpack.c.bf16 %v16395_v19, %v16382_v22 }
 0x34b   : > { %12474 = vmatmul.mubr.msk.bf16.gmra.mrb[148].mxu0 %vm550_vm3, %v3550_v6  ;;  %v3517_v6 = vld [vmem:[#allocation3 + $0xf5] sm:$0xff] }
 0x34c   : > { %12530 = vmatmul.mubr.msk.bf16.gmra.mrb[136].mxu1 %vm550_vm3, %v4377_v50  ;;  %12477 = vmatprep.mubr.msk.bf16.mxu0 %vm550_vm3, %v3551_v3  ;;  %v3518_v50 = vld [vmem:[#allocation3 + $0xfd] sm:$0xff]  ;;  %v3519_v3 = vld [vmem:[#allocation3 + $0x105] sm:$0xff] }
 0x34d   : > { %12533 = vmatprep.mubr.msk.bf16.mxu1 %vm550_vm3, %v4378_v11  ;;  %v3520_v11 = vld [vmem:[#allocation3 + $0x10d] sm:$0xff]  ;;  %v3554_v62 = vpack.c.bf16 %v3518_v50, %v3517_v6  ;;  %v4383_v50 = vpack.c.bf16 %v16425_v31, %v16412_v10 }
 0x34e   : > { %v3555_v28 = vpack.c.bf16 %v3520_v11, %v3519_v3  ;;  %v4384_v11 = vpack.c.bf16 %v16440_v4, %v16427_v52 }
 0x353   : > { %12478 = vmatmul.mubr.msk.bf16.gmra.mrb[152].mxu0 %vm550_vm3, %v3552_v44  ;;  %v3521_v44 = vld [vmem:[#allocation3 + $0x115] sm:$0xff] }
 0x354   : > { %12534 = vmatmul.mubr.msk.bf16.gmra.mrb[140].mxu1 %vm550_vm3, %v4379_v54  ;;  %12481 = vmatprep.mubr.msk.bf16.mxu0 %vm550_vm3, %v3553_v8  ;;  %v3522_v54 = vld [vmem:[#allocation3 + $0x11d] sm:$0xff]  ;;  %v3523_v8 = vld [vmem:[#allocation3 + $0x125] sm:$0xff] }
 0x355   : > { %12537 = vmatprep.mubr.msk.bf16.mxu1 %vm550_vm3, %v4380_v36  ;;  %v3524_v36 = vld [vmem:[#allocation3 + $0x12d] sm:$0xff]  ;;  %v3556_v6 = vpack.c.bf16 %v3522_v54, %v3521_v44  ;;  %v4385_v44 = vpack.c.bf16 %v16456_v55, %v16442_v34  ;;  %v3527_v54 = vld [vmem:[#allocation3 + $0x145] sm:$0xff] }
 0x356   : > { %v3557_v3 = vpack.c.bf16 %v3524_v36, %v3523_v8  ;;  %v4386_v36 = vpack.c.bf16 %v16471_v35, %v16458_v40 }
 0x35b   : > { %12482 = vmatmul.mubr.msk.bf16.gmra.mrb[156].mxu0 %vm550_vm3, %v3554_v62  ;;  %v3525_v62 = vld [vmem:[#allocation3 + $0x135] sm:$0xff] }
 0x35c   : > { %12538 = vmatmul.mubr.msk.bf16.gmra.mrb[144].mxu1 %vm550_vm3, %v4381_v37  ;;  %12485 = vmatprep.mubr.msk.bf16.mxu0 %vm550_vm3, %v3555_v28  ;;  %v3526_v37 = vld [vmem:[#allocation3 + $0x13d] sm:$0xff]  ;;  %v3528_v28 = vld [vmem:[#allocation3 + $0x14d] sm:$0xff] }
 0x35d   : > { %12541 = vmatprep.mubr.msk.bf16.mxu1 %vm550_vm3, %v4382_v1  ;;  %v3558_v1 = vpack.c.bf16 %v3526_v37, %v3525_v62  ;;  %v3559_v8 = vpack.c.bf16 %v3528_v28, %v3527_v54  ;;  %v4387_v62 = vpack.c.bf16 %v16486_v20, %v16473_v27  ;;  %v3531_v37 = vld [vmem:[#allocation3 + $0x165] sm:$0xff]  ;;  %v18614_v54 = vld [vmem:[#allocation48_spill] sm:$0xff] }
 0x35e   : > { %v4388_v23 = vpack.c.bf16 %v18614_v54, %v16488_v25 }
 0x363   : > { %12486 = vmatmul.mubr.msk.bf16.gmra.mrb[160].mxu0 %vm550_vm3, %v3556_v6  ;;  %v3530_v6 = vld [vmem:[#allocation3 + $0x15d] sm:$0xff] }
 0x364   : > { %12542 = vmatmul.mubr.msk.bf16.gmra.mrb[148].mxu1 %vm550_vm3, %v4383_v50  ;;  %12489 = vmatprep.mubr.msk.bf16.mxu0 %vm550_vm3, %v3557_v3  ;;  %v3532_v50 = vld [vmem:[#allocation3 + $0x16d] sm:$0xff]  ;;  %v3529_v3 = vld [vmem:[#allocation3 + $0x155] sm:$0xff] }
 0x365   : > { %12545 = vmatprep.mubr.msk.bf16.mxu1 %vm550_vm3, %v4384_v11  ;;  %v3560_v11 = vpack.c.bf16 %v3530_v6, %v3529_v3  ;;  %v3561_v28 = vpack.c.bf16 %v3532_v50, %v3531_v37  ;;  %v18616_v6 = vld [vmem:[#allocation52_spill] sm:$0xff]  ;;  %v4390_v50 = vpack.c.bf16 %v16532_v18, %v18617_v48 }
 0x366   : > { %v14002_v37 = vld [vmem:[%s18417_s4 + $0x48] sm:$0xff]  }
 0x36b   : > { %12490 = vmatmul.mubr.msk.bf16.gmra.mrb[164].mxu0 %vm550_vm3, %v3558_v1  ;;  %v3534_v1 = vld [vmem:[#allocation3 + $0x17d] sm:$0xff] }
 0x36c   : > { %12546 = vmatmul.mubr.msk.bf16.gmra.mrb[152].mxu1 %vm550_vm3, %v4385_v44  ;;  %12493 = vmatprep.mubr.msk.bf16.mxu0 %vm550_vm3, %v3559_v8  ;;  %v3533_v44 = vld [vmem:[#allocation3 + $0x175] sm:$0xff] }
 0x36d   : > { %12549 = vmatprep.mubr.msk.bf16.mxu1 %vm550_vm3, %v4386_v36  ;;  %v3562_v8 = vpack.c.bf16 %v3534_v1, %v3533_v44  ;;  %v18615_v36 = vld [vmem:[#allocation49_spill] sm:$0xff]  ;;  %v18620_v1 = vpack.c.bf16 %v16191_v26, %v16185_v39  ;;  %v18625_v39 = vpack.c.bf16 %v16265_v14, %v16263_v7  ;;  %v18626_v26 = vpack.c.bf16 %v16280_v53, %v16278_v38 }
 0x36e   : > { %v4389_v3 = vpack.c.bf16 %v18616_v6, %v18615_v36  ;;  %v18636_v7 = vpack.c.bf16 %v16442_v34, %v16440_v4  ;;  %v18637_v14 = vpack.c.bf16 %v16458_v40, %v16456_v55  ;;  %v18638_v38 = vpack.c.bf16 %v16473_v27, %v16471_v35  ;;  %v5251_v27 = vld [vmem:[#allocation3 + $0x38] sm:$0xff]  ;;  %v5252_v55 = vld [vmem:[#allocation3 + $0x40] sm:$0xff]  ;;  %v5253_v4 = vld [vmem:[#allocation3 + $0x48] sm:$0xff] }
 0x36f   : > { %v18639_v53 = vpack.c.bf16 %v16488_v25, %v16486_v20  ;;  %v5247_v25 = vld [vmem:[#allocation3 + $0x18] sm:$0xff]  ;;  %v5254_v35 = vld [vmem:[#allocation3 + $0x50] sm:$0xff] }
 0x370   : > { %v5255_v20 = vld [vmem:[#allocation3 + $0x58] sm:$0xff] }
 0x373   : > { %12494 = vmatmul.mubr.msk.bf16.gmra.mrb[168].mxu0 %vm550_vm3, %v3560_v11  ;;  %v4365_v11 = vld [vmem:[#allocation3 + $0x19f] sm:$0xff] }
 0x374   : > { %12550 = vmatmul.mubr.msk.bf16.gmra.mrb[156].mxu1 %vm550_vm3, %v4387_v62  ;;  %12497 = vmatprep.mubr.msk.bf16.mxu0 %vm550_vm3, %v3561_v28  ;;  %v4391_v62 = vpack.c.bf16 %v4365_v11, %v16534_v46  ;;  %v18619_v28 = vpack.c.bf16 %v16174_v13, %v16168_v60  ;;  %v18623_v60 = vpack.c.bf16 %v16236_v12, %v16231_v43 }
 0x375   : > { %12553 = vmatprep.mubr.msk.bf16.mxu1 %vm550_vm3, %v4388_v23  ;;  %v18618_v23 = vpack.c.bf16 %v16161_v2, %v16157_v32  ;;  %v18621_v32 = vpack.c.bf16 %v16206_v15, %v16201_v57  ;;  %v18622_v2 = vpack.c.bf16 %v16221_v42, %v16216_v21  ;;  %v18624_v13 = vpack.c.bf16 %v16252_v47, %v16248_v5  ;;  %v14003_v21 = vld [vmem:[%s18417_s4 + $0x50] sm:$0xff]  }
 0x376   : > { %v18627_v57 = vpack.c.bf16 %v16295_v56, %v16293_v9  ;;  %v18628_v15 = vpack.c.bf16 %v16310_v29, %v16308_v33  ;;  %v18629_v42 = vpack.c.bf16 %v16332_v0, %v16329_v30  ;;  %v18630_v43 = vpack.c.bf16 %v16352_v59, %v16350_v45  ;;  %v4831_v56 = vld [vmem:[#allocation3 + $0x1a7] sm:$0xff] }
 0x377   : > { %v18631_v29 = vpack.c.bf16 %v16367_v51, %v16365_v63  ;;  %v18632_v12 = vpack.c.bf16 %v16382_v22, %v16380_v17  ;;  %v18633_v33 = vpack.c.bf16 %v16397_v41, %v16395_v19  ;;  %v18634_v5 = vpack.c.bf16 %v16412_v10, %v16410_v24  ;;  %v5246_v24 = vld [vmem:[#allocation3 + $0x10] sm:$0xff]  ;;  %v5248_v59 = vld [vmem:[#allocation3 + $0x20] sm:$0xff]  ;;  %v5249_v63 = vld [vmem:[#allocation3 + $0x28] sm:$0xff] }
 0x378   : > { %v18635_v47 = vpack.c.bf16 %v16427_v52, %v16425_v31  ;;  %v18640_v31 = vpack.c.bf16 %v18615_v36, %v18614_v54  ;;  %v18641_v45 = vpack.c.bf16 %v18617_v48, %v18616_v6  ;;  %v18642_v9 = vpack.c.bf16 %v16534_v46, %v16532_v18  ;;  %v5250_v22 = vld [vmem:[#allocation3 + $0x30] sm:$0xff]  ;;  %v14004_v10 = vld [vmem:[%s18417_s4 + $0x58] sm:$0xff]   ;;  %v5257_v36 = vld [vmem:[#allocation3 + $0x68] sm:$0xff] }
 0x379   : > { %v4857_v19 = vpack.c.bf16 %v4831_v56, %v4365_v11  ;;  %v5298_v30 = vpack.c.bf16 %v5247_v25, %v5246_v24  ;;  %v5299_v17 = vpack.c.bf16 %v5249_v63, %v5248_v59  ;;  %v5300_v52 = vpack.c.bf16 %v5251_v27, %v5250_v22  ;;  %v5270_v56 = vld [vmem:[#allocation3 + $0xd0] sm:$0xff]  ;;  %v5271_v24 = vld [vmem:[#allocation3 + $0xd8] sm:$0xff]  ;;  %v5272_v22 = vld [vmem:[#allocation3 + $0xe0] sm:$0xff] }
 0x37a   : > { %v5302_v54 = vpack.c.bf16 %v5255_v20, %v5254_v35  ;;  %v5310_v59 = vpack.c.bf16 %v5271_v24, %v5270_v56  ;;  %v5273_v27 = vld [vmem:[#allocation3 + $0xe8] sm:$0xff]  ;;  %v5287_v24 = vld [vmem:[#allocation3 + $0x158] sm:$0xff] }
 0x37b   : > { %12498 = vmatmul.mubr.msk.bf16.gmra.mrb[172].mxu0 %vm550_vm3, %v3562_v8  ;;  %v5256_v8 = vld [vmem:[#allocation3 + $0x60] sm:$0xff]  ;;  %v5311_v35 = vpack.c.bf16 %v5273_v27, %v5272_v22 }
 0x37c   : > { %12554 = vmatmul.mubr.msk.bf16.gmra.mrb[160].mxu1 %vm550_vm3, %v4389_v3  ;;  %v5258_v3 = vld [vmem:[#allocation3 + $0x70] sm:$0xff] }
 0x37d   : > { %12557 = vmatprep.mubr.msk.bf16.mxu1 %vm550_vm3, %v4390_v50  ;;  %v5259_v50 = vld [vmem:[#allocation3 + $0x78] sm:$0xff] }
 0x384   : > { %12558 = vmatmul.mubr.msk.bf16.gmra.mrb[112].mxu1 %vm550_vm3, %v4391_v62 }
 0x385   : > { %12565 = vmatprep.mubr.msk.bf16.mxu1 %vm550_vm3, %v18618_v23  ;;  %v5303_v23 = vpack.c.bf16 %v5257_v36, %v5256_v8  ;;  %v5277_v8 = vld [vmem:[#allocation3 + $0x108] sm:$0xff] }
 0x38c   : > { %12566 = vmatmul.mubr.msk.bf16.vlgmr.msra.gmra.mrb[116].mxu1 %vm550_vm3, %v18619_v28 }
 0x38d   : > { %12569 = vmatprep.mubr.msk.bf16.mxu1 %vm550_vm3, %v18620_v1  ;;  %12618 = vmatpush3.bf16.msra.mxu1 %v16609_v49  ;;  %v5301_v49 = vpack.c.bf16 %v5253_v4, %v5252_v55  ;;  %v5260_v1 = vld [vmem:[#allocation3 + $0x80] sm:$0xff] }
 0x38e   : > { %12619 = vmatprep.subr.bf16.mxu1 %v14002_v37 }
 0x391   : > { %12620 = vmatpush3.bf16.msra.mxu1 %v14002_v37  ;;  %v5304_v37 = vpack.c.bf16 %v5259_v50, %v5258_v3  ;;  %v5278_v3 = vld [vmem:[#allocation3 + $0x110] sm:$0xff]  ;;  %v5279_v50 = vld [vmem:[#allocation3 + $0x118] sm:$0xff] }
 0x392   : > { %12673 = vmatprep.subr.bf16.mxu1 %v14003_v21 }
 0x394   : > { %12570 = vmatmul.mubr.msk.bf16.gmra.mrb[120].mxu1 %vm550_vm3, %v18621_v32  ;;  %v5261_v32 = vld [vmem:[#allocation3 + $0x88] sm:$0xff] }
 0x395   : > { %12573 = vmatprep.mubr.msk.bf16.mxu1 %vm550_vm3, %v18622_v2 }
 0x39c   : > { %12574 = vmatmul.mubr.msk.bf16.gmra.mrb[124].mxu1 %vm550_vm3, %v18623_v60  ;;  %v5262_v60 = vld [vmem:[#allocation3 + $0x90] sm:$0xff] }
 0x39d   : > { %12577 = vmatprep.mubr.msk.bf16.mxu1 %vm550_vm3, %v18624_v13  ;;  %v5263_v13 = vld [vmem:[#allocation3 + $0x98] sm:$0xff] }
 0x3a4   : > { %12578 = vmatmul.mubr.msk.bf16.gmra.mrb[128].mxu1 %vm550_vm3, %v18625_v39 }
 0x3a5   : > { %12581 = vmatprep.mubr.msk.bf16.mxu1 %vm550_vm3, %v18626_v26 }
 0x3ac   : > { %12582 = vmatmul.mubr.msk.bf16.gmra.mrb[132].mxu1 %vm550_vm3, %v18627_v57  ;;  %v5305_v57 = vpack.c.bf16 %v5261_v32, %v5260_v1  ;;  %v5314_v32 = vpack.c.bf16 %v5279_v50, %v5278_v3  ;;  %v5288_v50 = vld [vmem:[#allocation3 + $0x160] sm:$0xff] }
 0x3ad   : > { %12585 = vmatprep.mubr.msk.bf16.mxu1 %vm550_vm3, %v18628_v15  ;;  %v5306_v15 = vpack.c.bf16 %v5263_v13, %v5262_v60  ;;  %v5280_v13 = vld [vmem:[#allocation3 + $0x120] sm:$0xff] }
 0x3b4   : > { %12586 = vmatmul.mubr.msk.bf16.gmra.mrb[136].mxu1 %vm550_vm3, %v18629_v42  ;;  %v5264_v42 = vld [vmem:[#allocation3 + $0xa0] sm:$0xff] }
 0x3b5   : > { %12589 = vmatprep.mubr.msk.bf16.mxu1 %vm550_vm3, %v18630_v43  ;;  %v5265_v43 = vld [vmem:[#allocation3 + $0xa8] sm:$0xff] }
 0x3bc   : > { %12590 = vmatmul.mubr.msk.bf16.gmra.mrb[140].mxu1 %vm550_vm3, %v18631_v29 }
 0x3bd   : > { %12593 = vmatprep.mubr.msk.bf16.mxu1 %vm550_vm3, %v18632_v12  ;;  %v5266_v12 = vld [vmem:[#allocation3 + $0xb0] sm:$0xff] }
 0x3c4   : > { %12594 = vmatmul.mubr.msk.bf16.gmra.mrb[144].mxu1 %vm550_vm3, %v18633_v33  ;;  %v5267_v33 = vld [vmem:[#allocation3 + $0xb8] sm:$0xff] }
 0x3c5   : > { %12597 = vmatprep.mubr.msk.bf16.mxu1 %vm550_vm3, %v18634_v5 }
 0x3cc   : > { %12598 = vmatmul.mubr.msk.bf16.gmra.mrb[148].mxu1 %vm550_vm3, %v18635_v47 }
 0x3cd   : > { %12601 = vmatprep.mubr.msk.bf16.mxu1 %vm550_vm3, %v18636_v7  ;;  %v5307_v7 = vpack.c.bf16 %v5265_v43, %v5264_v42  ;;  %v5282_v42 = vld [vmem:[#allocation3 + $0x130] sm:$0xff]  ;;  %v5283_v43 = vld [vmem:[#allocation3 + $0x138] sm:$0xff] }
 0x3d4   : > { %12602 = vmatmul.mubr.msk.bf16.gmra.mrb[152].mxu1 %vm550_vm3, %v18637_v14  ;;  %v5308_v14 = vpack.c.bf16 %v5267_v33, %v5266_v12 }
 0x3d5   : > { %12605 = vmatprep.mubr.msk.bf16.mxu1 %vm550_vm3, %v18638_v38  ;;  %v16834_v38 = vld [vmem:[%s18417_s4 + $0x60] sm:$0xff]  }
 0x3dc   : > { %12606 = vmatmul.mubr.msk.bf16.gmra.mrb[156].mxu1 %vm550_vm3, %v18639_v53 }
 0x3dd   : > { %12609 = vmatprep.mubr.msk.bf16.mxu1 %vm550_vm3, %v18640_v31  ;;  %v5268_v31 = vld [vmem:[#allocation3 + $0xc0] sm:$0xff] }
 0x3e4   : > { %12610 = vmatmul.mubr.msk.bf16.gmra.mrb[160].mxu1 %vm550_vm3, %v18641_v45  ;;  %v5269_v45 = vld [vmem:[#allocation3 + $0xc8] sm:$0xff] }
 0x3e5   : > { %12613 = vmatprep.mubr.msk.bf16.mxu1 %vm550_vm3, %v18642_v9 }
 0x3ec   : > { %12614 = vmatmul.mubr.msk.bf16.gmra.mrb[112].mxu1 %vm550_vm3, %v4857_v19 }
 0x3ed   : > { %12621 = vmatprep.mubr.msk.bf16.mxu1 %vm550_vm3, %v5298_v30  ;;  %v5309_v30 = vpack.c.bf16 %v5269_v45, %v5268_v31  ;;  %v5285_v45 = vld [vmem:[#allocation3 + $0x148] sm:$0xff] }
 0x3ee   : > { %v16778_v0 = vpop.f32.mrb[176].mxu0 }
 0x3ef   : > { %18643 = vst [vmem:[#allocation48_spill] sm:$0xff] %v16778_v0  ;;  %v16780_v51 = vpop.f32.mrb[177].mxu0  ;;  %v14083_v0 = vld [vmem:[#allocation3 + $0x39] sm:$0xff] }
 0x3f0   : > { %18644 = vst [vmem:[#allocation49_spill] sm:$0xff] %v16780_v51  ;;  %v16782_v18 = vpop.f32.mrb[178].mxu0  ;;  %v14079_v51 = vld [vmem:[#allocation3 + $0x19] sm:$0xff] }
 0x3f1   : > { %18645 = vst [vmem:[#allocation52_spill] sm:$0xff] %v16782_v18  ;;  %v16784_v41 = vpop.f32.mrb[179].mxu0 }
 0x3f2   : > { %18646 = vst [vmem:[#allocation53_spill] sm:$0xff] %v16784_v41 }
 0x3f4   : > { %12622 = vmatmul.mubr.msk.bf16.vlgmr.msra.gmra.mrb[116].mxu1 %vm550_vm3, %v5299_v17 }
 0x3f5   : > { %12625 = vmatprep.mubr.msk.bf16.mxu1 %vm550_vm3, %v5300_v52  ;;  %12674 = vmatpush3.bf16.msra.mxu1 %v14003_v21  ;;  %v5275_v52 = vld [vmem:[#allocation3 + $0xf8] sm:$0xff] }
 0x3f6   : > { %12675 = vmatprep.subr.bf16.mxu1 %v14004_v10  ;;  %v16791_v34 = vpop.f32.mrb[128].mxu0 }
 0x3f7   : > { %v16793_v40 = vpop.f32.mrb[129].mxu0 }
 0x3f8   : > { %v16795_v46 = vpop.f32.mrb[130].mxu0 }
 0x3f9   : > { %12676 = vmatpush3.bf16.msra.mxu1 %v14004_v10  ;;  %v16797_v48 = vpop.f32.mrb[131].mxu0  ;;  %v5274_v10 = vld [vmem:[#allocation3 + $0xf0] sm:$0xff] }
 0x3fa   : > { %12729 = vmatprep.subr.bf16.mxu1 %v16834_v38  ;;  %v5312_v20 = vpack.c.bf16 %v5275_v52, %v5274_v10  ;;  %v5286_v10 = vld [vmem:[#allocation3 + $0x150] sm:$0xff] }
 0x3fb   : > { %v5318_v52 = vpack.c.bf16 %v5287_v24, %v5286_v10  ;;  %v5292_v24 = vld [vmem:[#allocation3 + $0x180] sm:$0xff]  ;;  %v5294_v10 = vld [vmem:[#allocation3 + $0x190] sm:$0xff] }
 0x3fc   : > { %12626 = vmatmul.mubr.msk.bf16.gmra.mrb[120].mxu1 %vm550_vm3, %v5301_v49 }
 0x3fd   : > { %12629 = vmatprep.mubr.msk.bf16.mxu1 %vm550_vm3, %v5302_v54  ;;  %v5276_v54 = vld [vmem:[#allocation3 + $0x100] sm:$0xff] }
 0x3fe   : > { %v16801_v44 = vpop.f32.mrb[132].mxu0  ;;  %v5313_v1 = vpack.c.bf16 %v5277_v8, %v5276_v54  ;;  %v5291_v8 = vld [vmem:[#allocation3 + $0x178] sm:$0xff] }
 0x3ff   : > { %v16803_v6 = vpop.f32.mrb[133].mxu0 }
 0x400   : > { %v16805_v11 = vpop.f32.mrb[134].mxu0 }
 0x401   : > { %v16807_v62 = vpop.f32.mrb[135].mxu0 }
 0x404   : > { %12630 = vmatmul.mubr.msk.bf16.gmra.mrb[124].mxu1 %vm550_vm3, %v5303_v23 }
 0x405   : > { %12633 = vmatprep.mubr.msk.bf16.mxu1 %vm550_vm3, %v5304_v37 }
 0x406   : > { %v16811_v28 = vpop.f32.mrb[136].mxu0 }
 0x407   : > { %v16813_v2 = vpop.f32.mrb[137].mxu0 }
 0x408   : > { %v16815_v39 = vpop.f32.mrb[138].mxu0 }
 0x409   : > { %v16817_v26 = vpop.f32.mrb[139].mxu0 }
 0x40c   : > { %12634 = vmatmul.mubr.msk.bf16.gmra.mrb[128].mxu1 %vm550_vm3, %v5305_v57  ;;  %v5281_v57 = vld [vmem:[#allocation3 + $0x128] sm:$0xff] }
 0x40d   : > { %12637 = vmatprep.mubr.msk.bf16.mxu1 %vm550_vm3, %v5306_v15 }
 0x40e   : > { %v16821_v21 = vpop.f32.mrb[140].mxu0 }
 0x40f   : > { %v16823_v29 = vpop.f32.mrb[141].mxu0 }
 0x410   : > { %v16825_v5 = vpop.f32.mrb[142].mxu0 }
 0x411   : > { %v16827_v47 = vpop.f32.mrb[143].mxu0 }
 0x414   : > { %12638 = vmatmul.mubr.msk.bf16.gmra.mrb[132].mxu1 %vm550_vm3, %v5307_v7  ;;  %v5315_v7 = vpack.c.bf16 %v5281_v57, %v5280_v13  ;;  %v5290_v13 = vld [vmem:[#allocation3 + $0x170] sm:$0xff] }
 0x415   : > { %12641 = vmatprep.mubr.msk.bf16.mxu1 %vm550_vm3, %v5308_v14  ;;  %v5316_v14 = vpack.c.bf16 %v5283_v43, %v5282_v42  ;;  %v5320_v57 = vpack.c.bf16 %v5291_v8, %v5290_v13  ;;  %v5293_v43 = vld [vmem:[#allocation3 + $0x188] sm:$0xff] }
 0x416   : > { %v16836_v53 = vpop.f32.mrb[144].mxu0  ;;  %v5297_v8 = vld [vmem:[#allocation3 + $0x1a8] sm:$0xff] }
 0x417   : > { %v16839_v9 = vpop.f32.mrb[145].mxu0 }
 0x418   : > { %v16841_v25 = vpop.f32.mrb[146].mxu0 }
 0x419   : > { %v16843_v19 = vpop.f32.mrb[147].mxu0 }
 0x41c   : > { %12642 = vmatmul.mubr.msk.bf16.gmra.mrb[136].mxu1 %vm550_vm3, %v5309_v30 }
 0x41d   : > { %12645 = vmatprep.mubr.msk.bf16.mxu1 %vm550_vm3, %v5310_v59  ;;  %v5284_v59 = vld [vmem:[#allocation3 + $0x140] sm:$0xff] }
 0x41e   : > { %v16847_v63 = vpop.f32.mrb[148].mxu0  ;;  %v5317_v27 = vpack.c.bf16 %v5285_v45, %v5284_v59 }
 0x41f   : > { %v16849_v17 = vpop.f32.mrb[149].mxu0 }
 0x420   : > { %v16851_v55 = vpop.f32.mrb[150].mxu0 }
 0x421   : > { %v16853_v4 = vpop.f32.mrb[151].mxu0 }
 0x424   : > { %12646 = vmatmul.mubr.msk.bf16.gmra.mrb[140].mxu1 %vm550_vm3, %v5311_v35 }
 0x425   : > { %12649 = vmatprep.mubr.msk.bf16.mxu1 %vm550_vm3, %v5312_v20  ;;  %v5289_v20 = vld [vmem:[#allocation3 + $0x168] sm:$0xff] }
 0x426   : > { %v16857_v49 = vpop.f32.mrb[152].mxu0 }
 0x427   : > { %v16859_v36 = vpop.f32.mrb[153].mxu0 }
 0x428   : > { %v16861_v23 = vpop.f32.mrb[154].mxu0 }
 0x429   : > { %v16863_v37 = vpop.f32.mrb[155].mxu0 }
 0x42c   : > { %12650 = vmatmul.mubr.msk.bf16.gmra.mrb[144].mxu1 %vm550_vm3, %v5313_v1 }
 0x42d   : > { %12653 = vmatprep.mubr.msk.bf16.mxu1 %vm550_vm3, %v5314_v32  ;;  %v5319_v32 = vpack.c.bf16 %v5289_v20, %v5288_v50 }
 0x42e   : > { %v16867_v60 = vpop.f32.mrb[156].mxu0 }
 0x42f   : > { %v16869_v15 = vpop.f32.mrb[157].mxu0 }
 0x430   : > { %v16871_v12 = vpop.f32.mrb[158].mxu0 }
 0x431   : > { %v16873_v33 = vpop.f32.mrb[159].mxu0 }
 0x434   : > { %12654 = vmatmul.mubr.msk.bf16.gmra.mrb[148].mxu1 %vm550_vm3, %v5315_v7 }
 0x435   : > { %12657 = vmatprep.mubr.msk.bf16.mxu1 %vm550_vm3, %v5316_v14  ;;  %v5295_v14 = vld [vmem:[#allocation3 + $0x198] sm:$0xff] }
 0x436   : > { %v16877_v31 = vpop.f32.mrb[160].mxu0 }
 0x437   : > { %v16879_v56 = vpop.f32.mrb[161].mxu0 }
 0x438   : > { %v16881_v30 = vpop.f32.mrb[162].mxu0 }
 0x439   : > { %18647 = vst [vmem:[#allocation57_spill] sm:$0xff] %v16881_v30  ;;  %v16883_v22 = vpop.f32.mrb[163].mxu0  ;;  %v18718_v30 = vld [vmem:[#allocation36_spill] sm:$0xff] }
 0x43a   : > { %18648 = vst [vmem:[#allocation58_spill] sm:$0xff] %v16883_v22 }
 0x43c   : > { %12658 = vmatmul.mubr.msk.bf16.gmra.mrb[152].mxu1 %vm550_vm3, %v5317_v27  ;;  %v5321_v27 = vpack.c.bf16 %v5293_v43, %v5292_v24  ;;  %v14081_v24 = vld [vmem:[#allocation3 + $0x29] sm:$0xff] }
 0x43d   : > { %12661 = vmatprep.mubr.msk.bf16.mxu1 %vm550_vm3, %v5318_v52  ;;  %v5322_v52 = vpack.c.bf16 %v5295_v14, %v5294_v10  ;;  %v14080_v14 = vld [vmem:[#allocation3 + $0x21] sm:$0xff]  ;;  %v14006_v10 = vld [vmem:[%s18417_s4 + $0x68] sm:$0xff]  }
 0x43e   : > { %v16887_v35 = vpop.f32.mrb[164].mxu0 }
 0x43f   : > { %18649 = vst [vmem:[#allocation59_spill] sm:$0xff] %v16887_v35  ;;  %v16889_v54 = vpop.f32.mrb[165].mxu0  ;;  %v18685_v35 = vld [vmem:[#allocation14_spill] sm:$0xff] }
 0x440   : > { %18650 = vst [vmem:[#allocation60_spill] sm:$0xff] %v16889_v54  ;;  %v16891_v3 = vpop.f32.mrb[166].mxu0 }
 0x441   : > { %18651 = vst [vmem:[#allocation61_spill] sm:$0xff] %v16891_v3  ;;  %v16893_v1 = vpop.f32.mrb[167].mxu0 }
 0x442   : > { %18652 = vst [vmem:[#allocation62_spill] sm:$0xff] %v16893_v1  ;;  %v18676_v1 = vld [vmem:[#allocation8_spill] sm:$0xff] }
 0x444   : > { %12662 = vmatmul.mubr.msk.bf16.gmra.mrb[156].mxu1 %vm550_vm3, %v5319_v32  ;;  %v5712_v32 = vld [vmem:[#allocation3 + $0x11] sm:$0xff] }
 0x445   : > { %12665 = vmatprep.mubr.msk.bf16.mxu1 %vm550_vm3, %v5320_v57  ;;  %v5296_v57 = vld [vmem:[#allocation3 + $0x1a0] sm:$0xff]  ;;  %v5764_v43 = vpack.c.bf16 %v14079_v51, %v5712_v32  ;;  %v14086_v32 = vld [vmem:[#allocation3 + $0x51] sm:$0xff] }
 0x446   : > { %v16897_v42 = vpop.f32.mrb[168].mxu0  ;;  %v5323_v18 = vpack.c.bf16 %v5297_v8, %v5296_v57  ;;  %v14084_v51 = vld [vmem:[#allocation3 + $0x41] sm:$0xff]  ;;  %v14087_v57 = vld [vmem:[#allocation3 + $0x59] sm:$0xff] }
 0x447   : > { %18653 = vst [vmem:[#allocation63_spill] sm:$0xff] %v16897_v42  ;;  %v16899_v7 = vpop.f32.mrb[169].mxu0  ;;  %v18675_v42 = vld [vmem:[#allocation9_spill] sm:$0xff] }
 0x448   : > { %18654 = vst [vmem:[#allocation64_spill] sm:$0xff] %v16899_v7  ;;  %v16901_v45 = vpop.f32.mrb[170].mxu0  ;;  %v18673_v7 = vld [vmem:[#allocation6_spill] sm:$0xff]  ;;  %v18677_v3 = vpack.c.bf16 %v18675_v42, %v18676_v1  ;;  %v18687_v1 = vld [vmem:[#allocation17_spill] sm:$0xff] }
 0x449   : > { %18655 = vst [vmem:[#allocation65_spill] sm:$0xff] %v16901_v45  ;;  %v16903_v59 = vpop.f32.mrb[171].mxu0  ;;  %v18672_v45 = vld [vmem:[#allocation7_spill] sm:$0xff] }
 0x44a   : > { %18656 = vst [vmem:[#allocation66_spill] sm:$0xff] %v16903_v59 }
 0x44c   : > { %12666 = vmatmul.mubr.msk.bf16.gmra.mrb[160].mxu1 %vm550_vm3, %v5321_v27  ;;  %v5765_v27 = vpack.c.bf16 %v14081_v24, %v14080_v14  ;;  %v14088_v14 = vld [vmem:[#allocation3 + $0x61] sm:$0xff] }
 0x44d   : > { %12669 = vmatprep.mubr.msk.bf16.mxu1 %vm550_vm3, %v5322_v52  ;;  %v14082_v52 = vld [vmem:[#allocation3 + $0x31] sm:$0xff] }
 0x44e   : > { %v16907_v20 = vpop.f32.mrb[172].mxu0 }
 0x44f   : > { %18657 = vst [vmem:[#allocation67_spill] sm:$0xff] %v16907_v20  ;;  %v16909_v50 = vpop.f32.mrb[173].mxu0 }
 0x450   : > { %18658 = vst [vmem:[#allocation68_spill] sm:$0xff] %v16909_v50  ;;  %v16911_v13 = vpop.f32.mrb[174].mxu0  ;;  %v14111_v50 = vld [vmem:[#allocation3 + $0x119] sm:$0xff] }
 0x451   : > { %18659 = vst [vmem:[#allocation69_spill] sm:$0xff] %v16911_v13  ;;  %v16913_v41 = vpop.f32.mrb[175].mxu0  ;;  %v5766_v13 = vpack.c.bf16 %v14083_v0, %v14082_v52  ;;  %v14089_v0 = vld [vmem:[#allocation3 + $0x69] sm:$0xff]  ;;  %v14091_v52 = vld [vmem:[#allocation3 + $0x79] sm:$0xff] }
 0x452   : > { %18660 = vst [vmem:[#allocation70_spill] sm:$0xff] %v16913_v41  ;;  %v5769_v24 = vpack.c.bf16 %v14089_v0, %v14088_v14  ;;  %v14095_v41 = vld [vmem:[#allocation3 + $0x99] sm:$0xff]  ;;  %v14098_v14 = vld [vmem:[#allocation3 + $0xb1] sm:$0xff] }
 0x453   : > { %v14099_v0 = vld [vmem:[#allocation3 + $0xb9] sm:$0xff] }
 0x454   : > { %12670 = vmatmul.mubr.msk.bf16.gmra.mrb[112].mxu1 %vm550_vm3, %v5323_v18  ;;  %v14085_v18 = vld [vmem:[#allocation3 + $0x49] sm:$0xff] }
 0x455   : > { %12677 = vmatprep.mubr.msk.bf16.mxu1 %vm550_vm3, %v5764_v43  ;;  %v5767_v8 = vpack.c.bf16 %v14085_v18, %v14084_v51  ;;  %v5768_v43 = vpack.c.bf16 %v14087_v57, %v14086_v32  ;;  %v14094_v18 = vld [vmem:[#allocation3 + $0x91] sm:$0xff]  ;;  %v14097_v57 = vld [vmem:[#allocation3 + $0xa9] sm:$0xff] }
 0x456   : > { %v5772_v32 = vpack.c.bf16 %v14095_v41, %v14094_v18  ;;  %v14100_v41 = vld [vmem:[#allocation3 + $0xc1] sm:$0xff] }
 0x457   : > { %v14104_v18 = vld [vmem:[#allocation3 + $0xe1] sm:$0xff] }
 0x45c   : > { %12678 = vmatmul.mubr.msk.bf16.vlgmr.msra.gmra.mrb[116].mxu1 %vm550_vm3, %v5765_v27  ;;  %v14090_v27 = vld [vmem:[#allocation3 + $0x71] sm:$0xff] }
 0x45d   : > { %12681 = vmatprep.mubr.msk.bf16.mxu1 %vm550_vm3, %v5766_v13  ;;  %12730 = vmatpush3.bf16.msra.mxu1 %v16834_v38  ;;  %v5770_v13 = vpack.c.bf16 %v14091_v52, %v14090_v27  ;;  %v14092_v38 = vld [vmem:[#allocation3 + $0x81] sm:$0xff]  ;;  %v5774_v27 = vpack.c.bf16 %v14099_v0, %v14098_v14  ;;  %v14101_v52 = vld [vmem:[#allocation3 + $0xc9] sm:$0xff] }
 0x45e   : > { %12731 = vmatprep.subr.bf16.mxu1 %v14006_v10  ;;  %v14108_v0 = vld [vmem:[#allocation3 + $0x101] sm:$0xff] }
 0x461   : > { %12732 = vmatpush3.bf16.msra.mxu1 %v14006_v10  ;;  %v14093_v10 = vld [vmem:[#allocation3 + $0x89] sm:$0xff] }
 0x462   : > { %v5771_v51 = vpack.c.bf16 %v14093_v10, %v14092_v38  ;;  %v14102_v38 = vld [vmem:[#allocation3 + $0xd1] sm:$0xff]  ;;  %v14103_v10 = vld [vmem:[#allocation3 + $0xd9] sm:$0xff] }
 0x464   : > { %12682 = vmatmul.mubr.msk.bf16.gmra.mrb[120].mxu1 %vm550_vm3, %v5767_v8  ;;  %v14096_v8 = vld [vmem:[#allocation3 + $0xa1] sm:$0xff] }
 0x465   : > { %12685 = vmatprep.mubr.msk.bf16.mxu1 %vm550_vm3, %v5768_v43  ;;  %v5773_v43 = vpack.c.bf16 %v14097_v57, %v14096_v8  ;;  %v14106_v57 = vld [vmem:[#allocation3 + $0xf1] sm:$0xff] }
 0x46c   : > { %12686 = vmatmul.mubr.msk.bf16.gmra.mrb[124].mxu1 %vm550_vm3, %v5769_v24  ;;  %v14007_v24 = vld [vmem:[%s18417_s4 + $0x70] sm:$0xff]  }
 0x46d   : > { %12689 = vmatprep.mubr.msk.bf16.mxu1 %vm550_vm3, %v5770_v13  ;;  %12785 = vmatprep.subr.bf16.mxu1 %v14007_v24  ;;  %v5775_v13 = vpack.c.bf16 %v14101_v52, %v14100_v41  ;;  %v14110_v52 = vld [vmem:[#allocation3 + $0x111] sm:$0xff] }
 0x474   : > { %12690 = vmatmul.mubr.msk.bf16.gmra.mrb[128].mxu1 %vm550_vm3, %v5771_v51  ;;  %v5776_v51 = vpack.c.bf16 %v14103_v10, %v14102_v38  ;;  %v5780_v38 = vpack.c.bf16 %v14111_v50, %v14110_v52  ;;  %v14113_v10 = vld [vmem:[#allocation3 + $0x129] sm:$0xff]  ;;  %v18667_v52 = vld [vmem:[#allocation50_spill] sm:$0xff] }
 0x475   : > { %12693 = vmatprep.mubr.msk.bf16.mxu1 %vm550_vm3, %v5772_v32  ;;  %v14105_v32 = vld [vmem:[#allocation3 + $0xe9] sm:$0xff] }
 0x476   : > { %v5777_v8 = vpack.c.bf16 %v14105_v32, %v14104_v18  ;;  %v14114_v18 = vld [vmem:[#allocation3 + $0x131] sm:$0xff]  ;;  %v18661_v32 = vld [vmem:[#allocation42_spill] sm:$0xff] }
 0x47c   : > { %12694 = vmatmul.mubr.msk.bf16.gmra.mrb[132].mxu1 %vm550_vm3, %v5773_v43  ;;  %v14107_v43 = vld [vmem:[#allocation3 + $0xf9] sm:$0xff] }
 0x47d   : > { %12697 = vmatprep.mubr.msk.bf16.mxu1 %vm550_vm3, %v5774_v27  ;;  %v5778_v14 = vpack.c.bf16 %v14107_v43, %v14106_v57  ;;  %v14109_v27 = vld [vmem:[#allocation3 + $0x109] sm:$0xff]  ;;  %v5782_v57 = vpack.c.bf16 %v18661_v32, %v14114_v18  ;;  %v18669_v18 = vld [vmem:[#allocation54_spill] sm:$0xff] }
 0x47e   : > { %v5779_v41 = vpack.c.bf16 %v14109_v27, %v14108_v0  ;;  %v18663_v43 = vld [vmem:[#allocation44_spill] sm:$0xff]  ;;  %v18664_v0 = vld [vmem:[#allocation45_spill] sm:$0xff]  ;;  %v18665_v27 = vld [vmem:[#allocation46_spill] sm:$0xff] }
 0x47f   : > { %v5784_v50 = vpack.c.bf16 %v18665_v27, %v18664_v0 }
 0x484   : > { %12698 = vmatmul.mubr.msk.bf16.gmra.mrb[136].mxu1 %vm550_vm3, %v5775_v13  ;;  %v14112_v13 = vld [vmem:[#allocation3 + $0x121] sm:$0xff] }
 0x485   : > { %12701 = vmatprep.mubr.msk.bf16.mxu1 %vm550_vm3, %v5776_v51  ;;  %v5781_v51 = vpack.c.bf16 %v14113_v10, %v14112_v13  ;;  %v18668_v13 = vld [vmem:[#allocation51_spill] sm:$0xff] }
 0x486   : > { %v5786_v10 = vpack.c.bf16 %v16523_v58, %v18668_v13 }
 0x48c   : > { %12702 = vmatmul.mubr.msk.bf16.gmra.mrb[140].mxu1 %vm550_vm3, %v5777_v8  ;;  %v18662_v8 = vld [vmem:[#allocation43_spill] sm:$0xff] }
 0x48d   : > { %12705 = vmatprep.mubr.msk.bf16.mxu1 %vm550_vm3, %v5778_v14  ;;  %v5783_v14 = vpack.c.bf16 %v18663_v43, %v18662_v8 }
 0x494   : > { %12706 = vmatmul.mubr.msk.bf16.gmra.mrb[144].mxu1 %vm550_vm3, %v5779_v41  ;;  %v18666_v41 = vld [vmem:[#allocation47_spill] sm:$0xff] }
 0x495   : > { %12709 = vmatprep.mubr.msk.bf16.mxu1 %vm550_vm3, %v5780_v38  ;;  %v5785_v38 = vpack.c.bf16 %v18667_v52, %v18666_v41 }
 0x49c   : > { %12710 = vmatmul.mubr.msk.bf16.gmra.mrb[148].mxu1 %vm550_vm3, %v5781_v51  ;;  %v5787_v51 = vpack.c.bf16 %v16539_v61, %v16525_v16 }
 0x49d   : > { %12713 = vmatprep.mubr.msk.bf16.mxu1 %vm550_vm3, %v5782_v57  ;;  %v18670_v57 = vld [vmem:[#allocation55_spill] sm:$0xff] }
 0x49e   : > { %v5788_v20 = vpack.c.bf16 %v18670_v57, %v18669_v18 }
 0x4a4   : > { %12714 = vmatmul.mubr.msk.bf16.gmra.mrb[152].mxu1 %vm550_vm3, %v5783_v14  ;;  %v5763_v14 = vld [vmem:[#allocation3 + $0x1a9] sm:$0xff] }
 0x4a5   : > { %12717 = vmatprep.mubr.msk.bf16.mxu1 %vm550_vm3, %v5784_v50  ;;  %v18671_v50 = vld [vmem:[#allocation56_spill] sm:$0xff] }
 0x4a6   : > { %v5789_v59 = vpack.c.bf16 %v5763_v14, %v18671_v50 }
 0x4ac   : > { %12718 = vmatmul.mubr.msk.bf16.gmra.mrb[156].mxu1 %vm550_vm3, %v5785_v38  ;;  %v18674_v38 = vpack.c.bf16 %v18672_v45, %v18673_v7  ;;  %v18681_v7 = vld [vmem:[#allocation13_spill] sm:$0xff]  ;;  %v18682_v45 = vld [vmem:[#allocation12_spill] sm:$0xff] }
 0x4ad   : > { %12721 = vmatprep.mubr.msk.bf16.mxu1 %vm550_vm3, %v5786_v10  ;;  %v14008_v10 = vld [vmem:[%s18417_s4 + $0x78] sm:$0xff]  }
 0x4b4   : > { %12722 = vmatmul.mubr.msk.bf16.gmra.mrb[160].mxu1 %vm550_vm3, %v5787_v51  ;;  %v18679_v51 = vld [vmem:[#allocation10_spill] sm:$0xff] }
 0x4b5   : > { %12725 = vmatprep.mubr.msk.bf16.mxu1 %vm550_vm3, %v5788_v20  ;;  %v18678_v20 = vld [vmem:[#allocation11_spill] sm:$0xff] }
 0x4b6   : > { %v18680_v54 = vpack.c.bf16 %v18678_v20, %v18679_v51  ;;  %v18690_v20 = vld [vmem:[#allocation19_spill] sm:$0xff]  ;;  %v18694_v51 = vld [vmem:[#allocation20_spill] sm:$0xff] }
 0x4bc   : > { %12726 = vmatmul.mubr.msk.bf16.gmra.mrb[112].mxu1 %vm550_vm3, %v5789_v59  ;;  %v18683_v59 = vpack.c.bf16 %v18681_v7, %v18682_v45  ;;  %v18696_v45 = vld [vmem:[#allocation23_spill] sm:$0xff] }
 0x4bd   : > { %12733 = vmatprep.mubr.msk.bf16.mxu1 %vm550_vm3, %v18674_v38  ;;  %v18684_v38 = vld [vmem:[#allocation15_spill] sm:$0xff] }
 0x4be   : > { %v18686_v22 = vpack.c.bf16 %v18684_v38, %v18685_v35  ;;  %v18700_v38 = vld [vmem:[#allocation24_spill] sm:$0xff] }
 0x4c4   : > { %12734 = vmatmul.mubr.msk.bf16.vlgmr.msra.gmra.mrb[116].mxu1 %vm550_vm3, %v18677_v3  ;;  %v18688_v3 = vld [vmem:[#allocation16_spill] sm:$0xff] }
 0x4c5   : > { %12737 = vmatprep.mubr.msk.bf16.mxu1 %vm550_vm3, %v18680_v54  ;;  %12786 = vmatpush3.bf16.msra.mxu1 %v14007_v24  ;;  %v18689_v42 = vpack.c.bf16 %v18687_v1, %v18688_v3  ;;  %v18691_v54 = vld [vmem:[#allocation18_spill] sm:$0xff]  ;;  %v18702_v3 = vld [vmem:[#allocation27_spill] sm:$0xff] }
 0x4c6   : > { %12787 = vmatprep.subr.bf16.mxu1 %v14008_v10  ;;  %v18692_v24 = vpack.c.bf16 %v18690_v20, %v18691_v54  ;;  %v14009_v54 = vld [vmem:[%s18417_s4 + $0x80] sm:$0xff]  }
 0x4c9   : > { %12788 = vmatpush3.bf16.msra.mxu1 %v14008_v10  ;;  %v18693_v10 = vld [vmem:[#allocation21_spill] sm:$0xff] }
 0x4ca   : > { %v18695_v7 = vpack.c.bf16 %v18693_v10, %v18694_v51  ;;  %12841 = vmatprep.subr.bf16.mxu1 %v14009_v54  ;;  %v18706_v10 = vld [vmem:[#allocation28_spill] sm:$0xff] }
 0x4cc   : > { %12738 = vmatmul.mubr.msk.bf16.gmra.mrb[120].mxu1 %vm550_vm3, %v18683_v59  ;;  %v18697_v59 = vld [vmem:[#allocation22_spill] sm:$0xff] }
 0x4cd   : > { %12741 = vmatprep.mubr.msk.bf16.mxu1 %vm550_vm3, %v18686_v22  ;;  %v18698_v35 = vpack.c.bf16 %v18696_v45, %v18697_v59  ;;  %v18699_v22 = vld [vmem:[#allocation25_spill] sm:$0xff]  ;;  %v18709_v45 = vld [vmem:[#allocation30_spill] sm:$0xff] }
 0x4ce   : > { %v18701_v1 = vpack.c.bf16 %v18699_v22, %v18700_v38  ;;  %v18712_v22 = vld [vmem:[#allocation32_spill] sm:$0xff] }
 0x4d4   : > { %12742 = vmatmul.mubr.msk.bf16.gmra.mrb[124].mxu1 %vm550_vm3, %v18689_v42  ;;  %v18703_v42 = vld [vmem:[#allocation26_spill] sm:$0xff] }
 0x4d5   : > { %12745 = vmatprep.mubr.msk.bf16.mxu1 %vm550_vm3, %v18692_v24  ;;  %v18704_v20 = vpack.c.bf16 %v18702_v3, %v18703_v42  ;;  %v18705_v24 = vld [vmem:[#allocation29_spill] sm:$0xff]  ;;  %v18715_v3 = vld [vmem:[#allocation34_spill] sm:$0xff] }
 0x4d6   : > { %v18707_v51 = vpack.c.bf16 %v18705_v24, %v18706_v10  ;;  %v18720_v10 = vld [vmem:[#allocation39_spill] sm:$0xff] }
 0x4dc   : > { %12746 = vmatmul.mubr.msk.bf16.gmra.mrb[128].mxu1 %vm550_vm3, %v18695_v7  ;;  %v18708_v7 = vld [vmem:[#allocation31_spill] sm:$0xff] }
 0x4dd   : > { %12749 = vmatprep.mubr.msk.bf16.mxu1 %vm550_vm3, %v18698_v35  ;;  %v18710_v59 = vpack.c.bf16 %v18708_v7, %v18709_v45  ;;  %v18711_v35 = vld [vmem:[#allocation33_spill] sm:$0xff] }
 0x4de   : > { %v18713_v38 = vpack.c.bf16 %v18711_v35, %v18712_v22  ;;  %v18723_v45 = vld [vmem:[#allocation41_spill] sm:$0xff]  ;;  %v18726_v22 = vpack.c.bf16 %v18662_v8, %v18661_v32  ;;  %v18730_v32 = vpack.c.bf16 %v16525_v16, %v16523_v58  ;;  %v18731_v8 = vpack.c.bf16 %v18669_v18, %v16539_v61  ;;  %v6646_v58 = vld [vmem:[#allocation3 + $0x2a] sm:$0xff]  ;;  %v6649_v61 = vld [vmem:[#allocation3 + $0x42] sm:$0xff] }
 0x4df   : > { %v6647_v16 = vld [vmem:[#allocation3 + $0x32] sm:$0xff] }
 0x4e0   : > { %v6697_v18 = vpack.c.bf16 %v6647_v16, %v6646_v58  ;;  %v6666_v16 = vld [vmem:[#allocation3 + $0xca] sm:$0xff] }
 0x4e4   : > { %12750 = vmatmul.mubr.msk.bf16.gmra.mrb[132].mxu1 %vm550_vm3, %v18701_v1  ;;  %v18714_v1 = vld [vmem:[#allocation35_spill] sm:$0xff] }
 0x4e5   : > { %12753 = vmatprep.mubr.msk.bf16.mxu1 %vm550_vm3, %v18704_v20  ;;  %v18716_v42 = vpack.c.bf16 %v18714_v1, %v18715_v3  ;;  %v18717_v20 = vld [vmem:[#allocation37_spill] sm:$0xff]  ;;  %v18729_v1 = vpack.c.bf16 %v18668_v13, %v18667_v52 }
 0x4e6   : > { %v18719_v24 = vpack.c.bf16 %v18717_v20, %v18718_v30  ;;  %v18727_v30 = vpack.c.bf16 %v18664_v0, %v18663_v43  ;;  %v18732_v43 = vpack.c.bf16 %v18671_v50, %v18670_v57  ;;  %v6229_v0 = vld [vmem:[#allocation3 + $0x1b1] sm:$0xff]  ;;  %v6648_v3 = vld [vmem:[#allocation3 + $0x3a] sm:$0xff] }
 0x4e7   : > { %v6255_v52 = vpack.c.bf16 %v6229_v0, %v5763_v14  ;;  %v14010_v57 = vld [vmem:[%s18417_s4 + $0x88] sm:$0xff]   ;;  %v6698_v50 = vpack.c.bf16 %v6649_v61, %v6648_v3  ;;  %v6652_v20 = vld [vmem:[#allocation3 + $0x5a] sm:$0xff]  ;;  %v6669_v61 = vld [vmem:[#allocation3 + $0xe2] sm:$0xff] }
 0x4e8   : > { %v6650_v14 = vld [vmem:[#allocation3 + $0x4a] sm:$0xff]  ;;  %v6667_v3 = vld [vmem:[#allocation3 + $0xd2] sm:$0xff] }
 0x4e9   : > { %v6662_v0 = vld [vmem:[#allocation3 + $0xaa] sm:$0xff] }
 0x4ec   : > { %12754 = vmatmul.mubr.msk.bf16.gmra.mrb[136].mxu1 %vm550_vm3, %v18707_v51  ;;  %v18721_v51 = vld [vmem:[#allocation38_spill] sm:$0xff] }
 0x4ed   : > { %12757 = vmatprep.mubr.msk.bf16.mxu1 %vm550_vm3, %v18710_v59  ;;  %v18722_v7 = vpack.c.bf16 %v18720_v10, %v18721_v51  ;;  %v18724_v59 = vld [vmem:[#allocation40_spill] sm:$0xff] }
 0x4ee   : > { %v18725_v35 = vpack.c.bf16 %v18723_v45, %v18724_v59  ;;  %v6655_v45 = vld [vmem:[#allocation3 + $0x72] sm:$0xff]  ;;  %v6656_v59 = vld [vmem:[#allocation3 + $0x7a] sm:$0xff] }
 0x4f4   : > { %12758 = vmatmul.mubr.msk.bf16.gmra.mrb[140].mxu1 %vm550_vm3, %v18713_v38  ;;  %v18728_v38 = vpack.c.bf16 %v18666_v41, %v18665_v27  ;;  %v6644_v27 = vld [vmem:[#allocation3 + $0x1a] sm:$0xff]  ;;  %v6645_v41 = vld [vmem:[#allocation3 + $0x22] sm:$0xff] }
 0x4f5   : > { %12761 = vmatprep.mubr.msk.bf16.mxu1 %vm550_vm3, %v18716_v42  ;;  %v6696_v13 = vpack.c.bf16 %v6645_v41, %v6644_v27  ;;  %v6651_v42 = vld [vmem:[#allocation3 + $0x52] sm:$0xff]  ;;  %v6664_v41 = vld [vmem:[#allocation3 + $0xba] sm:$0xff] }
 0x4f6   : > { %v6699_v10 = vpack.c.bf16 %v6651_v42, %v6650_v14  ;;  %v6663_v27 = vld [vmem:[#allocation3 + $0xb2] sm:$0xff]  ;;  %v6673_v42 = vld [vmem:[#allocation3 + $0x102] sm:$0xff] }
 0x4f7   : > { %v6671_v14 = vld [vmem:[#allocation3 + $0xf2] sm:$0xff] }
 0x4fc   : > { %12762 = vmatmul.mubr.msk.bf16.gmra.mrb[144].mxu1 %vm550_vm3, %v18719_v24  ;;  %v6653_v24 = vld [vmem:[#allocation3 + $0x62] sm:$0xff] }
 0x4fd   : > { %12765 = vmatprep.mubr.msk.bf16.mxu1 %vm550_vm3, %v18722_v7  ;;  %v6700_v51 = vpack.c.bf16 %v6653_v24, %v6652_v20  ;;  %v6654_v7 = vld [vmem:[#allocation3 + $0x6a] sm:$0xff] }
 0x4fe   : > { %v6670_v20 = vld [vmem:[#allocation3 + $0xea] sm:$0xff] }
 0x4ff   : > { %v6709_v24 = vpack.c.bf16 %v6671_v14, %v6670_v20  ;;  %v6693_v20 = vld [vmem:[#allocation3 + $0x1a2] sm:$0xff] }
 0x504   : > { %12766 = vmatmul.mubr.msk.bf16.gmra.mrb[148].mxu1 %vm550_vm3, %v18725_v35  ;;  %v6657_v35 = vld [vmem:[#allocation3 + $0x82] sm:$0xff] }
 0x505   : > { %12769 = vmatprep.mubr.msk.bf16.mxu1 %vm550_vm3, %v18726_v22  ;;  %v6701_v22 = vpack.c.bf16 %v6655_v45, %v6654_v7  ;;  %v6675_v7 = vld [vmem:[#allocation3 + $0x112] sm:$0xff]  ;;  %v6677_v45 = vld [vmem:[#allocation3 + $0x122] sm:$0xff] }
 0x50c   : > { %12770 = vmatmul.mubr.msk.bf16.gmra.mrb[152].mxu1 %vm550_vm3, %v18727_v30  ;;  %v6702_v30 = vpack.c.bf16 %v6657_v35, %v6656_v59  ;;  %v6674_v59 = vld [vmem:[#allocation3 + $0x10a] sm:$0xff] }
 0x50d   : > { %12773 = vmatprep.mubr.msk.bf16.mxu1 %vm550_vm3, %v18728_v38  ;;  %v6659_v38 = vld [vmem:[#allocation3 + $0x92] sm:$0xff]  ;;  %v6711_v35 = vpack.c.bf16 %v6675_v7, %v6674_v59 }
 0x50e   : > { %v6695_v59 = vld [vmem:[#allocation3 + $0x1b2] sm:$0xff] }
 0x514   : > { %12774 = vmatmul.mubr.msk.bf16.gmra.mrb[156].mxu1 %vm550_vm3, %v18729_v1  ;;  %v6660_v1 = vld [vmem:[#allocation3 + $0x9a] sm:$0xff] }
 0x515   : > { %12777 = vmatprep.mubr.msk.bf16.mxu1 %vm550_vm3, %v18730_v32  ;;  %v6661_v32 = vld [vmem:[#allocation3 + $0xa2] sm:$0xff] }
 0x51c   : > { %12778 = vmatmul.mubr.msk.bf16.gmra.mrb[160].mxu1 %vm550_vm3, %v18731_v8 }
 0x51d   : > { %12781 = vmatprep.mubr.msk.bf16.mxu1 %vm550_vm3, %v18732_v43  ;;  %v6704_v43 = vpack.c.bf16 %v6661_v32, %v6660_v1  ;;  %v6678_v1 = vld [vmem:[#allocation3 + $0x12a] sm:$0xff] }
 0x524   : > { %12782 = vmatmul.mubr.msk.bf16.gmra.mrb[112].mxu1 %vm550_vm3, %v6255_v52  ;;  %v6665_v52 = vld [vmem:[#allocation3 + $0xc2] sm:$0xff] }
 0x525   : > { %12789 = vmatprep.mubr.msk.bf16.mxu1 %vm550_vm3, %v6696_v13  ;;  %v6705_v13 = vpack.c.bf16 %v6663_v27, %v6662_v0  ;;  %v6706_v58 = vpack.c.bf16 %v6665_v52, %v6664_v41  ;;  %v6683_v0 = vld [vmem:[#allocation3 + $0x152] sm:$0xff]  ;;  %v6685_v27 = vld [vmem:[#allocation3 + $0x162] sm:$0xff]  ;;  %v6682_v41 = vld [vmem:[#allocation3 + $0x14a] sm:$0xff] }
 0x526   : > { %v6715_v52 = vpack.c.bf16 %v6683_v0, %v6682_v41  ;;  %v7117_v41 = vld [vmem:[#allocation3 + $0x53] sm:$0xff] }
 0x52c   : > { %12790 = vmatmul.mubr.msk.bf16.vlgmr.msra.gmra.mrb[116].mxu1 %vm550_vm3, %v6697_v18  ;;  %v6707_v18 = vpack.c.bf16 %v6667_v3, %v6666_v16  ;;  %v18733_v16 = vmov 0.0   ;;  %v6687_v3 = vld [vmem:[#allocation3 + $0x172] sm:$0xff] }
 0x52d   : > { %12793 = vmatprep.mubr.msk.bf16.mxu1 %vm550_vm3, %v6698_v50  ;;  %12842 = vmatpush3.bf16.msra.mxu1 %v14009_v54  ;;  %v6658_v54 = vld [vmem:[#allocation3 + $0x8a] sm:$0xff]  ;;  %559 = vst.msk [vmem:[#allocation4 + $0x1a0] sm:$0xff] %vm558_vm4, %v18733_v16  ;;  %560 = vst.msk [vmem:[#allocation4 + $0x1a8] sm:$0xff] %vm558_vm4, %v18733_v16 }
 0x52e   : > { %12843 = vmatprep.subr.bf16.mxu1 %v14010_v57  ;;  %v6703_v8 = vpack.c.bf16 %v6659_v38, %v6658_v54  ;;  %v6679_v54 = vld [vmem:[#allocation3 + $0x132] sm:$0xff]  ;;  %v6681_v38 = vld [vmem:[#allocation3 + $0x142] sm:$0xff]  ;;  %561 = vst.msk [vmem:[#allocation5] sm:$0xff] %vm558_vm4, %v18733_v16  ;;  %562 = vst.msk [vmem:[#allocation5 + $0xa8] sm:$0xff] %vm558_vm4, %v18733_v16  ;;  %12911 = vmatprep.mubr.msk.bf16.mxu0 %vm14127_vm5, %v18733_v16 }
 0x52f   : > { %v6713_v32 = vpack.c.bf16 %v6679_v54, %v6678_v1  ;;  %v7113_v1 = vld [vmem:[#allocation3 + $0x33] sm:$0xff] }
 0x531   : > { %12844 = vmatpush3.bf16.msra.mxu1 %v14010_v57  ;;  %v6668_v57 = vld [vmem:[#allocation3 + $0xda] sm:$0xff] }
 0x532   : > { %v6708_v50 = vpack.c.bf16 %v6669_v61, %v6668_v57  ;;  %v6689_v61 = vld [vmem:[#allocation3 + $0x182] sm:$0xff] }
 0x534   : > { %12794 = vmatmul.mubr.msk.bf16.gmra.mrb[120].mxu1 %vm550_vm3, %v6699_v10  ;;  %v6672_v10 = vld [vmem:[#allocation3 + $0xfa] sm:$0xff] }
 0x535   : > { %12797 = vmatprep.mubr.msk.bf16.mxu1 %vm550_vm3, %v6700_v51  ;;  %v6710_v51 = vpack.c.bf16 %v6673_v42, %v6672_v10  ;;  %v6691_v42 = vld [vmem:[#allocation3 + $0x192] sm:$0xff] }
 0x53c   : > { %12798 = vmatmul.mubr.msk.bf16.gmra.mrb[124].mxu1 %vm550_vm3, %v6701_v22  ;;  %v6676_v22 = vld [vmem:[#allocation3 + $0x11a] sm:$0xff] }
 0x53d   : > { %12801 = vmatprep.mubr.msk.bf16.mxu1 %vm550_vm3, %v6702_v30  ;;  %v6712_v30 = vpack.c.bf16 %v6677_v45, %v6676_v22  ;;  %v6694_v45 = vld [vmem:[#allocation3 + $0x1aa] sm:$0xff] }
 0x53e   : > { %v7111_v22 = vld [vmem:[#allocation3 + $0x23] sm:$0xff] }
 0x544   : > { %12802 = vmatmul.mubr.msk.bf16.gmra.mrb[128].mxu1 %vm550_vm3, %v6703_v8  ;;  %v6680_v8 = vld [vmem:[#allocation3 + $0x13a] sm:$0xff] }
 0x545   : > { %12805 = vmatprep.mubr.msk.bf16.mxu1 %vm550_vm3, %v6704_v43  ;;  %v6714_v43 = vpack.c.bf16 %v6681_v38, %v6680_v8  ;;  %v7112_v38 = vld [vmem:[#allocation3 + $0x2b] sm:$0xff]  ;;  %v7115_v8 = vld [vmem:[#allocation3 + $0x43] sm:$0xff] }
 0x54c   : > { %12806 = vmatmul.mubr.msk.bf16.gmra.mrb[132].mxu1 %vm550_vm3, %v6705_v13  ;;  %v6684_v13 = vld [vmem:[#allocation3 + $0x15a] sm:$0xff] }
 0x54d   : > { %12809 = vmatprep.mubr.msk.bf16.mxu1 %vm550_vm3, %v6706_v58  ;;  %v6716_v58 = vpack.c.bf16 %v6685_v27, %v6684_v13  ;;  %v7116_v27 = vld [vmem:[#allocation3 + $0x4b] sm:$0xff]  ;;  %v7119_v13 = vld [vmem:[#allocation3 + $0x63] sm:$0xff] }
 0x554   : > { %12810 = vmatmul.mubr.msk.bf16.gmra.mrb[136].mxu1 %vm550_vm3, %v6707_v18  ;;  %v6686_v18 = vld [vmem:[#allocation3 + $0x16a] sm:$0xff] }
 0x555   : > { %12813 = vmatprep.mubr.msk.bf16.mxu1 %vm550_vm3, %v6708_v50  ;;  %v6717_v57 = vpack.c.bf16 %v6687_v3, %v6686_v18  ;;  %v6688_v50 = vld [vmem:[#allocation3 + $0x17a] sm:$0xff] }
 0x556   : > { %v6718_v14 = vpack.c.bf16 %v6689_v61, %v6688_v50  ;;  %v7120_v61 = vld [vmem:[#allocation3 + $0x6b] sm:$0xff]  ;;  %v7121_v18 = vld [vmem:[#allocation3 + $0x73] sm:$0xff]  ;;  %v7123_v50 = vld [vmem:[#allocation3 + $0x83] sm:$0xff] }
 0x55c   : > { %12814 = vmatmul.mubr.msk.bf16.gmra.mrb[140].mxu1 %vm550_vm3, %v6709_v24  ;;  %v6690_v24 = vld [vmem:[#allocation3 + $0x18a] sm:$0xff] }
 0x55d   : > { %12817 = vmatprep.mubr.msk.bf16.mxu1 %vm550_vm3, %v6710_v51  ;;  %v6719_v10 = vpack.c.bf16 %v6691_v42, %v6690_v24  ;;  %v6692_v51 = vld [vmem:[#allocation3 + $0x19a] sm:$0xff] }
 0x55e   : > { %v6720_v7 = vpack.c.bf16 %v6693_v20, %v6692_v51  ;;  %v7124_v20 = vld [vmem:[#allocation3 + $0x8b] sm:$0xff]  ;;  %v7125_v24 = vld [vmem:[#allocation3 + $0x93] sm:$0xff]  ;;  %v7127_v51 = vld [vmem:[#allocation3 + $0xa3] sm:$0xff] }
 0x564   : > { %12818 = vmatmul.mubr.msk.bf16.gmra.mrb[144].mxu1 %vm550_vm3, %v6711_v35  ;;  %v7110_v35 = vld [vmem:[#allocation3 + $0x1b] sm:$0xff] }
 0x565   : > { %12821 = vmatprep.mubr.msk.bf16.mxu1 %vm550_vm3, %v6712_v30  ;;  %v6721_v30 = vpack.c.bf16 %v6695_v59, %v6694_v45  ;;  %v7162_v54 = vpack.c.bf16 %v7111_v22, %v7110_v35  ;;  %v7128_v59 = vld [vmem:[#allocation3 + $0xab] sm:$0xff]  ;;  %v7129_v35 = vld [vmem:[#allocation3 + $0xb3] sm:$0xff]  ;;  %v7130_v22 = vld [vmem:[#allocation3 + $0xbb] sm:$0xff] }
 0x56c   : > { %12822 = vmatmul.mubr.msk.bf16.gmra.mrb[148].mxu1 %vm550_vm3, %v6713_v32  ;;  %v7114_v32 = vld [vmem:[#allocation3 + $0x3b] sm:$0xff] }
 0x56d   : > { %12825 = vmatprep.mubr.msk.bf16.mxu1 %vm550_vm3, %v6714_v43  ;;  %v7163_v43 = vpack.c.bf16 %v7113_v1, %v7112_v38  ;;  %v7164_v0 = vpack.c.bf16 %v7115_v8, %v7114_v32  ;;  %v7132_v1 = vld [vmem:[#allocation3 + $0xcb] sm:$0xff]  ;;  %v7133_v32 = vld [vmem:[#allocation3 + $0xd3] sm:$0xff]  ;;  %v7135_v8 = vld [vmem:[#allocation3 + $0xe3] sm:$0xff] }
 0x574   : > { %12826 = vmatmul.mubr.msk.bf16.gmra.mrb[152].mxu1 %vm550_vm3, %v6715_v52  ;;  %v7118_v52 = vld [vmem:[#allocation3 + $0x5b] sm:$0xff] }
 0x575   : > { %12829 = vmatprep.mubr.msk.bf16.mxu1 %vm550_vm3, %v6716_v58  ;;  %v7165_v58 = vpack.c.bf16 %v7117_v41, %v7116_v27  ;;  %v7166_v3 = vpack.c.bf16 %v7119_v13, %v7118_v52  ;;  %v7137_v41 = vld [vmem:[#allocation3 + $0xf3] sm:$0xff]  ;;  %v7139_v52 = vld [vmem:[#allocation3 + $0x103] sm:$0xff]  ;;  %v7136_v13 = vld [vmem:[#allocation3 + $0xeb] sm:$0xff] }
 0x57c   : > { %12830 = vmatmul.mubr.msk.bf16.gmra.mrb[156].mxu1 %vm550_vm3, %v6717_v57  ;;  %v7122_v57 = vld [vmem:[#allocation3 + $0x7b] sm:$0xff] }
 0x57d   : > { %12833 = vmatprep.mubr.msk.bf16.mxu1 %vm550_vm3, %v6718_v14  ;;  %v7167_v14 = vpack.c.bf16 %v7121_v18, %v7120_v61  ;;  %v7168_v42 = vpack.c.bf16 %v7123_v50, %v7122_v57  ;;  %v7141_v18 = vld [vmem:[#allocation3 + $0x113] sm:$0xff]  ;;  %v7143_v57 = vld [vmem:[#allocation3 + $0x123] sm:$0xff]  ;;  %v7140_v50 = vld [vmem:[#allocation3 + $0x10b] sm:$0xff] }
 0x584   : > { %12834 = vmatmul.mubr.msk.bf16.gmra.mrb[160].mxu1 %vm550_vm3, %v6719_v10  ;;  %v7126_v10 = vld [vmem:[#allocation3 + $0x9b] sm:$0xff] }
 0x585   : > { %12837 = vmatprep.mubr.msk.bf16.mxu1 %vm550_vm3, %v6720_v7  ;;  %v7169_v7 = vpack.c.bf16 %v7125_v24, %v7124_v20  ;;  %v7170_v45 = vpack.c.bf16 %v7127_v51, %v7126_v10  ;;  %v7145_v24 = vld [vmem:[#allocation3 + $0x133] sm:$0xff]  ;;  %v7147_v10 = vld [vmem:[#allocation3 + $0x143] sm:$0xff]  ;;  %v7144_v51 = vld [vmem:[#allocation3 + $0x12b] sm:$0xff] }
 0x58c   : > { %12838 = vmatmul.mubr.msk.bf16.gmra.mrb[112].mxu1 %vm550_vm3, %v6721_v30  ;;  %v7131_v30 = vld [vmem:[#allocation3 + $0xc3] sm:$0xff] }
 0x58d   : > { %12845 = vmatprep.mubr.msk.bf16.mxu1 %vm550_vm3, %v7162_v54  ;;  %v7171_v54 = vpack.c.bf16 %v7129_v35, %v7128_v59  ;;  %v7172_v38 = vpack.c.bf16 %v7131_v30, %v7130_v22  ;;  %v7149_v35 = vld [vmem:[#allocation3 + $0x153] sm:$0xff]  ;;  %v7151_v22 = vld [vmem:[#allocation3 + $0x163] sm:$0xff]  ;;  %v7148_v30 = vld [vmem:[#allocation3 + $0x14b] sm:$0xff] }
 0x594   : > { %12846 = vmatmul.mubr.msk.bf16.vlgmr.msra.gmra.mrb[116].mxu1 %vm550_vm3, %v7163_v43  ;;  %v7173_v43 = vpack.c.bf16 %v7133_v32, %v7132_v1  ;;  %v7153_v32 = vld [vmem:[#allocation3 + $0x173] sm:$0xff] }
 0x595   : > { %12849 = vmatprep.mubr.msk.bf16.mxu1 %vm550_vm3, %v7164_v0  ;;  %v7134_v0 = vld [vmem:[#allocation3 + $0xdb] sm:$0xff] }
 0x596   : > { %v7174_v27 = vpack.c.bf16 %v7135_v8, %v7134_v0  ;;  %v7155_v8 = vld [vmem:[#allocation3 + $0x183] sm:$0xff] }
 0x59c   : > { %12850 = vmatmul.mubr.msk.bf16.gmra.mrb[120].mxu1 %vm550_vm3, %v7165_v58  ;;  %v7175_v58 = vpack.c.bf16 %v7137_v41, %v7136_v13  ;;  %v7159_v13 = vld [vmem:[#allocation3 + $0x1a3] sm:$0xff] }
 0x59d   : > { %12853 = vmatprep.mubr.msk.bf16.mxu1 %vm550_vm3, %v7166_v3  ;;  %v7138_v3 = vld [vmem:[#allocation3 + $0xfb] sm:$0xff] }
 0x59e   : > { %v7176_v61 = vpack.c.bf16 %v7139_v52, %v7138_v3  ;;  %v7157_v52 = vld [vmem:[#allocation3 + $0x193] sm:$0xff] }
 0x5a4   : > { %12854 = vmatmul.mubr.msk.bf16.gmra.mrb[124].mxu1 %vm550_vm3, %v7167_v14  ;;  %v7177_v14 = vpack.c.bf16 %v7141_v18, %v7140_v50  ;;  %v7161_v50 = vld [vmem:[#allocation3 + $0x1b3] sm:$0xff] }
 0x5a5   : > { %12857 = vmatprep.mubr.msk.bf16.mxu1 %vm550_vm3, %v7168_v42  ;;  %v7142_v42 = vld [vmem:[#allocation3 + $0x11b] sm:$0xff] }
 0x5a6   : > { %v7178_v20 = vpack.c.bf16 %v7143_v57, %v7142_v42  ;;  %v7160_v57 = vld [vmem:[#allocation3 + $0x1ab] sm:$0xff] }
 0x5ac   : > { %12858 = vmatmul.mubr.msk.bf16.gmra.mrb[128].mxu1 %vm550_vm3, %v7169_v7  ;;  %v7179_v7 = vpack.c.bf16 %v7145_v24, %v7144_v51  ;;  %v17144_v51 = vld [vmem:[%s18419_s6] ss:$0 sm:$0xff] }
 0x5ad   : > { %12861 = vmatprep.mubr.msk.bf16.mxu1 %vm550_vm3, %v7170_v45  ;;  %v7146_v45 = vld [vmem:[#allocation3 + $0x13b] sm:$0xff] }
 0x5ae   : > { %v7180_v59 = vpack.c.bf16 %v7147_v10, %v7146_v45 }
 0x5b4   : > { %12862 = vmatmul.mubr.msk.bf16.gmra.mrb[132].mxu1 %vm550_vm3, %v7171_v54  ;;  %v7181_v54 = vpack.c.bf16 %v7149_v35, %v7148_v30 }
 0x5b5   : > { %12865 = vmatprep.mubr.msk.bf16.mxu1 %vm550_vm3, %v7172_v38  ;;  %v7150_v38 = vld [vmem:[#allocation3 + $0x15b] sm:$0xff] }
 0x5b6   : > { %v7182_v1 = vpack.c.bf16 %v7151_v22, %v7150_v38 }
 0x5bc   : > { %12866 = vmatmul.mubr.msk.bf16.gmra.mrb[136].mxu1 %vm550_vm3, %v7173_v43  ;;  %v7152_v43 = vld [vmem:[#allocation3 + $0x16b] sm:$0xff] }
 0x5bd   : > { %12869 = vmatprep.mubr.msk.bf16.mxu1 %vm550_vm3, %v7174_v27  ;;  %v7183_v0 = vpack.c.bf16 %v7153_v32, %v7152_v43  ;;  %v7154_v27 = vld [vmem:[#allocation3 + $0x17b] sm:$0xff] }
 0x5be   : > { %v7184_v41 = vpack.c.bf16 %v7155_v8, %v7154_v27 }
 0x5c4   : > { %12870 = vmatmul.mubr.msk.bf16.gmra.mrb[140].mxu1 %vm550_vm3, %v7175_v58  ;;  %v7156_v58 = vld [vmem:[#allocation3 + $0x18b] sm:$0xff] }
 0x5c5   : > { %12873 = vmatprep.mubr.msk.bf16.mxu1 %vm550_vm3, %v7176_v61  ;;  %v7185_v3 = vpack.c.bf16 %v7157_v52, %v7156_v58  ;;  %v7158_v61 = vld [vmem:[#allocation3 + $0x19b] sm:$0xff] }
 0x5c6   : > { %v7186_v18 = vpack.c.bf16 %v7159_v13, %v7158_v61 }
 0x5cc   : > { %12874 = vmatmul.mubr.msk.bf16.gmra.mrb[144].mxu1 %vm550_vm3, %v7177_v14  ;;  %v7187_v14 = vpack.c.bf16 %v7161_v50, %v7160_v57 }
 0x5cd   : > { %12877 = vmatprep.mubr.msk.bf16.mxu1 %vm550_vm3, %v7178_v20  ;;  %v17138_v20 = vld [vmem:[%s18418_s5] ss:$0 sm:$0xff] }
 0x5d4   : > { %12878 = vmatmul.mubr.msk.bf16.gmra.mrb[148].mxu1 %vm550_vm3, %v7179_v7 }
 0x5d5   : > { %12881 = vmatprep.mubr.msk.bf16.mxu1 %vm550_vm3, %v7180_v59 }
 0x5dc   : > { %12882 = vmatmul.mubr.msk.bf16.gmra.mrb[152].mxu1 %vm550_vm3, %v7181_v54 }
 0x5dd   : > { %12885 = vmatprep.mubr.msk.bf16.mxu1 %vm550_vm3, %v7182_v1 }
 0x5e4   : > { %12886 = vmatmul.mubr.msk.bf16.gmra.mrb[156].mxu1 %vm550_vm3, %v7183_v0 }
 0x5e5   : > { %12889 = vmatprep.mubr.msk.bf16.mxu1 %vm550_vm3, %v7184_v41 }
 0x5ec   : > { %12890 = vmatmul.mubr.msk.bf16.gmra.mrb[160].mxu1 %vm550_vm3, %v7185_v3 }
 0x5ed   : > { %12893 = vmatprep.mubr.msk.bf16.mxu1 %vm550_vm3, %v7186_v18 }
 0x5f4   : > { %12894 = vmatmul.mubr.msk.bf16.gmra.mrb[112].mxu1 %vm550_vm3, %v7187_v14 }
 0x667   : > { %v12847_v42 = vpop.f32.mrb[116].mxu1 }
 0x668   : > { %v13319_v24 = vadd.f32 %v12847_v42, %v16791_v34  ;;  %v7317_v10 = vpop.f32.mrb[117].mxu1 }
 0x669   : > { %v13320_v7 = vadd.f32 %v7317_v10, %v16793_v40  ;;  %v12848_v45 = vpop.f32.mrb[118].mxu1 }
 0x66a   : > { %v7585_v59 = vmul.f32 %v13319_v24, %v17138_v20  ;;  %v13321_v35 = vadd.f32 %v12848_v45, %v16795_v46  ;;  %v7320_v22 = vpop.f32.mrb[119].mxu1 }
 0x66b   : > { %v7583_v30 = vmul.f32 %v13320_v7, %v17138_v20  ;;  %v13322_v54 = vadd.f32 %v7320_v22, %v16797_v48 }
 0x66c   : > { %v17152_v34 = vadd.f32 %v17144_v51, %v7585_v59  ;;  %v7586_v38 = vmul.f32 %v13321_v35, %v17138_v20 }
 0x66d   : > { %v7642_v1 = vadd.f32 %v17144_v51, %v7583_v30  ;;  %v7584_v32 = vmul.f32 %v13322_v54, %v17138_v20 }
 0x66e   : > { %v7696_v40 = vmax.f32 %v17152_v34, 0.0  ;;  %v17159_v8 = vadd.f32 %v17144_v51, %v7586_v38 }
 0x66f   : > { %v7694_v46 = vmax.f32 %v7642_v1, 0.0  ;;  %v7643_v43 = vadd.f32 %v17144_v51, %v7584_v32  ;;  %v12851_v0 = vpop.f32.mrb[120].mxu1 }
 0x670   : > { %7748 = vst.msk [vmem:[#allocation4 + $0x10] sm:$0xff] %vm558_vm4, %v7696_v40  ;;  %v7697_v48 = vmax.f32 %v17159_v8, 0.0  ;;  %v13323_v27 = vadd.f32 %v12851_v0, %v16801_v44  ;;  %v7333_v41 = vpop.f32.mrb[121].mxu1 }
 0x671   : > { %7746 = vst.msk [vmem:[#allocation4] sm:$0xff] %vm558_vm4, %v7694_v46  ;;  %v7695_v52 = vmax.f32 %v7643_v43, 0.0  ;;  %v13324_v13 = vadd.f32 %v7333_v41, %v16803_v6  ;;  %v12852_v58 = vpop.f32.mrb[122].mxu1 }
 0x672   : > { %7749 = vst.msk [vmem:[#allocation4 + $0x18] sm:$0xff] %vm558_vm4, %v7697_v48  ;;  %v7589_v3 = vmul.f32 %v13323_v27, %v17138_v20  ;;  %v13325_v61 = vadd.f32 %v12852_v58, %v16805_v11  ;;  %v7336_v18 = vpop.f32.mrb[123].mxu1 }
 0x673   : > { %7747 = vst.msk [vmem:[#allocation4 + $0x8] sm:$0xff] %vm558_vm4, %v7695_v52  ;;  %v7587_v44 = vmul.f32 %v13324_v13, %v17138_v20  ;;  %v13326_v57 = vadd.f32 %v7336_v18, %v16807_v62 }
 0x674   : > { %v17178_v50 = vadd.f32 %v17144_v51, %v7589_v3  ;;  %v7590_v6 = vmul.f32 %v13325_v61, %v17138_v20 }
 0x675   : > { %v17182_v14 = vadd.f32 %v17144_v51, %v7587_v44  ;;  %v7588_v42 = vmul.f32 %v13326_v57, %v17138_v20 }
 0x676   : > { %v7700_v24 = vmax.f32 %v17178_v50, 0.0  ;;  %v17187_v11 = vadd.f32 %v17144_v51, %v7590_v6 }
 0x677   : > { %v7698_v10 = vmax.f32 %v17182_v14, 0.0  ;;  %v17191_v7 = vadd.f32 %v17144_v51, %v7588_v42  ;;  %v12855_v62 = vpop.f32.mrb[124].mxu1 }
 0x678   : > { %7752 = vst.msk [vmem:[#allocation4 + $0x30] sm:$0xff] %vm558_vm4, %v7700_v24  ;;  %v7701_v45 = vmax.f32 %v17187_v11, 0.0  ;;  %v13327_v59 = vadd.f32 %v12855_v62, %v16811_v28  ;;  %v7349_v35 = vpop.f32.mrb[125].mxu1 }
 0x679   : > { %v7903_v22 = vld [vmem:[#allocation4 + $0x12] sm:$0xff]  ;;  %7750 = vst.msk [vmem:[#allocation4 + $0x20] sm:$0xff] %vm558_vm4, %v7698_v10  ;;  %v7699_v54 = vmax.f32 %v17191_v7, 0.0  ;;  %v13328_v38 = vadd.f32 %v7349_v35, %v16813_v2  ;;  %v12856_v1 = vpop.f32.mrb[126].mxu1 }
 0x67a   : > { %v7955_v30 = vld [vmem:[#allocation4 + $0x13] sm:$0xff]  ;;  %v7799_v32 = vld [vmem:[#allocation4 + $0x9] sm:$0xff]  ;;  %7753 = vst.msk [vmem:[#allocation4 + $0x38] sm:$0xff] %vm558_vm4, %v7701_v45  ;;  %v7593_v28 = vmul.f32 %v13327_v59, %v17138_v20  ;;  %v13329_v0 = vadd.f32 %v12856_v1, %v16815_v39  ;;  %v7352_v27 = vpop.f32.mrb[127].mxu1  ;;  %v7798_v41 = vld [vmem:[#allocation4 + $0x1] sm:$0xff] }
 0x67b   : > { %v8007_v43 = vmax.f32 %v7903_v22, %v7955_v30  ;;  %v7902_v13 = vld [vmem:[#allocation4 + $0xa] sm:$0xff]  ;;  %v7851_v58 = vmax.f32 %v7695_v52, %v7799_v32  ;;  %7751 = vst.msk [vmem:[#allocation4 + $0x28] sm:$0xff] %vm558_vm4, %v7699_v54  ;;  %v7591_v3 = vmul.f32 %v13328_v38, %v17138_v20  ;;  %v13330_v2 = vadd.f32 %v7352_v27, %v16817_v26 }
 0x67c   : > { %v7850_v61 = vmax.f32 %v7694_v46, %v7798_v41  ;;  %v7954_v18 = vld [vmem:[#allocation4 + $0xb] sm:$0xff]  ;;  %v17212_v44 = vadd.f32 %v17144_v51, %v7593_v28  ;;  %v7594_v57 = vmul.f32 %v13329_v0, %v17138_v20 }
 0x67d   : > { %v8006_v6 = vmax.f32 %v7902_v13, %v7954_v18  ;;  %v8059_v42 = vmax.f32 %v7851_v58, %v8007_v43  ;;  %v17216_v39 = vadd.f32 %v17144_v51, %v7591_v3  ;;  %v7592_v52 = vmul.f32 %v13330_v2, %v17138_v20  ;;  %v7800_v46 = vld [vmem:[#allocation4 + $0x11] sm:$0xff] }
 0x67e   : > { %v7704_v7 = vmax.f32 %v17212_v44, 0.0  ;;  %v17221_v62 = vadd.f32 %v17144_v51, %v7594_v57  ;;  %v7852_v2 = vmax.f32 %v7696_v40, %v7800_v46 }
 0x67f   : > { %v8058_v26 = vmax.f32 %v7850_v61, %v8006_v6  ;;  %v7702_v59 = vmax.f32 %v17216_v39, 0.0  ;;  %v17225_v35 = vadd.f32 %v17144_v51, %v7592_v52  ;;  %v12859_v22 = vpop.f32.mrb[128].mxu1 }
 0x680   : > { %7756 = vst.msk [vmem:[#allocation4 + $0x50] sm:$0xff] %vm558_vm4, %v7704_v7  ;;  %v7705_v30 = vmax.f32 %v17221_v62, 0.0  ;;  %v13331_v38 = vadd.f32 %v12859_v22, %v16821_v21  ;;  %v7365_v1 = vpop.f32.mrb[129].mxu1  ;;  %v7801_v43 = vld [vmem:[#allocation4 + $0x19] sm:$0xff] }
 0x681   : > { %v8110_v32 = vpack.c.bf16 %v8059_v42, %v8058_v26  ;;  %v7904_v28 = vld [vmem:[#allocation4 + $0x1a] sm:$0xff]  ;;  %v7907_v27 = vld [vmem:[#allocation4 + $0x32] sm:$0xff]  ;;  %7754 = vst.msk [vmem:[#allocation4 + $0x40] sm:$0xff] %vm558_vm4, %v7702_v59  ;;  %v7703_v13 = vmax.f32 %v17225_v35, 0.0  ;;  %v13332_v58 = vadd.f32 %v7365_v1, %v16823_v29  ;;  %v12860_v3 = vpop.f32.mrb[130].mxu1  ;;  %v7853_v29 = vmax.f32 %v7697_v48, %v7801_v43 }
 0x682   : > { %v7956_v0 = vld [vmem:[#allocation4 + $0x1b] sm:$0xff]  ;;  %v7959_v41 = vld [vmem:[#allocation4 + $0x33] sm:$0xff]  ;;  %v7803_v61 = vld [vmem:[#allocation4 + $0x29] sm:$0xff]  ;;  %7757 = vst.msk [vmem:[#allocation4 + $0x58] sm:$0xff] %vm558_vm4, %v7705_v30  ;;  %v7597_v57 = vmul.f32 %v13331_v38, %v17138_v20  ;;  %v13333_v6 = vadd.f32 %v12860_v3, %v16825_v5  ;;  %v7368_v42 = vpop.f32.mrb[131].mxu1 }
 0x683   : > { %v8008_v21 = vmax.f32 %v7904_v28, %v7956_v0  ;;  %v8011_v18 = vmax.f32 %v7907_v27, %v7959_v41  ;;  %12898 = vmatpush3.bf16.msra.mxu0 %v8110_v32  ;;  %v7905_v52 = vld [vmem:[#allocation4 + $0x22] sm:$0xff]  ;;  %v7855_v34 = vmax.f32 %v7699_v54, %v7803_v61  ;;  %7755 = vst.msk [vmem:[#allocation4 + $0x48] sm:$0xff] %vm558_vm4, %v7703_v13  ;;  %v7906_v38 = vld [vmem:[#allocation4 + $0x2a] sm:$0xff] }
 0x684   : > { %v7957_v26 = vld [vmem:[#allocation4 + $0x23] sm:$0xff]  ;;  %v7595_v40 = vmul.f32 %v13332_v58, %v17138_v20  ;;  %v13334_v46 = vadd.f32 %v7368_v42, %v16827_v47  ;;  %12899 = vmatprep.subr.bf16.mxu0 %v18733_v16  ;;  %v7958_v1 = vld [vmem:[#allocation4 + $0x2b] sm:$0xff]  ;;  %v17253_v8 = vadd.f32 %v17144_v51, %v7597_v57  ;;  %v7598_v48 = vmul.f32 %v13333_v6, %v17138_v20 }
 0x685   : > { %v8009_v22 = vmax.f32 %v7905_v52, %v7957_v26  ;;  %v7802_v5 = vld [vmem:[#allocation4 + $0x21] sm:$0xff]  ;;  %v8060_v47 = vmax.f32 %v7852_v2, %v8008_v21  ;;  %v7804_v0 = vld [vmem:[#allocation4 + $0x31] sm:$0xff]  ;;  %v8063_v27 = vmax.f32 %v7855_v34, %v8011_v18  ;;  %v8010_v3 = vmax.f32 %v7906_v38, %v7958_v1 }
 0x686   : > { %v7854_v54 = vmax.f32 %v7698_v10, %v7802_v5  ;;  %v17259_v32 = vadd.f32 %v17144_v51, %v7595_v40  ;;  %v7596_v43 = vmul.f32 %v13334_v46, %v17138_v20  ;;  %v7708_v41 = vmax.f32 %v17253_v8, 0.0 }
 0x687   : > { %v8061_v28 = vmax.f32 %v7853_v29, %v8009_v22  ;;  %v17264_v58 = vadd.f32 %v17144_v51, %v7598_v48  ;;  %v12863_v10 = vpop.f32.mrb[132].mxu1  ;;  %v7856_v29 = vmax.f32 %v7700_v24, %v7804_v0 }
 0x688   : > { %v7706_v61 = vmax.f32 %v17259_v32, 0.0  ;;  %v17268_v14 = vadd.f32 %v17144_v51, %v7596_v43  ;;  %7760 = vst.msk [vmem:[#allocation4 + $0x70] sm:$0xff] %vm558_vm4, %v7708_v41  ;;  %v13335_v21 = vadd.f32 %v12863_v10, %v16836_v53  ;;  %v7381_v18 = vpop.f32.mrb[133].mxu1  ;;  %v8062_v6 = vmax.f32 %v7854_v54, %v8010_v3  ;;  %v7805_v42 = vld [vmem:[#allocation4 + $0x39] sm:$0xff] }
 0x689   : > { %v8111_v57 = vpack.c.bf16 %v8061_v28, %v8060_v47  ;;  %v7709_v2 = vmax.f32 %v17264_v58, 0.0  ;;  %v7908_v52 = vld [vmem:[#allocation4 + $0x3a] sm:$0xff]  ;;  %v7911_v34 = vld [vmem:[#allocation4 + $0x52] sm:$0xff]  ;;  %v13336_v22 = vadd.f32 %v7381_v18, %v16839_v9  ;;  %v12864_v5 = vpop.f32.mrb[134].mxu1  ;;  %v7857_v53 = vmax.f32 %v7701_v45, %v7805_v42 }
 0x68a   : > { %v7960_v26 = vld [vmem:[#allocation4 + $0x3b] sm:$0xff]  ;;  %v7963_v40 = vld [vmem:[#allocation4 + $0x53] sm:$0xff]  ;;  %7758 = vst.msk [vmem:[#allocation4 + $0x60] sm:$0xff] %vm558_vm4, %v7706_v61  ;;  %v7707_v46 = vmax.f32 %v17268_v14, 0.0  ;;  %v7807_v50 = vld [vmem:[#allocation4 + $0x49] sm:$0xff]  ;;  %v7601_v1 = vmul.f32 %v13335_v21, %v17138_v20  ;;  %v13337_v48 = vadd.f32 %v12864_v5, %v16841_v25  ;;  %v7384_v54 = vpop.f32.mrb[135].mxu1  ;;  %v8112_v9 = vpack.c.bf16 %v8063_v27, %v8062_v6 }
 0x68b   : > { %12900 = vmatpush3.bf16.msra.mxu0 %v8111_v57  ;;  %v8012_v38 = vmax.f32 %v7908_v52, %v7960_v26  ;;  %v8015_v24 = vmax.f32 %v7911_v34, %v7963_v40  ;;  %7761 = vst.msk [vmem:[#allocation4 + $0x78] sm:$0xff] %vm558_vm4, %v7709_v2  ;;  %v7909_v43 = vld [vmem:[#allocation4 + $0x42] sm:$0xff]  ;;  %v7859_v11 = vmax.f32 %v7703_v13, %v7807_v50  ;;  %v7910_v25 = vld [vmem:[#allocation4 + $0x4a] sm:$0xff] }
 0x68c   : > { %12901 = vmatprep.subr.bf16.mxu0 %v18733_v16  ;;  %v7961_v47 = vld [vmem:[#allocation4 + $0x43] sm:$0xff]  ;;  %7759 = vst.msk [vmem:[#allocation4 + $0x68] sm:$0xff] %vm558_vm4, %v7707_v46  ;;  %v7599_v45 = vmul.f32 %v13336_v22, %v17138_v20  ;;  %v13338_v28 = vadd.f32 %v7384_v54, %v16843_v19  ;;  %v7962_v10 = vld [vmem:[#allocation4 + $0x4b] sm:$0xff]  ;;  %v17298_v57 = vadd.f32 %v17144_v51, %v7601_v1 }
 0x68d   : > { %v8013_v0 = vmax.f32 %v7909_v43, %v7961_v47  ;;  %v7806_v3 = vld [vmem:[#allocation4 + $0x41] sm:$0xff]  ;;  %v7602_v27 = vmul.f32 %v13337_v48, %v17138_v20  ;;  %v8064_v18 = vmax.f32 %v7856_v29, %v8012_v38  ;;  %v7808_v6 = vld [vmem:[#allocation4 + $0x51] sm:$0xff]  ;;  %v8067_v42 = vmax.f32 %v7859_v11, %v8015_v24 }
 0x68e   : > { %v7858_v35 = vmax.f32 %v7702_v59, %v7806_v3  ;;  %v17304_v13 = vadd.f32 %v17144_v51, %v7599_v45  ;;  %v7600_v21 = vmul.f32 %v13338_v28, %v17138_v20  ;;  %v7712_v52 = vmax.f32 %v17298_v57, 0.0 }
 0x68f   : > { %12902 = vmatpush3.bf16.msra.mxu0 %v8112_v9  ;;  %v8065_v19 = vmax.f32 %v7857_v53, %v8013_v0  ;;  %v17309_v26 = vadd.f32 %v17144_v51, %v7602_v27  ;;  %v8014_v34 = vmax.f32 %v7910_v25, %v7962_v10  ;;  %v12867_v40 = vpop.f32.mrb[136].mxu1  ;;  %v7860_v24 = vmax.f32 %v7704_v7, %v7808_v6 }
 0x690   : > { %12903 = vmatprep.subr.bf16.mxu0 %v18733_v16  ;;  %v7710_v39 = vmax.f32 %v17304_v13, 0.0  ;;  %v17314_v59 = vadd.f32 %v17144_v51, %v7600_v21  ;;  %7764 = vst.msk [vmem:[#allocation4 + $0x90] sm:$0xff] %vm558_vm4, %v7712_v52  ;;  %v13339_v5 = vadd.f32 %v12867_v40, %v16847_v63  ;;  %v7397_v53 = vpop.f32.mrb[137].mxu1 }
 0x691   : > { %v8113_v22 = vpack.c.bf16 %v8065_v19, %v8064_v18  ;;  %v7713_v29 = vmax.f32 %v17309_v26, 0.0  ;;  %v8066_v38 = vmax.f32 %v7858_v35, %v8014_v34  ;;  %v7809_v50 = vld [vmem:[#allocation4 + $0x59] sm:$0xff]  ;;  %v13340_v9 = vadd.f32 %v7397_v53, %v16849_v17  ;;  %v12868_v43 = vpop.f32.mrb[138].mxu1 }
 0x692   : > { %v7912_v1 = vld [vmem:[#allocation4 + $0x5a] sm:$0xff]  ;;  %7762 = vst.msk [vmem:[#allocation4 + $0x80] sm:$0xff] %vm558_vm4, %v7710_v39  ;;  %v7711_v54 = vmax.f32 %v17314_v59, 0.0  ;;  %v7861_v63 = vmax.f32 %v7705_v30, %v7809_v50  ;;  %v7915_v11 = vld [vmem:[#allocation4 + $0x72] sm:$0xff]  ;;  %v7605_v7 = vmul.f32 %v13339_v5, %v17138_v20  ;;  %v13341_v28 = vadd.f32 %v12868_v43, %v16851_v55  ;;  %v7400_v0 = vpop.f32.mrb[139].mxu1  ;;  %v17400_v59 = vld [vmem:[%s18424_s11] sm:$0xff]  }
 0x693   : > { %v7964_v48 = vld [vmem:[#allocation4 + $0x5b] sm:$0xff]  ;;  %12904 = vmatpush3.bf16.msra.mxu0 %v8113_v22  ;;  %v7967_v45 = vld [vmem:[#allocation4 + $0x73] sm:$0xff]  ;;  %v7811_v44 = vld [vmem:[#allocation4 + $0x69] sm:$0xff]  ;;  %7765 = vst.msk [vmem:[#allocation4 + $0x98] sm:$0xff] %vm558_vm4, %v7713_v29  ;;  %v8114_v17 = vpack.c.bf16 %v8067_v42, %v8066_v38  ;;  %v7603_v10 = vmul.f32 %v13340_v9, %v17138_v20  ;;  %v13342_v27 = vadd.f32 %v7400_v0, %v16853_v4 }
 0x694   : > { %v8016_v47 = vmax.f32 %v7912_v1, %v7964_v48  ;;  %12905 = vmatprep.subr.bf16.mxu0 %v18733_v16  ;;  %v7913_v3 = vld [vmem:[#allocation4 + $0x62] sm:$0xff]  ;;  %v8019_v62 = vmax.f32 %v7915_v11, %v7967_v45  ;;  %v7863_v30 = vmax.f32 %v7707_v46, %v7811_v44  ;;  %7763 = vst.msk [vmem:[#allocation4 + $0x88] sm:$0xff] %vm558_vm4, %v7711_v54  ;;  %v7914_v21 = vld [vmem:[#allocation4 + $0x6a] sm:$0xff] }
 0x695   : > { %v7965_v25 = vld [vmem:[#allocation4 + $0x63] sm:$0xff]  ;;  %v7966_v18 = vld [vmem:[#allocation4 + $0x6b] sm:$0xff]  ;;  %v17344_v19 = vadd.f32 %v17144_v51, %v7605_v7  ;;  %v7606_v6 = vmul.f32 %v13341_v28, %v17138_v20  ;;  %v17350_v46 = vadd.f32 %v17144_v51, %v7603_v10  ;;  %v7604_v34 = vmul.f32 %v13342_v27, %v17138_v20 }
 0x696   : > { %v8017_v35 = vmax.f32 %v7913_v3, %v7965_v25  ;;  %v7810_v55 = vld [vmem:[#allocation4 + $0x61] sm:$0xff]  ;;  %v8068_v42 = vmax.f32 %v7860_v24, %v8016_v47  ;;  %v8018_v40 = vmax.f32 %v7914_v21, %v7966_v18  ;;  %v8071_v53 = vmax.f32 %v7863_v30, %v8019_v62  ;;  %v7812_v38 = vld [vmem:[#allocation4 + $0x71] sm:$0xff] }
 0x697   : > { %v7862_v14 = vmax.f32 %v7706_v61, %v7810_v55  ;;  %12906 = vmatpush3.bf16.msra.mxu0 %v8114_v17  ;;  %v7716_v22 = vmax.f32 %v17344_v19, 0.0  ;;  %v17355_v5 = vadd.f32 %v17144_v51, %v7606_v6  ;;  %v7714_v32 = vmax.f32 %v17350_v46, 0.0  ;;  %v12871_v50 = vpop.f32.mrb[140].mxu1 }
 0x698   : > { %v8069_v4 = vmax.f32 %v7861_v63, %v8017_v35  ;;  %12907 = vmatprep.subr.bf16.mxu0 %v18733_v16  ;;  %v17360_v61 = vadd.f32 %v17144_v51, %v7604_v34  ;;  %v13343_v9 = vadd.f32 %v12871_v50, %v16857_v49  ;;  %v7413_v43 = vpop.f32.mrb[141].mxu1  ;;  %v7864_v49 = vmax.f32 %v7708_v41, %v7812_v38 }
 0x699   : > { %v8070_v1 = vmax.f32 %v7862_v14, %v8018_v40  ;;  %7768 = vst.msk [vmem:[#allocation4 + $0xb0] sm:$0xff] %vm558_vm4, %v7716_v22  ;;  %v7717_v48 = vmax.f32 %v17355_v5, 0.0  ;;  %v7813_v63 = vld [vmem:[#allocation4 + $0x79] sm:$0xff]  ;;  %7766 = vst.msk [vmem:[#allocation4 + $0xa0] sm:$0xff] %vm558_vm4, %v7714_v32  ;;  %v13344_v28 = vadd.f32 %v7413_v43, %v16859_v36  ;;  %v12872_v0 = vpop.f32.mrb[142].mxu1 }
 0x69a   : > { %v8115_v24 = vpack.c.bf16 %v8069_v4, %v8068_v42  ;;  %v7916_v47 = vld [vmem:[#allocation4 + $0x7a] sm:$0xff]  ;;  %v7919_v45 = vld [vmem:[#allocation4 + $0x92] sm:$0xff]  ;;  %v7715_v7 = vmax.f32 %v17360_v61, 0.0  ;;  %v7609_v25 = vmul.f32 %v13343_v9, %v17138_v20  ;;  %v13345_v62 = vadd.f32 %v12872_v0, %v16861_v23  ;;  %v7416_v30 = vpop.f32.mrb[143].mxu1 }
 0x69b   : > { %v7968_v11 = vld [vmem:[#allocation4 + $0x7b] sm:$0xff]  ;;  %v7971_v44 = vld [vmem:[#allocation4 + $0x93] sm:$0xff]  ;;  %v17372_v17 = vpack.c.bf16 %v8071_v53, %v8070_v1  ;;  %v7815_v3 = vld [vmem:[#allocation4 + $0x89] sm:$0xff]  ;;  %7769 = vst.msk [vmem:[#allocation4 + $0xb8] sm:$0xff] %vm558_vm4, %v7717_v48  ;;  %v7865_v36 = vmax.f32 %v7709_v2, %v7813_v63  ;;  %v7607_v55 = vmul.f32 %v13344_v28, %v17138_v20  ;;  %v13346_v23 = vadd.f32 %v7416_v30, %v16863_v37 }
 0x69c   : > { %12908 = vmatpush3.bf16.msra.mxu0 %v8115_v24  ;;  %v7917_v10 = vld [vmem:[#allocation4 + $0x82] sm:$0xff]  ;;  %v8020_v35 = vmax.f32 %v7916_v47, %v7968_v11  ;;  %v7867_v8 = vmax.f32 %v7711_v54, %v7815_v3  ;;  %v8023_v41 = vmax.f32 %v7919_v45, %v7971_v44  ;;  %7767 = vst.msk [vmem:[#allocation4 + $0xa8] sm:$0xff] %vm558_vm4, %v7715_v7  ;;  %v7918_v6 = vld [vmem:[#allocation4 + $0x8a] sm:$0xff] }
 0x69d   : > { %12909 = vmatprep.subr.bf16.mxu0 %v18733_v16  ;;  %v7969_v27 = vld [vmem:[#allocation4 + $0x83] sm:$0xff]  ;;  %v17392_v18 = vadd.f32 %v17144_v51, %v7609_v25  ;;  %v7610_v58 = vmul.f32 %v13345_v62, %v17138_v20  ;;  %v8166_v2 = vsel %vm8164_vm6, %v17372_v17, 0  ;;  %v7970_v42 = vld [vmem:[#allocation4 + $0x8b] sm:$0xff]  ;;  %v17403_v14 = vadd.f32 %v17144_v51, %v7607_v55 }
 0x69e   : > { %v7814_v21 = vld [vmem:[#allocation4 + $0x81] sm:$0xff]  ;;  %v8021_v54 = vmax.f32 %v7917_v10, %v7969_v27  ;;  %v7608_v37 = vmul.f32 %v13346_v23, %v17138_v20  ;;  %v8237_v34 = vrot.slane %v17372_v17, 4  ;;  %v8072_v4 = vmax.f32 %v7864_v49, %v8020_v35  ;;  %v7816_v40 = vld [vmem:[#allocation4 + $0x91] sm:$0xff] }
 0x69f   : > { %v7720_v53 = vmax.f32 %v17392_v18, 0.0  ;;  %v17409_v38 = vadd.f32 %v17144_v51, %v7610_v58  ;;  %v7866_v24 = vmax.f32 %v7710_v39, %v7814_v21  ;;  %v8075_v1 = vmax.f32 %v7867_v8, %v8023_v41  ;;  %v12875_v63 = vpop.f32.mrb[144].mxu1 }
 0x6a0   : > { %12910 = vmatpush3.bf16.msra.mxu0 %v8166_v2  ;;  %v8073_v50 = vmax.f32 %v7865_v36, %v8021_v54  ;;  %v7718_v9 = vmax.f32 %v17403_v14, 0.0  ;;  %v17416_v43 = vadd.f32 %v17144_v51, %v7608_v37  ;;  %v8022_v47 = vmax.f32 %v7918_v6, %v7970_v42  ;;  %v7429_v44 = vpop.f32.mrb[145].mxu1  ;;  %v7817_v39 = vld [vmem:[#allocation4 + $0x99] sm:$0xff] }
 0x6a1   : > { %12923 = vmatprep.subr.bf16.mxu0 %v18733_v16  ;;  %7772 = vst.msk [vmem:[#allocation4 + $0xd0] sm:$0xff] %vm558_vm4, %v7720_v53  ;;  %v7721_v11 = vmax.f32 %v17409_v38, 0.0  ;;  %v13347_v45 = vadd.f32 %v12875_v63, %v16867_v60  ;;  %v7868_v28 = vmax.f32 %v7712_v52, %v7816_v40  ;;  %v7920_v0 = vld [vmem:[#allocation4 + $0x9a] sm:$0xff]  ;;  %v13348_v60 = vadd.f32 %v7429_v44, %v16869_v15  ;;  %v12876_v25 = vpop.f32.mrb[146].mxu1 }
 0x6a2   : > { %v8117_v13 = vpack.c.bf16 %v8073_v50, %v8072_v4  ;;  %v7923_v17 = vld [vmem:[#allocation4 + $0xb2] sm:$0xff]  ;;  %7770 = vst.msk [vmem:[#allocation4 + $0xc0] sm:$0xff] %vm558_vm4, %v7718_v9  ;;  %v7719_v3 = vmax.f32 %v17416_v43, 0.0  ;;  %v8074_v62 = vmax.f32 %v7866_v24, %v8022_v47  ;;  %v7869_v30 = vmax.f32 %v7713_v29, %v7817_v39  ;;  %v7972_v36 = vld [vmem:[#allocation4 + $0x9b] sm:$0xff]  ;;  %v7432_v15 = vpop.f32.mrb[147].mxu1 }
 0x6a3   : > { %12912 = vmatmul.mubr.msk.bf16.vlgmr.msra.gmra.mrb[180].mxu0 %vm8154_vm7, %v17400_v59  ;;  %v7975_v49 = vld [vmem:[#allocation4 + $0xb3] sm:$0xff]  ;;  %v7819_v57 = vld [vmem:[#allocation4 + $0xa9] sm:$0xff]  ;;  %7773 = vst.msk [vmem:[#allocation4 + $0xd8] sm:$0xff] %vm558_vm4, %v7721_v11  ;;  %v7613_v10 = vmul.f32 %v13347_v45, %v17138_v20  ;;  %v13349_v27 = vadd.f32 %v12876_v25, %v16871_v12  ;;  %v7611_v29 = vmul.f32 %v13348_v60, %v17138_v20  ;;  %v7818_v2 = vld [vmem:[#allocation4 + $0xa1] sm:$0xff] }
 0x6a4   : > { %12915 = vmatprep.mubr.msk.bf16.mxu0 %vm14127_vm5, %v18733_v16  ;;  %v8027_v52 = vmax.f32 %v7923_v17, %v7975_v49  ;;  %v8238_v35 = vrot.slane %v8117_v13, 4  ;;  %v7871_v26 = vmax.f32 %v7715_v7, %v7819_v57  ;;  %7771 = vst.msk [vmem:[#allocation4 + $0xc8] sm:$0xff] %vm558_vm4, %v7719_v3  ;;  %v13350_v8 = vadd.f32 %v7432_v15, %v16873_v33  ;;  %v7921_v55 = vld [vmem:[#allocation4 + $0xa2] sm:$0xff]  ;;  %v17456_v7 = vld [vmem:[%s18424_s11 + $0x8] sm:$0xff]   ;;  %v18734_v15 = vld [vmem:[#allocation57_spill] sm:$0xff] }
 0x6a5   : > { %v8118_v41 = vpack.c.bf16 %v8075_v1, %v8074_v62  ;;  %v7973_v23 = vld [vmem:[#allocation4 + $0xa3] sm:$0xff]  ;;  %v17449_v21 = vadd.f32 %v17144_v51, %v7613_v10  ;;  %v7614_v12 = vmul.f32 %v13349_v27, %v17138_v20  ;;  %v8024_v61 = vmax.f32 %v7920_v0, %v7972_v36  ;;  %v7974_v4 = vld [vmem:[#allocation4 + $0xab] sm:$0xff]  ;;  %v17514_v43 = vld [vmem:[%s18424_s11 + $0x10] ss:$0 sps:$4 sm:$0xff]  }
 0x6a6   : > { %v8239_v58 = vsel %vm8164_vm6, %v8237_v34, %v8238_v35  ;;  %v17458_v54 = vmax.f32 %v7871_v26, %v8027_v52  ;;  %v17461_v33 = vadd.f32 %v17144_v51, %v7611_v29  ;;  %v7612_v6 = vmul.f32 %v13350_v8, %v17138_v20  ;;  %v7922_v37 = vld [vmem:[#allocation4 + $0xaa] sm:$0xff] }
 0x6a7   : > { %12924 = vmatpush3.bf16.msra.mxu0 %v8239_v58  ;;  %v8240_v42 = vrot.slane %v8118_v41, 4  ;;  %v7724_v34 = vmax.f32 %v17449_v21, 0.0  ;;  %v17466_v40 = vadd.f32 %v17144_v51, %v7614_v12  ;;  %v8025_v50 = vmax.f32 %v7921_v55, %v7973_v23  ;;  %v7820_v1 = vld [vmem:[#allocation4 + $0xb1] sm:$0xff]  ;;  %v12879_v45 = vpop.f32.mrb[148].mxu1  ;;  %v17634_v21 = vld [vmem:[%s18419_s6] ss:$0 sm:$0xff] }
 0x6a8   : > { %12925 = vmatprep.subr.bf16.mxu0 %v18733_v16  ;;  %v8076_v24 = vmax.f32 %v7868_v28, %v8024_v61  ;;  %v7722_v63 = vmax.f32 %v17461_v33, 0.0  ;;  %v17471_v47 = vadd.f32 %v17144_v51, %v7612_v6  ;;  %v7870_v13 = vmax.f32 %v7714_v32, %v7818_v2  ;;  %v7445_v0 = vpop.f32.mrb[149].mxu1 }
 0x6a9   : > { %v8241_v44 = vsel %vm8164_vm6, %v8238_v35, %v8240_v42  ;;  %7776 = vst.msk [vmem:[#allocation4 + $0xf0] sm:$0xff] %vm558_vm4, %v7724_v34  ;;  %v7725_v39 = vmax.f32 %v17466_v40, 0.0  ;;  %v13351_v28 = vadd.f32 %v12879_v45, %v16877_v31  ;;  %v8077_v17 = vmax.f32 %v7869_v30, %v8025_v50  ;;  %v7821_v60 = vld [vmem:[#allocation4 + $0xb9] sm:$0xff]  ;;  %v12880_v31 = vpop.f32.mrb[150].mxu1 }
 0x6aa   : > { %v8026_v49 = vmax.f32 %v7922_v37, %v7974_v4  ;;  %v7924_v25 = vld [vmem:[#allocation4 + $0xba] sm:$0xff]  ;;  %v7927_v62 = vld [vmem:[#allocation4 + $0xd2] sm:$0xff]  ;;  %7774 = vst.msk [vmem:[#allocation4 + $0xe0] sm:$0xff] %vm558_vm4, %v7722_v63  ;;  %v7723_v46 = vmax.f32 %v17471_v47, 0.0  ;;  %v13352_v32 = vadd.f32 %v7445_v0, %v16879_v56  ;;  %v7872_v30 = vmax.f32 %v7716_v22, %v7820_v1  ;;  %v7448_v26 = vpop.f32.mrb[151].mxu1 }
 0x6ab   : > { %12916 = vmatmul.mubr.msk.bf16.gmra.mrb[184].mxu0 %vm8154_vm7, %v17456_v7  ;;  %v7979_v36 = vld [vmem:[#allocation4 + $0xd3] sm:$0xff]  ;;  %v7873_v57 = vmax.f32 %v7717_v48, %v7821_v60  ;;  %v7976_v52 = vld [vmem:[#allocation4 + $0xbb] sm:$0xff]  ;;  %v7823_v10 = vld [vmem:[#allocation4 + $0xc9] sm:$0xff]  ;;  %7777 = vst.msk [vmem:[#allocation4 + $0xf8] sm:$0xff] %vm558_vm4, %v7725_v39  ;;  %v7617_v56 = vmul.f32 %v13351_v28, %v17138_v20  ;;  %v13353_v35 = vadd.f32 %v12880_v31, %v18734_v15 }
 0x6ac   : > { %12926 = vmatpush3.bf16.msra.mxu0 %v8241_v44  ;;  %12919 = vmatprep.mubr.msk.bf16.mxu0 %vm14127_vm5, %v18733_v16  ;;  %v8031_v27 = vmax.f32 %v7927_v62, %v7979_v36  ;;  %v8119_v19 = vpack.c.bf16 %v8077_v17, %v8076_v24  ;;  %v7875_v22 = vmax.f32 %v7719_v3, %v7823_v10  ;;  %v18735_v48 = vld [vmem:[#allocation58_spill] sm:$0xff]  ;;  %v7926_v44 = vld [vmem:[#allocation4 + $0xca] sm:$0xff] }
 0x6ad   : > { %12927 = vmatprep.subr.bf16.mxu0 %v18733_v16  ;;  %7775 = vst.msk [vmem:[#allocation4 + $0xe8] sm:$0xff] %vm558_vm4, %v7723_v46  ;;  %v7615_v5 = vmul.f32 %v13352_v32, %v17138_v20  ;;  %v13354_v29 = vadd.f32 %v7448_v26, %v18735_v48  ;;  %v8078_v8 = vmax.f32 %v7870_v13, %v8026_v49  ;;  %v7925_v41 = vld [vmem:[#allocation4 + $0xc2] sm:$0xff]  ;;  %v7978_v13 = vld [vmem:[#allocation4 + $0xcb] sm:$0xff] }
 0x6ae   : > { %v7977_v55 = vld [vmem:[#allocation4 + $0xc3] sm:$0xff]  ;;  %v17508_v23 = vadd.f32 %v17144_v51, %v7617_v56  ;;  %v7618_v12 = vmul.f32 %v13353_v35, %v17138_v20  ;;  %v8242_v58 = vrot.slane %v8119_v19, 4  ;;  %v8028_v61 = vmax.f32 %v7924_v25, %v7976_v52  ;;  %v18737_v10 = vld [vmem:[#allocation60_spill] sm:$0xff]  ;;  %v18738_v19 = vld [vmem:[#allocation61_spill] sm:$0xff] }
 0x6af   : > { %v17516_v3 = vmax.f32 %v7875_v22, %v8031_v27  ;;  %v17519_v2 = vadd.f32 %v17144_v51, %v7615_v5  ;;  %v7616_v6 = vmul.f32 %v13354_v29, %v17138_v20  ;;  %v8120_v37 = vpack.c.bf16 %v17458_v54, %v8078_v8  ;;  %v7822_v4 = vld [vmem:[#allocation4 + $0xc1] sm:$0xff]  ;;  %v12883_v17 = vpop.f32.mrb[152].mxu1  ;;  %v7824_v35 = vld [vmem:[#allocation4 + $0xd1] sm:$0xff] }
 0x6b0   : > { %v7728_v50 = vmax.f32 %v17508_v23, 0.0  ;;  %v17525_v24 = vadd.f32 %v17144_v51, %v7618_v12  ;;  %v8243_v1 = vsel %vm8164_vm6, %v8240_v42, %v8242_v58  ;;  %v8029_v45 = vmax.f32 %v7925_v41, %v7977_v55  ;;  %v18736_v25 = vld [vmem:[#allocation59_spill] sm:$0xff]  ;;  %v7461_v62 = vpop.f32.mrb[153].mxu1  ;;  %v18739_v41 = vld [vmem:[#allocation62_spill] sm:$0xff] }
 0x6b1   : > { %v7726_v28 = vmax.f32 %v17519_v2, 0.0  ;;  %v17530_v0 = vadd.f32 %v17144_v51, %v7616_v6  ;;  %12928 = vmatpush3.bf16.msra.mxu0 %v8243_v1  ;;  %v8244_v49 = vrot.slane %v8120_v37, 4  ;;  %v8080_v54 = vmax.f32 %v7872_v30, %v8028_v61  ;;  %v12884_v15 = vpop.f32.mrb[154].mxu1  ;;  %v7928_v37 = vld [vmem:[#allocation4 + $0xda] sm:$0xff]  ;;  %v17672_v2 = vld [vmem:[%s18418_s5] ss:$0 sm:$0xff] }
 0x6b2   : > { %7780 = vst.msk [vmem:[#allocation4 + $0x110] sm:$0xff] %vm558_vm4, %v7728_v50  ;;  %v7729_v60 = vmax.f32 %v17525_v24, 0.0  ;;  %v13355_v42 = vadd.f32 %v12883_v17, %v18736_v25  ;;  %12929 = vmatprep.subr.bf16.mxu0 %v18733_v16  ;;  %v8081_v36 = vmax.f32 %v7873_v57, %v8029_v45  ;;  %v7874_v32 = vmax.f32 %v7718_v9, %v7822_v4  ;;  %v7931_v31 = vld [vmem:[#allocation4 + $0xf2] sm:$0xff]  ;;  %v7464_v5 = vpop.f32.mrb[155].mxu1  ;;  %v7980_v4 = vld [vmem:[#allocation4 + $0xdb] sm:$0xff] }
 0x6b3   : > { %12920 = vmatmul.mubr.msk.bf16.gmra.mrb[188].mxu0 %vm8154_vm7, %v17514_v43  ;;  %v7983_v30 = vld [vmem:[#allocation4 + $0xf3] sm:$0xff]  ;;  %7778 = vst.msk [vmem:[#allocation4 + $0x100] sm:$0xff] %vm558_vm4, %v7726_v28  ;;  %v7727_v52 = vmax.f32 %v17530_v0, 0.0  ;;  %v13356_v27 = vadd.f32 %v7461_v62, %v18737_v10  ;;  %v8245_v56 = vsel %vm8164_vm6, %v8242_v58, %v8244_v49  ;;  %v8030_v57 = vmax.f32 %v7926_v44, %v7978_v13 }
 0x6b4   : > { %12937 = vmatprep.mubr.msk.bf16.mxu0 %vm14127_vm5, %v18733_v16  ;;  %v7827_v14 = vld [vmem:[#allocation4 + $0xe9] sm:$0xff]  ;;  %v8035_v9 = vmax.f32 %v7931_v31, %v7983_v30  ;;  %7781 = vst.msk [vmem:[#allocation4 + $0x118] sm:$0xff] %vm558_vm4, %v7729_v60  ;;  %v7621_v26 = vmul.f32 %v13355_v42, %v17138_v20  ;;  %v13357_v22 = vadd.f32 %v12884_v15, %v18738_v19  ;;  %v7825_v58 = vld [vmem:[#allocation4 + $0xd9] sm:$0xff]  ;;  %v7826_v25 = vld [vmem:[#allocation4 + $0xe1] sm:$0xff] }
 0x6b5   : > { %v8121_v48 = vpack.c.bf16 %v8081_v36, %v8080_v54  ;;  %v7879_v29 = vmax.f32 %v7723_v46, %v7827_v14  ;;  %7779 = vst.msk [vmem:[#allocation4 + $0x108] sm:$0xff] %vm558_vm4, %v7727_v52  ;;  %v7619_v8 = vmul.f32 %v13356_v27, %v17138_v20  ;;  %12930 = vmatpush3.bf16.msra.mxu0 %v8245_v56  ;;  %v7929_v17 = vld [vmem:[#allocation4 + $0xe2] sm:$0xff]  ;;  %v7930_v15 = vld [vmem:[#allocation4 + $0xea] sm:$0xff] }
 0x6b6   : > { %v13358_v55 = vadd.f32 %v7464_v5, %v18739_v41  ;;  %v8082_v12 = vmax.f32 %v7874_v32, %v8030_v57  ;;  %v17563_v61 = vadd.f32 %v17144_v51, %v7621_v26  ;;  %v7622_v6 = vmul.f32 %v13357_v22, %v17138_v20  ;;  %12931 = vmatprep.subr.bf16.mxu0 %v18733_v16  ;;  %v7981_v54 = vld [vmem:[#allocation4 + $0xe3] sm:$0xff]  ;;  %v7828_v57 = vld [vmem:[#allocation4 + $0xf1] sm:$0xff] }
 0x6b7   : > { %v8246_v47 = vrot.slane %v8121_v48, 4  ;;  %v7876_v46 = vmax.f32 %v7720_v53, %v7824_v35  ;;  %v17569_v1 = vmax.f32 %v7879_v29, %v8035_v9  ;;  %v17572_v45 = vadd.f32 %v17144_v51, %v7619_v8  ;;  %v18740_v27 = vld [vmem:[#allocation63_spill] sm:$0xff]  ;;  %v18741_v26 = vld [vmem:[#allocation64_spill] sm:$0xff]  ;;  %v18742_v41 = vld [vmem:[#allocation65_spill] sm:$0xff] }
 0x6b8   : > { %v7620_v44 = vmul.f32 %v13358_v55, %v17138_v20  ;;  %v8122_v13 = vpack.c.bf16 %v17516_v3, %v8082_v12  ;;  %v7732_v42 = vmax.f32 %v17563_v61, 0.0  ;;  %v17578_v62 = vadd.f32 %v17144_v51, %v7622_v6  ;;  %v12887_v3 = vpop.f32.mrb[156].mxu1  ;;  %v7982_v29 = vld [vmem:[#allocation4 + $0xeb] sm:$0xff] }
 0x6b9   : > { %v8247_v18 = vsel %vm8164_vm6, %v8244_v49, %v8246_v47  ;;  %v7877_v53 = vmax.f32 %v7721_v11, %v7825_v58  ;;  %v7730_v36 = vmax.f32 %v17572_v45, 0.0  ;;  %v8032_v30 = vmax.f32 %v7928_v37, %v7980_v4  ;;  %v7477_v38 = vpop.f32.mrb[157].mxu1  ;;  %v18743_v37 = vld [vmem:[#allocation66_spill] sm:$0xff] }
 0x6ba   : > { %v17585_v32 = vadd.f32 %v17144_v51, %v7620_v44  ;;  %12932 = vmatpush3.bf16.msra.mxu0 %v8247_v18  ;;  %v8248_v31 = vrot.slane %v8122_v13, 4  ;;  %7784 = vst.msk [vmem:[#allocation4 + $0x130] sm:$0xff] %vm558_vm4, %v7732_v42  ;;  %v7733_v10 = vmax.f32 %v17578_v62, 0.0  ;;  %v13359_v49 = vadd.f32 %v12887_v3, %v18740_v27  ;;  %v12888_v5 = vpop.f32.mrb[158].mxu1  ;;  %v7829_v13 = vld [vmem:[#allocation4 + $0xf9] sm:$0xff] }
 0x6bb   : > { %12933 = vmatprep.subr.bf16.mxu0 %v18733_v16  ;;  %v8033_v11 = vmax.f32 %v7929_v17, %v7981_v54  ;;  %v7878_v56 = vmax.f32 %v7722_v63, %v7826_v25  ;;  %v7935_v35 = vld [vmem:[#allocation4 + $0x112] sm:$0xff]  ;;  %7782 = vst.msk [vmem:[#allocation4 + $0x120] sm:$0xff] %vm558_vm4, %v7730_v36  ;;  %v13360_v19 = vadd.f32 %v7477_v38, %v18741_v26  ;;  %v7480_v12 = vpop.f32.mrb[159].mxu1  ;;  %v7932_v17 = vld [vmem:[#allocation4 + $0xfa] sm:$0xff] }
 0x6bc   : > { %v7987_v14 = vld [vmem:[#allocation4 + $0x113] sm:$0xff]  ;;  %v7731_v9 = vmax.f32 %v17585_v32, 0.0  ;;  %v8249_v22 = vsel %vm8164_vm6, %v8246_v47, %v8248_v31  ;;  %v8257_v48 = vsel %vm8164_vm6, %v8248_v31, 0  ;;  %v7831_v33 = vld [vmem:[#allocation4 + $0x109] sm:$0xff]  ;;  %7785 = vst.msk [vmem:[#allocation4 + $0x138] sm:$0xff] %vm558_vm4, %v7733_v10  ;;  %v7625_v8 = vmul.f32 %v13359_v49, %v17138_v20  ;;  %v7984_v18 = vld [vmem:[#allocation4 + $0xfb] sm:$0xff] }
 0x6bd   : > { %v8039_v63 = vmax.f32 %v7935_v35, %v7987_v14  ;;  %v13361_v55 = vadd.f32 %v12888_v5, %v18742_v41  ;;  %v17607_v58 = vmax.f32 %v7876_v46, %v8032_v30  ;;  %v7883_v6 = vmax.f32 %v7727_v52, %v7831_v33  ;;  %v7933_v25 = vld [vmem:[#allocation4 + $0x102] sm:$0xff]  ;;  %v7934_v26 = vld [vmem:[#allocation4 + $0x10a] sm:$0xff] }
 0x6be   : > { %7783 = vst.msk [vmem:[#allocation4 + $0x128] sm:$0xff] %vm558_vm4, %v7731_v9  ;;  %v7623_v47 = vmul.f32 %v13360_v19, %v17138_v20  ;;  %12934 = vmatpush3.bf16.msra.mxu0 %v8249_v22  ;;  %v13362_v4 = vadd.f32 %v7480_v12, %v18743_v37  ;;  %v8085_v44 = vmax.f32 %v7877_v53, %v8033_v11  ;;  %v7985_v3 = vld [vmem:[#allocation4 + $0x103] sm:$0xff]  ;;  %v7986_v19 = vld [vmem:[#allocation4 + $0x10b] sm:$0xff] }
 0x6bf   : > { %v17617_v54 = vadd.f32 %v17144_v51, %v7625_v8  ;;  %v7626_v46 = vmul.f32 %v13361_v55, %v17138_v20  ;;  %12935 = vmatprep.subr.bf16.mxu0 %v18733_v16  ;;  %v8034_v0 = vmax.f32 %v7930_v15, %v7982_v29  ;;  %v7880_v52 = vmax.f32 %v7724_v34, %v7828_v57  ;;  %v7830_v49 = vld [vmem:[#allocation4 + $0x101] sm:$0xff]  ;;  %v12891_v57 = vpop.f32.mrb[160].mxu1  ;;  %v18745_v8 = vld [vmem:[#allocation68_spill] sm:$0xff] }
 0x6c0   : > { %v17623_v31 = vmax.f32 %v7883_v6, %v8039_v63  ;;  %v17626_v53 = vadd.f32 %v17144_v51, %v7623_v47  ;;  %v7624_v30 = vmul.f32 %v13362_v4, %v17138_v20  ;;  %v8123_v27 = vpack.c.bf16 %v8085_v44, %v17607_v58  ;;  %v18744_v22 = vld [vmem:[#allocation67_spill] sm:$0xff]  ;;  %v18746_v47 = vld [vmem:[#allocation69_spill] sm:$0xff] }
 0x6c1   : > { %v7736_v38 = vmax.f32 %v17617_v54, 0.0  ;;  %v17637_v34 = vadd.f32 %v17634_v21, %v7626_v46  ;;  %v17639_v11 = vmax.f32 %v7878_v56, %v8034_v0  ;;  %v7881_v51 = vmax.f32 %v7725_v39, %v7829_v13  ;;  %v7493_v39 = vpop.f32.mrb[161].mxu1  ;;  %v7832_v13 = vld [vmem:[#allocation4 + $0x111] sm:$0xff]  ;;  %v18747_v0 = vld [vmem:[#allocation70_spill] sm:$0xff] }
 0x6c2   : > { %v7734_v20 = vmax.f32 %v17626_v53, 0.0  ;;  %v17645_v15 = vadd.f32 %v17634_v21, %v7624_v30  ;;  %12936 = vmatpush3.bf16.msra.mxu0 %v8257_v48  ;;  %v8036_v35 = vmax.f32 %v7932_v17, %v7984_v18  ;;  %v8037_v14 = vmax.f32 %v7933_v25, %v7985_v3  ;;  %v12892_v55 = vpop.f32.mrb[162].mxu1  ;;  %v7833_v18 = vld [vmem:[#allocation4 + $0x119] sm:$0xff] }
 0x6c3   : > { %7788 = vst.msk [vmem:[#allocation4 + $0x150] sm:$0xff] %vm558_vm4, %v7736_v38  ;;  %v7737_v56 = vmax.f32 %v17637_v34, 0.0  ;;  %v13363_v40 = vadd.f32 %v12891_v57, %v18744_v22  ;;  %12949 = vmatprep.subr.bf16.mxu0 %v18733_v16  ;;  %v8124_v5 = vpack.c.bf16 %v17569_v1, %v17639_v11  ;;  %v7882_v48 = vmax.f32 %v7726_v28, %v7830_v49  ;;  %v7939_v29 = vld [vmem:[#allocation4 + $0x132] sm:$0xff]  ;;  %v7496_v4 = vpop.f32.mrb[163].mxu1  ;;  %v7936_v3 = vld [vmem:[#allocation4 + $0x11a] sm:$0xff] }
 0x6c4   : > { %v7991_v33 = vld [vmem:[#allocation4 + $0x133] sm:$0xff]  ;;  %7786 = vst.msk [vmem:[#allocation4 + $0x140] sm:$0xff] %vm558_vm4, %v7734_v20  ;;  %v7735_v63 = vmax.f32 %v17645_v15, 0.0  ;;  %v13364_v41 = vadd.f32 %v7493_v39, %v18745_v8  ;;  %v17662_v12 = vmax.f32 %v7880_v52, %v8036_v35  ;;  %v17664_v58 = vmax.f32 %v7881_v51, %v8037_v14  ;;  %v7988_v49 = vld [vmem:[#allocation4 + $0x11b] sm:$0xff] }
 0x6c5   : > { %v7835_v6 = vld [vmem:[#allocation4 + $0x129] sm:$0xff]  ;;  %v8043_v1 = vmax.f32 %v7939_v29, %v7991_v33  ;;  %7789 = vst.msk [vmem:[#allocation4 + $0x158] sm:$0xff] %vm558_vm4, %v7737_v56  ;;  %v7629_v28 = vmul.f32 %v17672_v2, %v13363_v40  ;;  %12938 = vmatmul.mubr.msk.bf16.vlgmr.msra.gmra.mrb[192].mxu0 %vm8154_vm7, %v17400_v59  ;;  %v13365_v37 = vadd.f32 %v12892_v55, %v18746_v47 }
 0x6c6   : > { %v8038_v44 = vmax.f32 %v7934_v26, %v7986_v19  ;;  %v7887_v17 = vmax.f32 %v7731_v9, %v7835_v6  ;;  %7787 = vst.msk [vmem:[#allocation4 + $0x148] sm:$0xff] %vm558_vm4, %v7735_v63  ;;  %v7627_v46 = vmul.f32 %v17672_v2, %v13364_v41  ;;  %12950 = vmatpush3.bf16.msra.mxu0 %v8123_v27  ;;  %v7937_v27 = vld [vmem:[#allocation4 + $0x122] sm:$0xff]  ;;  %v7938_v19 = vld [vmem:[#allocation4 + $0x12a] sm:$0xff] }
 0x6c7   : > { %v13366_v52 = vadd.f32 %v7496_v4, %v18747_v0  ;;  %v8125_v25 = vpack.c.bf16 %v17664_v58, %v17662_v12  ;;  %v17688_v30 = vadd.f32 %v17634_v21, %v7629_v28  ;;  %v7630_v32 = vmul.f32 %v17672_v2, %v13365_v37  ;;  %12951 = vmatprep.subr.bf16.mxu0 %v18733_v16  ;;  %v7989_v11 = vld [vmem:[#allocation4 + $0x123] sm:$0xff]  ;;  %v7990_v22 = vld [vmem:[#allocation4 + $0x12b] sm:$0xff]  ;;  %v12895_v23 = vpop.f32.mrb[112].mxu1  ;;  %v18749_v28 = vld [vmem:[#allocation49_spill] sm:$0xff] }
 0x6c8   : > { %12941 = vmatprep.mubr.msk.bf16.mxu0 %vm14127_vm5, %v18733_v16  ;;  %v17694_v9 = vmax.f32 %v7882_v48, %v8038_v44  ;;  %v17696_v51 = vmax.f32 %v7887_v17, %v8043_v1  ;;  %v17699_v57 = vadd.f32 %v17634_v21, %v7627_v46  ;;  %v7884_v14 = vmax.f32 %v7728_v50, %v7832_v13  ;;  %v7834_v26 = vld [vmem:[#allocation4 + $0x121] sm:$0xff]  ;;  %v18748_v12 = vld [vmem:[#allocation48_spill] sm:$0xff]  ;;  %v7509_v24 = vpop.f32.mrb[113].mxu1 }
 0x6c9   : > { %v7628_v35 = vmul.f32 %v17672_v2, %v13366_v52  ;;  %v7740_v40 = vmax.f32 %v17688_v30, 0.0  ;;  %v17706_v39 = vadd.f32 %v17634_v21, %v7630_v32  ;;  %v7885_v29 = vmax.f32 %v7729_v60, %v7833_v18  ;;  %v12896_v37 = vpop.f32.mrb[114].mxu1  ;;  %v7836_v18 = vld [vmem:[#allocation4 + $0x131] sm:$0xff] }
 0x6ca   : > { %v8126_v48 = vpack.c.bf16 %v17623_v31, %v17694_v9  ;;  %v7738_v33 = vmax.f32 %v17699_v57, 0.0  ;;  %12952 = vmatpush3.bf16.msra.mxu0 %v8124_v5  ;;  %v8040_v50 = vmax.f32 %v7936_v3, %v7988_v49  ;;  %v8041_v41 = vmax.f32 %v7937_v27, %v7989_v11  ;;  %v7512_v0 = vpop.f32.mrb[115].mxu1  ;;  %v18751_v9 = vld [vmem:[#allocation53_spill] sm:$0xff] }
 0x6cb   : > { %v17714_v8 = vadd.f32 %v17634_v21, %v7628_v35  ;;  %7792 = vst.msk [vmem:[#allocation4 + $0x170] sm:$0xff] %vm558_vm4, %v7740_v40  ;;  %v7741_v55 = vmax.f32 %v17706_v39, 0.0  ;;  %v13367_v31 = vadd.f32 %v12895_v23, %v18748_v12  ;;  %12953 = vmatprep.subr.bf16.mxu0 %v18733_v16  ;;  %v7886_v60 = vmax.f32 %v7730_v36, %v7834_v26  ;;  %v18750_v36 = vld [vmem:[#allocation52_spill] sm:$0xff]  ;;  %v7837_v11 = vld [vmem:[#allocation4 + $0x139] sm:$0xff] }
 0x6cc   : > { %v8042_v58 = vmax.f32 %v7938_v19, %v7990_v22  ;;  %v7943_v6 = vld [vmem:[#allocation4 + $0x152] sm:$0xff]  ;;  %7790 = vst.msk [vmem:[#allocation4 + $0x160] sm:$0xff] %vm558_vm4, %v7738_v33  ;;  %v13368_v47 = vadd.f32 %v7509_v24, %v18749_v28  ;;  %v17729_v4 = vmax.f32 %v7884_v14, %v8040_v50  ;;  %v17731_v44 = vmax.f32 %v7885_v29, %v8041_v41  ;;  %v7940_v35 = vld [vmem:[#allocation4 + $0x13a] sm:$0xff] }
 0x6cd   : > { %v7995_v5 = vld [vmem:[#allocation4 + $0x153] sm:$0xff]  ;;  %v7739_v1 = vmax.f32 %v17714_v8, 0.0  ;;  %v7839_v13 = vld [vmem:[#allocation4 + $0x149] sm:$0xff]  ;;  %7793 = vst.msk [vmem:[#allocation4 + $0x178] sm:$0xff] %vm558_vm4, %v7741_v55  ;;  %v7633_v45 = vmul.f32 %v17672_v2, %v13367_v31  ;;  %v13369_v46 = vadd.f32 %v12896_v37, %v18750_v36  ;;  %12942 = vmatmul.mubr.msk.bf16.gmra.mrb[196].mxu0 %vm8154_vm7, %v17456_v7  ;;  %v13370_v27 = vadd.f32 %v7512_v0, %v18751_v9  ;;  %v7992_v14 = vld [vmem:[#allocation4 + $0x13b] sm:$0xff] }
 0x6ce   : > { %v8047_v17 = vmax.f32 %v7943_v6, %v7995_v5  ;;  %v17740_v52 = vmax.f32 %v7886_v60, %v8042_v58  ;;  %v7891_v3 = vmax.f32 %v7735_v63, %v7839_v13  ;;  %v7631_v32 = vmul.f32 %v17672_v2, %v13368_v47  ;;  %12954 = vmatpush3.bf16.msra.mxu0 %v8125_v25  ;;  %v7941_v25 = vld [vmem:[#allocation4 + $0x142] sm:$0xff]  ;;  %v7942_v41 = vld [vmem:[#allocation4 + $0x14a] sm:$0xff] }
 0x6cf   : > { %7791 = vst.msk [vmem:[#allocation4 + $0x168] sm:$0xff] %vm558_vm4, %v7739_v1  ;;  %v8127_v49 = vpack.c.bf16 %v17731_v44, %v17729_v4  ;;  %v17752_v26 = vadd.f32 %v17634_v21, %v7633_v45  ;;  %v7634_v15 = vmul.f32 %v17672_v2, %v13369_v46  ;;  %12955 = vmatprep.subr.bf16.mxu0 %v18733_v16  ;;  %v7993_v19 = vld [vmem:[#allocation4 + $0x143] sm:$0xff]  ;;  %v7994_v12 = vld [vmem:[#allocation4 + $0x14b] sm:$0xff] }
 0x6d0   : > { %12945 = vmatprep.mubr.msk.bf16.mxu0 %vm14127_vm5, %v18733_v16  ;;  %v8128_v63 = vpack.c.bf16 %v17696_v51, %v17740_v52  ;;  %v7838_v22 = vld [vmem:[#allocation4 + $0x141] sm:$0xff]  ;;  %v17761_v29 = vadd.f32 %v17634_v21, %v7631_v32  ;;  %v7632_v23 = vmul.f32 %v17672_v2, %v13370_v27  ;;  %v7888_v50 = vmax.f32 %v7732_v42, %v7836_v18  ;;  %v7840_v42 = vld [vmem:[#allocation4 + $0x151] sm:$0xff] }
 0x6d1   : > { %v7744_v31 = vmax.f32 %v17752_v26, 0.0  ;;  %v17768_v24 = vadd.f32 %v17634_v21, %v7634_v15  ;;  %v7889_v60 = vmax.f32 %v7733_v10, %v7837_v11  ;;  %v8044_v58 = vmax.f32 %v7940_v35, %v7992_v14  ;;  %v8005_v14 = vld [vmem:[#allocation4 + $0x1a3] sm:$0xff] }
 0x6d2   : > { %v7742_v6 = vmax.f32 %v17761_v29, 0.0  ;;  %v17774_v5 = vadd.f32 %v17634_v21, %v7632_v23  ;;  %12956 = vmatpush3.bf16.msra.mxu0 %v8126_v48  ;;  %v8045_v2 = vmax.f32 %v7941_v25, %v7993_v19  ;;  %v7890_v61 = vmax.f32 %v7734_v20, %v7838_v22 }
 0x6d3   : > { %v8099_v28 = vmax.f32 %v7891_v3, %v8047_v17  ;;  %7796 = vst.msk [vmem:[#allocation4 + $0x190] sm:$0xff] %vm558_vm4, %v7744_v31  ;;  %v7745_v62 = vmax.f32 %v17768_v24, 0.0  ;;  %12957 = vmatprep.subr.bf16.mxu0 %v18733_v16  ;;  %v8046_v10 = vmax.f32 %v7942_v41, %v7994_v12  ;;  %v7841_v47 = vld [vmem:[#allocation4 + $0x159] sm:$0xff]  ;;  %v8096_v20 = vmax.f32 %v7888_v50, %v8044_v58 }
 0x6d4   : > { %v7944_v37 = vld [vmem:[#allocation4 + $0x15a] sm:$0xff]  ;;  %v7947_v4 = vld [vmem:[#allocation4 + $0x172] sm:$0xff]  ;;  %7794 = vst.msk [vmem:[#allocation4 + $0x180] sm:$0xff] %vm558_vm4, %v7742_v6  ;;  %v7743_v53 = vmax.f32 %v17774_v5, 0.0  ;;  %v8097_v44 = vmax.f32 %v7889_v60, %v8045_v2  ;;  %v7892_v46 = vmax.f32 %v7736_v38, %v7840_v42  ;;  %v7893_v0 = vmax.f32 %v7737_v56, %v7841_v47 }
 0x6d5   : > { %v7996_v21 = vld [vmem:[#allocation4 + $0x15b] sm:$0xff]  ;;  %v7999_v48 = vld [vmem:[#allocation4 + $0x173] sm:$0xff]  ;;  %7797 = vst.msk [vmem:[#allocation4 + $0x198] sm:$0xff] %vm558_vm4, %v7745_v62  ;;  %12946 = vmatmul.mubr.msk.bf16.gmra.mrb[200].mxu0 %vm8154_vm7, %v17514_v43  ;;  %v8098_v36 = vmax.f32 %v7890_v61, %v8046_v10 }
 0x6d6   : > { %v8048_v13 = vmax.f32 %v7944_v37, %v7996_v21  ;;  %v7843_v17 = vld [vmem:[#allocation4 + $0x169] sm:$0xff]  ;;  %v8051_v45 = vmax.f32 %v7947_v4, %v7999_v48  ;;  %7795 = vst.msk [vmem:[#allocation4 + $0x188] sm:$0xff] %vm558_vm4, %v7743_v53  ;;  %12958 = vmatpush3.bf16.msra.mxu0 %v8127_v49  ;;  %v8129_v9 = vpack.c.bf16 %v8097_v44, %v8096_v20  ;;  %v7842_v11 = vld [vmem:[#allocation4 + $0x161] sm:$0xff]  ;;  %v7844_v23 = vld [vmem:[#allocation4 + $0x171] sm:$0xff] }
 0x6d7   : > { %v7945_v18 = vld [vmem:[#allocation4 + $0x162] sm:$0xff]  ;;  %v7895_v32 = vmax.f32 %v7739_v1, %v7843_v17  ;;  %12963 = vmatprep.mubr.msk.bf16.mxu0 %vm14127_vm5, %v18733_v16  ;;  %v7946_v35 = vld [vmem:[#allocation4 + $0x16a] sm:$0xff]  ;;  %12959 = vmatprep.subr.bf16.mxu0 %v18733_v16  ;;  %v8130_v38 = vpack.c.bf16 %v8099_v28, %v8098_v36  ;;  %v7894_v34 = vmax.f32 %v7738_v33, %v7842_v11 }
 0x6d8   : > { %v7997_v3 = vld [vmem:[#allocation4 + $0x163] sm:$0xff]  ;;  %v7998_v54 = vld [vmem:[#allocation4 + $0x16b] sm:$0xff]  ;;  %v8391_v15 = vrot.slane %v8129_v9, 4  ;;  %v8100_v49 = vmax.f32 %v7892_v46, %v8048_v13  ;;  %v8321_v61 = vsel %vm8164_vm6, %v8129_v9, 0  ;;  %v7896_v51 = vmax.f32 %v7740_v40, %v7844_v23 }
 0x6d9   : > { %v8049_v27 = vmax.f32 %v7945_v18, %v7997_v3  ;;  %v8050_v56 = vmax.f32 %v7946_v35, %v7998_v54  ;;  %v8103_v8 = vmax.f32 %v7895_v32, %v8051_v45  ;;  %v7953_v1 = vld [vmem:[#allocation4 + $0x1a2] sm:$0xff]  ;;  %v8392_v19 = vrot.slane %v8130_v38, 4 }
 0x6da   : > { %12960 = vmatpush3.bf16.msra.mxu0 %v8128_v63  ;;  %v8057_v41 = vmax.f32 %v7953_v1, %v8005_v14  ;;  %v14015_v1 = vld [vmem:[%s18420_s7 + $0x28] sm:$0xff]   ;;  %v14017_v14 = vld [vmem:[%s18420_s7 + $0x38] sm:$0xff]  }
 0x6db   : > { %v8101_v25 = vmax.f32 %v7893_v0, %v8049_v27  ;;  %v8102_v22 = vmax.f32 %v7894_v34, %v8050_v56  ;;  %12961 = vmatprep.subr.bf16.mxu0 %v18733_v16  ;;  %v8393_v57 = vsel %vm8164_vm6, %v8391_v15, %v8392_v19  ;;  %v7845_v12 = vld [vmem:[#allocation4 + $0x179] sm:$0xff]  ;;  %v14014_v56 = vld [vmem:[%s18420_s7 + $0x20] sm:$0xff]  }
 0x6dc   : > { %v7948_v24 = vld [vmem:[#allocation4 + $0x17a] sm:$0xff]  ;;  %v7951_v5 = vld [vmem:[#allocation4 + $0x192] sm:$0xff]  ;;  %v7897_v37 = vmax.f32 %v7741_v55, %v7845_v12 }
 0x6dd   : > { %v8131_v50 = vpack.c.bf16 %v8101_v25, %v8100_v49  ;;  %v8132_v33 = vpack.c.bf16 %v8103_v8, %v8102_v22  ;;  %v8000_v60 = vld [vmem:[#allocation4 + $0x17b] sm:$0xff]  ;;  %v8003_v2 = vld [vmem:[#allocation4 + $0x193] sm:$0xff]  ;;  %v7847_v28 = vld [vmem:[#allocation4 + $0x189] sm:$0xff] }
 0x6de   : > { %v7849_v58 = vld [vmem:[#allocation4 + $0x199] sm:$0xff]  ;;  %v8052_v52 = vmax.f32 %v7948_v24, %v8000_v60  ;;  %v8055_v10 = vmax.f32 %v7951_v5, %v8003_v2  ;;  %v7949_v21 = vld [vmem:[#allocation4 + $0x182] sm:$0xff]  ;;  %v7899_v48 = vmax.f32 %v7743_v53, %v7847_v28  ;;  %12962 = vmatpush3.bf16.msra.mxu0 %v8321_v61  ;;  %v7950_v45 = vld [vmem:[#allocation4 + $0x18a] sm:$0xff] }
 0x6df   : > { %v8394_v42 = vrot.slane %v8131_v50, 4  ;;  %v7901_v63 = vmax.f32 %v7745_v62, %v7849_v58  ;;  %v8396_v47 = vrot.slane %v8132_v33, 4  ;;  %v8001_v4 = vld [vmem:[#allocation4 + $0x183] sm:$0xff]  ;;  %v8002_v30 = vld [vmem:[#allocation4 + $0x18b] sm:$0xff]  ;;  %12975 = vmatprep.subr.bf16.mxu0 %v18733_v16  ;;  %v7952_v46 = vld [vmem:[#allocation4 + $0x19a] sm:$0xff] }
 0x6e0   : > { %v8053_v44 = vmax.f32 %v7949_v21, %v8001_v4  ;;  %v8104_v13 = vmax.f32 %v7896_v51, %v8052_v52  ;;  %v7846_v17 = vld [vmem:[#allocation4 + $0x181] sm:$0xff]  ;;  %v8054_v55 = vmax.f32 %v7950_v45, %v8002_v30  ;;  %v7848_v36 = vld [vmem:[#allocation4 + $0x191] sm:$0xff]  ;;  %v8107_v0 = vmax.f32 %v7899_v48, %v8055_v10 }
 0x6e1   : > { %v8395_v20 = vsel %vm8164_vm6, %v8392_v19, %v8394_v42  ;;  %v8109_v40 = vmax.f32 %v7901_v63, %v8057_v41  ;;  %v8397_v62 = vsel %vm8164_vm6, %v8394_v42, %v8396_v47  ;;  %v7898_v39 = vmax.f32 %v7742_v6, %v7846_v17  ;;  %v8004_v53 = vld [vmem:[#allocation4 + $0x19b] sm:$0xff]  ;;  %12964 = vmatmul.mubr.msk.bf16.vlgmr.msra.gmra.mrb[204].mxu0 %vm8154_vm7, %v17400_v59  ;;  %v17909_v45 = vld [vmem:[%s18420_s7 + $0x40] sm:$0xff]  }
 0x6e2   : > { %v8105_v18 = vmax.f32 %v7897_v37, %v8053_v44  ;;  %v7900_v3 = vmax.f32 %v7744_v31, %v7848_v36  ;;  %v8056_v32 = vmax.f32 %v7952_v46, %v8004_v53  ;;  %12976 = vmatpush3.bf16.msra.mxu0 %v8393_v57  ;;  %12967 = vmatprep.mubr.msk.bf16.mxu0 %vm14127_vm5, %v18733_v16  ;;  %v14020_v37 = vld [vmem:[%s18420_s7 + $0x10] sm:$0xff]   ;;  %v14021_v17 = vld [vmem:[%s18420_s7 + $0x18] sm:$0xff]  }
 0x6e3   : > { %v8106_v9 = vmax.f32 %v7898_v39, %v8054_v55  ;;  %12977 = vmatprep.subr.bf16.mxu0 %v18733_v16 }
 0x6e4   : > { %v8133_v29 = vpack.c.bf16 %v8105_v18, %v8104_v13  ;;  %v8108_v6 = vmax.f32 %v7900_v3, %v8056_v32 }
 0x6e5   : > { %v8134_v27 = vpack.c.bf16 %v8107_v0, %v8106_v9 }
 0x6e6   : > { %v8398_v11 = vrot.slane %v8133_v29, 4  ;;  %v8135_v35 = vpack.c.bf16 %v8109_v40, %v8108_v6  ;;  %12978 = vmatpush3.bf16.msra.mxu0 %v8395_v20 }
 0x6e7   : > { %v8400_v54 = vrot.slane %v8134_v27, 4  ;;  %12979 = vmatprep.subr.bf16.mxu0 %v18733_v16 }
 0x6e8   : > { %v8399_v26 = vsel %vm8164_vm6, %v8396_v47, %v8398_v11  ;;  %v8402_v31 = vrot.slane %v8135_v35, 4  ;;  %v14019_v47 = vld [vmem:[%s18420_s7 + $0x8] sm:$0xff]  }
 0x6e9   : > { %v8401_v38 = vsel %vm8164_vm6, %v8398_v11, %v8400_v54  ;;  %12968 = vmatmul.mubr.msk.bf16.gmra.mrb[208].mxu0 %vm8154_vm7, %v17456_v7 }
 0x6ea   : > { %v8403_v34 = vsel %vm8164_vm6, %v8400_v54, %v8402_v31  ;;  %12980 = vmatpush3.bf16.msra.mxu0 %v8397_v62  ;;  %12971 = vmatprep.mubr.msk.bf16.mxu0 %vm14127_vm5, %v18733_v16  ;;  %v8411_v8 = vsel %vm8164_vm6, %v8402_v31, 0 }
 0x6eb   : > { %12981 = vmatprep.subr.bf16.mxu0 %v18733_v16 }
 0x6ee   : > { %12982 = vmatpush3.bf16.msra.mxu0 %v8399_v26 }
 0x6ef   : > { %12983 = vmatprep.subr.bf16.mxu0 %v18733_v16 }
 0x6f1   : > { %12972 = vmatmul.mubr.msk.bf16.gmra.mrb[212].mxu0 %vm8154_vm7, %v17514_v43 }
 0x6f2   : > { %12984 = vmatpush3.bf16.msra.mxu0 %v8401_v38  ;;  %12989 = vmatprep.mubr.msk.bf16.mxu0 %vm14127_vm5, %v18733_v16 }
 0x6f3   : > { %12985 = vmatprep.subr.bf16.mxu0 %v18733_v16 }
 0x6f6   : > { %12986 = vmatpush3.bf16.msra.mxu0 %v8403_v34 }
 0x6f7   : > { %12987 = vmatprep.subr.bf16.mxu0 %v18733_v16 }
 0x6fa   : > { %12988 = vmatpush3.bf16.msra.mxu0 %v8411_v8 }
 0x6fb   : > { %13001 = vmatprep.subr.bf16.mxu0 %v14014_v56 }
 0x6fd   : > { %12990 = vmatmul.mubr.msk.bf16.vlgmr.msra.gmra.mrb[216].mxu0 %vm8154_vm7, %v17400_v59  ;;  %v14016_v59 = vld [vmem:[%s18420_s7 + $0x30] sm:$0xff]  }
 0x6fe   : > { %12993 = vmatprep.mubr.msk.bf16.mxu0 %vm14127_vm5, %v18733_v16  ;;  %13002 = vmatpush3.bf16.msra.mxu0 %v14014_v56 }
 0x6ff   : > { %13003 = vmatprep.subr.bf16.mxu0 %v14015_v1 }
 0x702   : > { %13004 = vmatpush3.bf16.msra.mxu0 %v14015_v1 }
 0x703   : > { %13005 = vmatprep.subr.bf16.mxu0 %v14016_v59 }
 0x705   : > { %12994 = vmatmul.mubr.msk.bf16.gmra.mrb[220].mxu0 %vm8154_vm7, %v17456_v7  ;;  %v14018_v7 = vld [vmem:[%s18420_s7] sm:$0xff]  }
 0x706   : > { %12997 = vmatprep.mubr.msk.bf16.mxu0 %vm14127_vm5, %v18733_v16  ;;  %13006 = vmatpush3.bf16.msra.mxu0 %v14016_v59 }
 0x707   : > { %13007 = vmatprep.subr.bf16.mxu0 %v14017_v14 }
 0x70a   : > { %13008 = vmatpush3.bf16.msra.mxu0 %v14017_v14 }
 0x70b   : > { %13029 = vmatprep.subr.bf16.mxu0 %v14018_v7 }
 0x70d   : > { %12998 = vmatmul.mubr.msk.bf16.gmra.mrb[224].mxu0 %vm8154_vm7, %v17514_v43 }
 0x776   : > { %v8202_v15 = vpop.f32.mrb[180].mxu0 }
 0x777   : > { %8224 = vst.msk [vmem:[#allocation5 + $0x8] sm:$0xff] %vm558_vm4, %v8202_v15  ;;  %v12913_v49 = vpop.f32.mrb[181].mxu0 }
 0x778   : > { %v8205_v25 = vpop.f32.mrb[182].mxu0 }
 0x779   : > { %8225 = vst.msk [vmem:[#allocation5 + $0x10] sm:$0xff] %vm558_vm4, %v8205_v25  ;;  %v12914_v19 = vpop.f32.mrb[183].mxu0 }
 0x77e   : > { %v8210_v43 = vpop.f32.mrb[184].mxu0  ;;  %v8512_v22 = vld [vmem:[#allocation5 + $0x2] sm:$0xff] }
 0x77f   : > { %8226 = vst.msk [vmem:[#allocation5 + $0x18] sm:$0xff] %vm558_vm4, %v8210_v43  ;;  %v12917_v23 = vpop.f32.mrb[185].mxu0 }
 0x780   : > { %v8213_v50 = vpop.f32.mrb[186].mxu0  ;;  %v8513_v41 = vld [vmem:[#allocation5 + $0xa] sm:$0xff] }
 0x781   : > { %8227 = vst.msk [vmem:[#allocation5 + $0x20] sm:$0xff] %vm558_vm4, %v8213_v50  ;;  %v12918_v57 = vpop.f32.mrb[187].mxu0  ;;  %v8532_v33 = vpack.c.bf16 %v8513_v41, %v8512_v22  ;;  %v17871_v24 = vld [vmem:[#allocation5 + $0x9] sm:$0xff] }
 0x782   : > { %v17876_v5 = vld [vmem:[#allocation5 + $0xf] sm:$0xff] }
 0x783   : > { %13009 = vmatprep.mubr.msk.bf16.mxu0 %vm558_vm4, %v8532_v33 }
 0x786   : > { %v8218_v12 = vpop.f32.mrb[188].mxu0  ;;  %v17873_v60 = vld [vmem:[#allocation5 + $0x11] sm:$0xff] }
 0x787   : > { %8228 = vst.msk [vmem:[#allocation5 + $0x28] sm:$0xff] %vm558_vm4, %v8218_v12  ;;  %v12921_v58 = vpop.f32.mrb[189].mxu0  ;;  %v17878_v2 = vld [vmem:[#allocation5 + $0x17] sm:$0xff]  ;;  %v9583_v61 = vpack.c.bf16 %v17873_v60, %v17871_v24 }
 0x788   : > { %v8221_v42 = vpop.f32.mrb[190].mxu0  ;;  %v8514_v51 = vld [vmem:[#allocation5 + $0x12] sm:$0xff]  ;;  %v8515_v52 = vld [vmem:[#allocation5 + $0x1a] sm:$0xff] }
 0x789   : > { %v12922_v28 = vpop.f32.mrb[191].mxu0  ;;  %v8533_v10 = vpack.c.bf16 %v8515_v52, %v8514_v51  ;;  %v17891_v21 = vld [vmem:[#allocation5 + $0x19] sm:$0xff] }
 0x78a   : > { %v17895_v48 = vld [vmem:[#allocation5 + $0x1f] sm:$0xff] }
 0x78b   : > { %13010 = vmatmul.mubr.msk.bf16.vlgmr.msra.gmra.mrb[228].mxu0 %vm558_vm4, %v8533_v10 }
 0x78c   : > { %13030 = vmatpush3.bf16.msra.mxu0 %v14018_v7 }
 0x78d   : > { %13031 = vmatprep.subr.bf16.mxu0 %v14019_v47 }
 0x78e   : > { %v17893_v4 = vld [vmem:[#allocation5 + $0x21] sm:$0xff] }
 0x78f   : > { %v17897_v20 = vld [vmem:[#allocation5 + $0x27] sm:$0xff]  ;;  %v9584_v44 = vpack.c.bf16 %v17893_v4, %v17891_v21 }
 0x790   : > { %13032 = vmatpush3.bf16.msra.mxu0 %v14019_v47  ;;  %v8516_v36 = vld [vmem:[#allocation5 + $0x22] sm:$0xff] }
 0x791   : > { %13033 = vmatprep.subr.bf16.mxu0 %v14020_v37 }
 0x794   : > { %13034 = vmatpush3.bf16.msra.mxu0 %v14020_v37 }
 0x795   : > { %13035 = vmatprep.subr.bf16.mxu0 %v14021_v17 }
 0x798   : > { %v8293_v30 = vpop.f32.mrb[192].mxu0  ;;  %13036 = vmatpush3.bf16.msra.mxu0 %v14021_v17 }
 0x799   : > { %8315 = vst.msk [vmem:[#allocation5 + $0x30] sm:$0xff] %vm558_vm4, %v8293_v30  ;;  %v12939_v40 = vpop.f32.mrb[193].mxu0  ;;  %13057 = vmatprep.subr.bf16.mxu0 %v17909_v45 }
 0x79a   : > { %v8296_v62 = vpop.f32.mrb[194].mxu0 }
 0x79b   : > { %8316 = vst.msk [vmem:[#allocation5 + $0x38] sm:$0xff] %vm558_vm4, %v8296_v62  ;;  %v12940_v39 = vpop.f32.mrb[195].mxu0 }
 0x7a0   : > { %v8301_v55 = vpop.f32.mrb[196].mxu0  ;;  %v8517_v46 = vld [vmem:[#allocation5 + $0x2a] sm:$0xff] }
 0x7a1   : > { %8317 = vst.msk [vmem:[#allocation5 + $0x40] sm:$0xff] %vm558_vm4, %v8301_v55  ;;  %v12943_v53 = vpop.f32.mrb[197].mxu0  ;;  %v8534_v0 = vpack.c.bf16 %v8517_v46, %v8516_v36  ;;  %v17915_v3 = vld [vmem:[#allocation5 + $0x29] sm:$0xff] }
 0x7a2   : > { %v8304_v18 = vpop.f32.mrb[198].mxu0  ;;  %v17917_v32 = vld [vmem:[#allocation5 + $0x31] sm:$0xff] }
 0x7a3   : > { %8318 = vst.msk [vmem:[#allocation5 + $0x48] sm:$0xff] %vm558_vm4, %v8304_v18  ;;  %v12944_v9 = vpop.f32.mrb[199].mxu0  ;;  %13013 = vmatprep.mubr.msk.bf16.mxu0 %vm558_vm4, %v8534_v0  ;;  %v17921_v29 = vld [vmem:[#allocation5 + $0x2f] sm:$0xff]  ;;  %v17923_v6 = vld [vmem:[#allocation5 + $0x37] sm:$0xff]  ;;  %v9585_v27 = vpack.c.bf16 %v17917_v32, %v17915_v3 }
 0x7a4   : > { %v8518_v54 = vld [vmem:[#allocation5 + $0x32] sm:$0xff]  ;;  %v8889_v9 = vld [vmem:[#allocation5 + $0x23] sm:$0xff] }
 0x7a8   : > { %v8309_v35 = vpop.f32.mrb[200].mxu0  ;;  %v8519_v26 = vld [vmem:[#allocation5 + $0x3a] sm:$0xff] }
 0x7a9   : > { %8319 = vst.msk [vmem:[#allocation5 + $0x50] sm:$0xff] %vm558_vm4, %v8309_v35  ;;  %v12947_v31 = vpop.f32.mrb[201].mxu0  ;;  %v8535_v38 = vpack.c.bf16 %v8519_v26, %v8518_v54  ;;  %v17930_v56 = vld [vmem:[#allocation5 + $0x39] sm:$0xff] }
 0x7aa   : > { %v8312_v34 = vpop.f32.mrb[202].mxu0  ;;  %v17932_v8 = vld [vmem:[#allocation5 + $0x41] sm:$0xff] }
 0x7ab   : > { %v12948_v1 = vpop.f32.mrb[203].mxu0  ;;  %13014 = vmatmul.mubr.msk.bf16.gmra.mrb[232].mxu0 %vm558_vm4, %v8535_v38  ;;  %v17935_v59 = vld [vmem:[#allocation5 + $0x3f] sm:$0xff]  ;;  %v17937_v14 = vld [vmem:[#allocation5 + $0x47] sm:$0xff]  ;;  %v9586_v7 = vpack.c.bf16 %v17932_v8, %v17930_v56 }
 0x7ac   : > { %v8520_v49 = vld [vmem:[#allocation5 + $0x42] sm:$0xff] }
 0x7b0   : > { %v8521_v25 = vld [vmem:[#allocation5 + $0x4a] sm:$0xff] }
 0x7b1   : > { %v8536_v19 = vpack.c.bf16 %v8521_v25, %v8520_v49  ;;  %v17946_v57 = vld [vmem:[#allocation5 + $0x49] sm:$0xff] }
 0x7b2   : > { %v17951_v58 = vld [vmem:[#allocation5 + $0x4f] sm:$0xff] }
 0x7b3   : > { %13017 = vmatprep.mubr.msk.bf16.mxu0 %vm558_vm4, %v8536_v19 }
 0x7b4   : > { %v8357_v43 = vpop.f32.mrb[204].mxu0 }
 0x7b5   : > { %8379 = vst.msk [vmem:[#allocation5 + $0x58] sm:$0xff] %vm558_vm4, %v8357_v43  ;;  %v12965_v22 = vpop.f32.mrb[205].mxu0 }
 0x7b6   : > { %v8360_v23 = vpop.f32.mrb[206].mxu0 }
 0x7b7   : > { %8380 = vst.msk [vmem:[#allocation5 + $0x60] sm:$0xff] %vm558_vm4, %v8360_v23  ;;  %v12966_v50 = vpop.f32.mrb[207].mxu0 }
 0x7bc   : > { %v8365_v41 = vpop.f32.mrb[208].mxu0  ;;  %v17948_v33 = vld [vmem:[#allocation5 + $0x51] sm:$0xff] }
 0x7bd   : > { %8381 = vst.msk [vmem:[#allocation5 + $0x68] sm:$0xff] %vm558_vm4, %v8365_v41  ;;  %v12969_v12 = vpop.f32.mrb[209].mxu0  ;;  %v17953_v42 = vld [vmem:[#allocation5 + $0x57] sm:$0xff]  ;;  %v9587_v51 = vpack.c.bf16 %v17948_v33, %v17946_v57 }
 0x7be   : > { %v8368_v52 = vpop.f32.mrb[210].mxu0  ;;  %v8522_v28 = vld [vmem:[#allocation5 + $0x52] sm:$0xff]  ;;  %v8523_v10 = vld [vmem:[#allocation5 + $0x5a] sm:$0xff] }
 0x7bf   : > { %8382 = vst.msk [vmem:[#allocation5 + $0x70] sm:$0xff] %vm558_vm4, %v8368_v52  ;;  %v12970_v37 = vpop.f32.mrb[211].mxu0  ;;  %v8537_v17 = vpack.c.bf16 %v8523_v10, %v8522_v28  ;;  %v17961_v40 = vld [vmem:[#allocation5 + $0x59] sm:$0xff] }
 0x7c0   : > { %v17966_v55 = vld [vmem:[#allocation5 + $0x5f] sm:$0xff] }
 0x7c1   : > { %13018 = vmatmul.mubr.msk.bf16.gmra.mrb[236].mxu0 %vm558_vm4, %v8537_v17 }
 0x7c4   : > { %v8373_v30 = vpop.f32.mrb[212].mxu0  ;;  %v17963_v62 = vld [vmem:[#allocation5 + $0x61] sm:$0xff] }
 0x7c5   : > { %8383 = vst.msk [vmem:[#allocation5 + $0x78] sm:$0xff] %vm558_vm4, %v8373_v30  ;;  %v12973_v39 = vpop.f32.mrb[213].mxu0  ;;  %v17968_v36 = vld [vmem:[#allocation5 + $0x67] sm:$0xff]  ;;  %v9588_v46 = vpack.c.bf16 %v17963_v62, %v17961_v40 }
 0x7c6   : > { %v8376_v53 = vpop.f32.mrb[214].mxu0  ;;  %v8524_v0 = vld [vmem:[#allocation5 + $0x62] sm:$0xff]  ;;  %v8525_v18 = vld [vmem:[#allocation5 + $0x6a] sm:$0xff] }
 0x7c7   : > { %v12974_v35 = vpop.f32.mrb[215].mxu0  ;;  %v8538_v54 = vpack.c.bf16 %v8525_v18, %v8524_v0  ;;  %v17975_v26 = vld [vmem:[#allocation5 + $0x69] sm:$0xff]  ;;  %v8887_v0 = vld [vmem:[#allocation5 + $0x13] sm:$0xff] }
 0x7c8   : > { %v17979_v38 = vld [vmem:[#allocation5 + $0x6f] sm:$0xff] }
 0x7c9   : > { %13021 = vmatprep.mubr.msk.bf16.mxu0 %vm558_vm4, %v8538_v54 }
 0x7cc   : > { %v17977_v31 = vld [vmem:[#allocation5 + $0x71] sm:$0xff] }
 0x7cd   : > { %v17981_v34 = vld [vmem:[#allocation5 + $0x77] sm:$0xff]  ;;  %v9589_v1 = vpack.c.bf16 %v17977_v31, %v17975_v26 }
 0x7ce   : > { %v8526_v50 = vld [vmem:[#allocation5 + $0x72] sm:$0xff] }
 0x7d0   : > { %v8447_v25 = vpop.f32.mrb[216].mxu0 }
 0x7d1   : > { %8469 = vst.msk [vmem:[#allocation5 + $0x80] sm:$0xff] %vm558_vm4, %v8447_v25  ;;  %v12991_v19 = vpop.f32.mrb[217].mxu0 }
 0x7d2   : > { %v8450_v43 = vpop.f32.mrb[218].mxu0 }
 0x7d3   : > { %8470 = vst.msk [vmem:[#allocation5 + $0x88] sm:$0xff] %vm558_vm4, %v8450_v43  ;;  %v12992_v22 = vpop.f32.mrb[219].mxu0 }
 0x7d8   : > { %v8455_v23 = vpop.f32.mrb[220].mxu0  ;;  %v8527_v41 = vld [vmem:[#allocation5 + $0x7a] sm:$0xff] }
 0x7d9   : > { %8471 = vst.msk [vmem:[#allocation5 + $0x90] sm:$0xff] %vm558_vm4, %v8455_v23  ;;  %v12995_v12 = vpop.f32.mrb[221].mxu0  ;;  %v8539_v52 = vpack.c.bf16 %v8527_v41, %v8526_v50  ;;  %v17990_v10 = vld [vmem:[#allocation5 + $0x79] sm:$0xff] }
 0x7da   : > { %v8458_v28 = vpop.f32.mrb[222].mxu0  ;;  %v17992_v37 = vld [vmem:[#allocation5 + $0x81] sm:$0xff] }
 0x7db   : > { %8472 = vst.msk [vmem:[#allocation5 + $0x98] sm:$0xff] %vm558_vm4, %v8458_v28  ;;  %v12996_v17 = vpop.f32.mrb[223].mxu0  ;;  %13022 = vmatmul.mubr.msk.bf16.gmra.mrb[240].mxu0 %vm558_vm4, %v8539_v52  ;;  %v17996_v30 = vld [vmem:[#allocation5 + $0x7f] sm:$0xff]  ;;  %v17998_v39 = vld [vmem:[#allocation5 + $0x87] sm:$0xff]  ;;  %v9590_v53 = vpack.c.bf16 %v17992_v37, %v17990_v10 }
 0x7dc   : > { %v8528_v35 = vld [vmem:[#allocation5 + $0x82] sm:$0xff]  ;;  %v8890_v28 = vld [vmem:[#allocation5 + $0x2b] sm:$0xff] }
 0x7dd   : > { %v8474_v17 = vld [vmem:[#allocation5 + $0x1] sm:$0xff] }
 0x7e0   : > { %v8463_v18 = vpop.f32.mrb[224].mxu0  ;;  %v8529_v54 = vld [vmem:[#allocation5 + $0x8a] sm:$0xff] }
 0x7e1   : > { %8473 = vst.msk [vmem:[#allocation5 + $0xa0] sm:$0xff] %vm558_vm4, %v8463_v18  ;;  %v8540_v25 = vpack.c.bf16 %v8529_v54, %v8528_v35  ;;  %v12999_v19 = vpop.f32.mrb[225].mxu0  ;;  %v18005_v43 = vld [vmem:[#allocation5 + $0x89] sm:$0xff] }
 0x7e2   : > { %v18007_v22 = vld [vmem:[#allocation5 + $0x91] sm:$0xff]  ;;  %v8466_v23 = vpop.f32.mrb[226].mxu0  ;;  %v8494_v19 = vpack.c.bf16 %v17871_v24, %v8474_v17  ;;  %v14024_v17 = vld [vmem:[%s18420_s7 + $0x50] sm:$0xff]  }
 0x7e3   : > { %13025 = vmatprep.mubr.msk.bf16.mxu0 %vm558_vm4, %v8540_v25  ;;  %v13000_v50 = vpop.f32.mrb[227].mxu0  ;;  %v18010_v41 = vld [vmem:[#allocation5 + $0x8f] sm:$0xff]  ;;  %v18012_v12 = vld [vmem:[#allocation5 + $0x97] sm:$0xff]  ;;  %v9591_v52 = vpack.c.bf16 %v18007_v22, %v18005_v43  ;;  %v8495_v25 = vpack.c.bf16 %v17891_v21, %v17873_v60  ;;  %v14023_v23 = vld [vmem:[%s18420_s7 + $0x48] sm:$0xff]  }
 0x7e4   : > { %v8530_v18 = vld [vmem:[#allocation5 + $0x92] sm:$0xff]  ;;  %v8496_v50 = vpack.c.bf16 %v17915_v3, %v17893_v4  ;;  %v14040_v24 = vld [vmem:[%s18420_s7 + $0xd0] sm:$0xff]   ;;  %v9791_v3 = vld [vmem:[#allocation5 + $0x1d] sm:$0xff] }
 0x7e5   : > { %v9355_v63 = vld [vmem:[#allocation5 + $0x98] sm:$0xff]  ;;  %v14041_v60 = vld [vmem:[%s18420_s7 + $0xd8] sm:$0xff]  }
 0x7e6   : > { %v9790_v21 = vld [vmem:[#allocation5 + $0x15] sm:$0xff] }
 0x7e8   : > { %v8531_v35 = vld [vmem:[#allocation5 + $0x9a] sm:$0xff] }
 0x7e9   : > { %v8541_v54 = vpack.c.bf16 %v8531_v35, %v8530_v18  ;;  %v8497_v18 = vpack.c.bf16 %v17930_v56, %v17917_v32  ;;  %v14025_v35 = vld [vmem:[%s18420_s7 + $0x58] sm:$0xff]   ;;  %v8904_v11 = vld [vmem:[#allocation5 + $0x9b] sm:$0xff]  ;;  %v9792_v32 = vld [vmem:[#allocation5 + $0x25] sm:$0xff] }
 0x7ea   : > { %v9356_v13 = vld [vmem:[#allocation5 + $0xa0] sm:$0xff]  ;;  %v9810_v56 = vpack.c.bf16 %v9792_v32, %v9791_v3 }
 0x7eb   : > { %13026 = vmatmul.mubr.msk.bf16.gmra.mrb[244].mxu0 %vm558_vm4, %v8541_v54  ;;  %v8498_v54 = vpack.c.bf16 %v17946_v57, %v17932_v8  ;;  %v9793_v8 = vld [vmem:[#allocation5 + $0x2d] sm:$0xff]  ;;  %v10021_v3 = vld [vmem:[#allocation5 + $0x3e] sm:$0xff] }
 0x7ec   : > { %13037 = vmatprep.mubr.msk.bf16.mxu0 %vm558_vm4, %v8494_v19  ;;  %v8499_v19 = vpack.c.bf16 %v17961_v40, %v17948_v33  ;;  %v14044_v33 = vld [vmem:[%s18420_s7 + $0xf0] sm:$0xff]   ;;  %v9798_v40 = vld [vmem:[#allocation5 + $0x55] sm:$0xff] }
 0x7f3   : > { %13038 = vmatmul.mubr.msk.bf16.vlgmr.msra.gmra.mrb[228].mxu0 %vm558_vm4, %v8495_v25  ;;  %v8500_v25 = vpack.c.bf16 %v17975_v26, %v17963_v62  ;;  %v9795_v62 = vld [vmem:[#allocation5 + $0x3d] sm:$0xff]  ;;  %v9797_v26 = vld [vmem:[#allocation5 + $0x4d] sm:$0xff] }
 0x7f4   : > { %13041 = vmatprep.mubr.msk.bf16.mxu0 %vm558_vm4, %v8496_v50  ;;  %13058 = vmatpush3.bf16.msra.mxu0 %v17909_v45  ;;  %v14026_v45 = vld [vmem:[%s18420_s7 + $0x60] sm:$0xff]   ;;  %v8502_v50 = vpack.c.bf16 %v18005_v43, %v17992_v37  ;;  %v9800_v37 = vld [vmem:[#allocation5 + $0x65] sm:$0xff] }
 0x7f5   : > { %13059 = vmatprep.subr.bf16.mxu0 %v14023_v23  ;;  %v9799_v43 = vld [vmem:[#allocation5 + $0x5d] sm:$0xff] }
 0x7f8   : > { %13060 = vmatpush3.bf16.msra.mxu0 %v14023_v23  ;;  %v8501_v23 = vpack.c.bf16 %v17990_v10, %v17977_v31  ;;  %v14045_v31 = vld [vmem:[%s18420_s7 + $0xf8] sm:$0xff]   ;;  %v14046_v10 = vld [vmem:[%s18420_s7 + $0x100] sm:$0xff]  }
 0x7f9   : > { %13061 = vmatprep.subr.bf16.mxu0 %v14024_v17 }
 0x7fb   : > { %13042 = vmatmul.mubr.msk.bf16.gmra.mrb[232].mxu0 %vm558_vm4, %v8497_v18  ;;  %v8885_v18 = vld [vmem:[#allocation5 + $0x3] sm:$0xff] }
 0x7fc   : > { %13045 = vmatprep.mubr.msk.bf16.mxu0 %vm558_vm4, %v8498_v54  ;;  %13062 = vmatpush3.bf16.msra.mxu0 %v14024_v17  ;;  %v18058_v17 = vld [vmem:[#allocation5 + $0x99] sm:$0xff] }
 0x7fd   : > { %13063 = vmatprep.subr.bf16.mxu0 %v14025_v35  ;;  %v8503_v54 = vpack.c.bf16 %v18058_v17, %v18007_v22  ;;  %v9814_v22 = vpack.c.bf16 %v9800_v37, %v9799_v43  ;;  %v10034_v43 = vld [vmem:[#allocation5 + $0xa6] sm:$0xff] }
 0x800   : > { %13064 = vmatpush3.bf16.msra.mxu0 %v14025_v35  ;;  %v8886_v35 = vld [vmem:[#allocation5 + $0xb] sm:$0xff] }
 0x801   : > { %13085 = vmatprep.subr.bf16.mxu0 %v14026_v45 }
 0x803   : > { %13046 = vmatmul.mubr.msk.bf16.gmra.mrb[236].mxu0 %vm558_vm4, %v8499_v19  ;;  %v8905_v19 = vpack.c.bf16 %v8886_v35, %v8885_v18  ;;  %v14028_v18 = vld [vmem:[%s18420_s7 + $0x70] sm:$0xff]   ;;  %v8892_v35 = vld [vmem:[#allocation5 + $0x3b] sm:$0xff] }
 0x804   : > { %13049 = vmatprep.mubr.msk.bf16.mxu0 %vm558_vm4, %v8500_v25  ;;  %v8888_v25 = vld [vmem:[#allocation5 + $0x1b] sm:$0xff] }
 0x805   : > { %v8906_v49 = vpack.c.bf16 %v8888_v25, %v8887_v0  ;;  %v8893_v25 = vld [vmem:[#allocation5 + $0x43] sm:$0xff] }
 0x80b   : > { %13050 = vmatmul.mubr.msk.bf16.gmra.mrb[240].mxu0 %vm558_vm4, %v8501_v23  ;;  %v14027_v23 = vld [vmem:[%s18420_s7 + $0x68] sm:$0xff]  }
 0x80c   : > { %13053 = vmatprep.mubr.msk.bf16.mxu0 %vm558_vm4, %v8502_v50  ;;  %v8907_v50 = vpack.c.bf16 %v8890_v28, %v8889_v9  ;;  %v14029_v9 = vld [vmem:[%s18420_s7 + $0x78] sm:$0xff]   ;;  %v14030_v28 = vld [vmem:[%s18420_s7 + $0x80] sm:$0xff]  }
 0x813   : > { %13054 = vmatmul.mubr.msk.bf16.gmra.mrb[244].mxu0 %vm558_vm4, %v8503_v54  ;;  %v8894_v54 = vld [vmem:[#allocation5 + $0x4b] sm:$0xff] }
 0x814   : > { %13065 = vmatprep.mubr.msk.bf16.mxu0 %vm558_vm4, %v8905_v19  ;;  %v8891_v19 = vld [vmem:[#allocation5 + $0x33] sm:$0xff] }
 0x815   : > { %v8908_v0 = vpack.c.bf16 %v8892_v35, %v8891_v19  ;;  %v8897_v19 = vld [vmem:[#allocation5 + $0x63] sm:$0xff] }
 0x81b   : > { %13066 = vmatmul.mubr.msk.bf16.vlgmr.msra.gmra.mrb[228].mxu0 %vm558_vm4, %v8906_v49  ;;  %v8909_v49 = vpack.c.bf16 %v8894_v54, %v8893_v25  ;;  %v8900_v54 = vld [vmem:[#allocation5 + $0x7b] sm:$0xff] }
 0x81c   : > { %13069 = vmatprep.mubr.msk.bf16.mxu0 %vm558_vm4, %v8907_v50  ;;  %13086 = vmatpush3.bf16.msra.mxu0 %v14026_v45  ;;  %v8896_v45 = vld [vmem:[#allocation5 + $0x5b] sm:$0xff]  ;;  %v8895_v50 = vld [vmem:[#allocation5 + $0x53] sm:$0xff] }
 0x81d   : > { %13087 = vmatprep.subr.bf16.mxu0 %v14027_v23  ;;  %v8910_v35 = vpack.c.bf16 %v8896_v45, %v8895_v50  ;;  %v8903_v45 = vld [vmem:[#allocation5 + $0x93] sm:$0xff] }
 0x81e   : > { %v8914_v50 = vpack.c.bf16 %v8904_v11, %v8903_v45  ;;  %v14032_v11 = vld [vmem:[%s18420_s7 + $0x90] sm:$0xff]   ;;  %v18123_v45 = vld [vmem:[#allocation5 + $0x9f] sm:$0xff] }
 0x820   : > { %13088 = vmatpush3.bf16.msra.mxu0 %v14027_v23  ;;  %v8898_v23 = vld [vmem:[#allocation5 + $0x6b] sm:$0xff] }
 0x821   : > { %13089 = vmatprep.subr.bf16.mxu0 %v14028_v18  ;;  %v8911_v47 = vpack.c.bf16 %v8898_v23, %v8897_v19  ;;  %v9134_v19 = vpack.c.bf16 %v17935_v59, %v17923_v6 }
 0x823   : > { %13070 = vmatmul.mubr.msk.bf16.gmra.mrb[232].mxu0 %vm558_vm4, %v8908_v0  ;;  %v8902_v0 = vld [vmem:[#allocation5 + $0x8b] sm:$0xff] }
 0x824   : > { %13073 = vmatprep.mubr.msk.bf16.mxu0 %vm558_vm4, %v8909_v49  ;;  %13090 = vmatpush3.bf16.msra.mxu0 %v14028_v18  ;;  %v8899_v18 = vld [vmem:[#allocation5 + $0x73] sm:$0xff]  ;;  %v8901_v49 = vld [vmem:[#allocation5 + $0x83] sm:$0xff] }
 0x825   : > { %13091 = vmatprep.subr.bf16.mxu0 %v14029_v9  ;;  %v8912_v25 = vpack.c.bf16 %v8900_v54, %v8899_v18  ;;  %v8913_v15 = vpack.c.bf16 %v8902_v0, %v8901_v49  ;;  %v14033_v54 = vld [vmem:[%s18420_s7 + $0x98] sm:$0xff]   ;;  %v9135_v0 = vpack.c.bf16 %v17951_v58, %v17937_v14  ;;  %v9136_v18 = vpack.c.bf16 %v17966_v55, %v17953_v42 }
 0x826   : > { %v9138_v49 = vpack.c.bf16 %v17996_v30, %v17981_v34 }
 0x828   : > { %13092 = vmatpush3.bf16.msra.mxu0 %v14029_v9  ;;  %v9111_v9 = vld [vmem:[#allocation5 + $0x7] sm:$0xff] }
 0x829   : > { %13113 = vmatprep.subr.bf16.mxu0 %v14030_v28  ;;  %v9131_v23 = vpack.c.bf16 %v17876_v5, %v9111_v9  ;;  %v9139_v9 = vpack.c.bf16 %v18010_v41, %v17998_v39 }
 0x82b   : > { %13074 = vmatmul.mubr.msk.bf16.gmra.mrb[236].mxu0 %vm558_vm4, %v8910_v35  ;;  %v14031_v35 = vld [vmem:[%s18420_s7 + $0x88] sm:$0xff]  }
 0x82c   : > { %13077 = vmatprep.mubr.msk.bf16.mxu0 %vm558_vm4, %v8911_v47  ;;  %v9132_v47 = vpack.c.bf16 %v17895_v48, %v17878_v2 }
 0x833   : > { %13078 = vmatmul.mubr.msk.bf16.gmra.mrb[240].mxu0 %vm558_vm4, %v8912_v25  ;;  %v9137_v25 = vpack.c.bf16 %v17979_v38, %v17968_v36 }
 0x834   : > { %13081 = vmatprep.mubr.msk.bf16.mxu0 %vm558_vm4, %v8913_v15  ;;  %v9133_v15 = vpack.c.bf16 %v17921_v29, %v17897_v20 }
 0x83b   : > { %13082 = vmatmul.mubr.msk.bf16.gmra.mrb[244].mxu0 %vm558_vm4, %v8914_v50  ;;  %v9337_v50 = vld [vmem:[#allocation5 + $0x8] sm:$0xff] }
 0x83c   : > { %13093 = vmatprep.mubr.msk.bf16.mxu0 %vm558_vm4, %v9131_v23  ;;  %v9338_v23 = vld [vmem:[#allocation5 + $0x10] sm:$0xff] }
 0x843   : > { %13094 = vmatmul.mubr.msk.bf16.vlgmr.msra.gmra.mrb[228].mxu0 %vm558_vm4, %v9132_v47  ;;  %v9140_v47 = vpack.c.bf16 %v18123_v45, %v18012_v12 }
 0x844   : > { %13097 = vmatprep.mubr.msk.bf16.mxu0 %vm558_vm4, %v9133_v15  ;;  %13114 = vmatpush3.bf16.msra.mxu0 %v14030_v28  ;;  %v14034_v28 = vld [vmem:[%s18420_s7 + $0xa0] sm:$0xff]  }
 0x845   : > { %13115 = vmatprep.subr.bf16.mxu0 %v14031_v35  ;;  %v9339_v15 = vld [vmem:[#allocation5 + $0x18] sm:$0xff] }
 0x848   : > { %13116 = vmatpush3.bf16.msra.mxu0 %v14031_v35  ;;  %v9357_v35 = vpack.c.bf16 %v9338_v23, %v9337_v50  ;;  %v9346_v50 = vld [vmem:[#allocation5 + $0x50] sm:$0xff]  ;;  %v9343_v23 = vld [vmem:[#allocation5 + $0x38] sm:$0xff] }
 0x849   : > { %13117 = vmatprep.subr.bf16.mxu0 %v14032_v11 }
 0x84b   : > { %13098 = vmatmul.mubr.msk.bf16.gmra.mrb[232].mxu0 %vm558_vm4, %v9134_v19  ;;  %v9342_v19 = vld [vmem:[#allocation5 + $0x30] sm:$0xff] }
 0x84c   : > { %13101 = vmatprep.mubr.msk.bf16.mxu0 %vm558_vm4, %v9135_v0  ;;  %13118 = vmatpush3.bf16.msra.mxu0 %v14032_v11  ;;  %v9340_v11 = vld [vmem:[#allocation5 + $0x20] sm:$0xff]  ;;  %v9341_v0 = vld [vmem:[#allocation5 + $0x28] sm:$0xff] }
 0x84d   : > { %13119 = vmatprep.subr.bf16.mxu0 %v14033_v54 }
 0x850   : > { %13120 = vmatpush3.bf16.msra.mxu0 %v14033_v54  ;;  %v9358_v54 = vpack.c.bf16 %v9340_v11, %v9339_v15  ;;  %v14037_v15 = vld [vmem:[%s18420_s7 + $0xb8] sm:$0xff]  }
 0x851   : > { %13141 = vmatprep.subr.bf16.mxu0 %v14034_v28 }
 0x853   : > { %13102 = vmatmul.mubr.msk.bf16.gmra.mrb[236].mxu0 %vm558_vm4, %v9136_v18  ;;  %v14035_v18 = vld [vmem:[%s18420_s7 + $0xa8] sm:$0xff]  }
 0x854   : > { %13105 = vmatprep.mubr.msk.bf16.mxu0 %vm558_vm4, %v9137_v25  ;;  %v9359_v25 = vpack.c.bf16 %v9342_v19, %v9341_v0  ;;  %v9347_v19 = vld [vmem:[#allocation5 + $0x58] sm:$0xff]  ;;  %v9349_v0 = vld [vmem:[#allocation5 + $0x68] sm:$0xff] }
 0x85b   : > { %13106 = vmatmul.mubr.msk.bf16.gmra.mrb[240].mxu0 %vm558_vm4, %v9138_v49  ;;  %v14036_v49 = vld [vmem:[%s18420_s7 + $0xb0] sm:$0xff]  }
 0x85c   : > { %13109 = vmatprep.mubr.msk.bf16.mxu0 %vm558_vm4, %v9139_v9  ;;  %v9344_v9 = vld [vmem:[#allocation5 + $0x40] sm:$0xff] }
 0x863   : > { %13110 = vmatmul.mubr.msk.bf16.gmra.mrb[244].mxu0 %vm558_vm4, %v9140_v47  ;;  %v9360_v47 = vpack.c.bf16 %v9344_v9, %v9343_v23  ;;  %v9354_v23 = vld [vmem:[#allocation5 + $0x90] sm:$0xff] }
 0x864   : > { %13121 = vmatprep.mubr.msk.bf16.mxu0 %vm558_vm4, %v9357_v35  ;;  %v9345_v35 = vld [vmem:[#allocation5 + $0x48] sm:$0xff] }
 0x865   : > { %v9361_v11 = vpack.c.bf16 %v9346_v50, %v9345_v35  ;;  %v9352_v50 = vld [vmem:[#allocation5 + $0x80] sm:$0xff]  ;;  %v9353_v35 = vld [vmem:[#allocation5 + $0x88] sm:$0xff] }
 0x86b   : > { %13122 = vmatmul.mubr.msk.bf16.vlgmr.msra.gmra.mrb[228].mxu0 %vm558_vm4, %v9358_v54  ;;  %v9348_v54 = vld [vmem:[#allocation5 + $0x60] sm:$0xff] }
 0x86c   : > { %13125 = vmatprep.mubr.msk.bf16.mxu0 %vm558_vm4, %v9359_v25  ;;  %13142 = vmatpush3.bf16.msra.mxu0 %v14034_v28  ;;  %v14038_v28 = vld [vmem:[%s18420_s7 + $0xc0] sm:$0xff]   ;;  %v9362_v25 = vpack.c.bf16 %v9348_v54, %v9347_v19  ;;  %v14039_v19 = vld [vmem:[%s18420_s7 + $0xc8] sm:$0xff]  }
 0x86d   : > { %13143 = vmatprep.subr.bf16.mxu0 %v14035_v18  ;;  %v9806_v54 = vld [vmem:[#allocation5 + $0x95] sm:$0xff] }
 0x870   : > { %13144 = vmatpush3.bf16.msra.mxu0 %v14035_v18  ;;  %v9350_v18 = vld [vmem:[#allocation5 + $0x70] sm:$0xff] }
 0x871   : > { %13145 = vmatprep.subr.bf16.mxu0 %v14036_v49  ;;  %v9363_v9 = vpack.c.bf16 %v9350_v18, %v9349_v0  ;;  %v9803_v0 = vld [vmem:[#allocation5 + $0x7d] sm:$0xff] }
 0x873   : > { %13126 = vmatmul.mubr.msk.bf16.gmra.mrb[232].mxu0 %vm558_vm4, %v9360_v47 }
 0x874   : > { %13129 = vmatprep.mubr.msk.bf16.mxu0 %vm558_vm4, %v9361_v11  ;;  %13146 = vmatpush3.bf16.msra.mxu0 %v14036_v49  ;;  %v9351_v49 = vld [vmem:[#allocation5 + $0x78] sm:$0xff]  ;;  %v9365_v11 = vpack.c.bf16 %v9354_v23, %v9353_v35  ;;  %v9808_v23 = vld [vmem:[#allocation5 + $0xa5] sm:$0xff]  ;;  %v10015_v35 = vld [vmem:[#allocation5 + $0xe] sm:$0xff] }
 0x875   : > { %13147 = vmatprep.subr.bf16.mxu0 %v14037_v15  ;;  %v9364_v47 = vpack.c.bf16 %v9352_v50, %v9351_v49  ;;  %v9807_v50 = vld [vmem:[#allocation5 + $0x9d] sm:$0xff] }
 0x876   : > { %v10016_v49 = vld [vmem:[#allocation5 + $0x16] sm:$0xff] }
 0x878   : > { %13148 = vmatpush3.bf16.msra.mxu0 %v14037_v15  ;;  %v9366_v15 = vpack.c.bf16 %v9356_v13, %v9355_v63  ;;  %v9582_v63 = vld [vmem:[#allocation5 + $0xa1] sm:$0xff] }
 0x879   : > { %13169 = vmatprep.subr.bf16.mxu0 %v14038_v28  ;;  %v9592_v4 = vpack.c.bf16 %v9582_v63, %v18058_v17  ;;  %v14047_v63 = vld [vmem:[%s18420_s7 + $0x108] sm:$0xff]  }
 0x87b   : > { %13130 = vmatmul.mubr.msk.bf16.gmra.mrb[236].mxu0 %vm558_vm4, %v9362_v25  ;;  %v9805_v25 = vld [vmem:[#allocation5 + $0x8d] sm:$0xff] }
 0x87c   : > { %13133 = vmatprep.mubr.msk.bf16.mxu0 %vm558_vm4, %v9363_v9  ;;  %v9817_v9 = vpack.c.bf16 %v9806_v54, %v9805_v25  ;;  %v18755_v54 = vpack.c.bf16 %v17937_v14, %v17935_v59  ;;  %v14128_v14 = vmov 0.0|0.0  }
 0x883   : > { %13134 = vmatmul.mubr.msk.bf16.gmra.mrb[240].mxu0 %vm558_vm4, %v9364_v47  ;;  %v9818_v47 = vpack.c.bf16 %v9808_v23, %v9807_v50 }
 0x884   : > { %13137 = vmatprep.mubr.msk.bf16.mxu0 %vm558_vm4, %v9365_v11  ;;  %v10035_v11 = vpack.c.bf16 %v10016_v49, %v10015_v35 }
 0x88b   : > { %13138 = vmatmul.mubr.msk.bf16.gmra.mrb[244].mxu0 %vm558_vm4, %v9366_v15  ;;  %v10017_v15 = vld [vmem:[#allocation5 + $0x1e] sm:$0xff] }
 0x88c   : > { %13149 = vmatprep.mubr.msk.bf16.mxu0 %vm558_vm4, %v9583_v61  ;;  %v14042_v61 = vld [vmem:[%s18420_s7 + $0xe0] sm:$0xff]  }
 0x893   : > { %13150 = vmatmul.mubr.msk.bf16.vlgmr.msra.gmra.mrb[228].mxu0 %vm558_vm4, %v9584_v44  ;;  %v9789_v44 = vld [vmem:[#allocation5 + $0xd] sm:$0xff] }
 0x894   : > { %13153 = vmatprep.mubr.msk.bf16.mxu0 %vm558_vm4, %v9585_v27  ;;  %13170 = vmatpush3.bf16.msra.mxu0 %v14038_v28  ;;  %v9809_v13 = vpack.c.bf16 %v9790_v21, %v9789_v44  ;;  %v9794_v27 = vld [vmem:[#allocation5 + $0x35] sm:$0xff]  ;;  %v9804_v28 = vld [vmem:[#allocation5 + $0x85] sm:$0xff] }
 0x895   : > { %13171 = vmatprep.subr.bf16.mxu0 %v14039_v19  ;;  %v9811_v57 = vpack.c.bf16 %v9794_v27, %v9793_v8  ;;  %v9816_v18 = vpack.c.bf16 %v9804_v28, %v9803_v0  ;;  %v10022_v44 = vld [vmem:[#allocation5 + $0x46] sm:$0xff]  ;;  %v10023_v27 = vld [vmem:[#allocation5 + $0x4e] sm:$0xff]  ;;  %v18754_v28 = vpack.c.bf16 %v17923_v6, %v17921_v29  ;;  %v18760_v29 = vpack.c.bf16 %v18012_v12, %v18010_v41 }
 0x896   : > { %v10038_v32 = vpack.c.bf16 %v10022_v44, %v10021_v3  ;;  %v10260_v6 = vld [vmem:[#allocation5 + $0xa7] sm:$0xff] }
 0x897   : > { %v10270_v59 = vpack.c.bf16 %v10260_v6, %v18123_v45 }
 0x898   : > { %13172 = vmatpush3.bf16.msra.mxu0 %v14039_v19  ;;  %v10018_v19 = vld [vmem:[#allocation5 + $0x26] sm:$0xff] }
 0x899   : > { %13173 = vmatprep.subr.bf16.mxu0 %v14040_v24 }
 0x89b   : > { %13154 = vmatmul.mubr.msk.bf16.gmra.mrb[232].mxu0 %vm558_vm4, %v9586_v7  ;;  %v14043_v7 = vld [vmem:[%s18420_s7 + $0xe8] sm:$0xff]  }
 0x89c   : > { %13157 = vmatprep.mubr.msk.bf16.mxu0 %vm558_vm4, %v9587_v51  ;;  %13174 = vmatpush3.bf16.msra.mxu0 %v14040_v24  ;;  %v9796_v51 = vld [vmem:[#allocation5 + $0x45] sm:$0xff]  ;;  %v10020_v24 = vld [vmem:[#allocation5 + $0x36] sm:$0xff] }
 0x89d   : > { %13175 = vmatprep.subr.bf16.mxu0 %v14041_v60 }
 0x8a0   : > { %13176 = vmatpush3.bf16.msra.mxu0 %v14041_v60  ;;  %v10036_v60 = vpack.c.bf16 %v10018_v19, %v10017_v15 }
 0x8a1   : > { %13197 = vmatprep.subr.bf16.mxu0 %v14042_v61 }
 0x8a3   : > { %13158 = vmatmul.mubr.msk.bf16.gmra.mrb[236].mxu0 %vm558_vm4, %v9588_v46  ;;  %v9812_v46 = vpack.c.bf16 %v9796_v51, %v9795_v62 }
 0x8a4   : > { %13161 = vmatprep.mubr.msk.bf16.mxu0 %vm558_vm4, %v9589_v1  ;;  %v9813_v1 = vpack.c.bf16 %v9798_v40, %v9797_v26  ;;  %v10027_v40 = vld [vmem:[#allocation5 + $0x6e] sm:$0xff]  ;;  %v10032_v26 = vld [vmem:[#allocation5 + $0x96] sm:$0xff] }
 0x8ab   : > { %13162 = vmatmul.mubr.msk.bf16.gmra.mrb[240].mxu0 %vm558_vm4, %v9590_v53  ;;  %v9802_v53 = vld [vmem:[#allocation5 + $0x75] sm:$0xff] }
 0x8ac   : > { %13165 = vmatprep.mubr.msk.bf16.mxu0 %vm558_vm4, %v9591_v52  ;;  %v9801_v52 = vld [vmem:[#allocation5 + $0x6d] sm:$0xff] }
 0x8ad   : > { %v9815_v17 = vpack.c.bf16 %v9802_v53, %v9801_v52  ;;  %v10033_v53 = vld [vmem:[#allocation5 + $0x9e] sm:$0xff]  ;;  %v18752_v52 = vpack.c.bf16 %v17878_v2, %v17876_v5  ;;  %v18756_v5 = vpack.c.bf16 %v17953_v42, %v17951_v58  ;;  %v18757_v2 = vpack.c.bf16 %v17968_v36, %v17966_v55  ;;  %v18287_v42 = vld [vmem:[%s18421_s8] ss:$0 sm:$0xff] }
 0x8ae   : > { %v10542_v58 = vld [vmem:[%s18425_s12 + $0x8] sm:$0xff]  ;;  %v18292_v36 = vld [vmem:[%s18422_s9] ss:$0 sm:$0xff] }
 0x8b3   : > { %13166 = vmatmul.mubr.msk.bf16.gmra.mrb[244].mxu0 %vm558_vm4, %v9592_v4  ;;  %v14048_v4 = vld [vmem:[%s18420_s7 + $0x110] sm:$0xff]  }
 0x8b4   : > { %13177 = vmatprep.mubr.msk.bf16.mxu0 %vm558_vm4, %v9809_v13  ;;  %v10024_v13 = vld [vmem:[#allocation5 + $0x56] sm:$0xff] }
 0x8b5   : > { %v10039_v8 = vpack.c.bf16 %v10024_v13, %v10023_v27 }
 0x8bb   : > { %13178 = vmatmul.mubr.msk.bf16.vlgmr.msra.gmra.mrb[228].mxu0 %vm558_vm4, %v9810_v56  ;;  %v14049_v56 = vld [vmem:[%s18420_s7 + $0x118] sm:$0xff]  }
 0x8bc   : > { %13181 = vmatprep.mubr.msk.bf16.mxu0 %vm558_vm4, %v9811_v57  ;;  %13198 = vmatpush3.bf16.msra.mxu0 %v14042_v61  ;;  %v10019_v61 = vld [vmem:[#allocation5 + $0x2e] sm:$0xff]  ;;  %v10028_v57 = vld [vmem:[#allocation5 + $0x76] sm:$0xff] }
 0x8bd   : > { %13199 = vmatprep.subr.bf16.mxu0 %v14043_v7  ;;  %v10037_v21 = vpack.c.bf16 %v10020_v24, %v10019_v61  ;;  %v10041_v62 = vpack.c.bf16 %v10028_v57, %v10027_v40 }
 0x8c0   : > { %13200 = vmatpush3.bf16.msra.mxu0 %v14043_v7  ;;  %v10026_v7 = vld [vmem:[#allocation5 + $0x66] sm:$0xff] }
 0x8c1   : > { %13201 = vmatprep.subr.bf16.mxu0 %v14044_v33 }
 0x8c3   : > { %13182 = vmatmul.mubr.msk.bf16.gmra.mrb[232].mxu0 %vm558_vm4, %v9812_v46  ;;  %v10030_v46 = vld [vmem:[#allocation5 + $0x86] sm:$0xff] }
 0x8c4   : > { %13185 = vmatprep.mubr.msk.bf16.mxu0 %vm558_vm4, %v9813_v1  ;;  %13202 = vmatpush3.bf16.msra.mxu0 %v14044_v33  ;;  %v10025_v33 = vld [vmem:[#allocation5 + $0x5e] sm:$0xff] }
 0x8c5   : > { %13203 = vmatprep.subr.bf16.mxu0 %v14045_v31  ;;  %v10040_v51 = vpack.c.bf16 %v10026_v7, %v10025_v33 }
 0x8c8   : > { %13204 = vmatpush3.bf16.msra.mxu0 %v14045_v31  ;;  %v10029_v31 = vld [vmem:[#allocation5 + $0x7e] sm:$0xff] }
 0x8c9   : > { %13225 = vmatprep.subr.bf16.mxu0 %v14046_v10  ;;  %v10042_v1 = vpack.c.bf16 %v10030_v46, %v10029_v31 }
 0x8cb   : > { %13186 = vmatmul.mubr.msk.bf16.gmra.mrb[236].mxu0 %vm558_vm4, %v9814_v22  ;;  %v10044_v22 = vpack.c.bf16 %v10034_v43, %v10033_v53 }
 0x8cc   : > { %13189 = vmatprep.mubr.msk.bf16.mxu0 %vm558_vm4, %v9815_v17  ;;  %v18753_v17 = vpack.c.bf16 %v17897_v20, %v17895_v48  ;;  %v18758_v48 = vpack.c.bf16 %v17981_v34, %v17979_v38  ;;  %v18759_v20 = vpack.c.bf16 %v17998_v39, %v17996_v30 }
 0x8d3   : > { %13190 = vmatmul.mubr.msk.bf16.gmra.mrb[240].mxu0 %vm558_vm4, %v9816_v18 }
 0x8d4   : > { %13193 = vmatprep.mubr.msk.bf16.mxu0 %vm558_vm4, %v9817_v9 }
 0x8db   : > { %13194 = vmatmul.mubr.msk.bf16.gmra.mrb[244].mxu0 %vm558_vm4, %v9818_v47 }
 0x8dc   : > { %13205 = vmatprep.mubr.msk.bf16.mxu0 %vm558_vm4, %v10035_v11 }
 0x8e3   : > { %13206 = vmatmul.mubr.msk.bf16.vlgmr.msra.gmra.mrb[228].mxu0 %vm558_vm4, %v10036_v60 }
 0x8e4   : > { %13209 = vmatprep.mubr.msk.bf16.mxu0 %vm558_vm4, %v10037_v21  ;;  %13226 = vmatpush3.bf16.msra.mxu0 %v14046_v10  ;;  %v10031_v10 = vld [vmem:[#allocation5 + $0x8e] sm:$0xff] }
 0x8e5   : > { %13227 = vmatprep.subr.bf16.mxu0 %v14047_v63  ;;  %v10043_v37 = vpack.c.bf16 %v10032_v26, %v10031_v10 }
 0x8e8   : > { %13228 = vmatpush3.bf16.msra.mxu0 %v14047_v63 }
 0x8e9   : > { %13229 = vmatprep.subr.bf16.mxu0 %v14048_v4 }
 0x8eb   : > { %13210 = vmatmul.mubr.msk.bf16.gmra.mrb[232].mxu0 %vm558_vm4, %v10038_v32 }
 0x8ec   : > { %13213 = vmatprep.mubr.msk.bf16.mxu0 %vm558_vm4, %v10039_v8  ;;  %13230 = vmatpush3.bf16.msra.mxu0 %v14048_v4 }
 0x8ed   : > { %13231 = vmatprep.subr.bf16.mxu0 %v14049_v56 }
 0x8f0   : > { %13232 = vmatpush3.bf16.msra.mxu0 %v14049_v56 }
 0x8f1   : > { %13285 = vmatprep.subr.bf16.mxu0 %v14128_v14 }
 0x8f3   : > { %13214 = vmatmul.mubr.msk.bf16.gmra.mrb[236].mxu0 %vm558_vm4, %v10040_v51 }
 0x8f4   : > { %13217 = vmatprep.mubr.msk.bf16.mxu0 %vm558_vm4, %v10041_v62 }
 0x8fb   : > { %13218 = vmatmul.mubr.msk.bf16.gmra.mrb[240].mxu0 %vm558_vm4, %v10042_v1 }
 0x8fc   : > { %13221 = vmatprep.mubr.msk.bf16.mxu0 %vm558_vm4, %v10043_v37 }
 0x903   : > { %13222 = vmatmul.mubr.msk.bf16.gmra.mrb[244].mxu0 %vm558_vm4, %v10044_v22 }
 0x904   : > { %13233 = vmatprep.mubr.msk.bf16.mxu0 %vm558_vm4, %v18752_v52 }
 0x90b   : > { %13234 = vmatmul.mubr.msk.bf16.vlgmr.msra.gmra.mrb[228].mxu0 %vm558_vm4, %v18753_v17 }
 0x90c   : > { %13237 = vmatprep.mubr.msk.bf16.mxu0 %vm558_vm4, %v18754_v28 }
 0x913   : > { %13238 = vmatmul.mubr.msk.bf16.gmra.mrb[232].mxu0 %vm558_vm4, %v18755_v54 }
 0x914   : > { %13241 = vmatprep.mubr.msk.bf16.mxu0 %vm558_vm4, %v18756_v5 }
 0x91b   : > { %13242 = vmatmul.mubr.msk.bf16.gmra.mrb[236].mxu0 %vm558_vm4, %v18757_v2 }
 0x91c   : > { %13245 = vmatprep.mubr.msk.bf16.mxu0 %vm558_vm4, %v18758_v48 }
 0x923   : > { %13246 = vmatmul.mubr.msk.bf16.gmra.mrb[240].mxu0 %vm558_vm4, %v18759_v20 }
 0x924   : > { %13249 = vmatprep.mubr.msk.bf16.mxu0 %vm558_vm4, %v18760_v29 }
 0x92b   : > { %13250 = vmatmul.mubr.msk.bf16.gmra.mrb[244].mxu0 %vm558_vm4, %v10270_v59 }
 0x92c   : > { %11513 = vmatprep.mubr.msk.f32.mxu0 %vm550_vm3, %v10542_v58 }
 0x9de   : > { %v13235_v55 = vpop.f32.mrb[228].mxu0 }
 0x9df   : > { %v10476_v38 = vmul.f32 %v13235_v55, %v18287_v42  ;;  %v10368_v34 = vpop.f32.mrb[229].mxu0 }
 0x9e0   : > { %v10474_v30 = vmul.f32 %v18287_v42, %v10368_v34  ;;  %v13236_v39 = vpop.f32.mrb[230].mxu0 }
 0x9e1   : > { %v10503_v41 = vadd.f32 %v18292_v36, %v10476_v38  ;;  %v10477_v12 = vmul.f32 %v13236_v39, %v18287_v42  ;;  %v10371_v45 = vpop.f32.mrb[231].mxu0 }
 0x9e2   : > { %v10501_v0 = vadd.f32 %v18292_v36, %v10474_v30  ;;  %v10475_v18 = vmul.f32 %v18287_v42, %v10371_v45 }
 0x9e3   : > { %v10504_v25 = vadd.f32 %v18292_v36, %v10477_v12  ;;  %v10523_v50 = vmax.f32 %v10503_v41, 0.0 }
 0x9e4   : > { %v10502_v9 = vadd.f32 %v18292_v36, %v10475_v18  ;;  %v10521_v49 = vmax.f32 %v10501_v0, 0.0 }
 0x9e5   : > { %v10524_v23 = vmax.f32 %v10504_v25, 0.0 }
 0x9e6   : > { %v10522_v47 = vmax.f32 %v10502_v9, 0.0  ;;  %v13239_v35 = vpop.f32.mrb[232].mxu0 }
 0x9e7   : > { %v13289_v11 = vpack.c.bf16 %v10524_v23, %v10523_v50  ;;  %v10480_v15 = vmul.f32 %v13239_v35, %v18287_v42  ;;  %v10384_v19 = vpop.f32.mrb[233].mxu0 }
 0x9e8   : > { %v13286_v24 = vpack.c.bf16 %v10522_v47, %v10521_v49  ;;  %v10478_v60 = vmul.f32 %v18287_v42, %v10384_v19  ;;  %v13240_v61 = vpop.f32.mrb[234].mxu0 }
 0x9e9   : > { %v10507_v63 = vadd.f32 %v18292_v36, %v10480_v15  ;;  %v10481_v21 = vmul.f32 %v13240_v61, %v18287_v42  ;;  %v10387_v4 = vpop.f32.mrb[235].mxu0 }
 0x9ea   : > { %v10505_v44 = vadd.f32 %v18292_v36, %v10478_v60  ;;  %v10479_v13 = vmul.f32 %v18287_v42, %v10387_v4  ;;  %13287 = vmatpush1.bf16.msra.mxu0 %v13286_v24 }
 0x9eb   : > { %v10508_v3 = vadd.f32 %v18292_v36, %v10481_v21  ;;  %13288 = vmatprep.subr.bf16.mxu0 %v14128_v14  ;;  %v10527_v27 = vmax.f32 %v10507_v63, 0.0 }
 0x9ec   : > { %v10506_v32 = vadd.f32 %v18292_v36, %v10479_v13  ;;  %v10525_v8 = vmax.f32 %v10505_v44, 0.0 }
 0x9ed   : > { %v10528_v56 = vmax.f32 %v10508_v3, 0.0 }
 0x9ee   : > { %v10526_v7 = vmax.f32 %v10506_v32, 0.0  ;;  %v13243_v57 = vpop.f32.mrb[236].mxu0  ;;  %13290 = vmatpush1.bf16.msra.mxu0 %v13289_v11 }
 0x9ef   : > { %v13295_v33 = vpack.c.bf16 %v10528_v56, %v10527_v27  ;;  %v10484_v51 = vmul.f32 %v13243_v57, %v18287_v42  ;;  %v10400_v40 = vpop.f32.mrb[237].mxu0  ;;  %13291 = vmatprep.subr.bf16.mxu0 %v14128_v14  ;;  %v14051_v27 = vld [vmem:[%s18426_s13 + $0x8] sm:$0xff]   ;;  %v14053_v56 = vld [vmem:[%s18426_s13 + $0x18] sm:$0xff]   ;;  %v14056_v57 = vld [vmem:[%s18426_s13 + $0x30] sm:$0xff]  }
 0x9f0   : > { %v13292_v62 = vpack.c.bf16 %v10526_v7, %v10525_v8  ;;  %v10482_v46 = vmul.f32 %v18287_v42, %v10400_v40  ;;  %v13244_v26 = vpop.f32.mrb[238].mxu0  ;;  %v14054_v8 = vld [vmem:[%s18426_s13 + $0x20] sm:$0xff]   ;;  %v14055_v7 = vld [vmem:[%s18426_s13 + $0x28] sm:$0xff]  }
 0x9f1   : > { %v10511_v31 = vadd.f32 %v18292_v36, %v10484_v51  ;;  %v10485_v1 = vmul.f32 %v13244_v26, %v18287_v42  ;;  %v10403_v10 = vpop.f32.mrb[239].mxu0  ;;  %v14058_v40 = vld [vmem:[%s18428_s15] sm:$0xff]   ;;  %v14059_v26 = vld [vmem:[%s18428_s15 + $0x8] sm:$0xff]  }
 0x9f2   : > { %v10509_v37 = vadd.f32 %v18292_v36, %v10482_v46  ;;  %v10483_v53 = vmul.f32 %v18287_v42, %v10403_v10  ;;  %13293 = vmatpush1.bf16.msra.mxu0 %v13292_v62  ;;  %v11514_v10 = vld [vmem:[%s18427_s14] ss:$0 sm:$0xff] }
 0x9f3   : > { %v10512_v43 = vadd.f32 %v18292_v36, %v10485_v1  ;;  %13294 = vmatprep.subr.bf16.mxu0 %v14128_v14  ;;  %v10531_v52 = vmax.f32 %v10511_v31, 0.0  ;;  %v14060_v31 = vld [vmem:[%s18428_s15 + $0x10] sm:$0xff]   ;;  %v14061_v1 = vld [vmem:[%s18428_s15 + $0x18] sm:$0xff]  }
 0x9f4   : > { %v10510_v22 = vadd.f32 %v18292_v36, %v10483_v53  ;;  %v10529_v28 = vmax.f32 %v10509_v37, 0.0 }
 0x9f5   : > { %v10532_v17 = vmax.f32 %v10512_v43, 0.0 }
 0x9f6   : > { %v10530_v54 = vmax.f32 %v10510_v22, 0.0  ;;  %v13247_v5 = vpop.f32.mrb[240].mxu0  ;;  %13296 = vmatpush1.bf16.msra.mxu0 %v13295_v33  ;;  %v14057_v33 = vld [vmem:[%s18426_s13 + $0x38] sm:$0xff]  }
 0x9f7   : > { %v13301_v2 = vpack.c.bf16 %v10532_v17, %v10531_v52  ;;  %v10488_v48 = vmul.f32 %v13247_v5, %v18287_v42  ;;  %v10416_v20 = vpop.f32.mrb[241].mxu0  ;;  %13297 = vmatprep.subr.bf16.mxu0 %v14128_v14 }
 0x9f8   : > { %v13298_v29 = vpack.c.bf16 %v10530_v54, %v10529_v28  ;;  %v10486_v6 = vmul.f32 %v18287_v42, %v10416_v20  ;;  %v13248_v59 = vpop.f32.mrb[242].mxu0 }
 0x9f9   : > { %v10515_v58 = vadd.f32 %v18292_v36, %v10488_v48  ;;  %v10489_v55 = vmul.f32 %v13248_v59, %v18287_v42  ;;  %v10419_v38 = vpop.f32.mrb[243].mxu0 }
 0x9fa   : > { %v10513_v34 = vadd.f32 %v18292_v36, %v10486_v6  ;;  %v10487_v30 = vmul.f32 %v18287_v42, %v10419_v38  ;;  %13299 = vmatpush1.bf16.msra.mxu0 %v13298_v29 }
 0x9fb   : > { %v10516_v39 = vadd.f32 %v18292_v36, %v10489_v55  ;;  %13300 = vmatprep.subr.bf16.mxu0 %v14128_v14  ;;  %v10535_v12 = vmax.f32 %v10515_v58, 0.0 }
 0x9fc   : > { %v10514_v41 = vadd.f32 %v18292_v36, %v10487_v30  ;;  %v10533_v0 = vmax.f32 %v10513_v34, 0.0 }
 0x9fd   : > { %v10536_v45 = vmax.f32 %v10516_v39, 0.0 }
 0x9fe   : > { %v10534_v18 = vmax.f32 %v10514_v41, 0.0  ;;  %v13251_v25 = vpop.f32.mrb[244].mxu0  ;;  %13302 = vmatpush1.bf16.msra.mxu0 %v13301_v2 }
 0x9ff   : > { %v13307_v9 = vpack.c.bf16 %v10536_v45, %v10535_v12  ;;  %v10492_v50 = vmul.f32 %v13251_v25, %v18287_v42  ;;  %v10432_v23 = vpop.f32.mrb[245].mxu0  ;;  %13303 = vmatprep.subr.bf16.mxu0 %v14128_v14 }
 0xa00   : > { %v13304_v49 = vpack.c.bf16 %v10534_v18, %v10533_v0  ;;  %v10490_v47 = vmul.f32 %v18287_v42, %v10432_v23  ;;  %v13252_v35 = vpop.f32.mrb[246].mxu0 }
 0xa01   : > { %v10519_v11 = vadd.f32 %v18292_v36, %v10492_v50  ;;  %v10493_v15 = vmul.f32 %v13252_v35, %v18287_v42  ;;  %v10435_v19 = vpop.f32.mrb[247].mxu0 }
 0xa02   : > { %v10517_v24 = vadd.f32 %v18292_v36, %v10490_v47  ;;  %v10491_v60 = vmul.f32 %v18287_v42, %v10435_v19  ;;  %13305 = vmatpush1.bf16.msra.mxu0 %v13304_v49  ;;  %v10541_v42 = vld [vmem:[%s18425_s12] sm:$0xff] }
 0xa03   : > { %v10520_v61 = vadd.f32 %v18292_v36, %v10493_v15  ;;  %13306 = vmatprep.subr.bf16.mxu0 %v14128_v14  ;;  %v10539_v21 = vmax.f32 %v10519_v11, 0.0 }
 0xa04   : > { %v10518_v63 = vadd.f32 %v18292_v36, %v10491_v60  ;;  %v10537_v44 = vmax.f32 %v10517_v24, 0.0  ;;  %v14050_v36 = vld [vmem:[%s18426_s13] sm:$0xff]  }
 0xa05   : > { %v10540_v4 = vmax.f32 %v10520_v61, 0.0 }
 0xa06   : > { %v10538_v13 = vmax.f32 %v10518_v63, 0.0  ;;  %13308 = vmatpush1.bf16.msra.mxu0 %v13307_v9 }
 0xa07   : > { %v13313_v3 = vpack.c.bf16 %v10540_v4, %v10539_v21  ;;  %13309 = vmatprep.subr.bf16.mxu0 %v14128_v14 }
 0xa08   : > { %v13310_v32 = vpack.c.bf16 %v10538_v13, %v10537_v44 }
 0xa0a   : > { %13311 = vmatpush1.bf16.msra.mxu0 %v13310_v32 }
 0xa0b   : > { %13312 = vmatprep.subr.bf16.mxu0 %v14128_v14  ;;  %v14052_v14 = vld [vmem:[%s18426_s13 + $0x10] sm:$0xff]  }
 0xa0e   : > { %13314 = vmatpush1.bf16.msra.mxu0 %v13313_v3 }
 0xa0f   : > { %13253 = vmatprep.subr.bf16.mxu0 %v18733_v16 }
 0xa11   : > { %10611 = vmatmul.mubr.f32.vlgmr.msra.gmra.mrb[248].mxu0 %v10541_v42 }
 0xa12   : > { %13254 = vmatpush3.bf16.msra.mxu0 %v14050_v36  ;;  %13269 = vmatprep.mubr.msk.bf16.mxu0 %vm14127_vm5, %v18733_v16 }
 0xa13   : > { %13255 = vmatprep.subr.bf16.mxu0 %v18733_v16 }
 0xa16   : > { %13256 = vmatpush3.bf16.msra.mxu0 %v14051_v27 }
 0xa17   : > { %13257 = vmatprep.subr.bf16.mxu0 %v18733_v16 }
 0xa1a   : > { %13258 = vmatpush3.bf16.msra.mxu0 %v14052_v14 }
 0xa1b   : > { %13259 = vmatprep.subr.bf16.mxu0 %v18733_v16 }
 0xa1e   : > { %13260 = vmatpush3.bf16.msra.mxu0 %v14053_v56 }
 0xa1f   : > { %13261 = vmatprep.subr.bf16.mxu0 %v18733_v16 }
 0xa22   : > { %13262 = vmatpush3.bf16.msra.mxu0 %v14054_v8 }
 0xa23   : > { %13263 = vmatprep.subr.bf16.mxu0 %v18733_v16 }
 0xa26   : > { %13264 = vmatpush3.bf16.msra.mxu0 %v14055_v7 }
 0xa27   : > { %13265 = vmatprep.subr.bf16.mxu0 %v18733_v16 }
 0xa2a   : > { %13266 = vmatpush3.bf16.msra.mxu0 %v14056_v57 }
 0xa2b   : > { %13267 = vmatprep.subr.bf16.mxu0 %v18733_v16 }
 0xa2e   : > { %13268 = vmatpush3.bf16.msra.mxu0 %v14057_v33 }
 0xa2f   : > { %13273 = vmatprep.subr.bf16.mxu0 %v18733_v16 }
 0xae4   : > { %v10612_v51 = vpop.f32.mrb[248].mxu0 }
 0xae5   : > { %v10616_v62 = vpack.c.bf16 %v10612_v51, %v10612_v51  ;;  %v10614_v46 = vpop.f32.mrb[249].mxu0 }
 0xae7   : > { %13270 = vmatmul.mubr.bf16.vlgmr.msra.gmra.mrb[252].mxu0 %v10616_v62 }
 0xae8   : > { %13274 = vmatpush3.bf16.msra.mxu0 %v14058_v40  ;;  %13281 = vmatprep.mubr.msk.bf16.mxu0 %vm14127_vm5, %v18733_v16 }
 0xae9   : > { %13275 = vmatprep.subr.bf16.mxu0 %v18733_v16 }
 0xaec   : > { %13276 = vmatpush3.bf16.msra.mxu0 %v14059_v26 }
 0xaed   : > { %13277 = vmatprep.subr.bf16.mxu0 %v18733_v16 }
 0xaf0   : > { %13278 = vmatpush3.bf16.msra.mxu0 %v14060_v31 }
 0xaf1   : > { %13279 = vmatprep.subr.bf16.mxu0 %v18733_v16  ;;  %v11523_v16 = vld [vmem:[%s18429_s16] ss:$0 sm:$0xff] }
 0xaf4   : > { %13280 = vmatpush3.bf16.msra.mxu0 %v14061_v1 }
 0xbba   : > { %v10722_v37 = vpop.f32.mrb[252].mxu0 }
 0xbbb   : > { %v10723_v53 = vadd.f32 %v11514_v10, %v10722_v37  ;;  %v13271_v43 = vpop.f32.mrb[253].mxu0 }
 0xbbc   : > { %v10725_v22 = vpop.f32.mrb[254].mxu0 }
 0xbbd   : > { %v10728_v52 = vmax.f32 %v10723_v53, 0.0  ;;  %v13272_v17 = vpop.f32.mrb[255].mxu0 }
 0xbbf   : > { %v10729_v28 = vpack.c.bf16 %v10728_v52, %v10728_v52 }
 0xbc1   : > { %13282 = vmatmul.mubr.msk.bf16.vlgmr.msra.gmra.mrb[0].mxu0 %vm558_vm4, %v10729_v28 }
 0xc94   : > { %v10806_v54 = vpop.f32.mrb[0].mxu0 }
 0xc95   : > { %v10807_v5 = vadd.f32 %v11523_v16, %v10806_v54  ;;  %v13283_v2 = vpop.f32.mrb[1].mxu0 }
 0xc96   : > { %v10809_v48 = vpop.f32.mrb[2].mxu0 }
 0xc97   : > { %10812 = vst [vmem:[%s548_s1] sm:$0xff] %v10807_v5  ;;  %v13284_v20 = vpop.f32.mrb[3].mxu0 }
 0xc98 PF: > { %s27_s24 = sadd.s32 1, %s14123_s24  }
 0xc99   : > { %p24_p5 = scmp.ge.s32.totalorder %s27_s24, 4  }
 0xc9b   :  { %26 = sbr.rel (!%p24_p5) target bundleno = 3 (0x3), region = 134 }

</bundles_post_ra>
